<compile_context>
chip_gen: v6e
topology: v6e:2x2x1
jax: 0.10.0
libtpu: 0.0.40
codegen_flags: <defaults>
</compile_context>

<pallas_src>
import functools

import jax
import jax.numpy as jnp
from jax.experimental import pallas as pl
from jax.experimental.pallas import tpu as pltpu


def mixer_kernel(x_ref, wqkv_ref, dwp_ref, cwp_ref, out_ref, *, H, W):
    HW = H * W
    C = out_ref.shape[-1]
    f32 = jnp.float32

    # ---- fused qkv 1x1 conv: single bf16 MXU matmul, f32 accumulation ------
    qkv = jnp.dot(x_ref[0], wqkv_ref[...], preferred_element_type=f32)  # (HW,3C)
    q = qkv[:, :C]
    k = qkv[:, C:2 * C]
    v = qkv[:, 2 * C:]

    # ---- edge masks built in-kernel (no mask inputs) ------------------------
    # Row/col are recovered from the flat pixel index with f32 math (exact at
    # these magnitudes); the +0.5 keeps the scaled index strictly inside its
    # integer cell before floor, so no integer div/mod is needed.
    idx = jax.lax.broadcasted_iota(jnp.int32, (HW, 1), 0)
    idxf = idx.astype(f32)
    rowf = jnp.floor((idxf + 0.5) * (1.0 / W))
    colf = idxf - rowf * W
    m_top = jnp.where(idx >= W, 1.0, 0.0)              # source row y-1 valid
    m_bot = jnp.where(idx < (H - 1) * W, 1.0, 0.0)     # source row y+1 valid
    m_left = jnp.where(colf >= 0.5, 1.0, 0.0)          # source col x-1 valid
    m_right = jnp.where(colf <= W - 1.5, 1.0, 0.0)     # source col x+1 valid
    # NOTE: correctness of the roll+mask scheme relies on m_left/m_right being
    # column-only (invariant under the +/-W row rolls) and m_top/m_bot row-only.

    dwp = dwp_ref[...]        # (42, C) packed: q(10) k(10) dwc(10) proj(10) w1(2)
    cwp = cwp_ref[...]        # (2C, C) packed: [cw_q ; cw_k]

    def dw3x3(t, base):
        """Depthwise 3x3 (stride 1, zero pad 1) on the flattened (HW, C) view.

        Neighbours come from sublane rotations (pltpu.roll, XLU slot) with the
        {0,1} edge masks reproducing zero padding.  x-taps are grouped per
        source row so only 4 rolls are needed; each row's partial sum is folded
        into `acc` immediately to keep the live f32 temporary set small.
        BN scale/bias are already folded into the weights/bias rows.
        """
        left = pltpu.roll(t, 1, 0) * m_left            # t[y, x-1]
        right = pltpu.roll(t, HW - 1, 0) * m_right     # t[y, x+1]
        # centre source row + (folded) bias
        acc = (left * dwp[base + 3] + t * dwp[base + 4] + right * dwp[base + 5]
               + dwp[base + 9])
        # contribution of source row y-1 (shift down by one row)
        u0 = left * dwp[base + 0] + t * dwp[base + 1] + right * dwp[base + 2]
        acc = acc + pltpu.roll(u0, W, 0) * m_top
        # contribution of source row y+1 (shift up by one row)
        u2 = left * dwp[base + 6] + t * dwp[base + 7] + right * dwp[base + 8]
        acc = acc + pltpu.roll(u2, HW - W, 0) * m_bot
        return acc

    def spatial_gate(t, base, w1_row):
        # dwconv3x3 (BN folded) -> ReLU -> 1x1 conv (C -> 1) -> sigmoid gate.
        y = jnp.maximum(dw3x3(t, base), 0.0)
        # TODO(synk): review suggests moving this cross-lane reduce onto the
        # idle MXU (jnp.dot(y, w1.T)); kept on the XLU pending a bundle-dump
        # check that the XLU is actually the binding slot.
        attn = jnp.sum(y * w1_row, axis=-1, keepdims=True)     # (HW, 1)
        return t * jax.nn.sigmoid(attn)

    def channel_gate(t, cw):
        # global avg pool -> 1x1 conv (C -> C, no bias) -> sigmoid gate.
        pooled = jnp.mean(t, axis=0, keepdims=True)             # (1, C)
        gate = jax.nn.sigmoid(jnp.dot(pooled, cw, preferred_element_type=f32))
        return t * gate

    q = channel_gate(spatial_gate(q, 0, dwp[40]), cwp[:C])
    k = channel_gate(spatial_gate(k, 10, dwp[41]), cwp[C:])

    h = dw3x3(q + k, 20)                    # dwc(q + k)
    out = dw3x3(h * v, 30)                  # proj(dwc(q + k) * v)
    # proj_drop has p = 0.0 -> identity.
    out_ref[0] = out.astype(out_ref.dtype)


def prepare_params(p):
    """Fold BN into the depthwise convs and pack all params into 3 operands."""
    # Fused qkv weight: one (C, 3C) bf16 operand, built once (not per jit call).
    wqkv = jnp.concatenate([p["wq_t"], p["wk_t"], p["wv_t"]],
                           axis=1).astype(jnp.bfloat16)

    def folded_dw(pre):
        s, bb = p[f"{pre}_bn_s"], p[f"{pre}_bn_b"]                # (1, C) each
        return [p[f"{pre}_dw_w"] * s, p[f"{pre}_dw_b"] * s + bb]  # (9,C),(1,C)

    dwp = jnp.concatenate(
        folded_dw("q") + folded_dw("k")
        + [p["dwc_w"], p["dwc_b"], p["proj_w"], p["proj_b"],
           p["q_w1"], p["k_w1"]],
        axis=0)                                                   # (42, C)
    cwp = jnp.concatenate([p["q_cw"], p["k_cw"]], axis=0)         # (2C, C)
    return wqkv, dwp, cwp


@jax.jit
def additive_token_mixer(x_nhwc, wqkv, dwp, cwp):
    B, H, W, C = x_nhwc.shape
    HW = H * W
    # bf16 input block: halves the x HBM->VMEM DMA and drops an in-kernel cast.
    x_flat = x_nhwc.reshape(B, HW, C).astype(jnp.bfloat16)

    def wspec(w):
        r = w.ndim
        return pl.BlockSpec(w.shape, lambda b, _r=r: (0,) * _r)

    weights = [wqkv, dwp, cwp]
    in_specs = [pl.BlockSpec((1, HW, C), lambda b: (b, 0, 0))]
    in_specs += [wspec(w) for w in weights]
    out_specs = pl.BlockSpec((1, HW, C), lambda b: (b, 0, 0))

    # TODO(synk): with B=2 on v7x each core gets a single grid step (no DMA
    # pipelining); splitting HW into >=2 sub-steps with a carried pool would
    # restore overlap, and spatial tiling is needed once HW*C outgrows VMEM.
    out_flat = pl.pallas_call(
        functools.partial(mixer_kernel, H=H, W=W),
        out_shape=jax.ShapeDtypeStruct((B, HW, C), jnp.float32),
        grid=(B,),
        in_specs=in_specs,
        out_specs=out_specs,
        compiler_params=pltpu.CompilerParams(
            dimension_semantics=("parallel",),
            vmem_limit_bytes=48 * 1024 * 1024),
    )(x_flat, *weights)
    return out_flat.reshape(B, H, W, C)


def ref_forward(x, p):
    """Plain-JAX NHWC reference.  qkv matmuls use bf16 operands with f32
    accumulation to mirror the kernel's MXU numerics; everything else f32."""
    B, H, W, C = x.shape
    bf16 = jnp.bfloat16

    def dw3x3(t, w, b):
        tp = jnp.pad(t, ((0, 0), (1, 1), (1, 1), (0, 0)))
        acc = jnp.zeros_like(t)
        for dy in range(3):
            for dx in range(3):
                acc = acc + tp[:, dy:dy + H, dx:dx + W, :] * w[dy * 3 + dx]
        return acc + b[0]

    def spatial(t, pre):
        y = dw3x3(t, p[f"{pre}_dw_w"], p[f"{pre}_dw_b"])
        y = y * p[f"{pre}_bn_s"][0] + p[f"{pre}_bn_b"][0]
        y = jnp.maximum(y, 0.0)
        attn = jnp.sum(y * p[f"{pre}_w1"][0], axis=-1, keepdims=True)
        return t * jax.nn.sigmoid(attn)

    def channel(t, pre):
        pooled = jnp.mean(t, axis=(1, 2), keepdims=True)
        gate = jax.nn.sigmoid(jnp.einsum("bijc,cd->bijd", pooled, p[f"{pre}_cw"]))
        return t * gate

    xb = x.astype(bf16)
    q = jnp.einsum("bhwc,cd->bhwd", xb, p["wq_t"].astype(bf16),
                   preferred_element_type=jnp.float32)
    k = jnp.einsum("bhwc,cd->bhwd", xb, p["wk_t"].astype(bf16),
                   preferred_element_type=jnp.float32)
    v = jnp.einsum("bhwc,cd->bhwd", xb, p["wv_t"].astype(bf16),
                   preferred_element_type=jnp.float32)
    q = channel(spatial(q, "q"), "q")
    k = channel(spatial(k, "k"), "k")
    h = dw3x3(q + k, p["dwc_w"], p["dwc_b"])
    return dw3x3(h * v, p["proj_w"], p["proj_b"])


def make_params(dim, key):
    keys = iter(jax.random.split(key, 64))

    def nrm(shape, scale=0.2):
        return scale * jax.random.normal(next(keys), shape, jnp.float32)

    p = {}
    # qkv: Conv2d(dim, 3*dim, 1, bias=False) -> three (C_in, C_out) matmul weights.
    p["wq_t"] = nrm((dim, dim))
    p["wk_t"] = nrm((dim, dim))
    p["wv_t"] = nrm((dim, dim))
    for pre in ("q", "k"):
        # SpatialOperation: dw3x3 (+bias) -> BN (eval) -> ReLU -> 1x1 dim->1
        p[f"{pre}_dw_w"] = nrm((9, dim))
        p[f"{pre}_dw_b"] = nrm((1, dim))
        gamma = 1.0 + nrm((dim,), 0.1)
        beta = nrm((dim,), 0.1)
        rmean = nrm((dim,), 0.1)
        rvar = 1.0 + jnp.abs(nrm((dim,), 0.1))
        scale = gamma / jnp.sqrt(rvar + 1e-5)
        p[f"{pre}_bn_s"] = scale[None, :]
        p[f"{pre}_bn_b"] = (beta - rmean * scale)[None, :]
        p[f"{pre}_w1"] = nrm((1, dim))
        # ChannelOperation: 1x1 conv dim->dim (no bias), transposed for matmul.
        p[f"{pre}_cw"] = nrm((dim, dim))
    # dwc / proj: depthwise 3x3 with bias.
    p["dwc_w"] = nrm((9, dim))
    p["dwc_b"] = nrm((1, dim))
    p["proj_w"] = nrm((9, dim))
    p["proj_b"] = nrm((1, dim))
    return p


if __name__ == "__main__":
    B, C, H, W = 2, 64, 16, 16          # dim=64 (module default 512, shrunk)
    key = jax.random.PRNGKey(0)
    kx, kp = jax.random.split(key)

    x_nchw = jax.random.normal(kx, (B, C, H, W), jnp.float32)   # PyTorch NCHW input
    x = jnp.transpose(x_nchw, (0, 2, 3, 1))                     # -> NHWC for kernel
    params = make_params(C, kp)
    wqkv, dwp, cwp = prepare_params(params)

    out = additive_token_mixer(x, wqkv, dwp, cwp)
    out = jax.block_until_ready(out)

    ref = ref_forward(x, params)
    assert out.shape == (B, H, W, C)
    if not jnp.allclose(out, ref, atol=2e-3, rtol=2e-3):
        err = float(jnp.max(jnp.abs(out - ref)))
        raise AssertionError(
            f"Pallas kernel does not match JAX reference (max abs err {err})")
    print("KERNEL_OK")
</pallas_src>

<mosaic_0001>
module attributes {stable_mosaic.version = 11 : i64} {
  func.func @mixer_kernel(%arg0: i32, %arg1: memref<1x256x64xbf16, #tpu.memory_space<vmem>>, %arg2: memref<64x192xbf16, #tpu.memory_space<vmem>>, %arg3: memref<42x64xf32, #tpu.memory_space<vmem>>, %arg4: memref<128x64xf32, #tpu.memory_space<vmem>>, %arg5: memref<1x256x64xf32, #tpu.memory_space<vmem>>) attributes {dimension_semantics = [#tpu.dimension_semantics<parallel>], iteration_bounds = array<i64: 2>, scalar_prefetch = 0 : i64, scratch_operands = 0 : i64, tpu.core_type = #tpu.core_type<tc>, window_params = [{transform_indices = @transform_0, window_bounds = array<i64: 1, 256, 64>}, {pipeline_mode = #tpu.pipeline_mode<synchronous>, transform_indices = @transform_1, window_bounds = array<i64: 64, 192>}, {pipeline_mode = #tpu.pipeline_mode<synchronous>, transform_indices = @transform_2, window_bounds = array<i64: 42, 64>}, {pipeline_mode = #tpu.pipeline_mode<synchronous>, transform_indices = @transform_3, window_bounds = array<i64: 128, 64>}, {transform_indices = @transform_4, window_bounds = array<i64: 1, 256, 64>}]} {
    %c0 = arith.constant 0 : index
    %c0_0 = arith.constant 0 : index
    %c0_1 = arith.constant 0 : index
    %0 = vector.load %arg1[%c0, %c0_0, %c0_1] : memref<1x256x64xbf16, #tpu.memory_space<vmem>>, vector<1x256x64xbf16>
    %1 = vector.shape_cast %0 : vector<1x256x64xbf16> to vector<256x64xbf16>
    %c0_2 = arith.constant 0 : index
    %c0_3 = arith.constant 0 : index
    %2 = vector.load %arg2[%c0_2, %c0_3] : memref<64x192xbf16, #tpu.memory_space<vmem>>, vector<64x192xbf16>
    %cst = arith.constant dense<0.000000e+00> : vector<256x192xf32>
    %3 = tpu.matmul %1, %2, %cst {dimension_numbers = #tpu.dot_dimension_numbers<[1], [0], [0], [1], [0, 0, 1, 1], [], []>} : vector<256x64xbf16>, vector<64x192xbf16>, vector<256x192xf32> -> vector<256x192xf32>
    %4 = vector.extract_strided_slice %3 {offsets = [0, 0], sizes = [256, 64], strides = [1, 1]} : vector<256x192xf32> to vector<256x64xf32>
    %5 = vector.extract_strided_slice %3 {offsets = [0, 64], sizes = [256, 64], strides = [1, 1]} : vector<256x192xf32> to vector<256x64xf32>
    %6 = vector.extract_strided_slice %3 {offsets = [0, 128], sizes = [256, 64], strides = [1, 1]} : vector<256x192xf32> to vector<256x64xf32>
    %7 = tpu.iota {dimensions = array<i32: 0>} : vector<256x1xi32>
    %8 = arith.sitofp %7 : vector<256x1xi32> to vector<256x1xf32>
    %cst_4 = arith.constant 5.000000e-01 : f32
    %9 = vector.broadcast %cst_4 : f32 to vector<256x1xf32>
    %10 = arith.addf %8, %9 : vector<256x1xf32>
    %cst_5 = arith.constant 6.250000e-02 : f32
    %11 = vector.broadcast %cst_5 : f32 to vector<256x1xf32>
    %12 = arith.mulf %10, %11 : vector<256x1xf32>
    %13 = math.floor %12 : vector<256x1xf32>
    %cst_6 = arith.constant 1.600000e+01 : f32
    %14 = vector.broadcast %cst_6 : f32 to vector<256x1xf32>
    %15 = arith.mulf %13, %14 : vector<256x1xf32>
    %16 = arith.subf %8, %15 : vector<256x1xf32>
    %c16_i32 = arith.constant 16 : i32
    %17 = vector.broadcast %c16_i32 : i32 to vector<256x1xi32>
    %18 = arith.cmpi sge, %7, %17 : vector<256x1xi32>
    %cst_7 = arith.constant 1.000000e+00 : f32
    %cst_8 = arith.constant 0.000000e+00 : f32
    %19 = vector.broadcast %cst_7 : f32 to vector<256x1xf32>
    %20 = vector.broadcast %cst_8 : f32 to vector<256x1xf32>
    %21 = arith.select %18, %19, %20 : vector<256x1xi1>, vector<256x1xf32>
    %c240_i32 = arith.constant 240 : i32
    %22 = vector.broadcast %c240_i32 : i32 to vector<256x1xi32>
    %23 = arith.cmpi slt, %7, %22 : vector<256x1xi32>
    %cst_9 = arith.constant 1.000000e+00 : f32
    %cst_10 = arith.constant 0.000000e+00 : f32
    %24 = vector.broadcast %cst_9 : f32 to vector<256x1xf32>
    %25 = vector.broadcast %cst_10 : f32 to vector<256x1xf32>
    %26 = arith.select %23, %24, %25 : vector<256x1xi1>, vector<256x1xf32>
    %cst_11 = arith.constant 5.000000e-01 : f32
    %27 = vector.broadcast %cst_11 : f32 to vector<256x1xf32>
    %28 = arith.cmpf oge, %16, %27 : vector<256x1xf32>
    %cst_12 = arith.constant 1.000000e+00 : f32
    %cst_13 = arith.constant 0.000000e+00 : f32
    %29 = vector.broadcast %cst_12 : f32 to vector<256x1xf32>
    %30 = vector.broadcast %cst_13 : f32 to vector<256x1xf32>
    %31 = arith.select %28, %29, %30 : vector<256x1xi1>, vector<256x1xf32>
    %cst_14 = arith.constant 1.450000e+01 : f32
    %32 = vector.broadcast %cst_14 : f32 to vector<256x1xf32>
    %33 = arith.cmpf ole, %16, %32 : vector<256x1xf32>
    %cst_15 = arith.constant 1.000000e+00 : f32
    %cst_16 = arith.constant 0.000000e+00 : f32
    %34 = vector.broadcast %cst_15 : f32 to vector<256x1xf32>
    %35 = vector.broadcast %cst_16 : f32 to vector<256x1xf32>
    %36 = arith.select %33, %34, %35 : vector<256x1xi1>, vector<256x1xf32>
    %c0_17 = arith.constant 0 : index
    %c0_18 = arith.constant 0 : index
    %37 = vector.load %arg3[%c0_17, %c0_18] : memref<42x64xf32, #tpu.memory_space<vmem>>, vector<42x64xf32>
    %c0_19 = arith.constant 0 : index
    %c0_20 = arith.constant 0 : index
    %38 = vector.load %arg4[%c0_19, %c0_20] : memref<128x64xf32, #tpu.memory_space<vmem>>, vector<128x64xf32>
    %39 = vector.extract_strided_slice %37 {offsets = [40, 0], sizes = [1, 64], strides = [1, 1]} : vector<42x64xf32> to vector<1x64xf32>
    %40 = vector.shape_cast %39 : vector<1x64xf32> to vector<64xf32>
    %c1_i32 = arith.constant 1 : i32
    %41 = tpu.dynamic_rotate %4 by %c1_i32 dim 0 : vector<256x64xf32>, i32 -> vector<256x64xf32>
    %42 = vector.broadcast %31 : vector<256x1xf32> to vector<256x64xf32>
    %43 = arith.mulf %41, %42 : vector<256x64xf32>
    %c255_i32 = arith.constant 255 : i32
    %44 = tpu.dynamic_rotate %4 by %c255_i32 dim 0 : vector<256x64xf32>, i32 -> vector<256x64xf32>
    %45 = vector.broadcast %36 : vector<256x1xf32> to vector<256x64xf32>
    %46 = arith.mulf %44, %45 : vector<256x64xf32>
    %47 = vector.extract_strided_slice %37 {offsets = [3, 0], sizes = [1, 64], strides = [1, 1]} : vector<42x64xf32> to vector<1x64xf32>
    %48 = vector.shape_cast %47 : vector<1x64xf32> to vector<64xf32>
    %49 = vector.shape_cast %48 : vector<64xf32> to vector<1x64xf32>
    %50 = vector.broadcast %49 : vector<1x64xf32> to vector<256x64xf32>
    %51 = arith.mulf %43, %50 : vector<256x64xf32>
    %52 = vector.extract_strided_slice %37 {offsets = [4, 0], sizes = [1, 64], strides = [1, 1]} : vector<42x64xf32> to vector<1x64xf32>
    %53 = vector.shape_cast %52 : vector<1x64xf32> to vector<64xf32>
    %54 = vector.shape_cast %53 : vector<64xf32> to vector<1x64xf32>
    %55 = vector.broadcast %54 : vector<1x64xf32> to vector<256x64xf32>
    %56 = arith.mulf %4, %55 : vector<256x64xf32>
    %57 = arith.addf %51, %56 : vector<256x64xf32>
    %58 = vector.extract_strided_slice %37 {offsets = [5, 0], sizes = [1, 64], strides = [1, 1]} : vector<42x64xf32> to vector<1x64xf32>
    %59 = vector.shape_cast %58 : vector<1x64xf32> to vector<64xf32>
    %60 = vector.shape_cast %59 : vector<64xf32> to vector<1x64xf32>
    %61 = vector.broadcast %60 : vector<1x64xf32> to vector<256x64xf32>
    %62 = arith.mulf %46, %61 : vector<256x64xf32>
    %63 = arith.addf %57, %62 : vector<256x64xf32>
    %64 = vector.extract_strided_slice %37 {offsets = [9, 0], sizes = [1, 64], strides = [1, 1]} : vector<42x64xf32> to vector<1x64xf32>
    %65 = vector.shape_cast %64 : vector<1x64xf32> to vector<64xf32>
    %66 = vector.shape_cast %65 : vector<64xf32> to vector<1x64xf32>
    %67 = vector.broadcast %66 : vector<1x64xf32> to vector<256x64xf32>
    %68 = arith.addf %63, %67 : vector<256x64xf32>
    %69 = vector.extract_strided_slice %37 {offsets = [0, 0], sizes = [1, 64], strides = [1, 1]} : vector<42x64xf32> to vector<1x64xf32>
    %70 = vector.shape_cast %69 : vector<1x64xf32> to vector<64xf32>
    %71 = vector.shape_cast %70 : vector<64xf32> to vector<1x64xf32>
    %72 = vector.broadcast %71 : vector<1x64xf32> to vector<256x64xf32>
    %73 = arith.mulf %43, %72 : vector<256x64xf32>
    %74 = vector.extract_strided_slice %37 {offsets = [1, 0], sizes = [1, 64], strides = [1, 1]} : vector<42x64xf32> to vector<1x64xf32>
    %75 = vector.shape_cast %74 : vector<1x64xf32> to vector<64xf32>
    %76 = vector.shape_cast %75 : vector<64xf32> to vector<1x64xf32>
    %77 = vector.broadcast %76 : vector<1x64xf32> to vector<256x64xf32>
    %78 = arith.mulf %4, %77 : vector<256x64xf32>
    %79 = arith.addf %73, %78 : vector<256x64xf32>
    %80 = vector.extract_strided_slice %37 {offsets = [2, 0], sizes = [1, 64], strides = [1, 1]} : vector<42x64xf32> to vector<1x64xf32>
    %81 = vector.shape_cast %80 : vector<1x64xf32> to vector<64xf32>
    %82 = vector.shape_cast %81 : vector<64xf32> to vector<1x64xf32>
    %83 = vector.broadcast %82 : vector<1x64xf32> to vector<256x64xf32>
    %84 = arith.mulf %46, %83 : vector<256x64xf32>
    %85 = arith.addf %79, %84 : vector<256x64xf32>
    %c16_i32_21 = arith.constant 16 : i32
    %86 = tpu.dynamic_rotate %85 by %c16_i32_21 dim 0 : vector<256x64xf32>, i32 -> vector<256x64xf32>
    %87 = vector.broadcast %21 : vector<256x1xf32> to vector<256x64xf32>
    %88 = arith.mulf %86, %87 : vector<256x64xf32>
    %89 = arith.addf %68, %88 : vector<256x64xf32>
    %90 = vector.extract_strided_slice %37 {offsets = [6, 0], sizes = [1, 64], strides = [1, 1]} : vector<42x64xf32> to vector<1x64xf32>
    %91 = vector.shape_cast %90 : vector<1x64xf32> to vector<64xf32>
    %92 = vector.shape_cast %91 : vector<64xf32> to vector<1x64xf32>
    %93 = vector.broadcast %92 : vector<1x64xf32> to vector<256x64xf32>
    %94 = arith.mulf %43, %93 : vector<256x64xf32>
    %95 = vector.extract_strided_slice %37 {offsets = [7, 0], sizes = [1, 64], strides = [1, 1]} : vector<42x64xf32> to vector<1x64xf32>
    %96 = vector.shape_cast %95 : vector<1x64xf32> to vector<64xf32>
    %97 = vector.shape_cast %96 : vector<64xf32> to vector<1x64xf32>
    %98 = vector.broadcast %97 : vector<1x64xf32> to vector<256x64xf32>
    %99 = arith.mulf %4, %98 : vector<256x64xf32>
    %100 = arith.addf %94, %99 : vector<256x64xf32>
    %101 = vector.extract_strided_slice %37 {offsets = [8, 0], sizes = [1, 64], strides = [1, 1]} : vector<42x64xf32> to vector<1x64xf32>
    %102 = vector.shape_cast %101 : vector<1x64xf32> to vector<64xf32>
    %103 = vector.shape_cast %102 : vector<64xf32> to vector<1x64xf32>
    %104 = vector.broadcast %103 : vector<1x64xf32> to vector<256x64xf32>
    %105 = arith.mulf %46, %104 : vector<256x64xf32>
    %106 = arith.addf %100, %105 : vector<256x64xf32>
    %c240_i32_22 = arith.constant 240 : i32
    %107 = tpu.dynamic_rotate %106 by %c240_i32_22 dim 0 : vector<256x64xf32>, i32 -> vector<256x64xf32>
    %108 = vector.broadcast %26 : vector<256x1xf32> to vector<256x64xf32>
    %109 = arith.mulf %107, %108 : vector<256x64xf32>
    %110 = arith.addf %89, %109 : vector<256x64xf32>
    %cst_23 = arith.constant 0.000000e+00 : f32
    %111 = vector.broadcast %cst_23 : f32 to vector<256x64xf32>
    %112 = arith.maximumf %110, %111 : vector<256x64xf32>
    %113 = vector.shape_cast %40 : vector<64xf32> to vector<1x64xf32>
    %114 = vector.broadcast %113 : vector<1x64xf32> to vector<256x64xf32>
    %115 = arith.mulf %112, %114 : vector<256x64xf32>
    %cst_24 = arith.constant dense<0.000000e+00> : vector<256xf32>
    %116 = vector.multi_reduction <add>, %115, %cst_24 [1] : vector<256x64xf32> to vector<256xf32>
    %117 = vector.shape_cast %116 : vector<256xf32> to vector<256x1xf32>
    %118 = arith.negf %117 : vector<256x1xf32>
    %119 = math.exp %118 : vector<256x1xf32>
    %cst_25 = arith.constant 1.000000e+00 : f32
    %120 = vector.broadcast %cst_25 : f32 to vector<256x1xf32>
    %121 = arith.addf %120, %119 : vector<256x1xf32>
    %122 = arith.divf %120, %121 : vector<256x1xf32>
    %123 = vector.broadcast %122 : vector<256x1xf32> to vector<256x64xf32>
    %124 = arith.mulf %4, %123 : vector<256x64xf32>
    %125 = vector.extract_strided_slice %38 {offsets = [0, 0], sizes = [64, 64], strides = [1, 1]} : vector<128x64xf32> to vector<64x64xf32>
    %cst_26 = arith.constant dense<0.000000e+00> : vector<64xf32>
    %126 = vector.multi_reduction <add>, %124, %cst_26 [0] : vector<256x64xf32> to vector<64xf32>
    %127 = vector.shape_cast %126 : vector<64xf32> to vector<1x64xf32>
    %cst_27 = arith.constant 2.560000e+02 : f32
    %128 = vector.broadcast %cst_27 : f32 to vector<1x64xf32>
    %129 = arith.divf %127, %128 : vector<1x64xf32>
    %cst_28 = arith.constant dense<0.000000e+00> : vector<1x64xf32>
    %130 = tpu.matmul %129, %125, %cst_28 {dimension_numbers = #tpu.dot_dimension_numbers<[1], [0], [0], [1], [0, 0, 1, 1], [], []>} : vector<1x64xf32>, vector<64x64xf32>, vector<1x64xf32> -> vector<1x64xf32>
    %131 = arith.negf %130 : vector<1x64xf32>
    %132 = math.exp %131 : vector<1x64xf32>
    %cst_29 = arith.constant 1.000000e+00 : f32
    %133 = vector.broadcast %cst_29 : f32 to vector<1x64xf32>
    %134 = arith.addf %133, %132 : vector<1x64xf32>
    %135 = arith.divf %133, %134 : vector<1x64xf32>
    %136 = vector.broadcast %135 : vector<1x64xf32> to vector<256x64xf32>
    %137 = arith.mulf %124, %136 : vector<256x64xf32>
    %138 = vector.extract_strided_slice %37 {offsets = [41, 0], sizes = [1, 64], strides = [1, 1]} : vector<42x64xf32> to vector<1x64xf32>
    %139 = vector.shape_cast %138 : vector<1x64xf32> to vector<64xf32>
    %c1_i32_30 = arith.constant 1 : i32
    %140 = tpu.dynamic_rotate %5 by %c1_i32_30 dim 0 : vector<256x64xf32>, i32 -> vector<256x64xf32>
    %141 = vector.broadcast %31 : vector<256x1xf32> to vector<256x64xf32>
    %142 = arith.mulf %140, %141 : vector<256x64xf32>
    %c255_i32_31 = arith.constant 255 : i32
    %143 = tpu.dynamic_rotate %5 by %c255_i32_31 dim 0 : vector<256x64xf32>, i32 -> vector<256x64xf32>
    %144 = vector.broadcast %36 : vector<256x1xf32> to vector<256x64xf32>
    %145 = arith.mulf %143, %144 : vector<256x64xf32>
    %146 = vector.extract_strided_slice %37 {offsets = [13, 0], sizes = [1, 64], strides = [1, 1]} : vector<42x64xf32> to vector<1x64xf32>
    %147 = vector.shape_cast %146 : vector<1x64xf32> to vector<64xf32>
    %148 = vector.shape_cast %147 : vector<64xf32> to vector<1x64xf32>
    %149 = vector.broadcast %148 : vector<1x64xf32> to vector<256x64xf32>
    %150 = arith.mulf %142, %149 : vector<256x64xf32>
    %151 = vector.extract_strided_slice %37 {offsets = [14, 0], sizes = [1, 64], strides = [1, 1]} : vector<42x64xf32> to vector<1x64xf32>
    %152 = vector.shape_cast %151 : vector<1x64xf32> to vector<64xf32>
    %153 = vector.shape_cast %152 : vector<64xf32> to vector<1x64xf32>
    %154 = vector.broadcast %153 : vector<1x64xf32> to vector<256x64xf32>
    %155 = arith.mulf %5, %154 : vector<256x64xf32>
    %156 = arith.addf %150, %155 : vector<256x64xf32>
    %157 = vector.extract_strided_slice %37 {offsets = [15, 0], sizes = [1, 64], strides = [1, 1]} : vector<42x64xf32> to vector<1x64xf32>
    %158 = vector.shape_cast %157 : vector<1x64xf32> to vector<64xf32>
    %159 = vector.shape_cast %158 : vector<64xf32> to vector<1x64xf32>
    %160 = vector.broadcast %159 : vector<1x64xf32> to vector<256x64xf32>
    %161 = arith.mulf %145, %160 : vector<256x64xf32>
    %162 = arith.addf %156, %161 : vector<256x64xf32>
    %163 = vector.extract_strided_slice %37 {offsets = [19, 0], sizes = [1, 64], strides = [1, 1]} : vector<42x64xf32> to vector<1x64xf32>
    %164 = vector.shape_cast %163 : vector<1x64xf32> to vector<64xf32>
    %165 = vector.shape_cast %164 : vector<64xf32> to vector<1x64xf32>
    %166 = vector.broadcast %165 : vector<1x64xf32> to vector<256x64xf32>
    %167 = arith.addf %162, %166 : vector<256x64xf32>
    %168 = vector.extract_strided_slice %37 {offsets = [10, 0], sizes = [1, 64], strides = [1, 1]} : vector<42x64xf32> to vector<1x64xf32>
    %169 = vector.shape_cast %168 : vector<1x64xf32> to vector<64xf32>
    %170 = vector.shape_cast %169 : vector<64xf32> to vector<1x64xf32>
    %171 = vector.broadcast %170 : vector<1x64xf32> to vector<256x64xf32>
    %172 = arith.mulf %142, %171 : vector<256x64xf32>
    %173 = vector.extract_strided_slice %37 {offsets = [11, 0], sizes = [1, 64], strides = [1, 1]} : vector<42x64xf32> to vector<1x64xf32>
    %174 = vector.shape_cast %173 : vector<1x64xf32> to vector<64xf32>
    %175 = vector.shape_cast %174 : vector<64xf32> to vector<1x64xf32>
    %176 = vector.broadcast %175 : vector<1x64xf32> to vector<256x64xf32>
    %177 = arith.mulf %5, %176 : vector<256x64xf32>
    %178 = arith.addf %172, %177 : vector<256x64xf32>
    %179 = vector.extract_strided_slice %37 {offsets = [12, 0], sizes = [1, 64], strides = [1, 1]} : vector<42x64xf32> to vector<1x64xf32>
    %180 = vector.shape_cast %179 : vector<1x64xf32> to vector<64xf32>
    %181 = vector.shape_cast %180 : vector<64xf32> to vector<1x64xf32>
    %182 = vector.broadcast %181 : vector<1x64xf32> to vector<256x64xf32>
    %183 = arith.mulf %145, %182 : vector<256x64xf32>
    %184 = arith.addf %178, %183 : vector<256x64xf32>
    %c16_i32_32 = arith.constant 16 : i32
    %185 = tpu.dynamic_rotate %184 by %c16_i32_32 dim 0 : vector<256x64xf32>, i32 -> vector<256x64xf32>
    %186 = vector.broadcast %21 : vector<256x1xf32> to vector<256x64xf32>
    %187 = arith.mulf %185, %186 : vector<256x64xf32>
    %188 = arith.addf %167, %187 : vector<256x64xf32>
    %189 = vector.extract_strided_slice %37 {offsets = [16, 0], sizes = [1, 64], strides = [1, 1]} : vector<42x64xf32> to vector<1x64xf32>
    %190 = vector.shape_cast %189 : vector<1x64xf32> to vector<64xf32>
    %191 = vector.shape_cast %190 : vector<64xf32> to vector<1x64xf32>
    %192 = vector.broadcast %191 : vector<1x64xf32> to vector<256x64xf32>
    %193 = arith.mulf %142, %192 : vector<256x64xf32>
    %194 = vector.extract_strided_slice %37 {offsets = [17, 0], sizes = [1, 64], strides = [1, 1]} : vector<42x64xf32> to vector<1x64xf32>
    %195 = vector.shape_cast %194 : vector<1x64xf32> to vector<64xf32>
    %196 = vector.shape_cast %195 : vector<64xf32> to vector<1x64xf32>
    %197 = vector.broadcast %196 : vector<1x64xf32> to vector<256x64xf32>
    %198 = arith.mulf %5, %197 : vector<256x64xf32>
    %199 = arith.addf %193, %198 : vector<256x64xf32>
    %200 = vector.extract_strided_slice %37 {offsets = [18, 0], sizes = [1, 64], strides = [1, 1]} : vector<42x64xf32> to vector<1x64xf32>
    %201 = vector.shape_cast %200 : vector<1x64xf32> to vector<64xf32>
    %202 = vector.shape_cast %201 : vector<64xf32> to vector<1x64xf32>
    %203 = vector.broadcast %202 : vector<1x64xf32> to vector<256x64xf32>
    %204 = arith.mulf %145, %203 : vector<256x64xf32>
    %205 = arith.addf %199, %204 : vector<256x64xf32>
    %c240_i32_33 = arith.constant 240 : i32
    %206 = tpu.dynamic_rotate %205 by %c240_i32_33 dim 0 : vector<256x64xf32>, i32 -> vector<256x64xf32>
    %207 = vector.broadcast %26 : vector<256x1xf32> to vector<256x64xf32>
    %208 = arith.mulf %206, %207 : vector<256x64xf32>
    %209 = arith.addf %188, %208 : vector<256x64xf32>
    %cst_34 = arith.constant 0.000000e+00 : f32
    %210 = vector.broadcast %cst_34 : f32 to vector<256x64xf32>
    %211 = arith.maximumf %209, %210 : vector<256x64xf32>
    %212 = vector.shape_cast %139 : vector<64xf32> to vector<1x64xf32>
    %213 = vector.broadcast %212 : vector<1x64xf32> to vector<256x64xf32>
    %214 = arith.mulf %211, %213 : vector<256x64xf32>
    %cst_35 = arith.constant dense<0.000000e+00> : vector<256xf32>
    %215 = vector.multi_reduction <add>, %214, %cst_35 [1] : vector<256x64xf32> to vector<256xf32>
    %216 = vector.shape_cast %215 : vector<256xf32> to vector<256x1xf32>
    %217 = arith.negf %216 : vector<256x1xf32>
    %218 = math.exp %217 : vector<256x1xf32>
    %cst_36 = arith.constant 1.000000e+00 : f32
    %219 = vector.broadcast %cst_36 : f32 to vector<256x1xf32>
    %220 = arith.addf %219, %218 : vector<256x1xf32>
    %221 = arith.divf %219, %220 : vector<256x1xf32>
    %222 = vector.broadcast %221 : vector<256x1xf32> to vector<256x64xf32>
    %223 = arith.mulf %5, %222 : vector<256x64xf32>
    %224 = vector.extract_strided_slice %38 {offsets = [64, 0], sizes = [64, 64], strides = [1, 1]} : vector<128x64xf32> to vector<64x64xf32>
    %cst_37 = arith.constant dense<0.000000e+00> : vector<64xf32>
    %225 = vector.multi_reduction <add>, %223, %cst_37 [0] : vector<256x64xf32> to vector<64xf32>
    %226 = vector.shape_cast %225 : vector<64xf32> to vector<1x64xf32>
    %cst_38 = arith.constant 2.560000e+02 : f32
    %227 = vector.broadcast %cst_38 : f32 to vector<1x64xf32>
    %228 = arith.divf %226, %227 : vector<1x64xf32>
    %cst_39 = arith.constant dense<0.000000e+00> : vector<1x64xf32>
    %229 = tpu.matmul %228, %224, %cst_39 {dimension_numbers = #tpu.dot_dimension_numbers<[1], [0], [0], [1], [0, 0, 1, 1], [], []>} : vector<1x64xf32>, vector<64x64xf32>, vector<1x64xf32> -> vector<1x64xf32>
    %230 = arith.negf %229 : vector<1x64xf32>
    %231 = math.exp %230 : vector<1x64xf32>
    %cst_40 = arith.constant 1.000000e+00 : f32
    %232 = vector.broadcast %cst_40 : f32 to vector<1x64xf32>
    %233 = arith.addf %232, %231 : vector<1x64xf32>
    %234 = arith.divf %232, %233 : vector<1x64xf32>
    %235 = vector.broadcast %234 : vector<1x64xf32> to vector<256x64xf32>
    %236 = arith.mulf %223, %235 : vector<256x64xf32>
    %237 = arith.addf %137, %236 : vector<256x64xf32>
    %c1_i32_41 = arith.constant 1 : i32
    %238 = tpu.dynamic_rotate %237 by %c1_i32_41 dim 0 : vector<256x64xf32>, i32 -> vector<256x64xf32>
    %239 = vector.broadcast %31 : vector<256x1xf32> to vector<256x64xf32>
    %240 = arith.mulf %238, %239 : vector<256x64xf32>
    %c255_i32_42 = arith.constant 255 : i32
    %241 = tpu.dynamic_rotate %237 by %c255_i32_42 dim 0 : vector<256x64xf32>, i32 -> vector<256x64xf32>
    %242 = vector.broadcast %36 : vector<256x1xf32> to vector<256x64xf32>
    %243 = arith.mulf %241, %242 : vector<256x64xf32>
    %244 = vector.extract_strided_slice %37 {offsets = [23, 0], sizes = [1, 64], strides = [1, 1]} : vector<42x64xf32> to vector<1x64xf32>
    %245 = vector.shape_cast %244 : vector<1x64xf32> to vector<64xf32>
    %246 = vector.shape_cast %245 : vector<64xf32> to vector<1x64xf32>
    %247 = vector.broadcast %246 : vector<1x64xf32> to vector<256x64xf32>
    %248 = arith.mulf %240, %247 : vector<256x64xf32>
    %249 = vector.extract_strided_slice %37 {offsets = [24, 0], sizes = [1, 64], strides = [1, 1]} : vector<42x64xf32> to vector<1x64xf32>
    %250 = vector.shape_cast %249 : vector<1x64xf32> to vector<64xf32>
    %251 = vector.shape_cast %250 : vector<64xf32> to vector<1x64xf32>
    %252 = vector.broadcast %251 : vector<1x64xf32> to vector<256x64xf32>
    %253 = arith.mulf %237, %252 : vector<256x64xf32>
    %254 = arith.addf %248, %253 : vector<256x64xf32>
    %255 = vector.extract_strided_slice %37 {offsets = [25, 0], sizes = [1, 64], strides = [1, 1]} : vector<42x64xf32> to vector<1x64xf32>
    %256 = vector.shape_cast %255 : vector<1x64xf32> to vector<64xf32>
    %257 = vector.shape_cast %256 : vector<64xf32> to vector<1x64xf32>
    %258 = vector.broadcast %257 : vector<1x64xf32> to vector<256x64xf32>
    %259 = arith.mulf %243, %258 : vector<256x64xf32>
    %260 = arith.addf %254, %259 : vector<256x64xf32>
    %261 = vector.extract_strided_slice %37 {offsets = [29, 0], sizes = [1, 64], strides = [1, 1]} : vector<42x64xf32> to vector<1x64xf32>
    %262 = vector.shape_cast %261 : vector<1x64xf32> to vector<64xf32>
    %263 = vector.shape_cast %262 : vector<64xf32> to vector<1x64xf32>
    %264 = vector.broadcast %263 : vector<1x64xf32> to vector<256x64xf32>
    %265 = arith.addf %260, %264 : vector<256x64xf32>
    %266 = vector.extract_strided_slice %37 {offsets = [20, 0], sizes = [1, 64], strides = [1, 1]} : vector<42x64xf32> to vector<1x64xf32>
    %267 = vector.shape_cast %266 : vector<1x64xf32> to vector<64xf32>
    %268 = vector.shape_cast %267 : vector<64xf32> to vector<1x64xf32>
    %269 = vector.broadcast %268 : vector<1x64xf32> to vector<256x64xf32>
    %270 = arith.mulf %240, %269 : vector<256x64xf32>
    %271 = vector.extract_strided_slice %37 {offsets = [21, 0], sizes = [1, 64], strides = [1, 1]} : vector<42x64xf32> to vector<1x64xf32>
    %272 = vector.shape_cast %271 : vector<1x64xf32> to vector<64xf32>
    %273 = vector.shape_cast %272 : vector<64xf32> to vector<1x64xf32>
    %274 = vector.broadcast %273 : vector<1x64xf32> to vector<256x64xf32>
    %275 = arith.mulf %237, %274 : vector<256x64xf32>
    %276 = arith.addf %270, %275 : vector<256x64xf32>
    %277 = vector.extract_strided_slice %37 {offsets = [22, 0], sizes = [1, 64], strides = [1, 1]} : vector<42x64xf32> to vector<1x64xf32>
    %278 = vector.shape_cast %277 : vector<1x64xf32> to vector<64xf32>
    %279 = vector.shape_cast %278 : vector<64xf32> to vector<1x64xf32>
    %280 = vector.broadcast %279 : vector<1x64xf32> to vector<256x64xf32>
    %281 = arith.mulf %243, %280 : vector<256x64xf32>
    %282 = arith.addf %276, %281 : vector<256x64xf32>
    %c16_i32_43 = arith.constant 16 : i32
    %283 = tpu.dynamic_rotate %282 by %c16_i32_43 dim 0 : vector<256x64xf32>, i32 -> vector<256x64xf32>
    %284 = vector.broadcast %21 : vector<256x1xf32> to vector<256x64xf32>
    %285 = arith.mulf %283, %284 : vector<256x64xf32>
    %286 = arith.addf %265, %285 : vector<256x64xf32>
    %287 = vector.extract_strided_slice %37 {offsets = [26, 0], sizes = [1, 64], strides = [1, 1]} : vector<42x64xf32> to vector<1x64xf32>
    %288 = vector.shape_cast %287 : vector<1x64xf32> to vector<64xf32>
    %289 = vector.shape_cast %288 : vector<64xf32> to vector<1x64xf32>
    %290 = vector.broadcast %289 : vector<1x64xf32> to vector<256x64xf32>
    %291 = arith.mulf %240, %290 : vector<256x64xf32>
    %292 = vector.extract_strided_slice %37 {offsets = [27, 0], sizes = [1, 64], strides = [1, 1]} : vector<42x64xf32> to vector<1x64xf32>
    %293 = vector.shape_cast %292 : vector<1x64xf32> to vector<64xf32>
    %294 = vector.shape_cast %293 : vector<64xf32> to vector<1x64xf32>
    %295 = vector.broadcast %294 : vector<1x64xf32> to vector<256x64xf32>
    %296 = arith.mulf %237, %295 : vector<256x64xf32>
    %297 = arith.addf %291, %296 : vector<256x64xf32>
    %298 = vector.extract_strided_slice %37 {offsets = [28, 0], sizes = [1, 64], strides = [1, 1]} : vector<42x64xf32> to vector<1x64xf32>
    %299 = vector.shape_cast %298 : vector<1x64xf32> to vector<64xf32>
    %300 = vector.shape_cast %299 : vector<64xf32> to vector<1x64xf32>
    %301 = vector.broadcast %300 : vector<1x64xf32> to vector<256x64xf32>
    %302 = arith.mulf %243, %301 : vector<256x64xf32>
    %303 = arith.addf %297, %302 : vector<256x64xf32>
    %c240_i32_44 = arith.constant 240 : i32
    %304 = tpu.dynamic_rotate %303 by %c240_i32_44 dim 0 : vector<256x64xf32>, i32 -> vector<256x64xf32>
    %305 = vector.broadcast %26 : vector<256x1xf32> to vector<256x64xf32>
    %306 = arith.mulf %304, %305 : vector<256x64xf32>
    %307 = arith.addf %286, %306 : vector<256x64xf32>
    %308 = arith.mulf %307, %6 : vector<256x64xf32>
    %c1_i32_45 = arith.constant 1 : i32
    %309 = tpu.dynamic_rotate %308 by %c1_i32_45 dim 0 : vector<256x64xf32>, i32 -> vector<256x64xf32>
    %310 = vector.broadcast %31 : vector<256x1xf32> to vector<256x64xf32>
    %311 = arith.mulf %309, %310 : vector<256x64xf32>
    %c255_i32_46 = arith.constant 255 : i32
    %312 = tpu.dynamic_rotate %308 by %c255_i32_46 dim 0 : vector<256x64xf32>, i32 -> vector<256x64xf32>
    %313 = vector.broadcast %36 : vector<256x1xf32> to vector<256x64xf32>
    %314 = arith.mulf %312, %313 : vector<256x64xf32>
    %315 = vector.extract_strided_slice %37 {offsets = [33, 0], sizes = [1, 64], strides = [1, 1]} : vector<42x64xf32> to vector<1x64xf32>
    %316 = vector.shape_cast %315 : vector<1x64xf32> to vector<64xf32>
    %317 = vector.shape_cast %316 : vector<64xf32> to vector<1x64xf32>
    %318 = vector.broadcast %317 : vector<1x64xf32> to vector<256x64xf32>
    %319 = arith.mulf %311, %318 : vector<256x64xf32>
    %320 = vector.extract_strided_slice %37 {offsets = [34, 0], sizes = [1, 64], strides = [1, 1]} : vector<42x64xf32> to vector<1x64xf32>
    %321 = vector.shape_cast %320 : vector<1x64xf32> to vector<64xf32>
    %322 = vector.shape_cast %321 : vector<64xf32> to vector<1x64xf32>
    %323 = vector.broadcast %322 : vector<1x64xf32> to vector<256x64xf32>
    %324 = arith.mulf %308, %323 : vector<256x64xf32>
    %325 = arith.addf %319, %324 : vector<256x64xf32>
    %326 = vector.extract_strided_slice %37 {offsets = [35, 0], sizes = [1, 64], strides = [1, 1]} : vector<42x64xf32> to vector<1x64xf32>
    %327 = vector.shape_cast %326 : vector<1x64xf32> to vector<64xf32>
    %328 = vector.shape_cast %327 : vector<64xf32> to vector<1x64xf32>
    %329 = vector.broadcast %328 : vector<1x64xf32> to vector<256x64xf32>
    %330 = arith.mulf %314, %329 : vector<256x64xf32>
    %331 = arith.addf %325, %330 : vector<256x64xf32>
    %332 = vector.extract_strided_slice %37 {offsets = [39, 0], sizes = [1, 64], strides = [1, 1]} : vector<42x64xf32> to vector<1x64xf32>
    %333 = vector.shape_cast %332 : vector<1x64xf32> to vector<64xf32>
    %334 = vector.shape_cast %333 : vector<64xf32> to vector<1x64xf32>
    %335 = vector.broadcast %334 : vector<1x64xf32> to vector<256x64xf32>
    %336 = arith.addf %331, %335 : vector<256x64xf32>
    %337 = vector.extract_strided_slice %37 {offsets = [30, 0], sizes = [1, 64], strides = [1, 1]} : vector<42x64xf32> to vector<1x64xf32>
    %338 = vector.shape_cast %337 : vector<1x64xf32> to vector<64xf32>
    %339 = vector.shape_cast %338 : vector<64xf32> to vector<1x64xf32>
    %340 = vector.broadcast %339 : vector<1x64xf32> to vector<256x64xf32>
    %341 = arith.mulf %311, %340 : vector<256x64xf32>
    %342 = vector.extract_strided_slice %37 {offsets = [31, 0], sizes = [1, 64], strides = [1, 1]} : vector<42x64xf32> to vector<1x64xf32>
    %343 = vector.shape_cast %342 : vector<1x64xf32> to vector<64xf32>
    %344 = vector.shape_cast %343 : vector<64xf32> to vector<1x64xf32>
    %345 = vector.broadcast %344 : vector<1x64xf32> to vector<256x64xf32>
    %346 = arith.mulf %308, %345 : vector<256x64xf32>
    %347 = arith.addf %341, %346 : vector<256x64xf32>
    %348 = vector.extract_strided_slice %37 {offsets = [32, 0], sizes = [1, 64], strides = [1, 1]} : vector<42x64xf32> to vector<1x64xf32>
    %349 = vector.shape_cast %348 : vector<1x64xf32> to vector<64xf32>
    %350 = vector.shape_cast %349 : vector<64xf32> to vector<1x64xf32>
    %351 = vector.broadcast %350 : vector<1x64xf32> to vector<256x64xf32>
    %352 = arith.mulf %314, %351 : vector<256x64xf32>
    %353 = arith.addf %347, %352 : vector<256x64xf32>
    %c16_i32_47 = arith.constant 16 : i32
    %354 = tpu.dynamic_rotate %353 by %c16_i32_47 dim 0 : vector<256x64xf32>, i32 -> vector<256x64xf32>
    %355 = vector.broadcast %21 : vector<256x1xf32> to vector<256x64xf32>
    %356 = arith.mulf %354, %355 : vector<256x64xf32>
    %357 = arith.addf %336, %356 : vector<256x64xf32>
    %358 = vector.extract_strided_slice %37 {offsets = [36, 0], sizes = [1, 64], strides = [1, 1]} : vector<42x64xf32> to vector<1x64xf32>
    %359 = vector.shape_cast %358 : vector<1x64xf32> to vector<64xf32>
    %360 = vector.shape_cast %359 : vector<64xf32> to vector<1x64xf32>
    %361 = vector.broadcast %360 : vector<1x64xf32> to vector<256x64xf32>
    %362 = arith.mulf %311, %361 : vector<256x64xf32>
    %363 = vector.extract_strided_slice %37 {offsets = [37, 0], sizes = [1, 64], strides = [1, 1]} : vector<42x64xf32> to vector<1x64xf32>
    %364 = vector.shape_cast %363 : vector<1x64xf32> to vector<64xf32>
    %365 = vector.shape_cast %364 : vector<64xf32> to vector<1x64xf32>
    %366 = vector.broadcast %365 : vector<1x64xf32> to vector<256x64xf32>
    %367 = arith.mulf %308, %366 : vector<256x64xf32>
    %368 = arith.addf %362, %367 : vector<256x64xf32>
    %369 = vector.extract_strided_slice %37 {offsets = [38, 0], sizes = [1, 64], strides = [1, 1]} : vector<42x64xf32> to vector<1x64xf32>
    %370 = vector.shape_cast %369 : vector<1x64xf32> to vector<64xf32>
    %371 = vector.shape_cast %370 : vector<64xf32> to vector<1x64xf32>
    %372 = vector.broadcast %371 : vector<1x64xf32> to vector<256x64xf32>
    %373 = arith.mulf %314, %372 : vector<256x64xf32>
    %374 = arith.addf %368, %373 : vector<256x64xf32>
    %c240_i32_48 = arith.constant 240 : i32
    %375 = tpu.dynamic_rotate %374 by %c240_i32_48 dim 0 : vector<256x64xf32>, i32 -> vector<256x64xf32>
    %376 = vector.broadcast %26 : vector<256x1xf32> to vector<256x64xf32>
    %377 = arith.mulf %375, %376 : vector<256x64xf32>
    %378 = arith.addf %357, %377 : vector<256x64xf32>
    %c0_49 = arith.constant 0 : index
    %c0_50 = arith.constant 0 : index
    %c0_51 = arith.constant 0 : index
    %379 = vector.load %arg5[%c0_49, %c0_50, %c0_51] : memref<1x256x64xf32, #tpu.memory_space<vmem>>, vector<1x256x64xf32>
    %380 = vector.shape_cast %379 : vector<1x256x64xf32> to vector<256x64xf32>
    %381 = vector.shape_cast %378 : vector<256x64xf32> to vector<1x256x64xf32>
    tpu.vector_store %arg5[%c0_49, %c0_50, %c0_51], %381 {strides = array<i32>} : memref<1x256x64xf32, #tpu.memory_space<vmem>>, vector<1x256x64xf32>,
    return
  }
  func.func @transform_0(%arg0: i32) -> (i32, i32, i32) {
    %c0_i32 = arith.constant 0 : i32
    %c0_i32_0 = arith.constant 0 : i32
    %c0_i32_1 = arith.constant 0 : i32
    return %arg0, %c0_i32, %c0_i32_0 : i32, i32, i32
  }
  func.func @transform_1(%arg0: i32) -> (i32, i32) {
    %c0_i32 = arith.constant 0 : i32
    %c0_i32_0 = arith.constant 0 : i32
    %c0_i32_1 = arith.constant 0 : i32
    return %c0_i32, %c0_i32_0 : i32, i32
  }
  func.func @transform_2(%arg0: i32) -> (i32, i32) {
    %c0_i32 = arith.constant 0 : i32
    %c0_i32_0 = arith.constant 0 : i32
    %c0_i32_1 = arith.constant 0 : i32
    return %c0_i32, %c0_i32_0 : i32, i32
  }
  func.func @transform_3(%arg0: i32) -> (i32, i32) {
    %c0_i32 = arith.constant 0 : i32
    %c0_i32_0 = arith.constant 0 : i32
    %c0_i32_1 = arith.constant 0 : i32
    return %c0_i32, %c0_i32_0 : i32, i32
  }
  func.func @transform_4(%arg0: i32) -> (i32, i32, i32) {
    %c0_i32 = arith.constant 0 : i32
    %c0_i32_0 = arith.constant 0 : i32
    %c0_i32_1 = arith.constant 0 : i32
    return %arg0, %c0_i32, %c0_i32_0 : i32, i32, i32
  }
}

</mosaic_0001>

<bundles_post_ra>
// kernel: additive_token_mixer.1
= control target key start
LH: loop header
LB: loop body
LE: loop exit
PB: predicated region body
PF: predicated region fallthrough
CT: control target
= control target key end

     0   :  { %9 = vsyncpa [#allocation3], 0  ;;  %s14762_s0 = inlined_call_operand.vmem [shape: bf16[2,256,64], index: 0, kind: input, shape index: {}]   ;;  %s14763_s1 = inlined_call_operand.vmem [shape: bf16[64,192], index: 1, kind: input, shape index: {}]   ;;  %s14764_s2 = inlined_call_operand.vmem [shape: f32[42,64], index: 2, kind: input, shape index: {}]   ;;  %s14765_s3 = inlined_call_operand.vmem [shape: f32[128,64], index: 3, kind: input, shape index: {}]   ;;  %s14766_s4 = inlined_call_operand.hbm [shape: f32[2,256,64], index: 4, kind: output, shape index: {}]  }
   0x1   :  { %11 = vsyncpa [#allocation3 + $0x1], 0  ;;  %s7188_s15 = smov 0   ;;  %s7190_s16 = smov 0  }
   0x2   :  { %s7192_s17 = smov 0   ;;  %s7194_s18 = smov 0  }
   0x3 LB: > { %s7209_s19 = sadd.s32 4294967295, %s7154_s18   ;;  %s6570_s20 = sadd.s32 4294967294, %s7154_s18   ;;  %s7154_s18 = sphi %s7194_s18, %s16974_s18   ;;  %s7150_s17 = sphi %s7192_s17, %s16973_s17   ;;  %s7146_s16 = sphi %s7190_s16, %s16972_s16   ;;  %s7142_s15 = sphi %s7188_s15, %s16971_s15  }
   0x4   : > { %s7213_s21 = sadd.s32 1, %s7154_s18   ;;  %s113_s22 = sadd.s32 1, %s7150_s17 }
   0x5   : > { %s110_s23 = ssub.s32 %s7154_s18, %s7213_s21  ;;  %p123_p0 = scmp.ne.s32.totalorder %s7150_s17, %s7146_s16 }
   0x6   : > { %p111_p1 = scmp.eq.s32.totalorder %s110_s23, 0  ;;  %p124_p2 = scmp.eq.s32.totalorder %s7209_s19, 1 }
   0x7   : > { %p129_p3 = scmp.ne.s32.totalorder %s7146_s16, %s7142_s15  ;;  %p130_p4 = scmp.eq.s32.totalorder %s6570_s20, 1 }
   0x8   : > { %s7224_s24 = scalar_select %p111_p1, %s7150_s17, %s113_s22  }
   0x9   : > { %p7226_p5 = por %p124_p2, %p123_p0  ;;  %p7230_p6 = por %p130_p4, %p129_p3 }
   0xa   : > { %p6573_p7 = scmp.ge.s32.totalorder %s7154_s18, 1  ;;  %p165_p8 = scmp.lt.s32.totalorder %s7154_s18, 3 }
   0xc   : > { %p166_p9 = pnand %p6573_p7, %p165_p8 }
   0xe   : > { %169 = sbr.rel (%p166_p9) target bundleno = 1931 (0x78b), region = 36 }
  0x13   : > { %v6801_v0 = vld [vmem:[%s14763_s1 + $0x34] ss:$8 sps:$4 sm:$0xff]   ;;  %p191_p10 = scmp.lt.s32.totalorder %s7209_s19, 1  ;;  %v599_v1 = vlaneseq  ;;  %v6803_v2 = vld [vmem:[%s14763_s1 + $0x30] ss:$8 sps:$4 sm:$0xff]   ;;  %v7156_v3 = vmov 0  }
  0x14   : > { %438 = vmatprep.mubr.bf16.mxu0 %v7156_v3  ;;  %538 = vmatprep.mubr.bf16.mxu1 %v7156_v3  ;;  %v6804_v4 = vld [vmem:[%s14763_s1 + $0x24] ss:$8 sps:$4 sm:$0xff]   ;;  %v6806_v5 = vld [vmem:[%s14763_s1 + $0x20] ss:$8 sps:$4 sm:$0xff]   ;;  %v6807_v7 = vld [vmem:[%s14763_s1 + $0x14] ss:$8 sps:$4 sm:$0xff]  }
  0x15   : > { %414 = vmatprep.subr.bf16.mxu0 %v6801_v0  ;;  %6748 = vmatprep.subr.bf16.mxu1 %v6801_v0  ;;  %s192_s7 = scalar_select %p191_p10, %s7209_s19, 1  ;;  %v7252_v6 = vshrl.u32 %v599_v1, 7  ;;  %v7265_v8 = vld [vmem:[%s14764_s2 + $0x8] sm:$0xff]  ;;  %v6809_v10 = vld [vmem:[%s14763_s1 + $0x10] ss:$8 sps:$4 sm:$0xff]   ;;  %vm357_vm0 = vcmask 523264  }
  0x16   : > { %415 = vmatpush1.bf16.msra.mxu0 %v6803_v2  ;;  %6752 = vmatpush1.bf16.msra.mxu1 %v6803_v2  ;;  %v6810_v12 = vld [vmem:[%s14763_s1 + $0x4] ss:$8 sps:$4 sm:$0xff]   ;;  %v6812_v13 = vld [vmem:[%s14763_s1] ss:$8 sps:$4 sm:$0xff]   ;;  %v7306_v22 = vld [vmem:[%s14764_s2 + $0x10] sm:$0xff]  ;;  %v14773_v38 = vmov 0.0  }
  0x17   : > { %15314 = vst [vmem:[#allocation5_spill] sm:$0xff] %v7252_v6  ;;  %416 = vmatprep.subr.bf16.mxu0 %v6804_v4  ;;  %6749 = vmatprep.subr.bf16.mxu1 %v6804_v4  ;;  %s6690_s12 = sshll.u32 %s192_s7, 7  ;;  %v7268_v9 = vsub.s32 6, %v7252_v6  ;;  %s7157_s7 = smov 64   ;;  %v7283_v14 = vsub.s32 1, %v7252_v6  ;;  %v7286_v15 = vsub.s32 3, %v7252_v6  ;;  %v632_v42 = vcvt.s32.f32 %v7252_v6 }
  0x18   : > { %s7260_s20 = scalar_lea.vmem %s14762_s0, %s6690_s12  ;;  %v620_v39 = vadd.s32 160, %v7252_v6  ;;  %v601_v40 = vadd.s32 8, %v7252_v6  ;;  %v621_v41 = vadd.s32 168, %v7252_v6  ;;  %v7363_v49 = vadd.s32 16, %v7252_v6  ;;  %s188_s28 = sand.u32 1, %s7146_s16  }
  0x19   : > { %15315 = vst [vmem:[#allocation6_spill] sm:$0xff] %v7268_v9  ;;  %v2909_v11 = vrot.slane %v7265_v8, %v7268_v9  ;;  %15316 = vst [vmem:[#allocation7_spill] sm:$0xff] %v7283_v14  ;;  %v7290_v16 = vrot.slane %v7265_v8, %v7283_v14  ;;  %v6813_v17 = vld [vmem:[%s7260_s20] sm:$0xff]   ;;  %v3249_v18 = vrot.slane %v7265_v8, %v7286_v15  ;;  %v6814_v19 = vld [vmem:[%s7260_s20 + $0x50] sm:$0xff]   ;;  %v664_v46 = vadd.f32 0.5, %v632_v42  ;;  %s6574_s29 = sshll.u32 %s188_s28, 8 }
  0x1a   : > { %417 = vmatpush1.bf16.msra.mxu0 %v6806_v5  ;;  %6753 = vmatpush1.bf16.msra.mxu1 %v6806_v5  ;;  %15317 = vst [vmem:[#allocation8_spill] sm:$0xff] %v7286_v15  ;;  %v6815_v20 = vld [vmem:[%s7260_s20 + $0x8] sm:$0xff]   ;;  %v6816_v21 = vld [vmem:[%s7260_s20 + $0x58] sm:$0xff]   ;;  %v3617_v23 = vrot.slane %v7306_v22, %v7283_v14  ;;  %v7312_v24 = vrot.slane %v7306_v22, %v7268_v9  ;;  %v6817_v26 = vld [vmem:[%s7260_s20 + $0x10] sm:$0xff]   ;;  %v652_v43 = vcvt.s32.f32 %v620_v39  ;;  %v633_v44 = vcvt.s32.f32 %v601_v40  ;;  %s12887_s30 = scalar_lea.vmem [#allocation2], %s6574_s29  ;;  %s6691_s5 = sshll.u32 %s7209_s19, 12 }
  0x1b   : > { %418 = vmatprep.subr.bf16.mxu0 %v6807_v7  ;;  %6750 = vmatprep.subr.bf16.mxu1 %v6807_v7  ;;  %15318 = vst [vmem:[#allocation9_spill] sm:$0xff] %v7290_v16  ;;  %v7319_v25 = vrot.slane %v7306_v22, %v7286_v15  ;;  %v6818_v27 = vld [vmem:[%s7260_s20 + $0x60] sm:$0xff]   ;;  %v6819_v28 = vld [vmem:[%s7260_s20 + $0x18] sm:$0xff]   ;;  %v6820_v29 = vld [vmem:[%s7260_s20 + $0x68] sm:$0xff]   ;;  %v653_v45 = vcvt.s32.f32 %v621_v41  ;;  %v696_v51 = vmul.f32 0.0625, %v664_v46  ;;  %v7366_v52 = vadd.s32 176, %v7252_v6  ;;  %s14697_s9 = scalar_lea.hbm %s14766_s4, %s6691_s5 }
  0x1c   : > { %2911 = vrot.lane.b32.xlu0 %v2909_v11, %s7157_s7  ;;  %15319 = vst [vmem:[#allocation10_spill] sm:$0xff] %v7312_v24  ;;  %3619 = vrot.lane.b32.xlu1 %v3617_v23, %s7157_s7  ;;  %v6821_v30 = vld [vmem:[%s7260_s20 + $0x20] sm:$0xff]   ;;  %v6822_v31 = vld [vmem:[%s7260_s20 + $0x70] sm:$0xff]   ;;  %v684_v47 = vadd.f32 0.5, %v652_v43  ;;  %v665_v48 = vadd.f32 0.5, %v633_v44  ;;  %v634_v55 = vcvt.s32.f32 %v7363_v49  ;;  %v7370_v57 = vsub.s32 7, %v7252_v6 }
  0x1d   : > { %15320 = vst [vmem:[#allocation11_spill] sm:$0xff] %v7319_v25  ;;  %v6823_v32 = vld [vmem:[%s7260_s20 + $0x28] sm:$0xff]   ;;  %v6824_v33 = vld [vmem:[%s7260_s20 + $0x78] sm:$0xff]   ;;  %v6825_v34 = vld [vmem:[%s7260_s20 + $0x30] sm:$0xff]   ;;  %v685_v50 = vadd.f32 0.5, %v653_v45  ;;  %v728_v58 = vfloor.f32 %v696_v51  ;;  %v654_v59 = vcvt.s32.f32 %v7366_v52  ;;  %v7374_v61 = vadd.s32 24, %v7252_v6 }
  0x1e   : > { %419 = vmatpush1.bf16.msra.mxu0 %v6809_v10  ;;  %6754 = vmatpush1.bf16.msra.mxu1 %v6809_v10  ;;  %v6826_v35 = vld [vmem:[%s7260_s20 + $0x38] sm:$0xff]   ;;  %v6827_v36 = vld [vmem:[%s7260_s20 + $0x40] sm:$0xff]   ;;  %v6828_v37 = vld [vmem:[%s7260_s20 + $0x48] sm:$0xff]   ;;  %v716_v53 = vmul.f32 0.0625, %v684_v47  ;;  %v697_v54 = vmul.f32 0.0625, %v665_v48  ;;  %15321 = vst [vmem:[#allocation12_spill] sm:$0xff] %v7370_v57  ;;  %v7381_v63 = vrot.slane %v7265_v8, %v7370_v57 }
  0x1f   : > { %420 = vmatprep.subr.bf16.mxu0 %v6810_v12  ;;  %6751 = vmatprep.subr.bf16.mxu1 %v6810_v12  ;;  %v717_v56 = vmul.f32 0.0625, %v685_v50  ;;  %v7377_v62 = vadd.s32 184, %v7252_v6  ;;  %v7384_v0 = vsub.s32 4, %v7252_v6  ;;  %v666_v2 = vadd.f32 0.5, %v634_v55  ;;  %v7460_v48 = vld [vmem:[%s14764_s2 + $0x28] sm:$0x3] }
  0x20   : > { %3251 = vrot.lane.b32.xlu0 %v3249_v18, %s7157_s7  ;;  %v748_v60 = vfloor.f32 %v716_v53  ;;  %15322 = vst [vmem:[#allocation13_spill] sm:$0xff] %v7381_v63  ;;  %v729_v1 = vfloor.f32 %v697_v54  ;;  %v7394_v4 = vsub.s32 5, %v7252_v6  ;;  %v7397_v5 = vsub.s32 0, %v7252_v6  ;;  %s6508_s6 = sshll.u32 %s12887_s30, 4  ;;  %s14722_s10 = scalar_lea.sflag [#allocation3], %s188_s28  ;;  %s14699_s6 = int_to_ptr.vmem [resolvable:$true] %s6508_s6 }
  0x21   : > { %15323 = vst [vmem:[#allocation14_spill] sm:$0xff] %v7384_v0  ;;  %v749_v7 = vfloor.f32 %v717_v56  ;;  %v7400_v10 = vadd.s32 192, %v7252_v6  ;;  %v7408_v12 = vrot.slane %v7265_v8, %v7384_v0  ;;  %v7413_v18 = vsub.s32 2, %v7252_v6  ;;  %s7094_s11 = scalar_lea.vmem %s14699_s6, 4096  ;;  %s7160_s12 = smov [#allocation2]  }
  0x22   : > { %421 = vmatpush1.bf16.msra.mxu0 %v6812_v13  ;;  %6755 = vmatpush1.bf16.msra.mxu1 %v6812_v13  ;;  %15324 = vst [vmem:[#allocation15_spill] sm:$0xff] %v7394_v4  ;;  %15325 = vst [vmem:[#allocation16_spill] sm:$0xff] %v7397_v5  ;;  %v760_v13 = vmul.f32 16.0, %v728_v58  ;;  %v7419_v23 = vrot.slane %v7265_v8, %v7394_v4  ;;  %v7454_v41 = vrot.slane %v7306_v22, %v7397_v5  ;;  %p7095_p11 = scmp.ne.s32.totalorder %s14699_s6, %s7094_s11  ;;  %s7098_s13 = sshll.u32 %s7160_s12, 4  ;;  %s7099_s13 = int_to_ptr.vmem [resolvable:$false] %s7098_s13 }
  0x23   : > { %6710 = vmatprep.subr.mxu1 %v14773_v38  ;;  %15327 = vst [vmem:[#allocation18_spill] sm:$0xff] %v7408_v12  ;;  %15328 = vst [vmem:[#allocation19_spill] sm:$0xff] %v7413_v18  ;;  %v7469_v53 = vadd.s32 200, %v7252_v6  ;;  %v7529_v24 = vadd.s32 216, %v7252_v6  ;;  %s7100_s14 = scalar_lea.vmem %s7099_s13, 8192  ;;  %p7101_p0 = scmp.lt.s32.totalorder %s14699_s6, %s7099_s13 }
  0x24   : > { %15329 = vst [vmem:[#allocation20_spill] sm:$0xff] %v7419_v23  ;;  %15335 = vst [vmem:[#allocation26_spill] sm:$0xff] %v7454_v41  ;;  %p7096_p12 = pnand %p7095_p11, %p7226_p5  ;;  %p7102_p1 = scmp.lt.s32.totalorder %s7100_s14, %s7094_s11 }
  0x25   : > { %6601 = vmatmul.mubr.msk.bf16.vlgmr.msra.gmra.mxu0 %vm357_vm0, %v6813_v17  ;;  %6611 = vmatmul.mubr.msk.bf16.vlgmr.msra.gmra.mxu1 %vm357_vm0, %v6814_v19  ;;  %v686_v17 = vadd.f32 0.5, %v654_v59  ;;  %v780_v19 = vmul.f32 16.0, %v748_v60  ;;  %v15393_v23 = vcvt.s32.f32 %v7529_v24 }
  0x26   : > { %448 = vmatprep.mubr.bf16.mxu0 %v7156_v3  ;;  %548 = vmatprep.mubr.bf16.mxu1 %v7156_v3  ;;  %p7097_p13 = pneg %p7096_p12  ;;  %p7103_p2 = por %p7102_p1, %p7101_p0 }
  0x27   : > { %v7446_v39 = vsub.f32 %v652_v43, %v780_v19  ;;  %v7464_v43 = vrot.slane %v7306_v22, %v7413_v18 }
  0x28   : > { %p7104_p3 = pnand %p7103_p2, %p7097_p13 }
  0x29   : > { %15334 = vst [vmem:[#allocation25_spill] sm:$0xff] %v7446_v39  ;;  %15336 = vst [vmem:[#allocation27_spill] sm:$0xff] %v7464_v43  ;;  %vm1036_vm2 = vcmp.le.f32.partialorder %v7446_v39, 14.5 }
  0x2d   : > { %6602 = vmatmul.mubr.msk.bf16.gmra.mxu0 %vm357_vm0, %v6815_v20  ;;  %6612 = vmatmul.mubr.msk.bf16.gmra.mxu1 %vm357_vm0, %v6816_v21  ;;  %v14771_v20 = vcvt.s32.f32 %v7374_v61  ;;  %v14769_v21 = vcvt.s32.f32 %v7377_v62 }
  0x2e   : > { %458 = vmatprep.mubr.bf16.mxu0 %v7156_v3  ;;  %558 = vmatprep.mubr.bf16.mxu1 %v7156_v3 }
  0x2f   : > { %v687_v40 = vadd.f32 0.5, %v14769_v21 }
  0x31   : > { %v719_v58 = vmul.f32 0.0625, %v687_v40 }
  0x33   : > { %v751_v40 = vfloor.f32 %v719_v58 }
  0x35   : > { %6603 = vmatmul.mubr.msk.bf16.gmra.mxu0 %vm357_vm0, %v6817_v26  ;;  %6613 = vmatmul.mubr.msk.bf16.gmra.mxu1 %vm357_vm0, %v6818_v27  ;;  %v761_v26 = vmul.f32 16.0, %v729_v1  ;;  %v698_v27 = vmul.f32 0.0625, %v666_v2  ;;  %v7484_v2 = vadd.s32 48, %v7252_v6 }
  0x36   : > { %468 = vmatprep.mubr.bf16.mxu0 %v7156_v3  ;;  %568 = vmatprep.mubr.bf16.mxu1 %v7156_v3 }
  0x37   : > { %v730_v46 = vfloor.f32 %v698_v27  ;;  %v14776_v21 = vcvt.s32.f32 %v7484_v2 }
  0x39   : > { %v762_v60 = vmul.f32 16.0, %v730_v46 }
  0x3d   : > { %6604 = vmatmul.mubr.msk.bf16.gmra.mxu0 %vm357_vm0, %v6819_v28  ;;  %6614 = vmatmul.mubr.msk.bf16.gmra.mxu1 %vm357_vm0, %v6820_v29  ;;  %v7422_v28 = vadd.s32 32, %v7252_v6  ;;  %v7426_v29 = vrot.slane %v7265_v8, %v7397_v5 }
  0x3e   : > { %478 = vmatprep.mubr.bf16.mxu0 %v7156_v3  ;;  %578 = vmatprep.mubr.bf16.mxu1 %v7156_v3 }
  0x3f   : > { %15330 = vst [vmem:[#allocation21_spill] sm:$0xff] %v7426_v29  ;;  %v14767_v47 = vcvt.s32.f32 %v7422_v28 }
  0x41   : > { %v668_v1 = vadd.f32 0.5, %v14767_v47  ;;  %v794_v47 = vsub.f32 %v634_v55, %v762_v60 }
  0x43   : > { %vm954_vm7 = vcmp.ge.f32.partialorder %v794_v47, 0.5  ;;  %vm1018_vm9 = vcmp.le.f32.partialorder %v794_v47, 14.5 }
  0x45   : > { %6605 = vmatmul.mubr.msk.bf16.gmra.mxu0 %vm357_vm0, %v6821_v30  ;;  %6615 = vmatmul.mubr.msk.bf16.gmra.mxu1 %vm357_vm0, %v6822_v31  ;;  %v7430_v30 = vrot.slane %v7265_v8, %v7413_v18  ;;  %v781_v31 = vmul.f32 16.0, %v749_v7  ;;  %v667_v8 = vadd.f32 0.5, %v14771_v20  ;;  %v7512_v20 = vadd.s32 56, %v7252_v6 }
  0x46   : > { %488 = vmatprep.mubr.bf16.mxu0 %v7156_v3  ;;  %588 = vmatprep.mubr.bf16.mxu1 %v7156_v3 }
  0x47   : > { %15331 = vst [vmem:[#allocation22_spill] sm:$0xff] %v7430_v30  ;;  %v813_v50 = vsub.f32 %v653_v45, %v781_v31  ;;  %v699_v22 = vmul.f32 0.0625, %v667_v8  ;;  %v7479_v45 = vadd.s32 208, %v7252_v6 }
  0x49   : > { %vm973_vm4 = vcmp.ge.f32.partialorder %v813_v50, 0.5  ;;  %v731_v8 = vfloor.f32 %v699_v22  ;;  %v14777_v46 = vcvt.s32.f32 %v7479_v45  ;;  %vm1037_vm6 = vcmp.le.f32.partialorder %v813_v50, 14.5 }
  0x4a   : > { %v15345_v50 = vmov 0.0  }
  0x4b   : > { %v763_v60 = vmul.f32 16.0, %v731_v8 }
  0x4d   : > { %6606 = vmatmul.mubr.msk.bf16.gmra.mxu0 %vm357_vm0, %v6823_v32  ;;  %6616 = vmatmul.mubr.msk.bf16.gmra.mxu1 %vm357_vm0, %v6824_v33  ;;  %v14768_v32 = vcvt.s32.f32 %v7400_v10 }
  0x4e   : > { %498 = vmatprep.mubr.bf16.mxu0 %v7156_v3 }
  0x4f   : > { %v688_v51 = vadd.f32 0.5, %v14768_v32  ;;  %v700_v32 = vmul.f32 0.0625, %v668_v1  ;;  %v783_v1 = vmul.f32 16.0, %v751_v40  ;;  %v7540_v40 = vsel %vm1037_vm6, 1.0, %v15345_v50 }
  0x50   : > { %15347 = vst [vmem:[#allocation37_spill] sm:$0xff] %v7540_v40 }
  0x51   : > { %v720_v7 = vmul.f32 0.0625, %v688_v51  ;;  %v7504_v51 = vsel %vm973_vm4, 1.0, %v14773_v38 }
  0x52   : > { %15342 = vst [vmem:[#allocation33_spill] sm:$0xff] %v7504_v51 }
  0x55   : > { %6607 = vmatmul.mubr.msk.bf16.gmra.mxu0 %vm357_vm0, %v6825_v34  ;;  %v7437_v34 = vsub.f32 %v632_v42, %v760_v13  ;;  %v793_v42 = vsub.f32 %v633_v44, %v761_v26  ;;  %v7473_v44 = vrot.slane %v7460_v48, %v7283_v14  ;;  %v14772_v13 = vcvt.s32.f32 %v7469_v53 }
  0x56   : > { %508 = vmatprep.mubr.bf16.mxu0 %v7156_v3  ;;  %v7495_v26 = vsel %vm1036_vm2, 1.0, %v14773_v38 }
  0x57   : > { %15337 = vst [vmem:[#allocation28_spill] sm:$0xff] %v7473_v44  ;;  %vm1016_vm1 = vcmp.le.f32.partialorder %v7437_v34, 14.5  ;;  %vm953_vm3 = vcmp.ge.f32.partialorder %v793_v42, 0.5  ;;  %15340 = vst [vmem:[#allocation31_spill] sm:$0xff] %v7495_v26  ;;  %vm1017_vm5 = vcmp.le.f32.partialorder %v793_v42, 14.5  ;;  %v7550_v42 = vsel %vm954_vm7, 1.0, %v15345_v50 }
  0x58   : > { %v7492_v19 = vsel %vm1016_vm1, 1.0, %v14773_v38  ;;  %v7537_v8 = vsel %vm1017_vm5, 1.0, %v15345_v50  ;;  %15350 = vst [vmem:[#allocation38_spill] sm:$0xff] %v7550_v42 }
  0x59   : > { %15339 = vst [vmem:[#allocation30_spill] sm:$0xff] %v7492_v19  ;;  %15346 = vst [vmem:[#allocation36_spill] sm:$0xff] %v7537_v8 }
  0x5d   : > { %6608 = vmatmul.mubr.msk.bf16.gmra.mxu0 %vm357_vm0, %v6826_v35  ;;  %v718_v35 = vmul.f32 0.0625, %v686_v17 }
  0x5e   : > { %518 = vmatprep.mubr.bf16.mxu0 %v7156_v3 }
  0x5f   : > { %v750_v54 = vfloor.f32 %v718_v35  ;;  %v7500_v35 = vsel %vm953_vm3, 1.0, %v14773_v38  ;;  %v670_v38 = vadd.f32 0.5, %v14776_v21  ;;  %v15348_v21 = vcvt.s32.f32 %v7374_v61 }
  0x60   : > { %15341 = vst [vmem:[#allocation32_spill] sm:$0xff] %v7500_v35  ;;  %v15352_v61 = vcvt.s32.f32 %v7512_v20 }
  0x61   : > { %v782_v27 = vmul.f32 16.0, %v750_v54  ;;  %v752_v54 = vfloor.f32 %v720_v7  ;;  %v690_v7 = vadd.f32 0.5, %v14777_v46  ;;  %v795_v46 = vsub.f32 %v15348_v21, %v763_v60 }
  0x62   : > { %v671_v21 = vadd.f32 0.5, %v15352_v61  ;;  %v7559_v60 = vsel %vm1018_vm9, 1.0, %v15345_v50 }
  0x63   : > { %v814_v58 = vsub.f32 %v654_v59, %v782_v27  ;;  %v784_v52 = vmul.f32 16.0, %v752_v54  ;;  %v722_v27 = vmul.f32 0.0625, %v690_v7  ;;  %15353 = vst [vmem:[#allocation39_spill] sm:$0xff] %v7559_v60  ;;  %vm955_vm11 = vcmp.ge.f32.partialorder %v795_v46, 0.5 }
  0x64   : > { %vm1019_vm13 = vcmp.le.f32.partialorder %v795_v46, 14.5 }
  0x65   : > { %6609 = vmatmul.mubr.msk.bf16.gmra.mxu0 %vm357_vm0, %v6827_v36  ;;  %v7440_v36 = vadd.s32 40, %v7252_v6  ;;  %vm974_vm8 = vcmp.ge.f32.partialorder %v814_v58, 0.5  ;;  %vm1038_vm10 = vcmp.le.f32.partialorder %v814_v58, 14.5 }
  0x66   : > { %528 = vmatprep.mubr.bf16.mxu0 %v7156_v3  ;;  %v7391_v3 = vld [vmem:[%s14764_s2] sm:$0xff]  ;;  %v7563_v47 = vsel %vm974_vm8, 1.0, %v15345_v50  ;;  %v7578_v46 = vsel %vm1038_vm10, 1.0, %v15345_v50 }
  0x67   : > { %v7404_v11 = vrot.slane %v7391_v3, %v7268_v9  ;;  %v7435_v33 = vrot.slane %v7391_v3, %v7283_v14  ;;  %v14770_v56 = vcvt.s32.f32 %v7440_v36  ;;  %v7489_v17 = vrot.slane %v7391_v3, %v7384_v0  ;;  %15354 = vst [vmem:[#allocation40_spill] sm:$0xff] %v7563_v47  ;;  %15357 = vst [vmem:[#allocation42_spill] sm:$0xff] %v7578_v46 }
  0x68   : > { %v7516_v22 = vrot.slane %v7391_v3, %v7370_v57  ;;  %v7522_v55 = vrot.slane %v7391_v3, %v7394_v4  ;;  %v702_v0 = vmul.f32 0.0625, %v670_v38  ;;  %v14791_v14 = vcvt.s32.f32 %v7529_v24 }
  0x69   : > { %15326 = vst [vmem:[#allocation17_spill] sm:$0xff] %v7404_v11  ;;  %15332 = vst [vmem:[#allocation23_spill] sm:$0xff] %v7435_v33  ;;  %v669_v31 = vadd.f32 0.5, %v14770_v56  ;;  %v689_v56 = vadd.f32 0.5, %v14772_v13  ;;  %v732_v13 = vfloor.f32 %v700_v32 }
  0x6a   : > { %15338 = vst [vmem:[#allocation29_spill] sm:$0xff] %v7489_v17  ;;  %15343 = vst [vmem:[#allocation34_spill] sm:$0xff] %v7516_v22  ;;  %v734_v7 = vfloor.f32 %v702_v0  ;;  %v7581_v0 = vsel %vm1019_vm13, 1.0, %v15345_v50 }
  0x6b   : > { %v701_v49 = vmul.f32 0.0625, %v669_v31  ;;  %15344 = vst [vmem:[#allocation35_spill] sm:$0xff] %v7522_v55  ;;  %v721_v59 = vmul.f32 0.0625, %v689_v56  ;;  %v7533_v31 = vadd.s32 64, %v7252_v6  ;;  %v15349_v56 = vcvt.s32.f32 %v7377_v62  ;;  %15358 = vst [vmem:[#allocation43_spill] sm:$0xff] %v7581_v0 }
  0x6c   : > { %v764_v4 = vmul.f32 16.0, %v732_v13  ;;  %v15355_v13 = vcvt.s32.f32 %v7422_v28 }
  0x6d   : > { %6610 = vmatmul.mubr.msk.bf16.gmra.mxu0 %vm357_vm0, %v6828_v37  ;;  %v7444_v37 = vrot.slane %v7391_v3, %v7286_v15  ;;  %v733_v32 = vfloor.f32 %v701_v49  ;;  %v815_v54 = vsub.f32 %v15349_v56, %v783_v1  ;;  %v15351_v49 = vcvt.s32.f32 %v7400_v10 }
  0x6e   : > { %v753_v9 = vfloor.f32 %v721_v59  ;;  %v14790_v62 = vcvt.s32.f32 %v7533_v31  ;;  %v754_v10 = vfloor.f32 %v722_v27  ;;  %v796_v1 = vsub.f32 %v15355_v13, %v764_v4 }
  0x6f   : > { %15333 = vst [vmem:[#allocation24_spill] sm:$0xff] %v7444_v37  ;;  %v816_v57 = vsub.f32 %v15351_v49, %v784_v52  ;;  %v765_v38 = vmul.f32 16.0, %v733_v32  ;;  %vm975_vm12 = vcmp.ge.f32.partialorder %v815_v54, 0.5  ;;  %vm1039_vm14 = vcmp.le.f32.partialorder %v815_v54, 14.5 }
  0x70   : > { %v691_v52 = vadd.f32 0.5, %v14791_v14  ;;  %v785_v59 = vmul.f32 16.0, %v753_v9  ;;  %v703_v56 = vmul.f32 0.0625, %v671_v21  ;;  %v672_v49 = vadd.f32 0.5, %v14790_v62 }
  0x71   : > { %vm976_vm15 = vcmp.ge.f32.partialorder %v816_v57, 0.5  ;;  %v7574_v32 = vsel %vm955_vm11, 1.0, %v15345_v50  ;;  %v15359_v4 = vcvt.s32.f32 %v7440_v36  ;;  %v7591_v21 = vsel %vm975_vm12, 1.0, %v15345_v50 }
  0x72   : > { %15356 = vst [vmem:[#allocation41_spill] sm:$0xff] %v7574_v32  ;;  %15362 = vst [vmem:[#allocation46_spill] sm:$0xff] %v7591_v21  ;;  %v7595_v13 = vsel %vm1039_vm14, 1.0, %v15345_v50  ;;  %v786_v58 = vmul.f32 16.0, %v754_v10  ;;  %v7598_v62 = vadd.s32 224, %v7252_v6  ;;  %v7606_v36 = vsel %vm976_vm15, 1.0, %v15345_v50 }
  0x73   : > { %v797_v28 = vsub.f32 %v15359_v4, %v765_v38  ;;  %15363 = vst [vmem:[#allocation47_spill] sm:$0xff] %v7595_v13  ;;  %15364 = vst [vmem:[#allocation48_spill] sm:$0xff] %v7606_v36  ;;  %vm956_vm1 = vcmp.ge.f32.partialorder %v796_v1, 0.5  ;;  %v766_v38 = vmul.f32 16.0, %v734_v7  ;;  %v723_v4 = vmul.f32 0.0625, %v691_v52 }
  0x74   : > { %vm1020_vm2 = vcmp.le.f32.partialorder %v796_v1, 14.5  ;;  %v15367_v10 = vcvt.s32.f32 %v7469_v53  ;;  %v735_v13 = vfloor.f32 %v703_v56  ;;  %v704_v46 = vmul.f32 0.0625, %v672_v49 }
  0x75   : > { %vm957_vm3 = vcmp.ge.f32.partialorder %v797_v28, 0.5  ;;  %vm1040_vm4 = vcmp.le.f32.partialorder %v816_v57, 14.5  ;;  %vm1021_vm5 = vcmp.le.f32.partialorder %v797_v28, 14.5  ;;  %v7632_v57 = vsel %vm956_vm1, 1.0, %v15345_v50 }
  0x76   : > { %v817_v44 = vsub.f32 %v15367_v10, %v785_v59  ;;  %v7626_v59 = vadd.s32 232, %v7252_v6  ;;  %15371 = vst [vmem:[#allocation53_spill] sm:$0xff] %v7632_v57  ;;  %v7636_v56 = vsel %vm1020_vm2, 1.0, %v15345_v50  ;;  %v736_v53 = vfloor.f32 %v704_v46 }
  0x77   : > { %15372 = vst [vmem:[#allocation54_spill] sm:$0xff] %v7636_v56  ;;  %v7651_v1 = vsel %vm957_vm3, 1.0, %v15345_v50  ;;  %v15381_v46 = vcvt.s32.f32 %v7598_v62  ;;  %vm952_vm15 = vcmp.ge.f32.partialorder %v7437_v34, 0.5 }
  0x78   : > { %vm977_vm6 = vcmp.ge.f32.partialorder %v817_v44, 0.5  ;;  %15377 = vst [vmem:[#allocation58_spill] sm:$0xff] %v7651_v1  ;;  %vm1041_vm7 = vcmp.le.f32.partialorder %v817_v44, 14.5  ;;  %v15425_v34 = vcvt.s32.f32 %v7626_v59 }
  0x79   : > { %v7671_v28 = vsel %vm977_vm6, 1.0, %v15345_v50 }
  0x7a   : > { %15382 = vst [vmem:[#allocation62_spill] sm:$0xff] %v7671_v28 }
  0x8e   : > { %v7546_v15 = vpop.permute.xlu0 %2911  ;;  %v7682_v26 = vpop.permute.xlu1 %3619 }
  0x92   : > { %v7571_v61 = vpop.permute.xlu0 %3251 }
  0xe5   : > { %v7585_v9 = vpop.f32.mrf.mxu0  ;;  %v7587_v27 = vpop.f32.mrf.mxu1 }
  0xe6   : > { %15360 = vst [vmem:[#allocation44_spill] sm:$0xff] %v7585_v9  ;;  %15361 = vst [vmem:[#allocation45_spill] sm:$0xff] %v7587_v27  ;;  %2622 = vrot.lane.b32.xlu0 %v7587_v27, %s7157_s7  ;;  %2582 = vrot.lane.b32.xlu1 %v7585_v9, %s7157_s7  ;;  %v3274_v25 = vmul.f32 %v7571_v61, %v7587_v27  ;;  %v2914_v43 = vmul.f32 %v7546_v15, %v7585_v9 }
  0xe7   : > { %v7608_v54 = vpop.f32.mrf.mxu0  ;;  %v7610_v14 = vpop.f32.mrf.mxu1  ;;  %v3254_v12 = vmul.f32 %v7571_v61, %v7585_v9  ;;  %v2934_v63 = vmul.f32 %v7546_v15, %v7587_v27  ;;  %v3642_v24 = vmul.f32 %v7682_v26, %v7587_v27 }
  0xe8   : > { %15365 = vst [vmem:[#allocation49_spill] sm:$0xff] %v7608_v54  ;;  %15366 = vst [vmem:[#allocation50_spill] sm:$0xff] %v7610_v14  ;;  %v15370_v54 = vcvt.s32.f32 %v7479_v45  ;;  %v15373_v45 = vcvt.s32.f32 %v7484_v2  ;;  %v7655_v2 = vsel %vm1021_vm5, 1.0, %v15345_v50 }
  0xe9   : > { %v7618_v7 = vpop.f32.mrf.mxu0  ;;  %v7620_v52 = vpop.f32.mrf.mxu1  ;;  %15378 = vst [vmem:[#allocation59_spill] sm:$0xff] %v7655_v2 }
  0xea   : > { %15368 = vst [vmem:[#allocation51_spill] sm:$0xff] %v7618_v7  ;;  %15369 = vst [vmem:[#allocation52_spill] sm:$0xff] %v7620_v52  ;;  %v818_v14 = vsub.f32 %v15370_v54, %v786_v58  ;;  %3358 = vrot.lane.b32.xlu0 %v3274_v25, %s7157_s7  ;;  %2978 = vrot.lane.b32.xlu1 %v2914_v43, %s7157_s7  ;;  %v798_v49 = vsub.f32 %v15373_v45, %v766_v38  ;;  %v755_v58 = vfloor.f32 %v723_v4 }
  0xeb   : > { %v7640_v54 = vpop.f32.mrf.mxu0  ;;  %v7642_v10 = vpop.f32.mrf.mxu1  ;;  %v7645_v25 = vsel %vm1040_vm4, 1.0, %v15345_v50  ;;  %v767_v43 = vmul.f32 16.0, %v735_v13  ;;  %v7658_v38 = vadd.s32 240, %v7252_v6  ;;  %v692_v13 = vadd.f32 0.5, %v15381_v46 }
  0xec   : > { %15374 = vst [vmem:[#allocation55_spill] sm:$0xff] %v7640_v54  ;;  %15375 = vst [vmem:[#allocation56_spill] sm:$0xff] %v7642_v10  ;;  %vm978_vm8 = vcmp.ge.f32.partialorder %v818_v14, 0.5  ;;  %vm958_vm9 = vcmp.ge.f32.partialorder %v798_v49, 0.5  ;;  %vm1042_vm10 = vcmp.le.f32.partialorder %v818_v14, 14.5  ;;  %v787_v10 = vmul.f32 16.0, %v755_v58 }
  0xed   : > { %15376 = vst [vmem:[#allocation57_spill] sm:$0xff] %v7645_v25  ;;  %v7660_v4 = vpop.f32.mrf.mxu0  ;;  %v7662_v45 = vpop.f32.mrf.mxu1  ;;  %vm1022_vm11 = vcmp.le.f32.partialorder %v798_v49, 14.5  ;;  %v15385_v46 = vcvt.s32.f32 %v7512_v20  ;;  %v768_v54 = vmul.f32 16.0, %v736_v53  ;;  %v7688_v58 = vsel %vm1041_vm7, 1.0, %v15345_v50 }
  0xee   : > { %15379 = vst [vmem:[#allocation60_spill] sm:$0xff] %v7660_v4  ;;  %15380 = vst [vmem:[#allocation61_spill] sm:$0xff] %v7662_v45  ;;  %3318 = vrot.lane.b32.xlu1 %v3254_v12, %s7157_s7  ;;  %2584 = vrot.lane.b32.xlu0 %v7618_v7, %s7157_s7  ;;  %v7680_v12 = vadd.s32 248, %v7252_v6  ;;  %v7708_v44 = vsel %vm1042_vm10, 1.0, %v15345_v50  ;;  %v819_v40 = vsub.f32 %v15393_v23, %v787_v10  ;;  %v724_v39 = vmul.f32 0.0625, %v692_v13 }
  0xef   : > { %v7673_v25 = vpop.f32.mrf.mxu0  ;;  %v7675_v41 = vpop.f32.mrf.mxu1  ;;  %v799_v30 = vsub.f32 %v15385_v46, %v767_v43  ;;  %15386 = vst [vmem:[#allocation65_spill] sm:$0xff] %v7688_v58  ;;  %v7700_v43 = vsel %vm978_vm8, 1.0, %v15345_v50  ;;  %v7704_v46 = vsel %vm958_vm9, 1.0, %v15345_v50  ;;  %15391 = vst [vmem:[#allocation70_spill] sm:$0xff] %v7708_v44  ;;  %v7711_v58 = vadd.s32 80, %v7252_v6 }
  0xf0   : > { %15383 = vst [vmem:[#allocation63_spill] sm:$0xff] %v7673_v25  ;;  %15384 = vst [vmem:[#allocation64_spill] sm:$0xff] %v7675_v41  ;;  %v7691_v25 = vadd.s32 72, %v7252_v6  ;;  %v7718_v41 = vsel %vm1022_vm11, 1.0, %v15345_v50  ;;  %v15394_v14 = vcvt.s32.f32 %v7626_v59  ;;  %v2915_v23 = vmul.f32 %v7546_v15, %v7618_v7 }
  0xf1   : > { %v7694_v20 = vpop.f32.mrf.mxu0  ;;  %v7696_v53 = vpop.f32.mrf.mxu1  ;;  %15389 = vst [vmem:[#allocation68_spill] sm:$0xff] %v7700_v43  ;;  %15390 = vst [vmem:[#allocation69_spill] sm:$0xff] %v7704_v46  ;;  %vm959_vm12 = vcmp.ge.f32.partialorder %v799_v30, 0.5  ;;  %vm1023_vm13 = vcmp.le.f32.partialorder %v799_v30, 14.5  ;;  %v15398_v13 = vcvt.s32.f32 %v7658_v38  ;;  %v756_v10 = vfloor.f32 %v724_v39 }
  0xf2   : > { %15387 = vst [vmem:[#allocation66_spill] sm:$0xff] %v7694_v20  ;;  %15388 = vst [vmem:[#allocation67_spill] sm:$0xff] %v7696_v53  ;;  %3018 = vrot.lane.b32.xlu1 %v2934_v63, %s7157_s7  ;;  %2624 = vrot.lane.b32.xlu0 %v7620_v52, %s7157_s7  ;;  %v693_v2 = vadd.f32 0.5, %v15394_v14  ;;  %v15397_v63 = vcvt.s32.f32 %v7533_v31  ;;  %v7744_v31 = vadd.s32 120, %v7252_v6  ;;  %v7767_v16 = vsel %vm959_vm12, 1.0, %v15345_v50 }
  0xf3   : > { %15392 = vst [vmem:[#allocation71_spill] sm:$0xff] %v7718_v41  ;;  %v7724_v44 = vpop.f32.mrf.mxu0  ;;  %v7726_v60 = vpop.f32.mrf.mxu1  ;;  %v694_v14 = vadd.f32 0.5, %v15398_v13  ;;  %v7756_v13 = vrot.slane %v7391_v3, %v7397_v5  ;;  %15403 = vst [vmem:[#allocation78_spill] sm:$0xff] %v7767_v16  ;;  %vm979_vm14 = vcmp.ge.f32.partialorder %v819_v40, 0.5  ;;  %v7771_v39 = vsel %vm1023_vm13, 1.0, %v15345_v50 }
  0xf4   : > { %15395 = vst [vmem:[#allocation72_spill] sm:$0xff] %v7724_v44  ;;  %15396 = vst [vmem:[#allocation73_spill] sm:$0xff] %v7726_v60  ;;  %v7730_v46 = vsub.f32 %v15397_v63, %v768_v54  ;;  %v7747_v54 = vadd.s32 128, %v7252_v6  ;;  %v7750_v63 = vadd.s32 136, %v7252_v6  ;;  %v725_v49 = vmul.f32 0.0625, %v693_v2 }
  0xf5   : > { %v7740_v60 = vpop.f32.mrf.mxu0  ;;  %15400 = vst [vmem:[#allocation75_spill] sm:$0xff] %v7756_v13  ;;  %v7759_v44 = vadd.s32 88, %v7252_v6  ;;  %v7761_v41 = vpop.f32.mrf.mxu1  ;;  %15404 = vst [vmem:[#allocation79_spill] sm:$0xff] %v7771_v39  ;;  %v15405_v2 = vcvt.s32.f32 %v7680_v12  ;;  %v3255_v13 = vmul.f32 %v7571_v61, %v7618_v7  ;;  %v726_v29 = vmul.f32 0.0625, %v694_v14 }
  0xf6   : > { %15399 = vst [vmem:[#allocation74_spill] sm:$0xff] %v7740_v60  ;;  %3726 = vrot.lane.b32.xlu1 %v3642_v24, %s7157_s7  ;;  %2980 = vrot.lane.b32.xlu0 %v2915_v23, %s7157_s7  ;;  %15401 = vst [vmem:[#allocation76_spill] sm:$0xff] %v7761_v41  ;;  %v3622_v23 = vmul.f32 %v7682_v26, %v7585_v9  ;;  %v15407_v16 = vcvt.s32.f32 %v7711_v58  ;;  %vm1043_vm1 = vcmp.le.f32.partialorder %v819_v40, 14.5  ;;  %v7793_v14 = vadd.s32 96, %v7252_v6 }
  0xf7   : > { %v7763_v43 = vpop.f32.mrf.mxu0  ;;  %v695_v24 = vadd.f32 0.5, %v15405_v2  ;;  %v7799_v39 = vsel %vm979_vm14, 1.0, %v15345_v50  ;;  %v788_v0 = vmul.f32 16.0, %v756_v10  ;;  %v757_v30 = vfloor.f32 %v725_v49 }
  0xf8   : > { %15402 = vst [vmem:[#allocation77_spill] sm:$0xff] %v7763_v43  ;;  %v15406_v43 = vcvt.s32.f32 %v7691_v25  ;;  %v674_v56 = vadd.f32 0.5, %v15407_v16  ;;  %v7795_v16 = vpop.f32.mrf.mxu1  ;;  %15410 = vst [vmem:[#allocation82_spill] sm:$0xff] %v7799_v39  ;;  %v15411_v11 = vcvt.s32.f32 %v7744_v31  ;;  %v15413_v39 = vcvt.s32.f32 %v7750_v63 }
  0xf9   : > { %v7786_v2 = vpop.f32.mrf.mxu0  ;;  %15409 = vst [vmem:[#allocation81_spill] sm:$0xff] %v7795_v16  ;;  %v727_v1 = vmul.f32 0.0625, %v695_v24  ;;  %v15412_v16 = vcvt.s32.f32 %v7747_v54  ;;  %vm960_vm2 = vcmp.ge.f32.partialorder %v7730_v46, 0.5  ;;  %vm1024_vm3 = vcmp.le.f32.partialorder %v7730_v46, 14.5 }
  0xfa   : > { %v673_v28 = vadd.f32 0.5, %v15406_v43  ;;  %15408 = vst [vmem:[#allocation80_spill] sm:$0xff] %v7786_v2  ;;  %3686 = vrot.lane.b32.xlu1 %v3622_v23, %s7157_s7  ;;  %3320 = vrot.lane.b32.xlu0 %v3255_v13, %s7157_s7  ;;  %v2935_v13 = vmul.f32 %v7546_v15, %v7620_v52  ;;  %v3275_v23 = vmul.f32 %v7571_v61, %v7620_v52  ;;  %v758_v43 = vfloor.f32 %v726_v29  ;;  %v7823_v24 = vpop.f32.mrf.mxu1 }
  0xfb   : > { %v706_v22 = vmul.f32 0.0625, %v674_v56  ;;  %v679_v36 = vadd.f32 0.5, %v15411_v11  ;;  %v680_v21 = vadd.f32 0.5, %v15412_v16  ;;  %v681_v10 = vadd.f32 0.5, %v15413_v39  ;;  %v7811_v49 = vpop.f32.mrf.mxu0  ;;  %15417 = vst [vmem:[#allocation85_spill] sm:$0xff] %v7823_v24 }
  0xfc   : > { %v705_v57 = vmul.f32 0.0625, %v673_v28  ;;  %15414 = vst [vmem:[#allocation83_spill] sm:$0xff] %v7811_v49  ;;  %v7817_v28 = vsel %vm1043_vm1, 1.0, %v15345_v50  ;;  %v15416_v11 = vcvt.s32.f32 %v7759_v44  ;;  %v15418_v39 = vcvt.s32.f32 %v7598_v62 }
  0xfd   : > { %15415 = vst [vmem:[#allocation84_spill] sm:$0xff] %v7817_v28  ;;  %v3643_v40 = vmul.f32 %v7682_v26, %v7620_v52  ;;  %v3623_v49 = vmul.f32 %v7682_v26, %v7618_v7  ;;  %v790_v2 = vmul.f32 16.0, %v758_v43  ;;  %v711_v47 = vmul.f32 0.0625, %v679_v36  ;;  %v7832_v24 = vpop.f32.mrf.mxu0 }
  0xfe   : > { %3020 = vrot.lane.b32.xlu1 %v2935_v13, %s7157_s7  ;;  %3360 = vrot.lane.b32.xlu0 %v3275_v23, %s7157_s7  ;;  %v675_v29 = vadd.f32 0.5, %v15416_v11  ;;  %v820_v16 = vsub.f32 %v15418_v39, %v788_v0  ;;  %v789_v13 = vmul.f32 16.0, %v757_v30  ;;  %v759_v23 = vfloor.f32 %v727_v1  ;;  %15419 = vst [vmem:[#allocation86_spill] sm:$0xff] %v7832_v24 }
  0xff   : > { %v737_v28 = vfloor.f32 %v705_v57  ;;  %v738_v11 = vfloor.f32 %v706_v22  ;;  %v712_v56 = vmul.f32 0.0625, %v680_v21  ;;  %v713_v32 = vmul.f32 0.0625, %v681_v10  ;;  %v7848_v57 = vpop.f32.mrf.mxu1 }
 0x100   : > { %v7839_v62 = vsel %vm952_vm15, 1.0, %v15345_v50  ;;  %v7844_v0 = vsel %vm960_vm2, 1.0, %v15345_v50  ;;  %v707_v22 = vmul.f32 0.0625, %v675_v29  ;;  %v15422_v21 = vcvt.s32.f32 %v7793_v14  ;;  %15423 = vst [vmem:[#allocation89_spill] sm:$0xff] %v7848_v57 }
 0x101   : > { %15420 = vst [vmem:[#allocation87_spill] sm:$0xff] %v7839_v62  ;;  %15421 = vst [vmem:[#allocation88_spill] sm:$0xff] %v7844_v0  ;;  %vm980_vm4 = vcmp.ge.f32.partialorder %v820_v16, 0.5  ;;  %v7853_v1 = vsel %vm1024_vm3, 1.0, %v15345_v50  ;;  %v821_v30 = vsub.f32 %v15425_v34, %v789_v13  ;;  %v791_v43 = vmul.f32 16.0, %v759_v23  ;;  %v7861_v0 = vpop.f32.mrf.mxu0 }
 0x102   : > { %3728 = vrot.lane.b32.xlu1 %v3643_v40, %s7157_s7  ;;  %3688 = vrot.lane.b32.xlu0 %v3623_v49, %s7157_s7  ;;  %v676_v36 = vadd.f32 0.5, %v15422_v21  ;;  %15424 = vst [vmem:[#allocation90_spill] sm:$0xff] %v7853_v1  ;;  %v2936_v10 = vmul.f32 %v7546_v15, %v7662_v45  ;;  %vm1044_vm5 = vcmp.le.f32.partialorder %v820_v16, 14.5  ;;  %v769_v49 = vmul.f32 16.0, %v737_v28  ;;  %15427 = vst [vmem:[#allocation91_spill] sm:$0xff] %v7861_v0 }
 0x103   : > { %v15426_v29 = vcvt.s32.f32 %v7658_v38  ;;  %v770_v40 = vmul.f32 16.0, %v738_v11  ;;  %v743_v21 = vfloor.f32 %v711_v47  ;;  %v744_v57 = vfloor.f32 %v712_v56  ;;  %v7874_v47 = vpop.f32.mrf.mxu1 }
 0x104   : > { %v745_v62 = vfloor.f32 %v713_v32  ;;  %v7868_v59 = vrot.slane %v7391_v3, %v7413_v18  ;;  %v7872_v46 = vrot.slane %v7460_v48, %v7397_v5  ;;  %v739_v38 = vfloor.f32 %v707_v22  ;;  %15430 = vst [vmem:[#allocation94_spill] sm:$0xff] %v7874_v47 }
 0x105   : > { %v822_v39 = vsub.f32 %v15426_v29, %v790_v2  ;;  %v708_v2 = vmul.f32 0.0625, %v676_v36  ;;  %v7878_v32 = vsel %vm980_vm4, 1.0, %v15345_v50  ;;  %v7882_v28 = vsel %vm1044_vm5, 1.0, %v15345_v50 }
 0x106   : > { %3022 = vrot.lane.b32.xlu1 %v2936_v10, %s7157_s7  ;;  %2586 = vrot.lane.b32.xlu0 %v7660_v4, %s7157_s7  ;;  %15428 = vst [vmem:[#allocation92_spill] sm:$0xff] %v7868_v59  ;;  %15429 = vst [vmem:[#allocation93_spill] sm:$0xff] %v7872_v46  ;;  %vm981_vm6 = vcmp.ge.f32.partialorder %v821_v30, 0.5  ;;  %v15433_v3 = vcvt.s32.f32 %v7680_v12  ;;  %v3644_v48 = vmul.f32 %v7682_v26, %v7662_v45  ;;  %v15434_v13 = vcvt.s32.f32 %v7691_v25  ;;  %v7892_v10 = vpop.f32.mrf.mxu0 }
 0x107   : > { %15431 = vst [vmem:[#allocation95_spill] sm:$0xff] %v7878_v32  ;;  %15432 = vst [vmem:[#allocation96_spill] sm:$0xff] %v7882_v28  ;;  %vm1045_vm7 = vcmp.le.f32.partialorder %v821_v30, 14.5  ;;  %vm982_vm8 = vcmp.ge.f32.partialorder %v822_v39, 0.5  ;;  %v15435_v11 = vcvt.s32.f32 %v7711_v58  ;;  %v775_v36 = vmul.f32 16.0, %v743_v21  ;;  %v7903_v58 = vpop.f32.mrf.mxu1 }
 0x108   : > { %v823_v56 = vsub.f32 %v15433_v3, %v791_v43  ;;  %v801_v23 = vsub.f32 %v15434_v13, %v769_v49  ;;  %v776_v34 = vmul.f32 16.0, %v744_v57  ;;  %v777_v16 = vmul.f32 16.0, %v745_v62  ;;  %15436 = vst [vmem:[#allocation97_spill] sm:$0xff] %v7892_v10  ;;  %15439 = vst [vmem:[#allocation100_spill] sm:$0xff] %v7903_v58  ;;  %v7923_v3 = vpop.f32.mrf.mxu0 }
 0x109   : > { %v802_v22 = vsub.f32 %v15435_v11, %v770_v40  ;;  %v7898_v12 = vsel %vm981_vm6, 1.0, %v15345_v50  ;;  %v771_v25 = vmul.f32 16.0, %v739_v38  ;;  %v740_v43 = vfloor.f32 %v708_v2  ;;  %15446 = vst [vmem:[#allocation104_spill] sm:$0xff] %v7923_v3  ;;  %v7934_v11 = vpop.f32.mrf.mxu1 }
 0x10a   : > { %3730 = vrot.lane.b32.xlu1 %v3644_v48, %s7157_s7  ;;  %2626 = vrot.lane.b32.xlu0 %v7662_v45, %s7157_s7  ;;  %15437 = vst [vmem:[#allocation98_spill] sm:$0xff] %v7898_v12  ;;  %v7901_v30 = vadd.s32 144, %v7252_v6  ;;  %v7906_v57 = vsel %vm1045_vm7, 1.0, %v15345_v50  ;;  %v7909_v62 = vsel %vm982_vm8, 1.0, %v15345_v50  ;;  %vm1046_vm9 = vcmp.le.f32.partialorder %v822_v39, 14.5  ;;  %15449 = vst [vmem:[#allocation106_spill] sm:$0xff] %v7934_v11 }
 0x10b   : > { %15440 = vst [vmem:[#allocation101_spill] sm:$0xff] %v7906_v57  ;;  %15441 = vst [vmem:[#allocation102_spill] sm:$0xff] %v7909_v62  ;;  %vm983_vm10 = vcmp.ge.f32.partialorder %v823_v56, 0.5  ;;  %v2916_v49 = vmul.f32 %v7546_v15, %v7660_v4  ;;  %vm1134_vm11 = vcmp.lt.s32.totalorder %v7252_v6, 1  ;;  %vm1231_vm12 = vcmp.lt.s32.totalorder %v7252_v6, 7  ;;  %v15511_v12 = vld [vmem:[#allocation43_spill] sm:$0xff] }
 0x10c   : > { %15438 = vst [vmem:[#allocation99_spill] sm:$0xff] %v7901_v30  ;;  %vm961_vm13 = vcmp.ge.f32.partialorder %v801_v23, 0.5  ;;  %vm1025_vm14 = vcmp.le.f32.partialorder %v801_v23, 14.5  ;;  %vm1047_vm15 = vcmp.le.f32.partialorder %v823_v56, 14.5  ;;  %vm962_vm1 = vcmp.ge.f32.partialorder %v802_v22, 0.5 }
 0x10d   : > { %v15442_v29 = vcvt.s32.f32 %v7744_v31  ;;  %v15443_v21 = vcvt.s32.f32 %v7747_v54  ;;  %v15444_v39 = vcvt.s32.f32 %v7750_v63  ;;  %v7929_v48 = vsel %vm1046_vm9, 1.0, %v15345_v50 }
 0x10e   : > { %2982 = vrot.lane.b32.xlu0 %v2916_v49, %s7157_s7  ;;  %2588 = vrot.lane.b32.xlu1 %v7694_v20, %s7157_s7  ;;  %15447 = vst [vmem:[#allocation105_spill] sm:$0xff] %v7929_v48  ;;  %v15448_v31 = vcvt.s32.f32 %v7759_v44  ;;  %v772_v23 = vmul.f32 16.0, %v740_v43  ;;  %v14836_v54 = vcvt.s32.f32 %v7901_v30  ;;  %v7937_v63 = vsel %vm961_vm13, 1.0, %v15345_v50  ;;  %v7959_v49 = vpop.f32.mrf.mxu0 }
 0x10f   : > { %v807_v40 = vsub.f32 %v15442_v29, %v775_v36  ;;  %v808_v38 = vsub.f32 %v15443_v21, %v776_v34  ;;  %v7921_v2 = vsub.f32 %v15444_v39, %v777_v16  ;;  %15450 = vst [vmem:[#allocation107_spill] sm:$0xff] %v7937_v63  ;;  %v7940_v36 = vsel %vm1025_vm14, 1.0, %v15345_v50  ;;  %15455 = vst [vmem:[#allocation112_spill] sm:$0xff] %v7959_v49  ;;  %v7967_v39 = vpop.f32.mrf.mxu1 }
 0x110   : > { %v803_v13 = vsub.f32 %v15448_v31, %v771_v25  ;;  %15451 = vst [vmem:[#allocation108_spill] sm:$0xff] %v7940_v36  ;;  %v7944_v34 = vsel %vm983_vm10, 1.0, %v15345_v50  ;;  %v7948_v16 = vsel %vm1047_vm15, 1.0, %v15345_v50  ;;  %v3624_v44 = vmul.f32 %v7682_v26, %v7660_v4  ;;  %15457 = vst [vmem:[#allocation113_spill] sm:$0xff] %v7967_v39  ;;  %v8001_v39 = vpop.f32.mrf.mxu0 }
 0x111   : > { %15445 = vst [vmem:[#allocation103_spill] sm:$0xff] %v7921_v2  ;;  %15452 = vst [vmem:[#allocation109_spill] sm:$0xff] %v7944_v34  ;;  %v3625_v25 = vmul.f32 %v7682_v26, %v7694_v20  ;;  %v7956_v43 = vsel %vm962_vm1, 1.0, %v15345_v50  ;;  %vm1026_vm2 = vcmp.le.f32.partialorder %v802_v22, 14.5  ;;  %vm967_vm3 = vcmp.ge.f32.partialorder %v807_v40, 0.5 }
 0x112   : > { %15453 = vst [vmem:[#allocation110_spill] sm:$0xff] %v7948_v16  ;;  %15454 = vst [vmem:[#allocation111_spill] sm:$0xff] %v7956_v43  ;;  %vm1031_vm4 = vcmp.le.f32.partialorder %v807_v40, 14.5  ;;  %vm968_vm5 = vcmp.ge.f32.partialorder %v808_v38, 0.5  ;;  %vm969_vm6 = vcmp.ge.f32.partialorder %v7921_v2, 0.5  ;;  %3690 = vrot.lane.b32.xlu0 %v3624_v44, %s7157_s7  ;;  %vm963_vm7 = vcmp.ge.f32.partialorder %v803_v13, 0.5  ;;  %v8009_v40 = vpop.f32.mrf.mxu1 }
 0x113   : > { %3692 = vrot.lane.b32.xlu1 %v3625_v25, %s7157_s7  ;;  %v15456_v56 = vcvt.s32.f32 %v7793_v14  ;;  %vm1032_vm8 = vcmp.le.f32.partialorder %v808_v38, 14.5  ;;  %v682_v21 = vadd.f32 0.5, %v14836_v54  ;;  %v1200_v58 = vrot.slane %v7618_v7, 1  ;;  %15464 = vst [vmem:[#allocation120_spill] sm:$0xff] %v8001_v39  ;;  %15466 = vst [vmem:[#allocation122_spill] sm:$0xff] %v8009_v40  ;;  %v15509_v43 = vld [vmem:[#allocation58_spill] sm:$0xff] }
 0x114   : > { %v1103_v44 = vrot.slane %v7618_v7, 7  ;;  %v3256_v25 = vmul.f32 %v7571_v61, %v7660_v4  ;;  %v2937_v14 = vmul.f32 %v7546_v15, %v7696_v53  ;;  %v7988_v54 = vsel %vm967_vm3, 1.0, %v15345_v50 }
 0x115   : > { %v804_v29 = vsub.f32 %v15456_v56, %v772_v23  ;;  %v7979_v23 = vsel %vm1026_vm2, 1.0, %v15345_v50  ;;  %v7984_v56 = vsel %vm969_vm6, 1.0, %v15345_v50  ;;  %15460 = vst [vmem:[#allocation116_spill] sm:$0xff] %v7988_v54  ;;  %v7992_v3 = vsel %vm1031_vm4, 1.0, %v15345_v50 }
 0x116   : > { %15458 = vst [vmem:[#allocation114_spill] sm:$0xff] %v7979_v23  ;;  %15459 = vst [vmem:[#allocation115_spill] sm:$0xff] %v7984_v56  ;;  %v7996_v31 = vsel %vm968_vm5, 1.0, %v15345_v50  ;;  %v7999_v22 = vsel %vm1032_vm8, 1.0, %v15345_v50  ;;  %3322 = vrot.lane.b32.xlu0 %v3256_v25, %s7157_s7  ;;  %v8007_v0 = vsel %vm963_vm7, 1.0, %v15345_v50  ;;  %vm1027_vm9 = vcmp.le.f32.partialorder %v803_v13, 14.5 }
 0x117   : > { %15461 = vst [vmem:[#allocation117_spill] sm:$0xff] %v7992_v3  ;;  %15462 = vst [vmem:[#allocation118_spill] sm:$0xff] %v7996_v31  ;;  %3024 = vrot.lane.b32.xlu1 %v2937_v14, %s7157_s7  ;;  %vm964_vm10 = vcmp.ge.f32.partialorder %v804_v29, 0.5  ;;  %vm1028_vm13 = vcmp.le.f32.partialorder %v804_v29, 14.5  ;;  %v15467_v38 = vrot.slane %v7585_v9, 1  ;;  %v15468_v39 = vrot.slane %v7585_v9, 7 }
 0x118   : > { %15463 = vst [vmem:[#allocation119_spill] sm:$0xff] %v7999_v22  ;;  %15465 = vst [vmem:[#allocation121_spill] sm:$0xff] %v8007_v0  ;;  %v1123_v14 = vrot.slane %v7620_v52, 7  ;;  %v8020_v5 = vmul.f32 0.0625, %v682_v21  ;;  %v3276_v13 = vmul.f32 %v7571_v61, %v7662_v45  ;;  %v3645_v3 = vmul.f32 %v7682_v26, %v7696_v53  ;;  %v8034_v21 = vpop.f32.mrf.mxu0 }
 0x119   : > { %v1262_v18 = vsel %vm1231_vm12, %v15467_v38, %v1200_v58  ;;  %v1165_v25 = vsel %vm1134_vm11, %v15468_v39, %v1103_v44  ;;  %v1104_v28 = vrot.slane %v7660_v4, 7  ;;  %v1105_v22 = vrot.slane %v7694_v20, 7  ;;  %15470 = vst [vmem:[#allocation124_spill] sm:$0xff] %v8034_v21 }
 0x11a   : > { %v1124_v39 = vrot.slane %v7662_v45, 7  ;;  %v8032_v52 = vsel %vm1027_vm9, 1.0, %v15345_v50  ;;  %3362 = vrot.lane.b32.xlu0 %v3276_v13, %s7157_s7  ;;  %v8039_v23 = vmul.f32 %v1165_v25, %v7500_v35  ;;  %v8043_v57 = vsel %vm964_vm10, 1.0, %v15345_v50  ;;  %v8084_v30 = vpop.f32.mrf.mxu0 }
 0x11b   : > { %15469 = vst [vmem:[#allocation123_spill] sm:$0xff] %v8032_v52  ;;  %3732 = vrot.lane.b32.xlu1 %v3645_v3, %s7157_s7  ;;  %15472 = vst [vmem:[#allocation126_spill] sm:$0xff] %v8043_v57  ;;  %v8047_v38 = vsel %vm1028_vm13, 1.0, %v15345_v50  ;;  %v8050_v45 = vadd.s32 104, %v7252_v6  ;;  %v8052_v52 = vpop.f32.mrf.mxu1  ;;  %v8055_v13 = vmul.f32 %v1262_v18, %v7492_v19  ;;  %v15477_v3 = vrot.slane %v7587_v27, 7  ;;  %v15499_v50 = vld [vmem:[#allocation34_spill] sm:$0xff] }
 0x11c   : > { %15471 = vst [vmem:[#allocation125_spill] sm:$0xff] %v8039_v23  ;;  %15473 = vst [vmem:[#allocation127_spill] sm:$0xff] %v8047_v38  ;;  %v8063_v35 = vmul.f32 %v7489_v17, %v7585_v9  ;;  %v746_v29 = vfloor.f32 %v8020_v5  ;;  %v3277_v38 = vmul.f32 %v7571_v61, %v7696_v53  ;;  %v15479_v36 = vrot.slane %v7660_v4, 1 }
 0x11d   : > { %15474 = vst [vmem:[#allocation128_spill] sm:$0xff] %v8050_v45  ;;  %15475 = vst [vmem:[#allocation129_spill] sm:$0xff] %v8052_v52  ;;  %v1145_v25 = vsel %vm1134_vm11, %v15477_v3, %v1123_v14  ;;  %v1164_v52 = vsel %vm1134_vm11, %v1103_v44, %v1104_v28  ;;  %v8076_v3 = vmul.f32 %v7435_v33, %v7585_v9  ;;  %v1125_v1 = vrot.slane %v7696_v53, 7 }
 0x11e   : > { %15476 = vst [vmem:[#allocation130_spill] sm:$0xff] %v8055_v13  ;;  %15478 = vst [vmem:[#allocation131_spill] sm:$0xff] %v8063_v35  ;;  %v1261_v18 = vsel %vm1231_vm12, %v1200_v58, %v15479_v36  ;;  %v1163_v19 = vsel %vm1134_vm11, %v1104_v28, %v1105_v22  ;;  %v1144_v5 = vsel %vm1134_vm11, %v1123_v14, %v1124_v39  ;;  %2628 = vrot.lane.b32.xlu0 %v7696_v53, %s7157_s7  ;;  %v8097_v14 = vpop.f32.mrf.mxu1  ;;  %v15486_v53 = vld [vmem:[#allocation41_spill] sm:$0xff]  ;;  %vm4334_vm9 = vcmask 1048064  }
 0x11f   : > { %15480 = vst [vmem:[#allocation132_spill] sm:$0xff] %v8076_v3  ;;  %15481 = vst [vmem:[#allocation133_spill] sm:$0xff] %v8084_v30  ;;  %3364 = vrot.lane.b32.xlu1 %v3277_v38, %s7157_s7  ;;  %v8090_v58 = vmul.f32 %v1145_v25, %v7504_v51  ;;  %v1301_v28 = vmul.f32 %v7444_v37, %v8039_v23  ;;  %v1337_v36 = vmul.f32 %v7489_v17, %v7618_v7  ;;  %v15488_v7 = vld [vmem:[#allocation40_spill] sm:$0xff]  ;;  %vm7159_vm10 = vmmov 0  }
 0x120   : > { %15483 = vst [vmem:[#allocation135_spill] sm:$0xff] %v8097_v14  ;;  %v2917_v56 = vmul.f32 %v7546_v15, %v7694_v20  ;;  %v3257_v30 = vmul.f32 %v7571_v61, %v7694_v20  ;;  %v8104_v38 = vmul.f32 %v1261_v18, %v7537_v8  ;;  %v8108_v25 = vmul.f32 %v7522_v55, %v8055_v13  ;;  %v15498_v13 = vld [vmem:[#allocation17_spill] sm:$0xff] }
 0x121   : > { %15482 = vst [vmem:[#allocation134_spill] sm:$0xff] %v8090_v58  ;;  %v2918_v58 = vmul.f32 %v7546_v15, %v7740_v60  ;;  %v8113_v44 = vmul.f32 %v1164_v52, %v7550_v42  ;;  %v8116_v51 = vmul.f32 %v1163_v19, %v15486_v53  ;;  %v8119_v23 = vmul.f32 %v1144_v5, %v15488_v7  ;;  %v8129_v52 = vpop.f32.mrf.mxu0  ;;  %v15492_v5 = vld [vmem:[#allocation80_spill] sm:$0xff]  ;;  %v8137_v7 = vpop.f32.mrf.mxu1 }
 0x122   : > { %15484 = vst [vmem:[#allocation136_spill] sm:$0xff] %v8104_v38  ;;  %15485 = vst [vmem:[#allocation137_spill] sm:$0xff] %v8108_v25  ;;  %v1143_v18 = vsel %vm1134_vm11, %v1124_v39, %v1125_v1  ;;  %v15490_v8 = vrot.slane %v7761_v41, 7  ;;  %v1106_v54 = vrot.slane %v7740_v60, 7  ;;  %2984 = vrot.lane.b32.xlu0 %v2917_v56, %s7157_s7  ;;  %v3626_v19 = vmul.f32 %v7682_v26, %v7740_v60  ;;  %v15494_v39 = vld [vmem:[#allocation46_spill] sm:$0xff] }
 0x123   : > { %15487 = vst [vmem:[#allocation138_spill] sm:$0xff] %v8116_v51  ;;  %15489 = vst [vmem:[#allocation139_spill] sm:$0xff] %v8119_v23  ;;  %2986 = vrot.lane.b32.xlu1 %v2918_v58, %s7157_s7  ;;  %v1203_v23 = vrot.slane %v7740_v60, 1  ;;  %v1369_v53 = vadd.f32 %v1337_v36, %v1301_v28  ;;  %v8145_v56 = vmul.f32 %v7571_v61, %v7740_v60  ;;  %v15496_v36 = vld [vmem:[#allocation48_spill] sm:$0xff]  ;;  %v1128_v0 = vrot.slane %v7874_v47, 7 }
 0x124   : > { %v1142_v31 = vsel %vm1134_vm11, %v1125_v1, %v15490_v8  ;;  %15491 = vst [vmem:[#allocation140_spill] sm:$0xff] %v8129_v52  ;;  %15493 = vst [vmem:[#allocation141_spill] sm:$0xff] %v8137_v7  ;;  %v2938_v8 = vmul.f32 %v7546_v15, %v7761_v41  ;;  %v3646_v1 = vmul.f32 %v7682_v26, %v7761_v41 }
 0x125   : > { %v8150_v2 = vmul.f32 %v7571_v61, %v7761_v41  ;;  %v8153_v28 = vmul.f32 %v1143_v18, %v15494_v39  ;;  %v8156_v7 = vmul.f32 %v1142_v31, %v15496_v36  ;;  %v1405_v42 = vmul.f32 %v7522_v55, %v8104_v38 }
 0x126   : > { %v8162_v46 = vmul.f32 %v7546_v15, %v15492_v5  ;;  %v1162_v58 = vsel %vm1134_vm11, %v1105_v22, %v1106_v54  ;;  %v1747_v3 = vmul.f32 %v15498_v13, %v8116_v51  ;;  %v1783_v18 = vmul.f32 %v15499_v50, %v7694_v20  ;;  %3324 = vrot.lane.b32.xlu0 %v3257_v30, %s7157_s7 }
 0x127   : > { %15495 = vst [vmem:[#allocation142_spill] sm:$0xff] %v8153_v28  ;;  %15497 = vst [vmem:[#allocation143_spill] sm:$0xff] %v8156_v7  ;;  %v8170_v28 = vpop.f32.mrf.mxu0  ;;  %3694 = vrot.lane.b32.xlu1 %v3626_v19, %s7157_s7  ;;  %v8176_v31 = vmul.f32 %v7682_v26, %v15492_v5  ;;  %v15501_v7 = vrot.slane %v15492_v5, 7  ;;  %v15502_v36 = vrot.slane %v7694_v20, 1  ;;  %v8186_v38 = vmul.f32 16.0, %v746_v29  ;;  %v15505_v19 = vld [vmem:[#allocation85_spill] sm:$0xff] }
 0x128   : > { %15500 = vst [vmem:[#allocation144_spill] sm:$0xff] %v8170_v28  ;;  %v8188_v28 = vpop.f32.mrf.mxu1  ;;  %v8192_v30 = vmul.f32 %v7571_v61, %v15492_v5  ;;  %v8196_v51 = vmul.f32 %v7546_v15, %v15505_v19  ;;  %v1127_v57 = vrot.slane %v15505_v19, 7  ;;  %v8205_v29 = vmul.f32 %v7682_v26, %v15505_v19 }
 0x129   : > { %v1161_v22 = vsel %vm1134_vm11, %v1106_v54, %v15501_v7  ;;  %v1259_v39 = vsel %vm1231_vm12, %v15502_v36, %v1203_v23  ;;  %15503 = vst [vmem:[#allocation145_spill] sm:$0xff] %v8186_v38  ;;  %15504 = vst [vmem:[#allocation146_spill] sm:$0xff] %v8188_v28  ;;  %v15506_v7 = vrot.slane %v15492_v5, 1  ;;  %v8209_v36 = vmul.f32 %v7571_v61, %v15505_v19  ;;  %v15508_v38 = vld [vmem:[#allocation53_spill] sm:$0xff]  ;;  %v8221_v35 = vpop.f32.mrf.mxu0 }
 0x12a   : > { %v8212_v27 = vmul.f32 %v1162_v58, %v15508_v38  ;;  %v8216_v25 = vmul.f32 %v1161_v22, %v15509_v43  ;;  %v8219_v63 = vmul.f32 %v1259_v39, %v15511_v12  ;;  %15513 = vst [vmem:[#allocation150_spill] sm:$0xff] %v8221_v35  ;;  %2590 = vrot.lane.b32.xlu0 %v7740_v60, %s7157_s7  ;;  %v15516_v39 = vcvt.s32.f32 %v8050_v45 }
 0x12b   : > { %v1258_v54 = vsel %vm1231_vm12, %v1203_v23, %v15506_v7  ;;  %15507 = vst [vmem:[#allocation147_spill] sm:$0xff] %v8209_v36  ;;  %v1437_v23 = vadd.f32 %v1405_v42, %v1369_v53  ;;  %v1815_v7 = vadd.f32 %v1783_v18, %v1747_v3  ;;  %3026 = vrot.lane.b32.xlu1 %v2938_v8, %s7157_s7  ;;  %v15517_v42 = vld [vmem:[#allocation54_spill] sm:$0xff]  ;;  %v8239_v3 = vpop.f32.mrf.mxu1  ;;  %v15519_v18 = vrot.slane %v7761_v41, 7 }
 0x12c   : > { %15510 = vst [vmem:[#allocation148_spill] sm:$0xff] %v8216_v25  ;;  %15512 = vst [vmem:[#allocation149_spill] sm:$0xff] %v8219_v63  ;;  %v8228_v58 = vmul.f32 %v7571_v61, %v7832_v24  ;;  %v8232_v22 = vmul.f32 %v7546_v15, %v7874_v47  ;;  %v677_v43 = vadd.f32 0.5, %v15516_v39  ;;  %v8237_v53 = vmul.f32 %v1258_v54, %v15517_v42  ;;  %v15521_v42 = vld [vmem:[#allocation21_spill] sm:$0xff] }
 0x12d   : > { %15518 = vst [vmem:[#allocation153_spill] sm:$0xff] %v8239_v3  ;;  %v1141_v8 = vsel %vm1134_vm11, %v15519_v18, %v1127_v57  ;;  %v1108_v38 = vrot.slane %v7832_v24, 7  ;;  %v1748_v12 = vmul.f32 %v15498_v13, %v8212_v27  ;;  %v1784_v25 = vmul.f32 %v15499_v50, %v7740_v60 }
 0x12e   : > { %15514 = vst [vmem:[#allocation151_spill] sm:$0xff] %v8228_v58  ;;  %15515 = vst [vmem:[#allocation152_spill] sm:$0xff] %v8232_v22  ;;  %v8252_v39 = vmul.f32 %v7682_v26, %v7874_v47  ;;  %v1140_v54 = vsel %vm1134_vm11, %v1127_v57, %v1128_v0  ;;  %v1109_v3 = vrot.slane %v7892_v10, 7  ;;  %v1852_v18 = vmul.f32 %v15521_v42, %v8237_v53  ;;  %v8271_v58 = vpop.f32.mrf.mxu0  ;;  %v15525_v57 = vld [vmem:[#allocation62_spill] sm:$0xff] }
 0x12f   : > { %v8261_v22 = vmul.f32 %v7546_v15, %v7832_v24  ;;  %v8265_v45 = vmul.f32 %v7571_v61, %v7874_v47  ;;  %v8269_v35 = vmul.f32 %v7682_v26, %v7832_v24  ;;  %15524 = vst [vmem:[#allocation157_spill] sm:$0xff] %v8271_v58  ;;  %2630 = vrot.lane.b32.xlu0 %v7761_v41, %s7157_s7  ;;  %v8285_v24 = vadd.s32 112, %v7252_v6 }
 0x130   : > { %15520 = vst [vmem:[#allocation154_spill] sm:$0xff] %v8252_v39  ;;  %v1816_v39 = vadd.f32 %v1784_v25, %v1748_v12  ;;  %3734 = vrot.lane.b32.xlu1 %v3646_v1, %s7157_s7  ;;  %v8277_v36 = vmul.f32 %v1141_v8, %v15525_v57  ;;  %v8287_v12 = vpop.f32.mrf.mxu1  ;;  %v15529_v25 = vld [vmem:[#allocation68_spill] sm:$0xff]  ;;  %v15531_v41 = vrot.slane %v15492_v5, 7  ;;  %v1159_v57 = vsel %vm1134_vm11, %v1108_v38, %v1109_v3 }
 0x131   : > { %15522 = vst [vmem:[#allocation155_spill] sm:$0xff] %v8261_v22  ;;  %15523 = vst [vmem:[#allocation156_spill] sm:$0xff] %v8265_v45  ;;  %v15527_v22 = vld [vmem:[#allocation9_spill] sm:$0xff]  ;;  %v1851_v45 = vmul.f32 %v15521_v42, %v8219_v63  ;;  %v8290_v58 = vmul.f32 %v1140_v54, %v15529_v25  ;;  %v15534_v63 = vrot.slane %v7694_v20, 1  ;;  %v15535_v54 = vrot.slane %v7660_v4, 1  ;;  %v15547_v20 = vld [vmem:[#allocation39_spill] sm:$0xff] }
 0x132   : > { %15526 = vst [vmem:[#allocation158_spill] sm:$0xff] %v8277_v36  ;;  %v8280_v52 = vadd.f32 %v15527_v22, %v1437_v23  ;;  %15528 = vst [vmem:[#allocation159_spill] sm:$0xff] %v8287_v12  ;;  %v1160_v1 = vsel %vm1134_vm11, %v15531_v41, %v1108_v38  ;;  %v8297_v23 = vadd.f32 %v1852_v18, %v1816_v39  ;;  %v15542_v25 = vld [vmem:[#allocation69_spill] sm:$0xff] }
 0x133   : > { %15530 = vst [vmem:[#allocation160_spill] sm:$0xff] %v8290_v58  ;;  %v8301_v36 = vmul.f32 %v7546_v15, %v7892_v10  ;;  %v1260_v58 = vsel %vm1231_vm12, %v15535_v54, %v15534_v63  ;;  %v1746_v41 = vmul.f32 %v15498_v13, %v8113_v44  ;;  %v8315_v39 = vmul.f32 %v7682_v26, %v7892_v10  ;;  %v8329_v63 = vpop.f32.mrf.mxu0 }
 0x134   : > { %15532 = vst [vmem:[#allocation161_spill] sm:$0xff] %v8297_v23  ;;  %v8319_v18 = vmul.f32 %v7571_v61, %v7892_v10  ;;  %v8323_v38 = vmul.f32 %v7546_v15, %v7934_v11  ;;  %v8327_v8 = vmul.f32 %v7682_v26, %v7934_v11  ;;  %15540 = vst [vmem:[#allocation167_spill] sm:$0xff] %v8329_v63  ;;  %3326 = vrot.lane.b32.xlu0 %v8145_v56, %s7157_s7 }
 0x135   : > { %15533 = vst [vmem:[#allocation162_spill] sm:$0xff] %v8301_v36  ;;  %15536 = vst [vmem:[#allocation163_spill] sm:$0xff] %v8315_v39  ;;  %2592 = vrot.lane.b32.xlu1 %v15492_v5, %s7157_s7  ;;  %v8337_v54 = vmul.f32 %v7571_v61, %v7934_v11  ;;  %v8340_v23 = vmul.f32 %v1160_v1, %v15542_v25  ;;  %v1133_v13 = vrot.slane %v8287_v12, 7  ;;  %v15546_v39 = vrot.slane %v7934_v11, 7  ;;  %v15555_v25 = vld [vmem:[#allocation82_spill] sm:$0xff] }
 0x136   : > { %15537 = vst [vmem:[#allocation164_spill] sm:$0xff] %v8319_v18  ;;  %15538 = vst [vmem:[#allocation165_spill] sm:$0xff] %v8323_v38  ;;  %v8343_v38 = vadd.f32 %v1851_v45, %v1815_v7  ;;  %v8354_v36 = vmul.f32 %v1260_v58, %v15547_v20  ;;  %v8358_v1 = vmul.f32 %v7571_v61, %v7959_v49  ;;  %v1132_v7 = vrot.slane %v8188_v28, 7 }
 0x137   : > { %15539 = vst [vmem:[#allocation166_spill] sm:$0xff] %v8327_v8  ;;  %15541 = vst [vmem:[#allocation168_spill] sm:$0xff] %v8337_v54  ;;  %v15544_v8 = vld [vmem:[#allocation78_spill] sm:$0xff]  ;;  %v1139_v56 = vsel %vm1134_vm11, %v1128_v0, %v15546_v39  ;;  %v8362_v45 = vmul.f32 %v7546_v15, %v7959_v49  ;;  %v8369_v0 = vmul.f32 %v7546_v15, %v8009_v40  ;;  %v14926_v10 = vcvt.s32.f32 %v8285_v24 }
 0x138   : > { %15543 = vst [vmem:[#allocation169_spill] sm:$0xff] %v8340_v23  ;;  %v8346_v18 = vmul.f32 %v1159_v57, %v15544_v8  ;;  %15548 = vst [vmem:[#allocation171_spill] sm:$0xff] %v8358_v1  ;;  %v1782_v57 = vmul.f32 %v15499_v50, %v7660_v4  ;;  %v8373_v58 = vmul.f32 %v7682_v26, %v7959_v49  ;;  %v8383_v8 = vpop.f32.mrf.mxu0  ;;  %3366 = vrot.lane.b32.xlu0 %v8150_v2, %s7157_s7  ;;  %v15562_v50 = vld [vmem:[#allocation88_spill] sm:$0xff] }
 0x139   : > { %15549 = vst [vmem:[#allocation172_spill] sm:$0xff] %v8362_v45  ;;  %15550 = vst [vmem:[#allocation173_spill] sm:$0xff] %v8369_v0  ;;  %v8377_v39 = vmul.f32 %v7682_v26, %v8009_v40  ;;  %v8381_v5 = vmul.f32 %v7571_v61, %v8009_v40  ;;  %2988 = vrot.lane.b32.xlu1 %v8162_v46, %s7157_s7  ;;  %v8390_v20 = vmul.f32 %v1139_v56, %v15555_v25 }
 0x13a   : > { %15545 = vst [vmem:[#allocation170_spill] sm:$0xff] %v8346_v18  ;;  %15551 = vst [vmem:[#allocation174_spill] sm:$0xff] %v8373_v58  ;;  %v1135_v58 = vsel %vm1134_vm11, %v1132_v7, %v1133_v13  ;;  %v709_v0 = vmul.f32 0.0625, %v677_v43  ;;  %v1130_v2 = vrot.slane %v8009_v40, 7  ;;  %v1131_v18 = vrot.slane %v8097_v14, 7  ;;  %v8420_v54 = vpop.f32.mrf.mxu0 }
 0x13b   : > { %15552 = vst [vmem:[#allocation175_spill] sm:$0xff] %v8377_v39  ;;  %15553 = vst [vmem:[#allocation176_spill] sm:$0xff] %v8381_v5  ;;  %v1304_v39 = vmul.f32 %v7444_v37, %v8212_v27  ;;  %v15557_v5 = vrot.slane %v7959_v49, 7  ;;  %v1340_v46 = vmul.f32 %v7489_v17, %v7740_v60  ;;  %v1230_v56 = vrot.slane %v8287_v12, 1 }
 0x13c   : > { %15554 = vst [vmem:[#allocation177_spill] sm:$0xff] %v8383_v8  ;;  %15556 = vst [vmem:[#allocation178_spill] sm:$0xff] %v8390_v20  ;;  %v1408_v43 = vmul.f32 %v7522_v55, %v8237_v53  ;;  %v15558_v20 = vld [vmem:[#allocation75_spill] sm:$0xff]  ;;  %v1546_v45 = vmul.f32 %v7435_v33, %v7660_v4  ;;  %v1614_v40 = vmul.f32 %v7868_v59, %v8354_v36  ;;  %2632 = vrot.lane.b32.xlu0 %v15505_v19, %s7157_s7 }
 0x13d   : > { %v1158_v8 = vsel %vm1134_vm11, %v1109_v3, %v15557_v5  ;;  %v1510_v25 = vmul.f32 %v15558_v20, %v8113_v44  ;;  %v8412_v5 = vmul.f32 %v1135_v58, %v7944_v34  ;;  %v15560_v3 = vrot.slane %v7585_v9, 7  ;;  %15561 = vst [vmem:[#allocation180_spill] sm:$0xff] %v8420_v54  ;;  %3696 = vrot.lane.b32.xlu1 %v8176_v31, %s7157_s7 }
 0x13e   : > { %v1372_v23 = vadd.f32 %v1340_v46, %v1304_v39  ;;  %v8427_v58 = vmul.f32 %v1158_v8, %v15562_v50  ;;  %v1814_v34 = vadd.f32 %v1782_v57, %v1746_v41  ;;  %v1850_v39 = vmul.f32 %v15521_v42, %v8354_v36  ;;  %v15564_v41 = vld [vmem:[#allocation87_spill] sm:$0xff] }
 0x13f   : > { %15559 = vst [vmem:[#allocation179_spill] sm:$0xff] %v8412_v5  ;;  %v1166_v1 = vsel %vm1134_vm11, %v1133_v13, %v15560_v3  ;;  %v1578_v55 = vadd.f32 %v1546_v45, %v1510_v25  ;;  %v1136_v13 = vsel %vm1134_vm11, %v1131_v18, %v1132_v7  ;;  %v741_v46 = vfloor.f32 %v709_v0 }
 0x140   : > { %v1440_v3 = vadd.f32 %v1408_v43, %v1372_v23  ;;  %v8436_v19 = vmul.f32 %v7546_v15, %v8034_v21  ;;  %v15563_v31 = vrot.slane %v7585_v9, 1  ;;  %v8443_v57 = vmul.f32 %v1166_v1, %v15564_v41  ;;  %v8451_v43 = vpop.f32.mrf.mxu0  ;;  %3328 = vrot.lane.b32.xlu0 %v8192_v30, %s7157_s7 }
 0x141   : > { %v1646_v25 = vadd.f32 %v1614_v40, %v1578_v55  ;;  %v1539_v45 = vmul.f32 %v15558_v20, %v8412_v5  ;;  %v1575_v7 = vmul.f32 %v7435_v33, %v8287_v12  ;;  %15566 = vst [vmem:[#allocation182_spill] sm:$0xff] %v8451_v43  ;;  %3028 = vrot.lane.b32.xlu1 %v8196_v51, %s7157_s7  ;;  %v1111_v40 = vrot.slane %v8034_v21, 7 }
 0x142   : > { %v1263_v8 = vsel %vm1231_vm12, %v1230_v56, %v15563_v31  ;;  %15565 = vst [vmem:[#allocation181_spill] sm:$0xff] %v8443_v57  ;;  %v1476_v0 = vadd.f32 %v15527_v22, %v1440_v3  ;;  %v8459_v55 = vmul.f32 %v7682_v26, %v8034_v21  ;;  %v8463_v1 = vmul.f32 %v1136_v13, %v7909_v62 }
 0x143   : > { %v678_v3 = vadd.f32 0.5, %v14926_v10  ;;  %v15568_v31 = vrot.slane %v7934_v11, 7  ;;  %v8472_v23 = vmul.f32 %v1263_v8, %v7948_v16  ;;  %v15570_v51 = vrot.slane %v8188_v28, 1 }
 0x144   : > { %15567 = vst [vmem:[#allocation183_spill] sm:$0xff] %v8463_v1  ;;  %v8478_v5 = vadd.f32 %v1646_v25, %v1476_v0  ;;  %v8482_v13 = vmul.f32 %v7571_v61, %v8034_v21  ;;  %v1300_v10 = vmul.f32 %v7444_v37, %v8443_v57  ;;  %v1574_v8 = vmul.f32 %v7435_v33, %v8188_v28 }
 0x145   : > { %v1138_v30 = vsel %vm1134_vm11, %v15568_v31, %v1130_v2  ;;  %15569 = vst [vmem:[#allocation184_spill] sm:$0xff] %v8472_v23  ;;  %v1232_v43 = vsel %vm1231_vm12, %v15570_v51, %v1230_v56  ;;  %v1538_v31 = vmul.f32 %v15558_v20, %v8463_v1  ;;  %v8492_v9 = vmul.f32 %v7546_v15, %v8097_v14  ;;  %v8502_v51 = vpop.f32.mrf.mxu0 }
 0x146   : > { %15571 = vst [vmem:[#allocation185_spill] sm:$0xff] %v8482_v13  ;;  %v8496_v56 = vmul.f32 %v7682_v26, %v8097_v14  ;;  %v8500_v25 = vmul.f32 %v7571_v61, %v8097_v14  ;;  %v1607_v0 = vadd.f32 %v1575_v7, %v1539_v45  ;;  %15575 = vst [vmem:[#allocation189_spill] sm:$0xff] %v8502_v51  ;;  %2634 = vrot.lane.b32.xlu0 %v7874_v47, %s7157_s7  ;;  %v15703_v13 = vld [vmem:[#allocation169_spill] sm:$0xff] }
 0x147   : > { %15572 = vst [vmem:[#allocation186_spill] sm:$0xff] %v8492_v9  ;;  %3736 = vrot.lane.b32.xlu1 %v8205_v29, %s7157_s7  ;;  %v8509_v1 = vmul.f32 %v1138_v30, %v7878_v32  ;;  %v15577_v16 = vrot.slane %v7959_v49, 7  ;;  %v8516_v62 = vmul.f32 %v1232_v43, %v7929_v48  ;;  %v710_v45 = vmul.f32 0.0625, %v678_v3  ;;  %v15579_v30 = vld [vmem:[#allocation140_spill] sm:$0xff]  ;;  %v15580_v32 = vld [vmem:[#allocation131_spill] sm:$0xff] }
 0x148   : > { %15573 = vst [vmem:[#allocation187_spill] sm:$0xff] %v8496_v56  ;;  %15574 = vst [vmem:[#allocation188_spill] sm:$0xff] %v8500_v25  ;;  %v1137_v7 = vsel %vm1134_vm11, %v1130_v2, %v1131_v18  ;;  %v1643_v50 = vmul.f32 %v7868_v59, %v8472_v23  ;;  %v8522_v47 = vadd.f32 %v1850_v39, %v1814_v34  ;;  %v773_v29 = vmul.f32 16.0, %v741_v46  ;;  %v15583_v2 = vld [vmem:[#allocation107_spill] sm:$0xff]  ;;  %v8539_v46 = vpop.f32.mrf.mxu0  ;;  %v15595_v23 = vld [vmem:[#allocation128_spill] sm:$0xff] }
 0x149   : > { %15576 = vst [vmem:[#allocation190_spill] sm:$0xff] %v8509_v1  ;;  %v1157_v41 = vsel %vm1134_vm11, %v15577_v16, %v1111_v40  ;;  %15578 = vst [vmem:[#allocation191_spill] sm:$0xff] %v8516_v62  ;;  %v1112_v1 = vrot.slane %v15579_v30, 7  ;;  %v1368_v25 = vadd.f32 %v15580_v32, %v1300_v10  ;;  %v1606_v56 = vadd.f32 %v1574_v8, %v1538_v31  ;;  %v15586_v32 = vld [vmem:[#allocation147_spill] sm:$0xff] }
 0x14a   : > { %v1642_v16 = vmul.f32 %v7868_v59, %v8516_v62  ;;  %v8530_v43 = vmul.f32 %v7571_v61, %v8188_v28  ;;  %v8534_v18 = vmul.f32 %v7571_v61, %v15579_v30  ;;  %v8537_v34 = vmul.f32 %v1157_v41, %v15583_v2  ;;  %15585 = vst [vmem:[#allocation194_spill] sm:$0xff] %v8539_v46  ;;  %v15587_v10 = vld [vmem:[#allocation151_spill] sm:$0xff] }
 0x14b   : > { %v1675_v39 = vadd.f32 %v1643_v50, %v1607_v0  ;;  %3368 = vrot.lane.b32.xlu1 %v15586_v32, %s7157_s7  ;;  %3330 = vrot.lane.b32.xlu0 %v15587_v10, %s7157_s7  ;;  %v8547_v3 = vmul.f32 %v7546_v15, %v8188_v28  ;;  %v8551_v31 = vmul.f32 %v7546_v15, %v15579_v30  ;;  %v742_v50 = vfloor.f32 %v710_v45  ;;  %v15592_v0 = vld [vmem:[#allocation98_spill] sm:$0xff]  ;;  %v15598_v45 = vld [vmem:[#allocation137_spill] sm:$0xff] }
 0x14c   : > { %15581 = vst [vmem:[#allocation131_spill] sm:$0xff] %v8530_v43  ;;  %15582 = vst [vmem:[#allocation192_spill] sm:$0xff] %v8534_v18  ;;  %v8555_v41 = vmul.f32 %v7682_v26, %v8188_v28  ;;  %v8559_v8 = vmul.f32 %v7682_v26, %v15579_v30  ;;  %v8562_v32 = vmul.f32 %v1137_v7, %v15592_v0  ;;  %v15594_v10 = vld [vmem:[#allocation150_spill] sm:$0xff]  ;;  %v15596_v62 = vcvt.s32.f32 %v15595_v23  ;;  %v8580_v23 = vpop.f32.mrf.mxu0  ;;  %v15607_v0 = vld [vmem:[#allocation111_spill] sm:$0xff] }
 0x14d   : > { %15584 = vst [vmem:[#allocation193_spill] sm:$0xff] %v8537_v34  ;;  %15588 = vst [vmem:[#allocation147_spill] sm:$0xff] %v8547_v3  ;;  %v1113_v46 = vrot.slane %v15594_v10, 7  ;;  %v8569_v2 = vmul.f32 %v7571_v61, %v8287_v12  ;;  %v1674_v3 = vadd.f32 %v1642_v16, %v1606_v56  ;;  %v1677_v18 = vmul.f32 0.0, %v1675_v39 }
 0x14e   : > { %15589 = vst [vmem:[#allocation151_spill] sm:$0xff] %v8551_v31  ;;  %15590 = vst [vmem:[#allocation195_spill] sm:$0xff] %v8555_v41  ;;  %v805_v48 = vsub.f32 %v15596_v62, %v773_v29  ;;  %v1156_v41 = vsel %vm1134_vm11, %v1111_v40, %v1112_v1  ;;  %v1436_v31 = vadd.f32 %v15598_v45, %v1368_v25  ;;  %v15600_v29 = vld [vmem:[#allocation86_spill] sm:$0xff]  ;;  %v15601_v40 = vld [vmem:[#allocation152_spill] sm:$0xff]  ;;  %v1114_v45 = vrot.slane %v8329_v63, 7 }
 0x14f   : > { %15591 = vst [vmem:[#allocation196_spill] sm:$0xff] %v8559_v8  ;;  %15593 = vst [vmem:[#allocation197_spill] sm:$0xff] %v8562_v32  ;;  %v1512_v7 = vmul.f32 %v15558_v20, %v8212_v27  ;;  %v1548_v32 = vmul.f32 %v7435_v33, %v7740_v60  ;;  %v1616_v62 = vmul.f32 %v7868_v59, %v8237_v53  ;;  %2594 = vrot.lane.b32.xlu1 %v15600_v29, %s7157_s7  ;;  %v15651_v8 = vld [vmem:[#allocation103_spill] sm:$0xff] }
 0x150   : > { %15597 = vst [vmem:[#allocation128_spill] sm:$0xff] %v8569_v2  ;;  %15599 = vst [vmem:[#allocation137_spill] sm:$0xff] %v8580_v23  ;;  %3030 = vrot.lane.b32.xlu0 %v15601_v40, %s7157_s7  ;;  %v8588_v56 = vmul.f32 %v7546_v15, %v15594_v10  ;;  %v8592_v27 = vmul.f32 %v7571_v61, %v15594_v10  ;;  %v8596_v25 = vmul.f32 %v7682_v26, %v15594_v10 }
 0x151   : > { %v774_v53 = vmul.f32 16.0, %v742_v50  ;;  %v8600_v16 = vmul.f32 %v7682_v26, %v8287_v12  ;;  %v1155_v39 = vsel %vm1134_vm11, %v1112_v1, %v1113_v46  ;;  %v1580_v40 = vadd.f32 %v1548_v32, %v1512_v7 }
 0x152   : > { %15602 = vst [vmem:[#allocation152_spill] sm:$0xff] %v8588_v56  ;;  %15603 = vst [vmem:[#allocation198_spill] sm:$0xff] %v8592_v27  ;;  %v8607_v60 = vmul.f32 %v7546_v15, %v8287_v12  ;;  %v8610_v27 = vmul.f32 %v1156_v41, %v15607_v0  ;;  %v1676_v50 = vmul.f32 0.0, %v1674_v3  ;;  %v8615_v56 = vmul.f32 %v7546_v15, %v8329_v63  ;;  %v15613_v41 = vld [vmem:[#allocation154_spill] sm:$0xff]  ;;  %v15616_v0 = vld [vmem:[#allocation121_spill] sm:$0xff] }
 0x153   : > { %15604 = vst [vmem:[#allocation199_spill] sm:$0xff] %v8596_v25  ;;  %15605 = vst [vmem:[#allocation200_spill] sm:$0xff] %v8600_v16  ;;  %v1472_v25 = vadd.f32 %v15527_v22, %v1436_v31  ;;  %v8619_v1 = vmul.f32 %v7571_v61, %v8329_v63  ;;  %v1709_v32 = vadd.f32 %v1677_v18, %v8280_v52  ;;  %v8624_v16 = vpop.f32.mrf.mxu0  ;;  %v15614_v31 = vld [vmem:[#allocation155_spill] sm:$0xff]  ;;  %vm965_vm14 = vcmp.ge.f32.partialorder %v805_v48, 0.5 }
 0x154   : > { %15606 = vst [vmem:[#allocation201_spill] sm:$0xff] %v8607_v60  ;;  %15608 = vst [vmem:[#allocation202_spill] sm:$0xff] %v8610_v27  ;;  %v8622_v7 = vadd.f32 %v1616_v62, %v1580_v40  ;;  %3738 = vrot.lane.b32.xlu0 %v15613_v41, %s7157_s7  ;;  %2990 = vrot.lane.b32.xlu1 %v15614_v31, %s7157_s7  ;;  %v8632_v3 = vmul.f32 %v7682_v26, %v8329_v63  ;;  %v1115_v31 = vrot.slane %v8420_v54, 7  ;;  %v15625_v62 = vld [vmem:[#allocation126_spill] sm:$0xff] }
 0x155   : > { %15609 = vst [vmem:[#allocation203_spill] sm:$0xff] %v8615_v56  ;;  %15610 = vst [vmem:[#allocation204_spill] sm:$0xff] %v8619_v1  ;;  %v8635_v56 = vmul.f32 %v1155_v39, %v15616_v0  ;;  %v15618_v1 = vcvt.s32.f32 %v8285_v24  ;;  %v8642_v40 = vmul.f32 %v7546_v15, %v8420_v54  ;;  %v1154_v41 = vsel %vm1134_vm11, %v1113_v46, %v1114_v45  ;;  %v15638_v60 = vld [vmem:[#allocation162_spill] sm:$0xff] }
 0x156   : > { %15611 = vst [vmem:[#allocation205_spill] sm:$0xff] %v8622_v7  ;;  %15612 = vst [vmem:[#allocation206_spill] sm:$0xff] %v8624_v16  ;;  %v1708_v16 = vadd.f32 %v1676_v50, %v1472_v25  ;;  %vm1029_vm15 = vcmp.le.f32.partialorder %v805_v48, 14.5  ;;  %v1302_v39 = vmul.f32 %v7444_v37, %v8113_v44  ;;  %v1338_v24 = vmul.f32 %v7489_v17, %v7660_v4  ;;  %v8662_v50 = vpop.f32.mrf.mxu0  ;;  %v15624_v44 = vld [vmem:[#allocation156_spill] sm:$0xff] }
 0x157   : > { %15615 = vst [vmem:[#allocation154_spill] sm:$0xff] %v8632_v3  ;;  %15617 = vst [vmem:[#allocation155_spill] sm:$0xff] %v8635_v56  ;;  %v806_v52 = vsub.f32 %v15618_v1, %v774_v53  ;;  %v8653_v53 = vmul.f32 %v7571_v61, %v8420_v54  ;;  %v8657_v1 = vmul.f32 %v7682_v26, %v8420_v54  ;;  %v15627_v0 = vmov 0.0  }
 0x158   : > { %15620 = vst [vmem:[#allocation207_spill] sm:$0xff] %v8642_v40  ;;  %v1945_v46 = vadd.f32 %v8343_v38, %v1709_v32  ;;  %v1508_v25 = vmul.f32 %v15558_v20, %v8443_v57  ;;  %15623 = vst [vmem:[#allocation210_spill] sm:$0xff] %v8662_v50  ;;  %3370 = vrot.lane.b32.xlu0 %v15624_v44, %s7157_s7  ;;  %3698 = vrot.lane.b32.xlu1 %v8269_v35, %s7157_s7  ;;  %v8672_v18 = vsel %vm965_vm14, 1.0, %v15627_v0  ;;  %v15629_v38 = vld [vmem:[#allocation35_spill] sm:$0xff]  ;;  %v8702_v3 = vpop.f32.mrf.mxu0  ;;  %v8719_v2 = vpop.permute.xlu0 %2622 }
 0x159   : > { %15621 = vst [vmem:[#allocation208_spill] sm:$0xff] %v8653_v53  ;;  %15622 = vst [vmem:[#allocation209_spill] sm:$0xff] %v8657_v1  ;;  %v8669_v4 = vmul.f32 %v1154_v41, %v15625_v62  ;;  %vm966_vm1 = vcmp.ge.f32.partialorder %v806_v52, 0.5  ;;  %v1406_v32 = vmul.f32 %v15629_v38, %v8354_v36  ;;  %v8678_v57 = vmul.f32 %v7546_v15, %v8502_v51 }
 0x15a   : > { %15628 = vst [vmem:[#allocation211_spill] sm:$0xff] %v8672_v18  ;;  %v1153_v44 = vsel %vm1134_vm11, %v1114_v45, %v1115_v31  ;;  %v8684_v35 = vsel %vm1029_vm15, 1.0, %v15627_v0  ;;  %v1116_v41 = vrot.slane %v8502_v51, 7  ;;  %v8689_v62 = vmul.f32 %v7571_v61, %v8502_v51 }
 0x15b   : > { %15626 = vst [vmem:[#allocation156_spill] sm:$0xff] %v8669_v4  ;;  %15630 = vst [vmem:[#allocation212_spill] sm:$0xff] %v8678_v57  ;;  %v8693_v36 = vmul.f32 %v7682_v26, %v8502_v51  ;;  %v1944_v1 = vadd.f32 %v8522_v47, %v1708_v16  ;;  %v1370_v57 = vadd.f32 %v1338_v24, %v1302_v39  ;;  %v1977_v53 = vmax.f32 %v1945_v46, 0.0  ;;  %v15640_v24 = vld [vmem:[#allocation130_spill] sm:$0xff]  ;;  %v15649_v46 = vld [vmem:[#allocation93_spill] sm:$0xff] }
 0x15c   : > { %15631 = vst [vmem:[#allocation213_spill] sm:$0xff] %v8684_v35  ;;  %15632 = vst [vmem:[#allocation214_spill] sm:$0xff] %v8689_v62  ;;  %v8697_v45 = vsel %vm966_vm1, 1.0, %v15627_v0  ;;  %v1152_v48 = vsel %vm1134_vm11, %v1115_v31, %v1116_v41  ;;  %v15635_v35 = vld [vmem:[#allocation132_spill] sm:$0xff]  ;;  %v15637_v62 = vld [vmem:[#allocation97_spill] sm:$0xff]  ;;  %2992 = vrot.lane.b32.xlu1 %v15638_v60, %s7157_s7  ;;  %v8709_v47 = vmul.f32 %v1153_v44, %v8672_v18  ;;  %vm1030_vm2 = vcmp.le.f32.partialorder %v806_v52, 14.5  ;;  %v8721_v60 = vpop.permute.xlu1 %2582 }
 0x15d   : > { %15633 = vst [vmem:[#allocation215_spill] sm:$0xff] %v8693_v36  ;;  %15634 = vst [vmem:[#allocation216_spill] sm:$0xff] %v8697_v45  ;;  %v1576_v40 = vadd.f32 %v15635_v35, %v1508_v25  ;;  %2596 = vrot.lane.b32.xlu0 %v15637_v62, %s7157_s7  ;;  %v1117_v16 = vrot.slane %v8580_v23, 7  ;;  %v1438_v39 = vadd.f32 %v1406_v32, %v1370_v57  ;;  %v15641_v25 = vld [vmem:[#allocation138_spill] sm:$0xff]  ;;  %v8740_v18 = vsel %vm1030_vm2, 1.0, %v15627_v0 }
 0x15e   : > { %15636 = vst [vmem:[#allocation132_spill] sm:$0xff] %v8702_v3  ;;  %15639 = vst [vmem:[#allocation162_spill] sm:$0xff] %v8709_v47  ;;  %v1612_v31 = vmul.f32 %v7868_v59, %v15640_v24  ;;  %v1303_v35 = vmul.f32 %v7444_v37, %v15641_v25  ;;  %v15642_v3 = vld [vmem:[#allocation66_spill] sm:$0xff]  ;;  %v8725_v52 = vmul.f32 %v7546_v15, %v8580_v23  ;;  %v1976_v24 = vmax.f32 %v1944_v1, 0.0 }
 0x15f   : > { %v1339_v36 = vmul.f32 %v7489_v17, %v15642_v3  ;;  %15643 = vst [vmem:[#allocation138_spill] sm:$0xff] %v8719_v2  ;;  %15644 = vst [vmem:[#allocation217_spill] sm:$0xff] %v8721_v60  ;;  %v8729_v57 = vmul.f32 %v7571_v61, %v8580_v23  ;;  %v8733_v32 = vmul.f32 %v7682_v26, %v8580_v23  ;;  %vm1033_vm3 = vcmp.le.f32.partialorder %v15651_v8, 14.5  ;;  %v8768_v23 = vpop.permute.xlu0 %3358  ;;  %v15701_v8 = vld [vmem:[#allocation168_spill] sm:$0xff] }
 0x160   : > { %15645 = vst [vmem:[#allocation218_spill] sm:$0xff] %v8725_v52  ;;  %v8736_v44 = vmul.f32 %v1152_v48, %v8697_v45  ;;  %v2013_v47 = vmul.f32 %v15649_v46, %v1977_v53  ;;  %15650 = vst [vmem:[#allocation222_spill] sm:$0xff] %v8740_v18  ;;  %v1644_v12 = vadd.f32 %v1612_v31, %v1576_v40  ;;  %v8743_v52 = vpop.f32.mrf.mxu0  ;;  %v1118_v1 = vrot.slane %v8662_v50, 7  ;;  %v15656_v45 = vld [vmem:[#allocation80_spill] sm:$0xff] }
 0x161   : > { %15646 = vst [vmem:[#allocation219_spill] sm:$0xff] %v8729_v57  ;;  %15647 = vst [vmem:[#allocation220_spill] sm:$0xff] %v8733_v32  ;;  %2636 = vrot.lane.b32.xlu0 %v7934_v11, %s7157_s7  ;;  %v15653_v57 = vld [vmem:[#allocation163_spill] sm:$0xff]  ;;  %v8751_v48 = vmul.f32 %v7546_v15, %v8662_v50  ;;  %v1151_v53 = vsel %vm1134_vm11, %v1116_v41, %v1117_v16  ;;  %v1474_v40 = vadd.f32 %v15527_v22, %v1438_v39  ;;  %v8770_v41 = vpop.permute.xlu1 %2978 }
 0x162   : > { %15648 = vst [vmem:[#allocation221_spill] sm:$0xff] %v8736_v44  ;;  %15652 = vst [vmem:[#allocation103_spill] sm:$0xff] %v8743_v52  ;;  %3700 = vrot.lane.b32.xlu1 %v15653_v57, %s7157_s7  ;;  %v15655_v31 = vrot.slane %v15600_v29, 1  ;;  %v15657_v32 = vrot.slane %v15656_v45, 1  ;;  %v1371_v18 = vadd.f32 %v1339_v36, %v1303_v35  ;;  %v15658_v57 = vld [vmem:[#allocation149_spill] sm:$0xff]  ;;  %v8774_v39 = vmul.f32 %v7571_v61, %v8662_v50  ;;  %v8790_v43 = vpop.f32.mrf.mxu0  ;;  %v15670_v35 = vld [vmem:[#allocation148_spill] sm:$0xff] }
 0x163   : > { %15654 = vst [vmem:[#allocation163_spill] sm:$0xff] %v8751_v48  ;;  %v1407_v44 = vmul.f32 %v15629_v38, %v15658_v57  ;;  %v8766_v48 = vadd.s32 152, %v7252_v6  ;;  %15659 = vst [vmem:[#allocation149_spill] sm:$0xff] %v8768_v23  ;;  %v8778_v4 = vmul.f32 %v7682_v26, %v8662_v50  ;;  %v1150_v36 = vsel %vm1134_vm11, %v1117_v16, %v1118_v1  ;;  %v15664_v23 = vld [vmem:[#allocation116_spill] sm:$0xff]  ;;  %v15669_v16 = vld [vmem:[#allocation59_spill] sm:$0xff] }
 0x164   : > { %v1257_v11 = vsel %vm1231_vm12, %v15657_v32, %v15655_v31  ;;  %15660 = vst [vmem:[#allocation223_spill] sm:$0xff] %v8770_v41  ;;  %15661 = vst [vmem:[#allocation224_spill] sm:$0xff] %v8774_v39  ;;  %v8784_v32 = vsel %vm357_vm0, %v2013_v47, 0.0  ;;  %v2012_v31 = vmul.f32 %v15649_v46, %v1976_v24  ;;  %v8788_v41 = vmul.f32 %v1151_v53, %v15664_v23  ;;  %v15667_v39 = vld [vmem:[#allocation164_spill] sm:$0xff]  ;;  %v15671_v47 = vld [vmem:[#allocation17_spill] sm:$0xff]  ;;  %v8840_v28 = vpop.f32.mrf.mxu0 }
 0x165   : > { %15662 = vst [vmem:[#allocation225_spill] sm:$0xff] %v8778_v4  ;;  %15663 = vst [vmem:[#allocation226_spill] sm:$0xff] %v8784_v32  ;;  %v1710_v51 = vadd.f32 %v1644_v12, %v1474_v40  ;;  %3332 = vrot.lane.b32.xlu0 %v15667_v39, %s7157_s7  ;;  %v15668_v4 = vld [vmem:[#allocation165_spill] sm:$0xff]  ;;  %v8797_v50 = vmul.f32 %v1257_v11, %v15669_v16  ;;  %v1749_v32 = vmul.f32 %v15671_v47, %v15670_v35  ;;  %v15672_v24 = vld [vmem:[#allocation34_spill] sm:$0xff]  ;;  %v8810_v23 = vpop.permute.xlu1 %3318  ;;  %v8812_v11 = vpop.permute.xlu0 %2584 }
 0x166   : > { %15665 = vst [vmem:[#allocation227_spill] sm:$0xff] %v8788_v41  ;;  %15666 = vst [vmem:[#allocation228_spill] sm:$0xff] %v8790_v43  ;;  %3032 = vrot.lane.b32.xlu1 %v15668_v4, %s7157_s7  ;;  %v1785_v54 = vmul.f32 %v15672_v24, %v15656_v45  ;;  %v1206_v53 = vrot.slane %v15637_v62, 1  ;;  %v15673_v12 = vld [vmem:[#allocation118_spill] sm:$0xff]  ;;  %v1439_v43 = vadd.f32 %v1407_v44, %v1371_v18  ;;  %v15675_v41 = vld [vmem:[#allocation125_spill] sm:$0xff]  ;;  %v15681_v44 = vrot.slane %v8743_v52, 7 }
 0x167   : > { %v8805_v40 = vmul.f32 %v1150_v36, %v15673_v12  ;;  %v1509_v39 = vmul.f32 %v15558_v20, %v15675_v41  ;;  %15676 = vst [vmem:[#allocation165_spill] sm:$0xff] %v8810_v23  ;;  %15677 = vst [vmem:[#allocation148_spill] sm:$0xff] %v8812_v11  ;;  %v8816_v16 = vmul.f32 %v7546_v15, %v8743_v52  ;;  %v15682_v4 = vld [vmem:[#allocation161_spill] sm:$0xff]  ;;  %v15684_v23 = vld [vmem:[#allocation99_spill] sm:$0xff] }
 0x168   : > { %v8820_v60 = vmul.f32 %v7571_v61, %v8743_v52  ;;  %v8824_v18 = vmul.f32 %v7682_v26, %v8743_v52  ;;  %v1149_v36 = vsel %vm1134_vm11, %v1118_v1, %v15681_v44  ;;  %v1946_v41 = vadd.f32 %v15682_v4, %v1710_v51  ;;  %v15683_v12 = vld [vmem:[#allocation145_spill] sm:$0xff] }
 0x169   : > { %15674 = vst [vmem:[#allocation164_spill] sm:$0xff] %v8805_v40  ;;  %15678 = vst [vmem:[#allocation229_spill] sm:$0xff] %v8816_v16  ;;  %v15685_v40 = vcvt.s32.f32 %v15684_v23  ;;  %v15687_v16 = vld [vmem:[#allocation51_spill] sm:$0xff]  ;;  %2598 = vrot.lane.b32.xlu0 %v7959_v49, %s7157_s7  ;;  %v8847_v51 = vsel %vm357_vm0, %v2012_v31, 0.0  ;;  %v1817_v23 = vadd.f32 %v1785_v54, %v1749_v32  ;;  %v1853_v1 = vmul.f32 %v15521_v42, %v8797_v50  ;;  %v8859_v9 = vpop.permute.xlu1 %3018  ;;  %v8861_v31 = vpop.permute.xlu0 %2624 }
 0x16a   : > { %15679 = vst [vmem:[#allocation230_spill] sm:$0xff] %v8820_v60  ;;  %15680 = vst [vmem:[#allocation231_spill] sm:$0xff] %v8824_v18  ;;  %v1545_v56 = vmul.f32 %v7435_v33, %v15687_v16  ;;  %v15688_v60 = vld [vmem:[#allocation136_spill] sm:$0xff]  ;;  %v15690_v18 = vld [vmem:[#allocation166_spill] sm:$0xff]  ;;  %v1475_v4 = vadd.f32 %v15527_v22, %v1439_v43  ;;  %v1207_v16 = vrot.slane %v7959_v49, 1  ;;  %v1305_v43 = vmul.f32 %v7444_v37, %v15670_v35 }
 0x16b   : > { %v8834_v11 = vsub.f32 %v15685_v40, %v15683_v12  ;;  %v1613_v7 = vmul.f32 %v7868_v59, %v15688_v60  ;;  %15689 = vst [vmem:[#allocation145_spill] sm:$0xff] %v8840_v28  ;;  %3740 = vrot.lane.b32.xlu1 %v15690_v18, %s7157_s7  ;;  %15691 = vst [vmem:[#allocation99_spill] sm:$0xff] %v8847_v51  ;;  %v15692_v12 = vrot.slane %v15600_v29, 1  ;;  %v15693_v18 = vcvt.s32.f32 %v8766_v48  ;;  %v15695_v54 = vld [vmem:[#allocation115_spill] sm:$0xff] }
 0x16c   : > { %v1577_v44 = vadd.f32 %v1545_v56, %v1509_v39  ;;  %15694 = vst [vmem:[#allocation166_spill] sm:$0xff] %v8859_v9  ;;  %v8864_v32 = vmul.f32 %v1149_v36, %v15695_v54  ;;  %v8869_v51 = vsel %vm1033_vm3, 1.0, %v15627_v0  ;;  %v1341_v56 = vmul.f32 %v7489_v17, %v15656_v45  ;;  %v15699_v36 = vld [vmem:[#allocation71_spill] sm:$0xff]  ;;  %v8883_v9 = vpop.f32.mrf.mxu0 }
 0x16d   : > { %15686 = vst [vmem:[#allocation161_spill] sm:$0xff] %v8834_v11  ;;  %v1256_v40 = vsel %vm1231_vm12, %v15692_v12, %v1206_v53  ;;  %v683_v60 = vadd.f32 0.5, %v15693_v18  ;;  %15697 = vst [vmem:[#allocation233_spill] sm:$0xff] %v8869_v51  ;;  %v8877_v39 = vmul.f32 %v7546_v15, %v8840_v28  ;;  %v15702_v51 = vld [vmem:[#allocation122_spill] sm:$0xff]  ;;  %vm970_vm4 = vcmp.ge.f32.partialorder %v8834_v11, 0.5 }
 0x16e   : > { %15696 = vst [vmem:[#allocation232_spill] sm:$0xff] %v8864_v32  ;;  %v1645_v18 = vadd.f32 %v1613_v7, %v1577_v44  ;;  %v8881_v32 = vmul.f32 %v1256_v40, %v15699_v36  ;;  %15700 = vst [vmem:[#allocation235_spill] sm:$0xff] %v8883_v9  ;;  %2638 = vrot.lane.b32.xlu0 %v15702_v51, %s7157_s7  ;;  %v1885_v54 = vadd.f32 %v1853_v1, %v1817_v23  ;;  %v8896_v36 = vpop.permute.xlu1 %3726 }
 0x16f   : > { %15698 = vst [vmem:[#allocation234_spill] sm:$0xff] %v8877_v39  ;;  %3372 = vrot.lane.b32.xlu1 %v15701_v8, %s7157_s7  ;;  %v1750_v39 = vmul.f32 %v15671_v47, %v15703_v13  ;;  %v1786_v7 = vmul.f32 %v15672_v24, %v15600_v29  ;;  %v1978_v44 = vmax.f32 %v1946_v41, 0.0  ;;  %v715_v12 = vmul.f32 0.0625, %v683_v60  ;;  %15704 = vst [vmem:[#allocation168_spill] sm:$0xff] %v8896_v36  ;;  %v8898_v8 = vpop.permute.xlu0 %2980 }
 0x170   : > { %v1711_v40 = vadd.f32 %v1645_v18, %v1475_v4  ;;  %v1255_v9 = vsel %vm1231_vm12, %v1206_v53, %v1207_v16  ;;  %15705 = vst [vmem:[#allocation169_spill] sm:$0xff] %v8898_v8  ;;  %v1373_v51 = vadd.f32 %v1341_v56, %v1305_v43  ;;  %v1409_v23 = vmul.f32 %v15629_v38, %v8797_v50  ;;  %v8925_v56 = vpop.f32.mrf.mxu0  ;;  %v15712_v18 = vld [vmem:[#allocation171_spill] sm:$0xff] }
 0x171   : > { %v1511_v1 = vmul.f32 %v15558_v20, %v15641_v25  ;;  %v1547_v63 = vmul.f32 %v7435_v33, %v15642_v3  ;;  %v8908_v60 = vmul.f32 %v7571_v61, %v8840_v28  ;;  %v8912_v41 = vmul.f32 %v7682_v26, %v8840_v28  ;;  %15711 = vst [vmem:[#allocation239_spill] sm:$0xff] %v8925_v56  ;;  %v15713_v3 = vld [vmem:[#allocation172_spill] sm:$0xff] }
 0x172   : > { %v8917_v53 = vsel %vm970_vm4, 1.0, %v15627_v0  ;;  %v15709_v4 = vrot.slane %v8840_v28, 7  ;;  %v15710_v25 = vrot.slane %v8743_v52, 7  ;;  %3334 = vrot.lane.b32.xlu0 %v15712_v18, %s7157_s7  ;;  %v1947_v36 = vadd.f32 %v1885_v54, %v1711_v40  ;;  %v15714_v52 = vld [vmem:[#allocation79_spill] sm:$0xff]  ;;  %v8941_v34 = vpop.permute.xlu1 %3686 }
 0x173   : > { %15706 = vst [vmem:[#allocation236_spill] sm:$0xff] %v8908_v60  ;;  %15707 = vst [vmem:[#allocation237_spill] sm:$0xff] %v8912_v41  ;;  %2994 = vrot.lane.b32.xlu1 %v15713_v3, %s7157_s7  ;;  %v1818_v41 = vadd.f32 %v1786_v7, %v1750_v39  ;;  %v1854_v60 = vmul.f32 %v15521_v42, %v8881_v32  ;;  %v1208_v11 = vrot.slane %v8034_v21, 1  ;;  %v747_v8 = vfloor.f32 %v715_v12  ;;  %v8943_v3 = vpop.permute.xlu0 %3320 }
 0x174   : > { %15708 = vst [vmem:[#allocation238_spill] sm:$0xff] %v8917_v53  ;;  %v1148_v43 = vsel %vm1134_vm11, %v15710_v25, %v15709_v4  ;;  %v8935_v27 = vmul.f32 %v1255_v9, %v15714_v52  ;;  %v15715_v4 = vld [vmem:[#allocation170_spill] sm:$0xff]  ;;  %v1787_v18 = vmul.f32 %v15672_v24, %v15637_v62  ;;  %15716 = vst [vmem:[#allocation171_spill] sm:$0xff] %v8941_v34 }
 0x175   : > { %v1751_v25 = vmul.f32 %v15671_v47, %v15715_v4  ;;  %15717 = vst [vmem:[#allocation172_spill] sm:$0xff] %v8943_v3  ;;  %v2014_v54 = vmul.f32 %v15649_v46, %v1978_v44  ;;  %v1441_v39 = vadd.f32 %v1409_v23, %v1373_v51  ;;  %v1579_v7 = vadd.f32 %v1547_v63, %v1511_v1  ;;  %v15720_v51 = vld [vmem:[#allocation173_spill] sm:$0xff]  ;;  %v15721_v63 = vld [vmem:[#allocation174_spill] sm:$0xff] }
 0x176   : > { %v1615_v12 = vmul.f32 %v7868_v59, %v15658_v57  ;;  %v8950_v9 = vmul.f32 %v7546_v15, %v8925_v56  ;;  %v8954_v40 = vmul.f32 %v7682_v26, %v8925_v56  ;;  %v1306_v34 = vmul.f32 %v7444_v37, %v15703_v13  ;;  %3034 = vrot.lane.b32.xlu0 %v15720_v51, %s7157_s7  ;;  %v8973_v51 = vpop.permute.xlu1 %3020 }
 0x177   : > { %v1342_v52 = vmul.f32 %v7489_v17, %v15600_v29  ;;  %3702 = vrot.lane.b32.xlu1 %v15721_v63, %s7157_s7  ;;  %v8966_v15 = vmul.f32 %v7571_v61, %v8925_v56  ;;  %v1979_v57 = vmax.f32 %v1947_v36, 0.0  ;;  %v1254_v44 = vsel %vm1231_vm12, %v1207_v16, %v1208_v11  ;;  %v8975_v3 = vpop.permute.xlu0 %3360  ;;  %v15726_v16 = vld [vmem:[#allocation25_spill] sm:$0xff] }
 0x178   : > { %15718 = vst [vmem:[#allocation170_spill] sm:$0xff] %v8950_v9  ;;  %15719 = vst [vmem:[#allocation240_spill] sm:$0xff] %v8954_v40  ;;  %v1886_v23 = vadd.f32 %v1854_v60, %v1818_v41  ;;  %v779_v1 = vmul.f32 16.0, %v747_v8  ;;  %v1819_v40 = vadd.f32 %v1787_v18, %v1751_v25  ;;  %v1855_v9 = vmul.f32 %v15521_v42, %v8935_v27  ;;  %v15727_v8 = vld [vmem:[#allocation90_spill] sm:$0xff]  ;;  %v15729_v18 = vld [vmem:[#allocation175_spill] sm:$0xff] }
 0x179   : > { %15722 = vst [vmem:[#allocation173_spill] sm:$0xff] %v8966_v15  ;;  %15723 = vst [vmem:[#allocation174_spill] sm:$0xff] %v8975_v3  ;;  %v8978_v63 = vsel %vm357_vm0, %v2014_v54, 0.0  ;;  %v8981_v61 = vmul.f32 %v1148_v43, %v8917_v53  ;;  %v1477_v36 = vadd.f32 %v15527_v22, %v1441_v39  ;;  %v1647_v26 = vadd.f32 %v1615_v12, %v1579_v7 }
 0x17a   : > { %15724 = vst [vmem:[#allocation241_spill] sm:$0xff] %v8978_v63  ;;  %vm972_vm5 = vcmp.ge.f32.partialorder %v15726_v16, 0.5  ;;  %v8986_v60 = vmul.f32 %v1254_v44, %v15727_v8  ;;  %v1374_v41 = vadd.f32 %v1342_v52, %v1306_v34  ;;  %v1410_v25 = vmul.f32 %v15629_v38, %v8881_v32  ;;  %3742 = vrot.lane.b32.xlu0 %v15729_v18, %s7157_s7  ;;  %v9019_v53 = vpop.permute.xlu1 %3728 }
 0x17b   : > { %15725 = vst [vmem:[#allocation242_spill] sm:$0xff] %v8981_v61  ;;  %2640 = vrot.lane.b32.xlu1 %v8097_v14, %s7157_s7  ;;  %v8995_v43 = vmul.f32 %v15649_v46, %v1979_v57  ;;  %v1209_v54 = vrot.slane %v15579_v30, 1  ;;  %v1307_v39 = vmul.f32 %v7444_v37, %v15715_v4  ;;  %v1343_v34 = vmul.f32 %v7489_v17, %v15637_v62  ;;  %v9021_v63 = vpop.permute.xlu0 %3688  ;;  %v15742_v61 = vld [vmem:[#allocation108_spill] sm:$0xff] }
 0x17c   : > { %15728 = vst [vmem:[#allocation25_spill] sm:$0xff] %v8986_v60  ;;  %v9003_v52 = vadd.f32 %v1886_v23, %v8478_v5  ;;  %v15731_v7 = vcvt.s32.f32 %v8766_v48  ;;  %v15733_v44 = vrot.slane %v8925_v56, 7  ;;  %v15734_v57 = vrot.slane %v8840_v28, 7  ;;  %15735 = vst [vmem:[#allocation244_spill] sm:$0xff] %v9019_v53 }
 0x17d   : > { %15730 = vst [vmem:[#allocation175_spill] sm:$0xff] %v8995_v43  ;;  %v9017_v14 = vadd.f32 %v1855_v9, %v1819_v40  ;;  %15736 = vst [vmem:[#allocation245_spill] sm:$0xff] %v9021_v63  ;;  %v9023_v5 = vadd.f32 %v1647_v26, %v1477_v36  ;;  %v1308_v23 = vmul.f32 %v7444_v37, %v8427_v58  ;;  %v15737_v26 = vld [vmem:[#allocation176_spill] sm:$0xff]  ;;  %v9043_v36 = vsel %vm972_vm5, 1.0, %v15627_v0  ;;  %v15754_v63 = vld [vmem:[#allocation33_spill] sm:$0xff] }
 0x17e   : > { %v9007_v12 = vsub.f32 %v15731_v7, %v779_v1  ;;  %v9015_v18 = vsel %vm1134_vm11, %v15734_v57, %v15733_v44  ;;  %v1344_v1 = vmul.f32 %v7489_v17, %v7959_v49  ;;  %v1442_v7 = vadd.f32 %v1410_v25, %v1374_v41  ;;  %3374 = vrot.lane.b32.xlu0 %v15737_v26, %s7157_s7  ;;  %v9058_v8 = vpop.permute.xlu1 %3022 }
 0x17f   : > { %v1752_v44 = vmul.f32 %v15671_v47, %v8427_v58  ;;  %v1788_v9 = vmul.f32 %v15672_v24, %v7959_v49  ;;  %v1856_v40 = vmul.f32 %v15521_v42, %v8986_v60  ;;  %2996 = vrot.lane.b32.xlu1 %v8436_v19, %s7157_s7  ;;  %15738 = vst [vmem:[#allocation176_spill] sm:$0xff] %v9043_v36  ;;  %15739 = vst [vmem:[#allocation246_spill] sm:$0xff] %v9058_v8 }
 0x180   : > { %15732 = vst [vmem:[#allocation243_spill] sm:$0xff] %v9007_v12  ;;  %v1253_v41 = vsel %vm1231_vm12, %v1208_v11, %v1209_v54  ;;  %v1375_v25 = vadd.f32 %v1343_v34, %v1307_v39  ;;  %v1411_v57 = vmul.f32 %v15629_v38, %v8935_v27  ;;  %v1513_v48 = vmul.f32 %v15558_v20, %v15670_v35  ;;  %v9060_v11 = vpop.permute.xlu0 %2586 }
 0x181   : > { %v1549_v26 = vmul.f32 %v7435_v33, %v15656_v45  ;;  %v1514_v19 = vmul.f32 %v15558_v20, %v15703_v13  ;;  %v1550_v16 = vmul.f32 %v7435_v33, %v15600_v29  ;;  %15740 = vst [vmem:[#allocation247_spill] sm:$0xff] %v9060_v11  ;;  %v15741_v39 = vrot.slane %v15594_v10, 1 }
 0x182   : > { %v1376_v34 = vadd.f32 %v1344_v1, %v1308_v23  ;;  %v1412_v45 = vmul.f32 %v15629_v38, %v8986_v60  ;;  %v1478_v13 = vadd.f32 %v15527_v22, %v1442_v7  ;;  %v1820_v36 = vadd.f32 %v1788_v9, %v1752_v44  ;;  %2600 = vrot.lane.b32.xlu0 %v8034_v21, %s7157_s7  ;;  %v15744_v23 = vld [vmem:[#allocation193_spill] sm:$0xff]  ;;  %v15745_v9 = vld [vmem:[#allocation114_spill] sm:$0xff] }
 0x183   : > { %v1252_v35 = vsel %vm1231_vm12, %v1209_v54, %v15741_v39  ;;  %v9070_v29 = vmul.f32 %v1253_v41, %v15742_v61  ;;  %v1617_v15 = vmul.f32 %v7868_v59, %v8797_v50  ;;  %3704 = vrot.lane.b32.xlu1 %v8459_v55, %s7157_s7  ;;  %v1443_v54 = vadd.f32 %v1411_v57, %v1375_v25  ;;  %v9094_v25 = vpop.permute.xlu1 %3730 }
 0x184   : > { %v1753_v1 = vmul.f32 %v15671_v47, %v15744_v23  ;;  %v1789_v7 = vmul.f32 %v15672_v24, %v8034_v21  ;;  %v1581_v44 = vadd.f32 %v1549_v26, %v1513_v48  ;;  %v9084_v41 = vmul.f32 %v1252_v35, %v15745_v9  ;;  %15748 = vst [vmem:[#allocation249_spill] sm:$0xff] %v9094_v25  ;;  %v9096_v57 = vpop.permute.xlu0 %2626  ;;  %v15750_v48 = vld [vmem:[#allocation202_spill] sm:$0xff]  ;;  %v15751_v9 = vld [vmem:[#allocation167_spill] sm:$0xff] }
 0x185   : > { %15743 = vst [vmem:[#allocation248_spill] sm:$0xff] %v9070_v29  ;;  %v1582_v50 = vadd.f32 %v1550_v16, %v1514_v19  ;;  %v1618_v39 = vmul.f32 %v7868_v59, %v8881_v32  ;;  %v15746_v8 = vrot.slane %v8861_v31, 7  ;;  %v15747_v61 = vrot.slane %v8719_v2, 7  ;;  %15749 = vst [vmem:[#allocation250_spill] sm:$0xff] %v9096_v57 }
 0x186   : > { %v1444_v43 = vadd.f32 %v1412_v45, %v1376_v34  ;;  %v1754_v26 = vmul.f32 %v15671_v47, %v15750_v48  ;;  %v1790_v19 = vmul.f32 %v15672_v24, %v15579_v30  ;;  %v1857_v35 = vmul.f32 %v15521_v42, %v9070_v29  ;;  %v15753_v45 = vld [vmem:[#allocation186_spill] sm:$0xff] }
 0x187   : > { %v2720_v55 = vsel %vm1134_vm11, %v15747_v61, %v15746_v8  ;;  %v15752_v8 = vld [vmem:[#allocation185_spill] sm:$0xff]  ;;  %3036 = vrot.lane.b32.xlu1 %v15753_v45, %s7157_s7  ;;  %v1980_v34 = vmax.f32 %v9003_v52, 0.0  ;;  %v1479_v25 = vadd.f32 %v15527_v22, %v1443_v54  ;;  %v1309_v32 = vmul.f32 %v7444_v37, %v15744_v23  ;;  %v9128_v54 = vpop.permute.xlu1 %2588 }
 0x188   : > { %3336 = vrot.lane.b32.xlu0 %v15752_v8, %s7157_s7  ;;  %v1345_v16 = vmul.f32 %v7489_v17, %v8034_v21  ;;  %v9118_v53 = vmul.f32 %v2720_v55, %v15754_v63  ;;  %v15755_v61 = vrot.slane %v9096_v57, 1  ;;  %v15756_v8 = vrot.slane %v8861_v31, 1  ;;  %v9126_v3 = vpop.permute.xlu0 %2982  ;;  %v15757_v63 = vld [vmem:[#allocation37_spill] sm:$0xff] }
 0x189   : > { %v1649_v28 = vadd.f32 %v1617_v15, %v1581_v44  ;;  %v1821_v52 = vadd.f32 %v1789_v7, %v1753_v1  ;;  %v1480_v23 = vadd.f32 %v15527_v22, %v1444_v43  ;;  %v1650_v56 = vadd.f32 %v1618_v39, %v1582_v50  ;;  %v15760_v43 = vld [vmem:[#allocation146_spill] sm:$0xff]  ;;  %v15761_v44 = vld [vmem:[#allocation187_spill] sm:$0xff] }
 0x18a   : > { %v2815_v45 = vsel %vm1231_vm12, %v15756_v8, %v15755_v61  ;;  %v1822_v21 = vadd.f32 %v1790_v19, %v1754_v26  ;;  %v1858_v55 = vmul.f32 %v15521_v42, %v9084_v41  ;;  %v1888_v11 = vadd.f32 %v1856_v40, %v1820_v36  ;;  %v15763_v26 = vld [vmem:[#allocation205_spill] sm:$0xff] }
 0x18b   : > { %v9134_v57 = vmul.f32 %v2815_v45, %v15757_v63  ;;  %v15758_v60 = vrot.slane %v15751_v9, 1  ;;  %v15759_v15 = vrot.slane %v15594_v10, 1  ;;  %v1413_v7 = vmul.f32 %v15629_v38, %v9070_v29  ;;  %3744 = vrot.lane.b32.xlu1 %v15761_v44, %s7157_s7  ;;  %v15767_v29 = vld [vmem:[#allocation155_spill] sm:$0xff] }
 0x18c   : > { %2642 = vrot.lane.b32.xlu0 %v15760_v43, %s7157_s7  ;;  %vm971_vm6 = vcmp.ge.f32.partialorder %v9007_v12, 0.5  ;;  %v1377_v50 = vadd.f32 %v1345_v16, %v1309_v32  ;;  %v1515_v40 = vmul.f32 %v15558_v20, %v15715_v4  ;;  %v1551_v36 = vmul.f32 %v7435_v33, %v15637_v62  ;;  %v9156_v45 = vpop.permute.xlu0 %3690  ;;  %v15765_v4 = vld [vmem:[#allocation123_spill] sm:$0xff] }
 0x18d   : > { %v1251_v1 = vsel %vm1231_vm12, %v15759_v15, %v15758_v60  ;;  %v15762_v60 = vld [vmem:[#allocation20_spill] sm:$0xff]  ;;  %v1714_v19 = vadd.f32 %v15763_v26, %v1478_v13  ;;  %v1715_v61 = vadd.f32 %v1649_v28, %v1479_v25  ;;  %v1889_v8 = vadd.f32 %v1857_v35, %v1821_v52  ;;  %v9158_v15 = vpop.permute.xlu1 %3692  ;;  %v15768_v13 = vld [vmem:[#allocation13_spill] sm:$0xff] }
 0x18e   : > { %v2895_v39 = vmul.f32 %v15762_v60, %v9118_v53  ;;  %15764 = vst [vmem:[#allocation202_spill] sm:$0xff] %v9158_v15  ;;  %v1949_v32 = vadd.f32 %v9017_v14, %v9023_v5  ;;  %v1716_v16 = vadd.f32 %v1650_v56, %v1480_v23  ;;  %v1890_v44 = vadd.f32 %v1858_v55, %v1822_v21  ;;  %v15769_v35 = vld [vmem:[#allocation188_spill] sm:$0xff] }
 0x18f   : > { %v9163_v63 = vmul.f32 %v1251_v1, %v15765_v4  ;;  %v1755_v43 = vmul.f32 %v15671_v47, %v15767_v29  ;;  %v1791_v28 = vmul.f32 %v15672_v24, %v15594_v10  ;;  %v3131_v25 = vmul.f32 %v15768_v13, %v9134_v57  ;;  %3376 = vrot.lane.b32.xlu1 %v15769_v35, %s7157_s7  ;;  %v15771_v5 = vld [vmem:[#allocation148_spill] sm:$0xff] }
 0x190   : > { %v3095_v62 = vadd.f32 %v8973_v51, %v2895_v39  ;;  %2602 = vrot.lane.b32.xlu0 %v15579_v30, %s7157_s7  ;;  %v9179_v21 = vsel %vm971_vm6, 1.0, %v15627_v0  ;;  %v1445_v14 = vadd.f32 %v1413_v7, %v1377_v50  ;;  %v1583_v56 = vadd.f32 %v1551_v36, %v1515_v40  ;;  %v15773_v39 = vld [vmem:[#allocation217_spill] sm:$0xff]  ;;  %v9188_v29 = vpop.permute.xlu0 %3322  ;;  %v15776_v7 = vld [vmem:[#allocation180_spill] sm:$0xff] }
 0x191   : > { %15766 = vst [vmem:[#allocation185_spill] sm:$0xff] %v9163_v63  ;;  %15770 = vst [vmem:[#allocation186_spill] sm:$0xff] %v9179_v21  ;;  %v1619_v51 = vmul.f32 %v7868_v59, %v8935_v27  ;;  %v15014_v23 = vrot.slane %v15771_v5, 7  ;;  %v1950_v52 = vadd.f32 %v1888_v11, %v1714_v19  ;;  %v1951_v55 = vadd.f32 %v1889_v8, %v1715_v61  ;;  %v9190_v4 = vpop.permute.xlu1 %3024  ;;  %v15777_v19 = vld [vmem:[#allocation131_spill] sm:$0xff]  ;;  %v15778_v61 = vld [vmem:[#allocation192_spill] sm:$0xff] }
 0x192   : > { %v9184_v1 = vadd.f32 %v3131_v25, %v3095_v62  ;;  %v15012_v26 = vrot.slane %v15773_v39, 7  ;;  %v15015_v35 = vrot.slane %v15771_v5, 1  ;;  %15774 = vst [vmem:[#allocation20_spill] sm:$0xff] %v9188_v29  ;;  %15775 = vst [vmem:[#allocation205_spill] sm:$0xff] %v9190_v4  ;;  %v1952_v15 = vadd.f32 %v1890_v44, %v1716_v16  ;;  %v15813_v4 = vld [vmem:[#allocation169_spill] sm:$0xff]  ;;  %v15828_v29 = vld [vmem:[#allocation103_spill] sm:$0xff] }
 0x193   : > { %v1823_v40 = vadd.f32 %v1791_v28, %v1755_v43  ;;  %v1859_v27 = vmul.f32 %v15521_v42, %v9163_v63  ;;  %v1310_v11 = vmul.f32 %v7444_v37, %v15750_v48  ;;  %v1346_v62 = vmul.f32 %v7489_v17, %v15579_v30  ;;  %3378 = vrot.lane.b32.xlu1 %v15777_v19, %s7157_s7 }
 0x194   : > { %15772 = vst [vmem:[#allocation187_spill] sm:$0xff] %v9184_v1  ;;  %v15013_v36 = vrot.slane %v15773_v39, 1  ;;  %3338 = vrot.lane.b32.xlu0 %v15778_v61, %s7157_s7  ;;  %v9205_v8 = vmul.f32 %v15649_v46, %v1980_v34  ;;  %v1481_v43 = vadd.f32 %v15527_v22, %v1445_v14  ;;  %v1651_v16 = vadd.f32 %v1619_v51, %v1583_v56  ;;  %v9220_v19 = vpop.permute.xlu0 %3362  ;;  %v15787_v1 = vld [vmem:[#allocation151_spill] sm:$0xff] }
 0x195   : > { %v2740_v44 = vsel %vm1134_vm11, %v15012_v26, %v15014_v23  ;;  %v1981_v28 = vmax.f32 %v1949_v32, 0.0  ;;  %v1982_v25 = vmax.f32 %v1950_v52, 0.0  ;;  %v1983_v50 = vmax.f32 %v1951_v55, 0.0  ;;  %15780 = vst [vmem:[#allocation188_spill] sm:$0xff] %v9220_v19  ;;  %v9222_v14 = vpop.permute.xlu1 %3732 }
 0x196   : > { %15779 = vst [vmem:[#allocation13_spill] sm:$0xff] %v9205_v8  ;;  %v2836_v34 = vsel %vm1231_vm12, %v15013_v36, %v15015_v35  ;;  %15781 = vst [vmem:[#allocation148_spill] sm:$0xff] %v9222_v14  ;;  %v9226_v56 = vmul.f32 %v9015_v18, %v9179_v21  ;;  %v1984_v51 = vmax.f32 %v1952_v15, 0.0  ;;  %v15783_v32 = vrot.slane %v15776_v7, 1  ;;  %v15785_v18 = vld [vmem:[#allocation32_spill] sm:$0xff]  ;;  %v15786_v15 = vld [vmem:[#allocation147_spill] sm:$0xff] }
 0x197   : > { %v15784_v52 = vrot.slane %v15751_v9, 1  ;;  %v1891_v61 = vadd.f32 %v1859_v27, %v1823_v40  ;;  %v1378_v26 = vadd.f32 %v1346_v62, %v1310_v11  ;;  %v1414_v36 = vmul.f32 %v15629_v38, %v9084_v41  ;;  %2998 = vrot.lane.b32.xlu1 %v15787_v1, %s7157_s7  ;;  %v15788_v27 = vld [vmem:[#allocation30_spill] sm:$0xff] }
 0x198   : > { %15782 = vst [vmem:[#allocation131_spill] sm:$0xff] %v9226_v56  ;;  %v1516_v23 = vmul.f32 %v15558_v20, %v8427_v58  ;;  %v15023_v35 = vrot.slane %v8719_v2, 1  ;;  %v2743_v56 = vmul.f32 %v2740_v44, %v15785_v18  ;;  %3038 = vrot.lane.b32.xlu0 %v15786_v15, %s7157_s7  ;;  %v1717_v63 = vadd.f32 %v1651_v16, %v1481_v43  ;;  %v9264_v43 = vpop.permute.xlu0 %2628  ;;  %v15806_v14 = vld [vmem:[#allocation22_spill] sm:$0xff] }
 0x199   : > { %v1250_v55 = vsel %vm1231_vm12, %v15784_v52, %v15783_v32  ;;  %v1552_v40 = vmul.f32 %v7435_v33, %v7959_v49  ;;  %v9247_v11 = vmul.f32 %v2836_v34, %v15788_v27  ;;  %v9250_v62 = vmul.f32 %v15649_v46, %v1981_v28  ;;  %15794 = vst [vmem:[#allocation252_spill] sm:$0xff] %v9264_v43  ;;  %v9266_v16 = vpop.permute.xlu1 %3364  ;;  %v15797_v34 = vld [vmem:[#allocation127_spill] sm:$0xff]  ;;  %v15798_v52 = vld [vmem:[#allocation189_spill] sm:$0xff]  ;;  %v15800_v49 = vld [vmem:[#allocation156_spill] sm:$0xff] }
 0x19a   : > { %v9253_v58 = vmul.f32 %v15649_v46, %v1982_v25  ;;  %v9256_v44 = vmul.f32 %v15649_v46, %v1983_v50  ;;  %v15793_v32 = vrot.slane %v8861_v31, 1  ;;  %15795 = vst [vmem:[#allocation253_spill] sm:$0xff] %v9266_v16  ;;  %v9269_v28 = vmul.f32 %v15649_v46, %v1984_v51  ;;  %v15799_v27 = vld [vmem:[#allocation25_spill] sm:$0xff]  ;;  %v15801_v51 = vld [vmem:[#allocation195_spill] sm:$0xff] }
 0x19b   : > { %15789 = vst [vmem:[#allocation192_spill] sm:$0xff] %v9247_v11  ;;  %15790 = vst [vmem:[#allocation147_spill] sm:$0xff] %v9250_v62  ;;  %v9272_v25 = vmul.f32 %v1250_v55, %v15797_v34  ;;  %v1446_v15 = vadd.f32 %v1414_v36, %v1378_v26  ;;  %v1620_v18 = vmul.f32 %v7868_v59, %v15799_v27  ;;  %v15802_v55 = vld [vmem:[#allocation196_spill] sm:$0xff]  ;;  %v15803_v36 = vld [vmem:[#allocation137_spill] sm:$0xff] }
 0x19c   : > { %15791 = vst [vmem:[#allocation151_spill] sm:$0xff] %v9253_v58  ;;  %15792 = vst [vmem:[#allocation251_spill] sm:$0xff] %v9256_v44  ;;  %v2816_v1 = vsel %vm1231_vm12, %v15023_v35, %v15793_v32  ;;  %v1312_v21 = vmul.f32 %v7444_v37, %v15800_v49  ;;  %v1348_v32 = vmul.f32 %v7489_v17, %v15751_v9  ;;  %3746 = vrot.lane.b32.xlu0 %v15801_v51, %s7157_s7  ;;  %v15805_v34 = vld [vmem:[#allocation31_spill] sm:$0xff]  ;;  %v15807_v44 = vld [vmem:[#allocation26_spill] sm:$0xff]  ;;  %v9302_v58 = vpop.permute.xlu0 %2984 }
 0x19d   : > { %15796 = vst [vmem:[#allocation254_spill] sm:$0xff] %v9269_v28  ;;  %v2875_v35 = vmul.f32 %v15762_v60, %v2743_v56  ;;  %3706 = vrot.lane.b32.xlu1 %v15802_v55, %s7157_s7  ;;  %v9286_v2 = vadd.f32 %v1891_v61, %v1717_v63  ;;  %v1584_v26 = vadd.f32 %v1552_v40, %v1516_v23  ;;  %v15028_v50 = vrot.slane %v15803_v36, 1  ;;  %v9304_v63 = vpop.permute.xlu1 %2986  ;;  %v15810_v23 = vld [vmem:[#allocation18_spill] sm:$0xff]  ;;  %v15814_v62 = vld [vmem:[#allocation159_spill] sm:$0xff] }
 0x19e   : > { %v9291_v27 = vmul.f32 %v15768_v13, %v9247_v11  ;;  %v9294_v39 = vmul.f32 %v2816_v1, %v15805_v34  ;;  %v9297_v28 = vmul.f32 %v15806_v14, %v2743_v56  ;;  %v9300_v51 = vmul.f32 %v15807_v44, %v2743_v56  ;;  %15808 = vst [vmem:[#allocation156_spill] sm:$0xff] %v9302_v58  ;;  %v15826_v34 = vld [vmem:[#allocation161_spill] sm:$0xff] }
 0x19f   : > { %15809 = vst [vmem:[#allocation195_spill] sm:$0xff] %v9304_v63  ;;  %v9308_v61 = vmul.f32 %v15810_v23, %v9247_v11  ;;  %v1756_v40 = vmul.f32 %v15671_v47, %v15800_v49  ;;  %v1792_v1 = vmul.f32 %v15672_v24, %v15751_v9  ;;  %v15812_v55 = vrot.slane %v15798_v52, 1 }
 0x1a0   : > { %15804 = vst [vmem:[#allocation25_spill] sm:$0xff] %v9291_v27  ;;  %v1380_v27 = vadd.f32 %v1348_v32, %v1312_v21  ;;  %v1416_v63 = vmul.f32 %v15629_v38, %v9272_v25  ;;  %v1518_v11 = vmul.f32 %v15558_v20, %v15750_v48  ;;  %v9327_v16 = vadd.f32 %v15813_v4, %v2875_v35  ;;  %v15816_v4 = vld [vmem:[#allocation221_spill] sm:$0xff] }
 0x1a1   : > { %15811 = vst [vmem:[#allocation196_spill] sm:$0xff] %v9308_v61  ;;  %v1248_v56 = vsel %vm1231_vm12, %v15812_v55, %v15028_v50  ;;  %v1554_v61 = vmul.f32 %v7435_v33, %v15579_v30  ;;  %2644 = vrot.lane.b32.xlu1 %v15814_v62, %s7157_s7  ;;  %2604 = vrot.lane.b32.xlu0 %v15594_v10, %s7157_s7  ;;  %v1985_v21 = vmax.f32 %v9286_v2, 0.0  ;;  %v9347_v62 = vpop.permute.xlu0 %3324  ;;  %v9349_v2 = vpop.permute.xlu1 %3694  ;;  %vm1034_vm7 = vcmp.le.f32.partialorder %v15826_v34, 14.5 }
 0x1a2   : > { %v1482_v32 = vadd.f32 %v15527_v22, %v1446_v15  ;;  %v1652_v55 = vadd.f32 %v1620_v18, %v1584_v26  ;;  %v9337_v48 = vmul.f32 %v15768_v13, %v9294_v39  ;;  %v9341_v50 = vmul.f32 %v15806_v14, %v9118_v53  ;;  %15817 = vst [vmem:[#allocation18_spill] sm:$0xff] %v9347_v62  ;;  %v15819_v26 = vld [vmem:[#allocation222_spill] sm:$0xff] }
 0x1a3   : > { %v1314_v35 = vmul.f32 %v7444_v37, %v15816_v4  ;;  %v1350_v30 = vmul.f32 %v7489_v17, %v15798_v52  ;;  %15818 = vst [vmem:[#allocation169_spill] sm:$0xff] %v9349_v2  ;;  %v1824_v15 = vadd.f32 %v1792_v1, %v1756_v40  ;;  %v1860_v18 = vmul.f32 %v15521_v42, %v9272_v25  ;;  %v15820_v1 = vld [vmem:[#allocation128_spill] sm:$0xff] }
 0x1a4   : > { %15815 = vst [vmem:[#allocation22_spill] sm:$0xff] %v9337_v48  ;;  %v9354_v10 = vmul.f32 %v1248_v56, %v15819_v26  ;;  %v1622_v48 = vmul.f32 %v7868_v59, %v9084_v41  ;;  %v1448_v58 = vadd.f32 %v1416_v63, %v1380_v27  ;;  %v1586_v19 = vadd.f32 %v1554_v61, %v1518_v11  ;;  %v15821_v56 = vld [vmem:[#allocation152_spill] sm:$0xff]  ;;  %v15822_v26 = vld [vmem:[#allocation27_spill] sm:$0xff]  ;;  %v15824_v11 = vld [vmem:[#allocation210_spill] sm:$0xff] }
 0x1a5   : > { %v1758_v36 = vmul.f32 %v15671_v47, %v15816_v4  ;;  %v1794_v62 = vmul.f32 %v15672_v24, %v15798_v52  ;;  %v3603_v40 = vmul.f32 %v15807_v44, %v9118_v53  ;;  %3380 = vrot.lane.b32.xlu0 %v15820_v1, %s7157_s7  ;;  %3000 = vrot.lane.b32.xlu1 %v15821_v56, %s7157_s7  ;;  %v15825_v61 = vld [vmem:[#allocation247_spill] sm:$0xff]  ;;  %v9381_v8 = vpop.permute.xlu0 %2590  ;;  %v9383_v43 = vpop.permute.xlu1 %3026  ;;  %v15040_v52 = vrot.slane %v15828_v29, 1 }
 0x1a6   : > { %v9370_v41 = vmul.f32 %v15822_v26, %v9294_v39  ;;  %v1418_v63 = vmul.f32 %v15629_v38, %v9354_v10  ;;  %v2776_v2 = vrot.slane %v15825_v61, 1  ;;  %v1382_v53 = vadd.f32 %v1350_v30, %v1314_v35  ;;  %15827 = vst [vmem:[#allocation152_spill] sm:$0xff] %v9383_v43  ;;  %v15831_v43 = vld [vmem:[#allocation199_spill] sm:$0xff] }
 0x1a7   : > { %v1520_v1 = vmul.f32 %v15558_v20, %v15800_v49  ;;  %v1556_v56 = vmul.f32 %v7435_v33, %v15751_v9  ;;  %v1892_v27 = vadd.f32 %v1860_v18, %v1824_v15  ;;  %v1862_v12 = vmul.f32 %v15521_v42, %v9354_v10  ;;  %v15829_v20 = vld [vmem:[#allocation250_spill] sm:$0xff]  ;;  %v15835_v18 = vld [vmem:[#allocation172_spill] sm:$0xff] }
 0x1a8   : > { %15823 = vst [vmem:[#allocation128_spill] sm:$0xff] %v9370_v41  ;;  %v1718_v41 = vadd.f32 %v1652_v55, %v1482_v32  ;;  %v2680_v4 = vrot.slane %v15825_v61, 7  ;;  %v1484_v30 = vadd.f32 %v15527_v22, %v1448_v58  ;;  %v1654_v35 = vadd.f32 %v1622_v48, %v1586_v19  ;;  %v15830_v33 = vld [vmem:[#allocation198_spill] sm:$0xff]  ;;  %v15833_v19 = vld [vmem:[#allocation164_spill] sm:$0xff] }
 0x1a9   : > { %v1826_v49 = vadd.f32 %v1794_v62, %v1758_v36  ;;  %3340 = vrot.lane.b32.xlu0 %v15830_v33, %s7157_s7  ;;  %3708 = vrot.lane.b32.xlu1 %v15831_v43, %s7157_s7  ;;  %v15832_v32 = vrot.slane %v15824_v11, 1  ;;  %v1624_v58 = vmul.f32 %v7868_v59, %v9272_v25  ;;  %v1760_v62 = vmul.f32 %v15671_v47, %v15833_v19  ;;  %v9417_v25 = vpop.permute.xlu1 %3734 }
 0x1aa   : > { %v15834_v36 = vrot.slane %v15771_v5, 1  ;;  %v1450_v48 = vadd.f32 %v1418_v63, %v1382_v53  ;;  %v1588_v43 = vadd.f32 %v1556_v56, %v1520_v1  ;;  %v1796_v15 = vmul.f32 %v15672_v24, %v15824_v11  ;;  %15836 = vst [vmem:[#allocation247_spill] sm:$0xff] %v9417_v25  ;;  %v15842_v25 = vld [vmem:[#allocation36_spill] sm:$0xff] }
 0x1ab   : > { %v1246_v55 = vsel %vm1231_vm12, %v15832_v32, %v15040_v52  ;;  %v9413_v61 = vadd.f32 %v15835_v18, %v9297_v28  ;;  %v9415_v32 = vpop.permute.xlu0 %2630  ;;  %v9421_v52 = vmul.f32 %v15810_v23, %v9294_v39  ;;  %v9424_v26 = vmul.f32 %v15649_v46, %v1985_v21  ;;  %v15854_v46 = vld [vmem:[#allocation244_spill] sm:$0xff] }
 0x1ac   : > { %v2835_v33 = vsel %vm1231_vm12, %v15834_v36, %v2776_v2  ;;  %v9426_v63 = vadd.f32 %v1892_v27, %v1718_v41  ;;  %v15840_v53 = vrot.slane %v15771_v5, 7  ;;  %v1720_v28 = vadd.f32 %v1654_v35, %v1484_v30  ;;  %v15841_v36 = vld [vmem:[#allocation119_spill] sm:$0xff]  ;;  %v15846_v27 = vld [vmem:[#allocation200_spill] sm:$0xff] }
 0x1ad   : > { %15837 = vst [vmem:[#allocation161_spill] sm:$0xff] %v9421_v52  ;;  %15838 = vst [vmem:[#allocation250_spill] sm:$0xff] %v9424_v26  ;;  %v1894_v56 = vadd.f32 %v1862_v12, %v1826_v49  ;;  %v9433_v18 = vmul.f32 %v1246_v55, %v15841_v36  ;;  %v9436_v29 = vmul.f32 %v2835_v33, %v15842_v25  ;;  %v15844_v39 = vrot.slane %v15829_v20, 7  ;;  %v15847_v12 = vld [vmem:[#allocation201_spill] sm:$0xff]  ;;  %v15848_v30 = vld [vmem:[#allocation239_spill] sm:$0xff]  ;;  %v9459_v26 = vpop.permute.xlu1 %2592 }
 0x1ae   : > { %15839 = vst [vmem:[#allocation198_spill] sm:$0xff] %v9426_v63  ;;  %v2739_v1 = vsel %vm1134_vm11, %v15840_v53, %v2680_v4  ;;  %v15845_v21 = vrot.slane %v8861_v31, 7  ;;  %3748 = vrot.lane.b32.xlu0 %v15846_v27, %s7157_s7  ;;  %3040 = vrot.lane.b32.xlu1 %v15847_v12, %s7157_s7  ;;  %v1486_v49 = vadd.f32 %v15527_v22, %v1450_v48  ;;  %v15849_v53 = vld [vmem:[#allocation174_spill] sm:$0xff]  ;;  %15852 = vst [vmem:[#allocation172_spill] sm:$0xff] %v9459_v26  ;;  %v15853_v12 = vld [vmem:[#allocation145_spill] sm:$0xff] }
 0x1af   : > { %15843 = vst [vmem:[#allocation199_spill] sm:$0xff] %v9436_v29  ;;  %v1656_v55 = vadd.f32 %v1624_v58, %v1588_v43  ;;  %v1828_v33 = vadd.f32 %v1796_v15, %v1760_v62  ;;  %v1864_v31 = vmul.f32 %v15521_v42, %v9433_v18  ;;  %v9457_v27 = vpop.permute.xlu0 %3326  ;;  %v15045_v35 = vrot.slane %v15853_v12, 1  ;;  %v15855_v58 = vld [vmem:[#allocation40_spill] sm:$0xff] }
 0x1b0   : > { %v2719_v41 = vsel %vm1134_vm11, %v15845_v21, %v15844_v39  ;;  %v3435_v39 = vadd.f32 %v15849_v53, %v9341_v50  ;;  %v15850_v21 = vld [vmem:[#allocation38_spill] sm:$0xff]  ;;  %15851 = vst [vmem:[#allocation164_spill] sm:$0xff] %v9457_v27  ;;  %v9463_v48 = vadd.f32 %v15854_v46, %v3603_v40  ;;  %v1316_v43 = vmul.f32 %v7444_v37, %v15833_v19  ;;  %v15857_v53 = vld [vmem:[#allocation203_spill] sm:$0xff]  ;;  %v15905_v27 = vld [vmem:[#allocation252_spill] sm:$0xff] }
 0x1b1   : > { %v2744_v5 = vmul.f32 %v2739_v1, %v15850_v21  ;;  %v2764_v62 = vmul.f32 %v2719_v41, %v15855_v58  ;;  %v1352_v50 = vmul.f32 %v7489_v17, %v15824_v11  ;;  %v15856_v15 = vrot.slane %v9128_v54, 1  ;;  %v9504_v63 = vpop.permute.xlu1 %2988 }
 0x1b2   : > { %2606 = vrot.lane.b32.xlu0 %v15751_v9, %s7157_s7  ;;  %3002 = vrot.lane.b32.xlu1 %v15857_v53, %s7157_s7  ;;  %v3111_v46 = vmul.f32 %v15768_v13, %v9436_v29  ;;  %v9483_v40 = vsel %vm1034_vm7, 1.0, %v15627_v0  ;;  %v15859_v41 = vrot.slane %v15848_v30, 1  ;;  %v9495_v53 = vadd.f32 %v1894_v56, %v1720_v28  ;;  %15865 = vst [vmem:[#allocation203_spill] sm:$0xff] %v9504_v63  ;;  %v15866_v28 = vld [vmem:[#allocation39_spill] sm:$0xff] }
 0x1b3   : > { %v2834_v1 = vsel %vm1231_vm12, %v2776_v2, %v15856_v15  ;;  %15858 = vst [vmem:[#allocation200_spill] sm:$0xff] %v9483_v40  ;;  %v15860_v15 = vld [vmem:[#allocation245_spill] sm:$0xff]  ;;  %v1722_v58 = vadd.f32 %v1656_v55, %v1486_v49  ;;  %v1896_v21 = vadd.f32 %v1864_v31, %v1828_v33  ;;  %v2876_v9 = vmul.f32 %v15762_v60, %v2744_v5  ;;  %v9502_v36 = vpop.permute.xlu0 %3366  ;;  %v15869_v31 = vld [vmem:[#allocation154_spill] sm:$0xff] }
 0x1b4   : > { %v1244_v2 = vsel %vm1231_vm12, %v15045_v35, %v15859_v41  ;;  %v9493_v25 = vadd.f32 %v15860_v15, %v9300_v51  ;;  %15862 = vst [vmem:[#allocation174_spill] sm:$0xff] %v9495_v53  ;;  %v15863_v34 = vrot.slane %v9128_v54, 7  ;;  %15864 = vst [vmem:[#allocation244_spill] sm:$0xff] %v9502_v36  ;;  %v3471_v41 = vmul.f32 %v15810_v23, %v9134_v57 }
 0x1b5   : > { %v3451_v51 = vmul.f32 %v15810_v23, %v9436_v29  ;;  %v2840_v56 = vmul.f32 %v2834_v1, %v15866_v28  ;;  %v2896_v49 = vmul.f32 %v15762_v60, %v2764_v62  ;;  %v9513_v55 = vmul.f32 %v1244_v2, %v9483_v40  ;;  %v15893_v29 = vld [vmem:[#allocation23_spill] sm:$0xff] }
 0x1b6   : > { %15861 = vst [vmem:[#allocation201_spill] sm:$0xff] %v9493_v25  ;;  %v2738_v52 = vsel %vm1134_vm11, %v2680_v4, %v15863_v34  ;;  %v1384_v33 = vadd.f32 %v1352_v50, %v1316_v43  ;;  %v15868_v4 = vld [vmem:[#allocation204_spill] sm:$0xff]  ;;  %3710 = vrot.lane.b32.xlu1 %v15869_v31, %s7157_s7  ;;  %v3143_v15 = vadd.f32 %v3111_v46, %v9327_v16  ;;  %v15870_v34 = vld [vmem:[#allocation175_spill] sm:$0xff]  ;;  %v15872_v43 = vld [vmem:[#allocation41_spill] sm:$0xff] }
 0x1b7   : > { %15867 = vst [vmem:[#allocation245_spill] sm:$0xff] %v9513_v55  ;;  %3342 = vrot.lane.b32.xlu0 %v15868_v4, %s7157_s7  ;;  %v9522_v35 = vsel %vm357_vm0, %v15870_v34, 0.0  ;;  %v3604_v1 = vmul.f32 %v15807_v44, %v2764_v62  ;;  %v1420_v28 = vmul.f32 %v15629_v38, %v9433_v18  ;;  %v3584_v2 = vmul.f32 %v15807_v44, %v2744_v5  ;;  %v9536_v46 = vpop.permute.xlu0 %2632  ;;  %v9538_v34 = vpop.permute.xlu1 %3696  ;;  %v15892_v25 = vld [vmem:[#allocation189_spill] sm:$0xff] }
 0x1b8   : > { %15871 = vst [vmem:[#allocation204_spill] sm:$0xff] %v9522_v35  ;;  %v2745_v50 = vmul.f32 %v2738_v52, %v15872_v43  ;;  %v3216_v4 = vmul.f32 %v15806_v14, %v2744_v5  ;;  %v9530_v53 = vadd.f32 %v1896_v21, %v1722_v58  ;;  %v3076_v31 = vadd.f32 %v9126_v3, %v2876_v9  ;;  %v15878_v3 = vld [vmem:[#allocation246_spill] sm:$0xff]  ;;  %v15885_v58 = vld [vmem:[#allocation52_spill] sm:$0xff] }
 0x1b9   : > { %v9534_v16 = vmul.f32 %v15806_v14, %v2764_v62  ;;  %15874 = vst [vmem:[#allocation175_spill] sm:$0xff] %v9536_v46  ;;  %15875 = vst [vmem:[#allocation255_spill] sm:$0xff] %v9538_v34  ;;  %v9540_v40 = vadd.f32 %v3471_v41, %v3435_v39  ;;  %v9543_v35 = vadd.f32 %v3451_v51, %v9413_v61  ;;  %v15879_v39 = vld [vmem:[#allocation207_spill] sm:$0xff]  ;;  %v15882_v41 = vld [vmem:[#allocation249_spill] sm:$0xff] }
 0x1ba   : > { %15873 = vst [vmem:[#allocation154_spill] sm:$0xff] %v9530_v53  ;;  %v3112_v52 = vmul.f32 %v15768_v13, %v2840_v56  ;;  %v9547_v5 = vadd.f32 %v9156_v45, %v3584_v2  ;;  %v9551_v9 = vadd.f32 %v15878_v3, %v2896_v49  ;;  %3004 = vrot.lane.b32.xlu1 %v15879_v39, %s7157_s7  ;;  %v15880_v61 = vld [vmem:[#allocation11_spill] sm:$0xff] }
 0x1bb   : > { %15876 = vst [vmem:[#allocation256_spill] sm:$0xff] %v9540_v40  ;;  %15877 = vst [vmem:[#allocation257_spill] sm:$0xff] %v9543_v35  ;;  %2608 = vrot.lane.b32.xlu0 %v15776_v7, %s7157_s7  ;;  %v9559_v62 = vadd.f32 %v15880_v61, %v3143_v15  ;;  %v9562_v51 = vadd.f32 %v15882_v41, %v3604_v1  ;;  %v1452_v45 = vadd.f32 %v1420_v28, %v1384_v33  ;;  %v15884_v2 = vld [vmem:[#allocation27_spill] sm:$0xff]  ;;  %v9583_v33 = vpop.permute.xlu0 %3328  ;;  %v9585_v41 = vpop.permute.xlu1 %3028  ;;  %v15890_v7 = vld [vmem:[#allocation221_spill] sm:$0xff] }
 0x1bc   : > { %v9565_v21 = vmul.f32 %v15884_v2, %v2840_v56  ;;  %v9568_v49 = vmul.f32 %v15807_v44, %v2745_v50  ;;  %v9571_v3 = vmul.f32 %v15810_v23, %v2840_v56  ;;  %v9575_v39 = vmul.f32 %v15762_v60, %v2745_v50  ;;  %15888 = vst [vmem:[#allocation11_spill] sm:$0xff] %v9583_v33  ;;  %v15891_v53 = vld [vmem:[#allocation75_spill] sm:$0xff] }
 0x1bd   : > { %15881 = vst [vmem:[#allocation246_spill] sm:$0xff] %v9559_v62  ;;  %15883 = vst [vmem:[#allocation207_spill] sm:$0xff] %v9562_v51  ;;  %v15886_v15 = vrot.slane %v9536_v46, 7  ;;  %v15887_v1 = vrot.slane %v9415_v32, 7  ;;  %v1522_v56 = vmul.f32 %v15891_v53, %v15890_v7  ;;  %v1558_v43 = vmul.f32 %v15893_v29, %v15892_v25  ;;  %v15894_v62 = vld [vmem:[#allocation20_spill] sm:$0xff]  ;;  %v15898_v7 = vld [vmem:[#allocation243_spill] sm:$0xff] }
 0x1be   : > { %15889 = vst [vmem:[#allocation249_spill] sm:$0xff] %v9585_v41  ;;  %v9592_v40 = vadd.f32 %v15894_v62, %v3216_v4  ;;  %v9595_v34 = vmul.f32 %v15806_v14, %v2745_v50  ;;  %v9597_v63 = vadd.f32 %v3112_v52, %v3076_v31  ;;  %v15897_v41 = vld [vmem:[#allocation209_spill] sm:$0xff]  ;;  %vm1035_vm8 = vcmp.le.f32.partialorder %v15898_v7, 14.5  ;;  %v15899_v4 = vld [vmem:[#allocation242_spill] sm:$0xff] }
 0x1bf   : > { %v2716_v28 = vsel %vm1134_vm11, %v15887_v1, %v15886_v15  ;;  %v1626_v15 = vmul.f32 %v7868_v59, %v9354_v10  ;;  %v15896_v1 = vld [vmem:[#allocation208_spill] sm:$0xff]  ;;  %3712 = vrot.lane.b32.xlu1 %v15897_v41, %s7157_s7  ;;  %v1488_v33 = vadd.f32 %v15527_v22, %v1452_v45  ;;  %v1762_v62 = vmul.f32 %v15671_v47, %v15899_v4  ;;  %v15900_v50 = vld [vmem:[#allocation45_spill] sm:$0xff]  ;;  %v15903_v52 = vld [vmem:[#allocation62_spill] sm:$0xff]  ;;  %v9625_v51 = vpop.permute.xlu0 %2634 }
 0x1c0   : > { %15895 = vst [vmem:[#allocation27_spill] sm:$0xff] %v9595_v34  ;;  %3344 = vrot.lane.b32.xlu0 %v15896_v1, %s7157_s7  ;;  %v15901_v35 = vrot.slane %v15900_v50, 7  ;;  %v15902_v31 = vrot.slane %v15848_v30, 7  ;;  %v9616_v36 = vmul.f32 %v2716_v28, %v15903_v52  ;;  %v1798_v41 = vmul.f32 %v15672_v24, %v15853_v12  ;;  %15906 = vst [vmem:[#allocation20_spill] sm:$0xff] %v9625_v51  ;;  %v9627_v30 = vpop.permute.xlu1 %3736 }
 0x1c1   : > { %v1318_v1 = vmul.f32 %v7444_v37, %v15899_v4  ;;  %v1354_v45 = vmul.f32 %v7489_v17, %v15853_v12  ;;  %15907 = vst [vmem:[#allocation208_spill] sm:$0xff] %v9627_v30  ;;  %v1590_v34 = vadd.f32 %v1558_v43, %v1522_v56  ;;  %v15908_v28 = vrot.slane %v15885_v58, 1  ;;  %v15910_v4 = vld [vmem:[#allocation176_spill] sm:$0xff]  ;;  %v15913_v56 = vld [vmem:[#allocation13_spill] sm:$0xff] }
 0x1c2   : > { %v1146_v10 = vsel %vm1134_vm11, %v15902_v31, %v15901_v35  ;;  %15904 = vst [vmem:[#allocation221_spill] sm:$0xff] %v9616_v36  ;;  %v1866_v35 = vmul.f32 %v15521_v42, %v9513_v55  ;;  %v15909_v31 = vrot.slane %v15900_v50, 1  ;;  %v15064_v12 = vrot.slane %v9536_v46, 1  ;;  %v15912_v43 = vld [vmem:[#allocation212_spill] sm:$0xff] }
 0x1c3   : > { %v15063_v44 = vrot.slane %v9625_v51, 1  ;;  %v9641_v17 = vmul.f32 %v1146_v10, %v15910_v4  ;;  %3006 = vrot.lane.b32.xlu1 %v15912_v43, %s7157_s7  ;;  %v9649_v58 = vsel %vm357_vm0, %v15913_v56, 0.0  ;;  %v3839_v10 = vmul.f32 %v15884_v2, %v9134_v57  ;;  %v9676_v51 = vpop.permute.xlu0 %3330 }
 0x1c4   : > { %v1242_v52 = vsel %vm1231_vm12, %v15909_v31, %v15908_v28  ;;  %2610 = vrot.lane.b32.xlu0 %v15892_v25, %s7157_s7  ;;  %15914 = vst [vmem:[#allocation243_spill] sm:$0xff] %v9649_v58  ;;  %v1422_v28 = vmul.f32 %v15629_v38, %v9513_v55  ;;  %v1524_v31 = vmul.f32 %v15891_v53, %v15833_v19  ;;  %v15915_v4 = vrot.slane %v15905_v27, 7  ;;  %v15917_v58 = vld [vmem:[#allocation65_spill] sm:$0xff]  ;;  %v3369_v46 = vpop.permute.xlu1 %3368 }
 0x1c5   : > { %15911 = vst [vmem:[#allocation209_spill] sm:$0xff] %v9641_v17  ;;  %v2811_v43 = vsel %vm1231_vm12, %v15064_v12, %v15063_v44  ;;  %v3239_v56 = vmul.f32 %v15806_v14, %v9616_v36  ;;  %v1386_v26 = vadd.f32 %v1354_v45, %v1318_v1  ;;  %v1560_v25 = vmul.f32 %v15893_v29, %v15824_v11 }
 0x1c6   : > { %v15916_v19 = vrot.slane %v15829_v20, 7  ;;  %v9674_v30 = vmul.f32 %v2811_v43, %v15917_v58  ;;  %15918 = vst [vmem:[#allocation252_spill] sm:$0xff] %v9676_v51  ;;  %v1658_v44 = vadd.f32 %v1626_v15, %v1590_v34  ;;  %v1830_v12 = vadd.f32 %v1798_v41, %v1762_v62  ;;  %v15922_v34 = vld [vmem:[#allocation214_spill] sm:$0xff]  ;;  %v15923_v15 = vld [vmem:[#allocation215_spill] sm:$0xff] }
 0x1c7   : > { %v15919_v1 = vrot.slane %v15905_v27, 1  ;;  %v15920_v45 = vrot.slane %v15829_v20, 1  ;;  %v3439_v55 = vadd.f32 %v3369_v46, %v3239_v56  ;;  %v1764_v38 = vmul.f32 %v15671_v47, %v9641_v17  ;;  %3714 = vrot.lane.b32.xlu1 %v15923_v15, %s7157_s7  ;;  %v15925_v46 = vld [vmem:[#allocation31_spill] sm:$0xff]  ;;  %v15927_v41 = vld [vmem:[#allocation46_spill] sm:$0xff] }
 0x1c8   : > { %v2718_v57 = vsel %vm1134_vm11, %v15916_v19, %v15915_v4  ;;  %v9687_v4 = vadd.f32 %v3839_v10, %v9463_v48  ;;  %v3475_v43 = vmul.f32 %v15810_v23, %v9674_v30  ;;  %3346 = vrot.lane.b32.xlu0 %v15922_v34, %s7157_s7  ;;  %v9698_v20 = vsel %vm1035_vm8, 1.0, %v15627_v0  ;;  %v9713_v7 = vpop.permute.xlu1 %2594  ;;  %v9715_v0 = vpop.permute.xlu0 %3030 }
 0x1c9   : > { %v2814_v36 = vsel %vm1231_vm12, %v15920_v45, %v15919_v1  ;;  %15924 = vst [vmem:[#allocation13_spill] sm:$0xff] %v9698_v20  ;;  %v9701_v62 = vmul.f32 %v1242_v52, %v15925_v46  ;;  %v1628_v48 = vmul.f32 %v7868_v59, %v9433_v18  ;;  %v9706_v10 = vmul.f32 %v2718_v57, %v15927_v41  ;;  %v15928_v45 = vld [vmem:[#allocation42_spill] sm:$0xff] }
 0x1ca   : > { %15921 = vst [vmem:[#allocation212_spill] sm:$0xff] %v9687_v4  ;;  %v1454_v56 = vadd.f32 %v1422_v28, %v1386_v26  ;;  %v1592_v19 = vadd.f32 %v1560_v25, %v1524_v31  ;;  %v1800_v1 = vmul.f32 %v15672_v24, %v15900_v50  ;;  %v2860_v34 = vmul.f32 %v2814_v36, %v15928_v45  ;;  %v15930_v26 = vld [vmem:[#allocation202_spill] sm:$0xff]  ;;  %v15931_v31 = vld [vmem:[#allocation67_spill] sm:$0xff] }
 0x1cb   : > { %15926 = vst [vmem:[#allocation214_spill] sm:$0xff] %v9701_v62  ;;  %v9711_v15 = vadd.f32 %v3475_v43, %v3439_v55  ;;  %v1724_v52 = vadd.f32 %v1658_v44, %v1488_v33  ;;  %v1898_v46 = vadd.f32 %v1866_v35, %v1830_v12  ;;  %v9719_v18 = vadd.f32 %v9565_v21, %v9547_v5  ;;  %v15932_v44 = vld [vmem:[#allocation137_spill] sm:$0xff]  ;;  %v15933_v12 = vld [vmem:[#allocation218_spill] sm:$0xff]  ;;  %v15936_v35 = vld [vmem:[#allocation188_spill] sm:$0xff] }
 0x1cc   : > { %v9723_v25 = vadd.f32 %v15930_v26, %v9568_v49  ;;  %v1832_v28 = vadd.f32 %v1800_v1, %v1764_v38  ;;  %v9728_v36 = vadd.f32 %v9571_v3, %v9592_v40  ;;  %v2778_v55 = vrot.slane %v9381_v8, 1  ;;  %2612 = vrot.lane.b32.xlu0 %v15932_v44, %s7157_s7  ;;  %3008 = vrot.lane.b32.xlu1 %v15933_v12, %s7157_s7  ;;  %v15935_v21 = vld [vmem:[#allocation61_spill] sm:$0xff]  ;;  %v9750_v26 = vpop.permute.xlu0 %3738  ;;  %v9752_v12 = vpop.permute.xlu1 %2990  ;;  %v15950_v20 = vld [vmem:[#allocation242_spill] sm:$0xff] }
 0x1cd   : > { %15929 = vst [vmem:[#allocation215_spill] sm:$0xff] %v9719_v18  ;;  %v9737_v5 = vadd.f32 %v15880_v61, %v9597_v63  ;;  %v3237_v49 = vmul.f32 %v15806_v14, %v9706_v10  ;;  %v1490_v40 = vadd.f32 %v15527_v22, %v1454_v56  ;;  %v1660_v3 = vadd.f32 %v1628_v48, %v1592_v19  ;;  %v15938_v56 = vld [vmem:[#allocation156_spill] sm:$0xff] }
 0x1ce   : > { %v1868_v33 = vmul.f32 %v15521_v42, %v9701_v62  ;;  %v3436_v43 = vadd.f32 %v15936_v35, %v9534_v16  ;;  %v3132_v1 = vmul.f32 %v15768_v13, %v2860_v34  ;;  %v2897_v63 = vmul.f32 %v15762_v60, %v9706_v10 }
 0x1cf   : > { %15934 = vst [vmem:[#allocation202_spill] sm:$0xff] %v9737_v5  ;;  %v9754_v38 = vadd.f32 %v1898_v46, %v1724_v52  ;;  %v3077_v48 = vadd.f32 %v15938_v56, %v9575_v39  ;;  %v2682_v19 = vrot.slane %v9381_v8, 7  ;;  %v15939_v41 = vrot.slane %v15931_v31, 1  ;;  %v15942_v46 = vld [vmem:[#allocation219_spill] sm:$0xff]  ;;  %v15943_v39 = vld [vmem:[#allocation220_spill] sm:$0xff]  ;;  %v15947_v31 = vld [vmem:[#allocation205_spill] sm:$0xff] }
 0x1d0   : > { %v1900_v57 = vadd.f32 %v1868_v33, %v1832_v28  ;;  %v15940_v16 = vrot.slane %v15935_v21, 1  ;;  %v15941_v58 = vrot.slane %v9128_v54, 1  ;;  %3348 = vrot.lane.b32.xlu0 %v15942_v46, %s7157_s7  ;;  %3716 = vrot.lane.b32.xlu1 %v15943_v39, %s7157_s7  ;;  %v3472_v8 = vmul.f32 %v15810_v23, %v2860_v34  ;;  %v15944_v52 = vld [vmem:[#allocation147_spill] sm:$0xff]  ;;  %v15946_v33 = vld [vmem:[#allocation253_spill] sm:$0xff]  ;;  %v9788_v39 = vpop.permute.xlu0 %3370 }
 0x1d1   : > { %15937 = vst [vmem:[#allocation218_spill] sm:$0xff] %v9754_v38  ;;  %v9776_v28 = vsel %vm357_vm0, %v15944_v52, 0.0  ;;  %v9781_v56 = vadd.f32 %v15946_v33, %v3237_v49  ;;  %v1726_v46 = vadd.f32 %v1660_v3, %v1490_v40  ;;  %v9786_v4 = vadd.f32 %v15947_v31, %v2897_v63  ;;  %15948 = vst [vmem:[#allocation156_spill] sm:$0xff] %v9788_v39  ;;  %v9790_v38 = vpop.permute.xlu1 %3698  ;;  %v15952_v40 = vld [vmem:[#allocation43_spill] sm:$0xff]  ;;  %v15953_v3 = vld [vmem:[#allocation172_spill] sm:$0xff] }
 0x1d2   : > { %v1240_v35 = vsel %vm1231_vm12, %v15940_v16, %v15939_v41  ;;  %v2833_v44 = vsel %vm1231_vm12, %v15941_v58, %v2778_v55  ;;  %15945 = vst [vmem:[#allocation188_spill] sm:$0xff] %v9776_v28  ;;  %v1320_v41 = vmul.f32 %v7444_v37, %v9641_v17  ;;  %v3840_v16 = vmul.f32 %v15884_v2, %v2860_v34  ;;  %v15949_v28 = vld [vmem:[#allocation29_spill] sm:$0xff]  ;;  %v15968_v39 = vld [vmem:[#allocation139_spill] sm:$0xff] }
 0x1d3   : > { %v3164_v52 = vadd.f32 %v3132_v1, %v9551_v9  ;;  %v1356_v17 = vmul.f32 %v15949_v28, %v15900_v50  ;;  %v1526_v49 = vmul.f32 %v15891_v53, %v15950_v20  ;;  %v15951_v33 = vrot.slane %v9128_v54, 7  ;;  %v15954_v58 = vld [vmem:[#allocation145_spill] sm:$0xff]  ;;  %v15955_v9 = vld [vmem:[#allocation27_spill] sm:$0xff]  ;;  %v15956_v1 = vld [vmem:[#allocation18_spill] sm:$0xff] }
 0x1d4   : > { %v9802_v31 = vmul.f32 %v2833_v44, %v15952_v40  ;;  %v1562_v5 = vmul.f32 %v15893_v29, %v15954_v58  ;;  %v9809_v18 = vadd.f32 %v15956_v1, %v15955_v9  ;;  %2614 = vrot.lane.b32.xlu0 %v15824_v11, %s7157_s7  ;;  %v15957_v54 = vld [vmem:[#allocation163_spill] sm:$0xff]  ;;  %v9815_v20 = vadd.f32 %v3472_v8, %v3436_v43  ;;  %v15964_v43 = vld [vmem:[#allocation85_spill] sm:$0xff] }
 0x1d5   : > { %v2737_v34 = vsel %vm1134_vm11, %v15951_v33, %v2682_v19  ;;  %3010 = vrot.lane.b32.xlu1 %v15957_v54, %s7157_s7  ;;  %v15958_v33 = vld [vmem:[#allocation151_spill] sm:$0xff]  ;;  %v9822_v63 = vmul.f32 %v1240_v35, %v15928_v45  ;;  %v15961_v40 = vrot.slane %v9415_v32, 1  ;;  %v15962_v9 = vrot.slane %v15905_v27, 1  ;;  %v15965_v50 = vld [vmem:[#allocation53_spill] sm:$0xff]  ;;  %v9837_v35 = vpop.permute.xlu1 %2992 }
 0x1d6   : > { %v9819_v44 = vsel %vm357_vm0, %v15958_v33, 0.0  ;;  %v1388_v11 = vadd.f32 %v1356_v17, %v1320_v41  ;;  %v15963_v29 = vld [vmem:[#allocation35_spill] sm:$0xff]  ;;  %v2746_v53 = vmul.f32 %v2737_v34, %v15965_v50  ;;  %15966 = vst [vmem:[#allocation147_spill] sm:$0xff] %v9837_v35  ;;  %v15967_v45 = vld [vmem:[#allocation245_spill] sm:$0xff]  ;;  %v3113_v17 = vmul.f32 %v15768_v13, %v9802_v31 }
 0x1d7   : > { %15959 = vst [vmem:[#allocation219_spill] sm:$0xff] %v9819_v44  ;;  %15960 = vst [vmem:[#allocation220_spill] sm:$0xff] %v9822_v63  ;;  %v2813_v1 = vsel %vm1231_vm12, %v15962_v9, %v15961_v40  ;;  %v1424_v54 = vmul.f32 %v15963_v29, %v9701_v62  ;;  %v9835_v44 = vpop.permute.xlu0 %2596  ;;  %v1630_v51 = vmul.f32 %v7868_v59, %v15967_v45  ;;  %v15969_v41 = vrot.slane %v15953_v3, 1  ;;  %v15973_v62 = vld [vmem:[#allocation224_spill] sm:$0xff]  ;;  %v15974_v29 = vld [vmem:[#allocation225_spill] sm:$0xff] }
 0x1d8   : > { %v1766_v40 = vmul.f32 %v15671_v47, %v15968_v39  ;;  %v1594_v9 = vadd.f32 %v1562_v5, %v1526_v49  ;;  %v1802_v8 = vmul.f32 %v15672_v24, %v15935_v21  ;;  %v15970_v33 = vrot.slane %v9415_v32, 7  ;;  %v15972_v47 = vld [vmem:[#allocation47_spill] sm:$0xff]  ;;  %3350 = vrot.lane.b32.xlu0 %v15973_v62, %s7157_s7  ;;  %v15977_v49 = vld [vmem:[#allocation76_spill] sm:$0xff] }
 0x1d9   : > { %v2832_v34 = vsel %vm1231_vm12, %v2778_v55, %v15969_v41  ;;  %v15971_v50 = vrot.slane %v15905_v27, 7  ;;  %v2861_v59 = vmul.f32 %v2813_v1, %v15972_v47  ;;  %3718 = vrot.lane.b32.xlu1 %v15974_v29, %s7157_s7  ;;  %v15975_v55 = vld [vmem:[#allocation207_spill] sm:$0xff]  ;;  %v15083_v41 = vrot.slane %v15977_v49, 1  ;;  %v16012_v49 = vld [vmem:[#allocation148_spill] sm:$0xff] }
 0x1da   : > { %v9863_v5 = vadd.f32 %v3840_v16, %v15975_v55  ;;  %v9867_v24 = vadd.f32 %v15880_v61, %v3164_v52  ;;  %v9869_v27 = vadd.f32 %v1900_v57, %v1726_v46  ;;  %v1456_v35 = vadd.f32 %v1424_v54, %v1388_v11  ;;  %v15982_v16 = vld [vmem:[#allocation54_spill] sm:$0xff]  ;;  %v9883_v52 = vpop.permute.xlu1 %3700  ;;  %v15985_v46 = vld [vmem:[#allocation48_spill] sm:$0xff] }
 0x1db   : > { %v2717_v45 = vsel %vm1134_vm11, %v15971_v50, %v15970_v33  ;;  %v9873_v50 = vmul.f32 %v15521_v42, %v9822_v63  ;;  %v2878_v62 = vmul.f32 %v15762_v60, %v2746_v53  ;;  %v15981_v1 = vrot.slane %v15953_v3, 7  ;;  %v9881_v55 = vpop.permute.xlu0 %2636  ;;  %15983 = vst [vmem:[#allocation27_spill] sm:$0xff] %v9883_v52  ;;  %v16016_v52 = vld [vmem:[#allocation257_spill] sm:$0xff] }
 0x1dc   : > { %15976 = vst [vmem:[#allocation253_spill] sm:$0xff] %v9863_v5  ;;  %15978 = vst [vmem:[#allocation205_spill] sm:$0xff] %v9867_v24  ;;  %v2842_v33 = vmul.f32 %v2832_v34, %v15982_v16  ;;  %v15984_v57 = vrot.slane %v15964_v43, 1  ;;  %v2766_v54 = vmul.f32 %v2717_v45, %v15985_v46  ;;  %v3145_v47 = vadd.f32 %v3113_v17, %v3077_v48  ;;  %v15989_v16 = vld [vmem:[#allocation229_spill] sm:$0xff]  ;;  %v16013_v24 = vld [vmem:[#allocation247_spill] sm:$0xff] }
 0x1dd   : > { %15979 = vst [vmem:[#allocation242_spill] sm:$0xff] %v9869_v27  ;;  %15980 = vst [vmem:[#allocation172_spill] sm:$0xff] %v9873_v50  ;;  %v2736_v29 = vsel %vm1134_vm11, %v2682_v19, %v15981_v1  ;;  %v9892_v27 = vadd.f32 %v1630_v51, %v1594_v9  ;;  %v9894_v50 = vadd.f32 %v1802_v8, %v1766_v40  ;;  %v15988_v1 = vld [vmem:[#allocation103_spill] sm:$0xff]  ;;  %3012 = vrot.lane.b32.xlu1 %v15989_v16, %s7157_s7  ;;  %v15992_v51 = vld [vmem:[#allocation58_spill] sm:$0xff] }
 0x1de   : > { %v1238_v11 = vsel %vm1231_vm12, %v15083_v41, %v15984_v57  ;;  %v3133_v19 = vmul.f32 %v15768_v13, %v2861_v59  ;;  %v3218_v34 = vmul.f32 %v15806_v14, %v2746_v53  ;;  %2616 = vrot.lane.b32.xlu0 %v15988_v1, %s7157_s7  ;;  %v3453_v57 = vmul.f32 %v15810_v23, %v9802_v31  ;;  %v15990_v41 = vld [vmem:[#allocation251_spill] sm:$0xff]  ;;  %v15994_v9 = vld [vmem:[#allocation57_spill] sm:$0xff]  ;;  %v9919_v43 = vpop.permute.xlu1 %3032 }
 0x1df   : > { %15986 = vst [vmem:[#allocation18_spill] sm:$0xff] %v9892_v27  ;;  %15987 = vst [vmem:[#allocation163_spill] sm:$0xff] %v9894_v50  ;;  %v9906_v48 = vsel %vm357_vm0, %v15990_v41, 0.0  ;;  %v2747_v8 = vmul.f32 %v2736_v29, %v15992_v51  ;;  %v9911_v17 = vadd.f32 %v15527_v22, %v1456_v35  ;;  %v9914_v45 = vmul.f32 %v1238_v11, %v15994_v9  ;;  %v9917_v16 = vpop.permute.xlu0 %3332  ;;  %v15997_v1 = vld [vmem:[#allocation195_spill] sm:$0xff]  ;;  %v15998_v41 = vld [vmem:[#allocation26_spill] sm:$0xff] }
 0x1e0   : > { %15991 = vst [vmem:[#allocation151_spill] sm:$0xff] %v9906_v48  ;;  %v3114_v46 = vmul.f32 %v15768_v13, %v2842_v33  ;;  %15996 = vst [vmem:[#allocation225_spill] sm:$0xff] %v9917_v16  ;;  %v3078_v50 = vadd.f32 %v15997_v1, %v2878_v62  ;;  %v3586_v48 = vmul.f32 %v15998_v41, %v2746_v53  ;;  %v15999_v51 = vld [vmem:[#allocation20_spill] sm:$0xff]  ;;  %v16002_v53 = vld [vmem:[#allocation231_spill] sm:$0xff] }
 0x1e1   : > { %15993 = vst [vmem:[#allocation245_spill] sm:$0xff] %v9911_v17  ;;  %15995 = vst [vmem:[#allocation224_spill] sm:$0xff] %v9914_v45  ;;  %v3605_v29 = vmul.f32 %v15998_v41, %v9706_v10  ;;  %v3606_v40 = vmul.f32 %v15998_v41, %v2766_v54  ;;  %v3238_v35 = vmul.f32 %v15806_v14, %v2766_v54  ;;  %v16000_v17 = vld [vmem:[#allocation164_spill] sm:$0xff]  ;;  %v16001_v45 = vld [vmem:[#allocation230_spill] sm:$0xff]  ;;  %3720 = vrot.lane.b32.xlu1 %v16002_v53, %s7157_s7 }
 0x1e2   : > { %v3181_v27 = vadd.f32 %v15880_v61, %v3145_v47  ;;  %v3418_v42 = vadd.f32 %v16000_v17, %v3218_v34  ;;  %v3165_v22 = vadd.f32 %v3133_v19, %v9786_v4  ;;  %3352 = vrot.lane.b32.xlu0 %v16001_v45, %s7157_s7  ;;  %v9936_v10 = vadd.f32 %v3453_v57, %v9809_v18  ;;  %v16004_v62 = vld [vmem:[#allocation254_spill] sm:$0xff]  ;;  %v16008_v45 = vld [vmem:[#allocation175_spill] sm:$0xff] }
 0x1e3   : > { %v9940_v1 = vsel %vm357_vm0, %v16004_v62, 0.0  ;;  %v2898_v11 = vmul.f32 %v15762_v60, %v2766_v54  ;;  %v2879_v47 = vmul.f32 %v15762_v60, %v2747_v8  ;;  %v16006_v34 = vrot.slane %v9881_v55, 7  ;;  %v9957_v62 = vpop.permute.xlu1 %3740  ;;  %v9959_v54 = vpop.permute.xlu0 %2598 }
 0x1e4   : > { %16003 = vst [vmem:[#allocation207_spill] sm:$0xff] %v9936_v10  ;;  %16005 = vst [vmem:[#allocation229_spill] sm:$0xff] %v9940_v1  ;;  %v16007_v4 = vrot.slane %v15999_v51, 7  ;;  %v3473_v17 = vmul.f32 %v15810_v23, %v2861_v59  ;;  %v16009_v18 = vrot.slane %v16008_v45, 1  ;;  %v16010_v57 = vrot.slane %v9415_v32, 1 }
 0x1e5   : > { %16011 = vst [vmem:[#allocation251_spill] sm:$0xff] %v9957_v62  ;;  %v3146_v1 = vadd.f32 %v3114_v46, %v3078_v50  ;;  %v3805_v5 = vadd.f32 %v16012_v49, %v3605_v29  ;;  %v3841_v63 = vmul.f32 %v15884_v2, %v2861_v59  ;;  %v3587_v32 = vmul.f32 %v15998_v41, %v2747_v8  ;;  %v16018_v59 = vld [vmem:[#allocation234_spill] sm:$0xff]  ;;  %v16023_v29 = vld [vmem:[#allocation203_spill] sm:$0xff] }
 0x1e6   : > { %v2714_v19 = vsel %vm1134_vm11, %v16007_v4, %v16006_v34  ;;  %v2812_v53 = vsel %vm1231_vm12, %v16010_v57, %v16009_v18  ;;  %v9964_v34 = vadd.f32 %v16013_v24, %v3606_v40  ;;  %v16014_v4 = vld [vmem:[#allocation244_spill] sm:$0xff]  ;;  %v9971_v10 = vadd.f32 %v16016_v52, %v3181_v27  ;;  %v16017_v57 = vld [vmem:[#allocation82_spill] sm:$0xff]  ;;  %2618 = vrot.lane.b32.xlu0 %v15954_v58, %s7157_s7 }
 0x1e7   : > { %v9967_v16 = vadd.f32 %v16014_v4, %v3238_v35  ;;  %v3201_v18 = vadd.f32 %v15880_v61, %v3165_v22  ;;  %v9975_v62 = vmul.f32 %v2714_v19, %v16017_v57  ;;  %3014 = vrot.lane.b32.xlu1 %v16018_v59, %s7157_s7  ;;  %v9982_v50 = vadd.f32 %v3841_v63, %v3805_v5  ;;  %v16022_v27 = vld [vmem:[#allocation152_spill] sm:$0xff]  ;;  %v3373_v4 = vpop.permute.xlu1 %3372  ;;  %v9994_v59 = vpop.permute.xlu0 %2638 }
 0x1e8   : > { %v9985_v46 = vmul.f32 %v2812_v53, %v15994_v9  ;;  %v3098_v52 = vadd.f32 %v16022_v27, %v2898_v11  ;;  %v3454_v22 = vmul.f32 %v15810_v23, %v2842_v33  ;;  %v3822_v40 = vmul.f32 %v15884_v2, %v2842_v33  ;;  %v16024_v33 = vld [vmem:[#allocation169_spill] sm:$0xff] }
 0x1e9   : > { %16015 = vst [vmem:[#allocation195_spill] sm:$0xff] %v9967_v16  ;;  %16020 = vst [vmem:[#allocation26_spill] sm:$0xff] %v9982_v50  ;;  %v9991_v35 = vadd.f32 %v16023_v29, %v2879_v47  ;;  %v3219_v19 = vmul.f32 %v15806_v14, %v2747_v8  ;;  %v3182_v63 = vadd.f32 %v15880_v61, %v3146_v1  ;;  %v15093_v27 = vrot.slane %v9994_v59, 1  ;;  %v16025_v47 = vld [vmem:[#allocation255_spill] sm:$0xff]  ;;  %v16026_v8 = vld [vmem:[#allocation256_spill] sm:$0xff] }
 0x1ea   : > { %16021 = vst [vmem:[#allocation20_spill] sm:$0xff] %v9985_v46  ;;  %v9998_v5 = vadd.f32 %v3473_v17, %v9781_v56  ;;  %v3786_v49 = vadd.f32 %v16024_v33, %v3586_v48  ;;  %v10005_v29 = vadd.f32 %v16025_v47, %v3587_v32  ;;  %v10008_v57 = vadd.f32 %v16026_v8, %v3201_v18  ;;  %v16027_v56 = vld [vmem:[#allocation236_spill] sm:$0xff]  ;;  %v16028_v17 = vld [vmem:[#allocation237_spill] sm:$0xff]  ;;  %v16038_v8 = vld [vmem:[#allocation170_spill] sm:$0xff] }
 0x1eb   : > { %v2901_v1 = vmul.f32 %v15762_v60, %v9975_v62  ;;  %3354 = vrot.lane.b32.xlu0 %v16027_v56, %s7157_s7  ;;  %3722 = vrot.lane.b32.xlu1 %v16028_v17, %s7157_s7  ;;  %v3134_v48 = vmul.f32 %v15768_v13, %v9985_v46  ;;  %v16030_v32 = vrot.slane %v9881_v55, 1  ;;  %v10025_v33 = vadd.f32 %v3454_v22, %v3418_v42  ;;  %v16032_v56 = vld [vmem:[#allocation84_spill] sm:$0xff]  ;;  %v10033_v11 = vpop.permute.xlu0 %3334  ;;  %v10035_v9 = vpop.permute.xlu1 %2994 }
 0x1ec   : > { %v10027_v47 = vadd.f32 %v3822_v40, %v3786_v49  ;;  %v10038_v50 = vadd.f32 %v9728_v36, %v3182_v63  ;;  %v3821_v58 = vmul.f32 %v15884_v2, %v9802_v31  ;;  %v16034_v49 = vld [vmem:[#allocation221_spill] sm:$0xff]  ;;  %v16035_v40 = vrot.slane %v9713_v7, 1 }
 0x1ed   : > { %v2809_v18 = vsel %vm1231_vm12, %v16030_v32, %v15093_v27  ;;  %v16033_v32 = vld [vmem:[#allocation11_spill] sm:$0xff]  ;;  %v2899_v22 = vmul.f32 %v15762_v60, %v16034_v49  ;;  %v1322_v36 = vmul.f32 %v7444_v37, %v15968_v39  ;;  %v3101_v63 = vadd.f32 %v9919_v43, %v2901_v1 }
 0x1ee   : > { %16031 = vst [vmem:[#allocation164_spill] sm:$0xff] %v10027_v47  ;;  %v10031_v17 = vmul.f32 %v2809_v18, %v16032_v56  ;;  %v10043_v42 = vadd.f32 %v16033_v32, %v3219_v19  ;;  %v16036_v18 = vrot.slane %v15953_v3, 1  ;;  %v3241_v31 = vmul.f32 %v15806_v14, %v9975_v62  ;;  %v16037_v32 = vld [vmem:[#allocation239_spill] sm:$0xff] }
 0x1ef   : > { %2620 = vrot.lane.b32.xlu0 %v16037_v32, %s7157_s7  ;;  %3016 = vrot.lane.b32.xlu1 %v16038_v8, %s7157_s7  ;;  %v3166_v1 = vadd.f32 %v3134_v48, %v3098_v52  ;;  %v16040_v39 = vld [vmem:[#allocation59_spill] sm:$0xff]  ;;  %v16041_v32 = vrot.slane %v9994_v59, 7  ;;  %v16042_v47 = vrot.slane %v9881_v55, 7  ;;  %v10079_v24 = vpop.permute.xlu0 %3034  ;;  %v16045_v16 = vrot.slane %v15999_v51, 7 }
 0x1f0   : > { %v2831_v27 = vsel %vm1231_vm12, %v16036_v18, %v16035_v40  ;;  %v3137_v19 = vmul.f32 %v15768_v13, %v10031_v17  ;;  %v3607_v40 = vmul.f32 %v15998_v41, %v16034_v49  ;;  %v2684_v18 = vrot.slane %v9713_v7, 7  ;;  %16043 = vst [vmem:[#allocation230_spill] sm:$0xff] %v10079_v24  ;;  %v10081_v49 = vpop.permute.xlu1 %3702 }
 0x1f1   : > { %v3477_v43 = vmul.f32 %v15810_v23, %v10031_v17  ;;  %v10071_v37 = vmul.f32 %v2831_v27, %v16040_v39  ;;  %v3441_v53 = vadd.f32 %v3373_v4, %v3241_v31  ;;  %v2713_v8 = vsel %vm1134_vm11, %v16042_v47, %v16041_v32  ;;  %16044 = vst [vmem:[#allocation231_spill] sm:$0xff] %v10081_v49  ;;  %v16047_v31 = vld [vmem:[#allocation249_spill] sm:$0xff] }
 0x1f2   : > { %v3169_v56 = vadd.f32 %v3137_v19, %v3101_v63  ;;  %v16046_v52 = vrot.slane %v16008_v45, 7  ;;  %v3843_v4 = vmul.f32 %v15884_v2, %v9674_v30  ;;  %v3842_v48 = vmul.f32 %v15884_v2, %v9985_v46  ;;  %v16048_v19 = vld [vmem:[#allocation240_spill] sm:$0xff] }
 0x1f3   : > { %v1358_v47 = vmul.f32 %v15949_v28, %v15935_v21  ;;  %v3099_v32 = vadd.f32 %v16047_v31, %v2899_v22  ;;  %v3135_v63 = vmul.f32 %v15768_v13, %v9674_v30  ;;  %3724 = vrot.lane.b32.xlu1 %v16048_v19, %s7157_s7  ;;  %v16050_v49 = vrot.slane %v15953_v3, 7  ;;  %v16051_v22 = vld [vmem:[#allocation95_spill] sm:$0xff]  ;;  %v16052_v30 = vld [vmem:[#allocation68_spill] sm:$0xff]  ;;  %v10113_v24 = vpop.permute.xlu0 %3742 }
 0x1f4   : > { %v2715_v27 = vsel %vm1134_vm11, %v16046_v52, %v16045_v16  ;;  %v3205_v45 = vadd.f32 %v15880_v61, %v3169_v56  ;;  %v10101_v16 = vadd.f32 %v3477_v43, %v3441_v53  ;;  %v16049_v52 = vld [vmem:[#allocation208_spill] sm:$0xff]  ;;  %v2781_v21 = vrot.slane %v9835_v44, 1  ;;  %v10115_v19 = vpop.permute.xlu1 %2640 }
 0x1f5   : > { %v3807_v39 = vadd.f32 %v16049_v52, %v3607_v40  ;;  %v2735_v46 = vsel %vm1134_vm11, %v16050_v49, %v2684_v18  ;;  %v10110_v31 = vmul.f32 %v2713_v8, %v16051_v22  ;;  %v2768_v28 = vmul.f32 %v2715_v27, %v16052_v30  ;;  %v16055_v27 = vld [vmem:[#allocation69_spill] sm:$0xff] }
 0x1f6   : > { %v10118_v53 = vadd.f32 %v9711_v15, %v3205_v45  ;;  %v3823_v3 = vmul.f32 %v15884_v2, %v10071_v37  ;;  %v3202_v56 = vadd.f32 %v15880_v61, %v3166_v1  ;;  %v15100_v43 = vrot.slane %v10115_v19, 1 }
 0x1f7   : > { %v3875_v40 = vadd.f32 %v3843_v4, %v3807_v39  ;;  %v10125_v8 = vadd.f32 %v3821_v58, %v9723_v25  ;;  %v10127_v49 = vadd.f32 %v1358_v47, %v1322_v36  ;;  %v2748_v52 = vmul.f32 %v2735_v46, %v16055_v27  ;;  %v16059_v36 = vld [vmem:[#allocation96_spill] sm:$0xff]  ;;  %v16062_v27 = vld [vmem:[#allocation71_spill] sm:$0xff] }
 0x1f8   : > { %v15101_v22 = vrot.slane %v9835_v44, 7  ;;  %v3167_v30 = vadd.f32 %v3135_v63, %v3099_v32  ;;  %v10132_v15 = vadd.f32 %v3842_v48, %v9964_v34  ;;  %v3115_v45 = vmul.f32 %v15768_v13, %v10071_v37  ;;  %v3375_v48 = vpop.permute.xlu0 %3374 }
 0x1f9   : > { %16053 = vst [vmem:[#allocation254_spill] sm:$0xff] %v10125_v8  ;;  %16054 = vst [vmem:[#allocation175_spill] sm:$0xff] %v10127_v49  ;;  %v16057_v39 = vrot.slane %v9713_v7, 1  ;;  %v16058_v25 = vrot.slane %v9994_v59, 1  ;;  %v3242_v46 = vmul.f32 %v15806_v14, %v10110_v31  ;;  %v2900_v34 = vmul.f32 %v15762_v60, %v2768_v28  ;;  %v10152_v7 = vpop.permute.xlu1 %2996 }
 0x1fa   : > { %16056 = vst [vmem:[#allocation148_spill] sm:$0xff] %v10132_v15  ;;  %16061 = vst [vmem:[#allocation244_spill] sm:$0xff] %v10152_v7  ;;  %v3855_v47 = vadd.f32 %v3823_v3, %v10005_v29  ;;  %v10156_v32 = vadd.f32 %v9815_v20, %v3202_v56  ;;  %v3937_v63 = vadd.f32 %v3875_v40, %v10008_v57  ;;  %v16063_v56 = vrot.slane %v9881_v55, 1 }
 0x1fb   : > { %v2830_v1 = vsel %vm1231_vm12, %v16057_v39, %v2781_v21  ;;  %v2808_v58 = vsel %vm1231_vm12, %v16058_v25, %v15100_v43  ;;  %v3608_v39 = vmul.f32 %v15998_v41, %v2768_v28  ;;  %v3442_v43 = vadd.f32 %v3375_v48, %v3242_v46  ;;  %v16068_v25 = vld [vmem:[#allocation78_spill] sm:$0xff] }
 0x1fc   : > { %v10150_v4 = vmul.f32 %v2808_v58, %v16059_v36  ;;  %v2734_v58 = vsel %vm1134_vm11, %v2684_v18, %v15101_v22  ;;  %v10166_v36 = vmul.f32 %v2830_v1, %v16062_v27  ;;  %v3203_v20 = vadd.f32 %v15880_v61, %v3167_v30  ;;  %v10186_v30 = vpop.permute.xlu0 %2600 }
 0x1fd   : > { %v3240_v57 = vmul.f32 %v15806_v14, %v2768_v28  ;;  %v3588_v3 = vmul.f32 %v15998_v41, %v2748_v52  ;;  %v16064_v40 = vrot.slane %v15999_v51, 1  ;;  %v3147_v18 = vadd.f32 %v3115_v45, %v9991_v35  ;;  %16067 = vst [vmem:[#allocation152_spill] sm:$0xff] %v10186_v30  ;;  %v10188_v28 = vpop.permute.xlu1 %3704 }
 0x1fe   : > { %16060 = vst [vmem:[#allocation247_spill] sm:$0xff] %v10150_v4  ;;  %v3478_v29 = vmul.f32 %v15810_v23, %v10150_v4  ;;  %v10181_v1 = vadd.f32 %v9715_v0, %v2900_v34  ;;  %v15102_v48 = vrot.slane %v10115_v19, 7  ;;  %v3917_v55 = vadd.f32 %v3855_v47, %v9971_v10  ;;  %v16070_v34 = vld [vmem:[#allocation70_spill] sm:$0xff] }
 0x1ff   : > { %v2810_v46 = vsel %vm1231_vm12, %v16064_v40, %v16063_v56  ;;  %v2880_v51 = vmul.f32 %v15762_v60, %v2748_v52  ;;  %v10193_v27 = vmul.f32 %v2734_v58, %v16068_v25  ;;  %v16069_v35 = vrot.slane %v9959_v54, 1 }
 0x200   : > { %16065 = vst [vmem:[#allocation257_spill] sm:$0xff] %v10181_v1  ;;  %v10184_v22 = vadd.f32 %v3478_v29, %v3442_v43  ;;  %v3969_v45 = vmax.f32 %v3937_v63, 0.0  ;;  %v3808_v43 = vadd.f32 %v9750_v26, %v3608_v39  ;;  %v10201_v29 = vmul.f32 %v2810_v46, %v16070_v34  ;;  %v16072_v63 = vld [vmem:[#allocation79_spill] sm:$0xff]  ;;  %v16079_v34 = vld [vmem:[#allocation252_spill] sm:$0xff] }
 0x201   : > { %v2829_v0 = vsel %vm1231_vm12, %v2781_v21, %v16069_v35  ;;  %v3824_v56 = vmul.f32 %v15884_v2, %v10166_v36  ;;  %v10206_v10 = vadd.f32 %v9998_v5, %v3203_v20  ;;  %v3220_v47 = vmul.f32 %v15806_v14, %v2748_v52  ;;  %v10223_v52 = vpop.permute.xlu0 %3336  ;;  %v16075_v35 = vld [vmem:[#allocation28_spill] sm:$0xff] }
 0x202   : > { %16066 = vst [vmem:[#allocation234_spill] sm:$0xff] %v10184_v22  ;;  %16071 = vst [vmem:[#allocation203_spill] sm:$0xff] %v10201_v29  ;;  %v3788_v58 = vadd.f32 %v9790_v38, %v3588_v3  ;;  %v3183_v40 = vadd.f32 %v15880_v61, %v3147_v18  ;;  %v3455_v21 = vmul.f32 %v15810_v23, %v10071_v37  ;;  %v16073_v39 = vrot.slane %v9994_v59, 7  ;;  %v3037_v38 = vpop.permute.xlu1 %3036  ;;  %v16076_v20 = vld [vmem:[#allocation156_spill] sm:$0xff] }
 0x203   : > { %v10214_v26 = vmul.f32 %v2829_v0, %v16072_v63  ;;  %16074 = vst [vmem:[#allocation169_spill] sm:$0xff] %v10223_v52  ;;  %v3949_v3 = vmax.f32 %v3917_v55, 0.0  ;;  %v3080_v46 = vadd.f32 %v9752_v12, %v2880_v51  ;;  %v2881_v37 = vmul.f32 %v15762_v60, %v10193_v27  ;;  %v16078_v51 = vld [vmem:[#allocation98_spill] sm:$0xff] }
 0x204   : > { %v2712_v5 = vsel %vm1134_vm11, %v16073_v39, %v15102_v48  ;;  %v3589_v18 = vmul.f32 %v15998_v41, %v10193_v27  ;;  %v10231_v0 = vmul.f32 %v16075_v35, %v3969_v45  ;;  %v3609_v59 = vmul.f32 %v15998_v41, %v9975_v62 }
 0x205   : > { %v2686_v39 = vrot.slane %v9959_v54, 7  ;;  %v3856_v48 = vadd.f32 %v3824_v56, %v3788_v58  ;;  %v3844_v55 = vmul.f32 %v15884_v2, %v10201_v29  ;;  %v10239_v12 = vadd.f32 %v16076_v20, %v3240_v57  ;;  %v10254_v58 = vpop.permute.xlu0 %2642 }
 0x206   : > { %v2771_v63 = vmul.f32 %v2712_v5, %v16078_v51  ;;  %v10243_v25 = vadd.f32 %v3455_v21, %v10043_v42  ;;  %v10246_v45 = vadd.f32 %v16079_v34, %v3220_v47  ;;  %v3117_v62 = vmul.f32 %v15768_v13, %v10214_v26  ;;  %v3745_v57 = vpop.permute.xlu1 %3744  ;;  %v16081_v5 = vld [vmem:[#allocation207_spill] sm:$0xff] }
 0x207   : > { %16077 = vst [vmem:[#allocation255_spill] sm:$0xff] %v10239_v12  ;;  %v16080_v49 = vrot.slane %v10186_v30, 7  ;;  %v3985_v20 = vmul.f32 %v16075_v35, %v3949_v3  ;;  %v3551_v51 = vadd.f32 %v16081_v5, %v3183_v40  ;;  %v3116_v42 = vmul.f32 %v15768_v13, %v10166_v36  ;;  %v16082_v34 = vld [vmem:[#allocation147_spill] sm:$0xff] }
 0x208   : > { %v3081_v47 = vadd.f32 %v16082_v34, %v2881_v37  ;;  %v16083_v21 = vld [vmem:[#allocation27_spill] sm:$0xff]  ;;  %v15103_v15 = vrot.slane %v10254_v58, 1  ;;  %v3918_v3 = vadd.f32 %v3856_v48, %v10038_v50  ;;  %v3876_v7 = vadd.f32 %v3844_v55, %v3808_v43 }
 0x209   : > { %v2732_v56 = vsel %vm1134_vm11, %v2686_v39, %v16080_v49  ;;  %v3789_v22 = vadd.f32 %v16083_v21, %v3589_v18  ;;  %v16084_v12 = vld [vmem:[#allocation251_spill] sm:$0xff]  ;;  %v16085_v49 = vrot.slane %v9835_v44, 7  ;;  %v16087_v37 = vrot.slane %v10115_v19, 1  ;;  %v10283_v43 = vpop.permute.xlu0 %2602 }
 0x20a   : > { %v3809_v8 = vadd.f32 %v16084_v12, %v3609_v59  ;;  %v16086_v40 = vld [vmem:[#allocation107_spill] sm:$0xff]  ;;  %v3243_v59 = vmul.f32 %v15806_v14, %v2771_v63  ;;  %v3825_v44 = vmul.f32 %v15884_v2, %v10214_v26  ;;  %v16088_v12 = vld [vmem:[#allocation101_spill] sm:$0xff]  ;;  %v3611_v50 = vmul.f32 %v15998_v41, %v2771_v63  ;;  %v3377_v48 = vpop.permute.xlu1 %3376  ;;  %16089 = vst [vmem:[#allocation256_spill] sm:$0xff] %v10283_v43 }
 0x20b   : > { %v2733_v1 = vsel %vm1134_vm11, %v16085_v49, %v2686_v39  ;;  %v10270_v5 = vmul.f32 %v2732_v56, %v16086_v40  ;;  %v2807_v18 = vsel %vm1231_vm12, %v16087_v37, %v15103_v15  ;;  %v3149_v55 = vadd.f32 %v3117_v62, %v3081_v47 }
 0x20c   : > { %v2867_v39 = vmul.f32 %v2807_v18, %v16088_v12  ;;  %v3845_v56 = vmul.f32 %v15884_v2, %v10031_v17  ;;  %v2783_v34 = vrot.slane %v10186_v30, 1  ;;  %v2903_v21 = vmul.f32 %v15762_v60, %v2771_v63  ;;  %v16090_v30 = vld [vmem:[#allocation108_spill] sm:$0xff] }
 0x20d   : > { %v3443_v49 = vadd.f32 %v3377_v48, %v3243_v59  ;;  %v15107_v37 = vrot.slane %v10283_v43, 1  ;;  %v3811_v40 = vadd.f32 %v3745_v57, %v3611_v50  ;;  %v3591_v62 = vmul.f32 %v15998_v41, %v10270_v5 }
 0x20e   : > { %v3139_v15 = vmul.f32 %v15768_v13, %v2867_v39  ;;  %v3847_v18 = vmul.f32 %v15884_v2, %v2867_v39  ;;  %v3479_v12 = vmul.f32 %v15810_v23, %v2867_v39  ;;  %v3103_v47 = vadd.f32 %v3037_v38, %v2903_v21  ;;  %v10305_v57 = vpop.permute.xlu1 %3378  ;;  %v10307_v39 = vpop.permute.xlu0 %3338  ;;  %v16091_v21 = vld [vmem:[#allocation226_spill] sm:$0xff] }
 0x20f   : > { %v2827_v17 = vsel %vm1231_vm12, %v2783_v34, %v15107_v37  ;;  %v3938_v63 = vadd.f32 %v3876_v7, %v10156_v32  ;;  %v3857_v50 = vadd.f32 %v3825_v44, %v3789_v22  ;;  %v3221_v38 = vmul.f32 %v15806_v14, %v10193_v27  ;;  %2048 = vadd.xlane.f32.xlu0 %v16091_v21  ;;  %v16092_v7 = vld [vmem:[#allocation88_spill] sm:$0xff] }
 0x210   : > { %v3879_v59 = vadd.f32 %v3847_v18, %v3811_v40  ;;  %v10300_v48 = vadd.f32 %v3479_v12, %v3443_v49  ;;  %v10303_v52 = vmul.f32 %v2827_v17, %v16090_v30  ;;  %v3171_v4 = vadd.f32 %v3139_v15, %v3103_v47 }
 0x211   : > { %v3950_v37 = vmax.f32 %v3918_v3, 0.0  ;;  %v3148_v43 = vadd.f32 %v3116_v42, %v3080_v46  ;;  %v2750_v32 = vmul.f32 %v2733_v1, %v16092_v7  ;;  %v3185_v12 = vadd.f32 %v15880_v61, %v3149_v55 }
 0x212   : > { %v10314_v40 = vadd.f32 %v3879_v59, %v10118_v53  ;;  %v3877_v49 = vadd.f32 %v3845_v56, %v3809_v8  ;;  %v16094_v18 = vrot.slane %v9959_v54, 1  ;;  %v3791_v27 = vadd.f32 %v10188_v28, %v3591_v62  ;;  %v10325_v42 = vpop.permute.xlu0 %3038  ;;  %v10327_v1 = vpop.permute.xlu1 %2998  ;;  %v16095_v56 = vld [vmem:[#allocation225_spill] sm:$0xff]  ;;  %v16096_v62 = vld [vmem:[#allocation90_spill] sm:$0xff] }
 0x213   : > { %v3827_v15 = vmul.f32 %v15884_v2, %v10303_v52  ;;  %v3207_v46 = vadd.f32 %v15880_v61, %v3171_v4  ;;  %v4023_v53 = vsel %vm357_vm0, %v3985_v20, 0.0  ;;  %v3919_v3 = vadd.f32 %v3857_v50, %v3551_v51 }
 0x214   : > { %16093 = vst [vmem:[#allocation236_spill] sm:$0xff] %v10314_v40  ;;  %v2828_v22 = vsel %vm1231_vm12, %v16094_v18, %v2783_v34  ;;  %v10332_v54 = vsel %vm357_vm0, %v10231_v0, 0.0  ;;  %v3970_v8 = vmax.f32 %v3938_v63, 0.0  ;;  %v3184_v55 = vadd.f32 %v15880_v61, %v3148_v43  ;;  %v16097_v18 = vld [vmem:[#allocation99_spill] sm:$0xff] }
 0x215   : > { %v3859_v44 = vadd.f32 %v3827_v15, %v3791_v27  ;;  %v10335_v28 = vadd.f32 %v10101_v16, %v3207_v46  ;;  %v3456_v4 = vmul.f32 %v15810_v23, %v10166_v36  ;;  %v3421_v34 = vadd.f32 %v16095_v56, %v3221_v38 }
 0x216   : > { %v2846_v47 = vmul.f32 %v2828_v22, %v16096_v62  ;;  %v3986_v51 = vmul.f32 %v16075_v35, %v3950_v37  ;;  %v3939_v20 = vadd.f32 %v3877_v49, %v10206_v10  ;;  %v3222_v0 = vmul.f32 %v15806_v14, %v2750_v32  ;;  %v10352_v59 = vpop.permute.xlu0 %3746  ;;  %v10354_v50 = vpop.permute.xlu1 %3706  ;;  %v16117_v62 = vld [vmem:[#allocation244_spill] sm:$0xff] }
 0x217   : > { %v2882_v17 = vmul.f32 %v15762_v60, %v2750_v32  ;;  %v3553_v16 = vadd.f32 %v10243_v25, %v3185_v12  ;;  %v3457_v43 = vmul.f32 %v15810_v23, %v10214_v26  ;;  %v2902_v36 = vmul.f32 %v15762_v60, %v10110_v31  ;;  %2045 = vadd.xlane.f32.xlu1 %v16097_v18 }
 0x218   : > { %v2708_v63 = vrot.slane %v10254_v58, 7  ;;  %v3951_v37 = vmax.f32 %v3919_v3, 0.0  ;;  %v4006_v10 = vmul.f32 %v16075_v35, %v3970_v8  ;;  %v10359_v38 = vmul.f32 %v15768_v13, %v10201_v29 }
 0x219   : > { %v3921_v25 = vadd.f32 %v3859_v44, %v3553_v16  ;;  %v3552_v21 = vadd.f32 %v10025_v33, %v3184_v55  ;;  %v3488_v26 = vadd.f32 %v3456_v4, %v10246_v45  ;;  %v3590_v12 = vmul.f32 %v15998_v41, %v2750_v32  ;;  %v16098_v45 = vld [vmem:[#allocation230_spill] sm:$0xff] }
 0x21a   : > { %v3118_v49 = vmul.f32 %v15768_v13, %v2846_v47  ;;  %v10367_v22 = vsel %vm357_vm0, %v3986_v51, 0.0  ;;  %v3971_v27 = vmax.f32 %v3939_v20, 0.0  ;;  %v3422_v15 = vadd.f32 %v10033_v11, %v3222_v0  ;;  %v2645_v55 = vpop.permute.xlu1 %2644  ;;  %v10382_v4 = vpop.permute.xlu0 %2604  ;;  %v16101_v20 = vld [vmem:[#allocation231_spill] sm:$0xff] }
 0x21b   : > { %v3082_v46 = vadd.f32 %v10035_v9, %v2882_v17  ;;  %v3610_v3 = vmul.f32 %v15998_v41, %v10110_v31  ;;  %v10373_v33 = vadd.f32 %v3457_v43, %v3421_v34  ;;  %v10376_v8 = vadd.f32 %v16098_v45, %v2902_v36  ;;  %4024 = vadd.xlane.f32.xlu1 %v4023_v53  ;;  %v16103_v36 = vld [vmem:[#allocation102_spill] sm:$0xff] }
 0x21c   : > { %v16100_v32 = vrot.slane %v10115_v19, 7  ;;  %v3987_v11 = vmul.f32 %v16075_v35, %v3951_v37  ;;  %v10386_v9 = vsel %vm357_vm0, %v4006_v10, 0.0  ;;  %v2709_v56 = vrot.slane %v2645_v55, 7  ;;  %v16104_v10 = vld [vmem:[#allocation217_spill] sm:$0xff] }
 0x21d   : > { %16099 = vst [vmem:[#allocation237_spill] sm:$0xff] %v10376_v8  ;;  %v2805_v31 = vrot.slane %v2645_v55, 1  ;;  %v3953_v34 = vmax.f32 %v3921_v25, 0.0  ;;  %v3826_v51 = vmul.f32 %v15884_v2, %v2846_v47  ;;  %v3790_v0 = vadd.f32 %v16101_v20, %v3590_v12  ;;  %v16107_v12 = vld [vmem:[#allocation256_spill] sm:$0xff] }
 0x21e   : > { %v2711_v44 = vsel %vm1134_vm11, %v16100_v32, %v2708_v63  ;;  %v10391_v19 = vadd.f32 %v10113_v24, %v3610_v3  ;;  %v4007_v17 = vmul.f32 %v16075_v35, %v3971_v27  ;;  %v3150_v16 = vadd.f32 %v3118_v49, %v3082_v46  ;;  %v16108_v46 = vld [vmem:[#allocation87_spill] sm:$0xff]  ;;  %v3381_v32 = vpop.permute.xlu0 %3380 }
 0x21f   : > { %v2883_v43 = vmul.f32 %v15762_v60, %v10270_v5  ;;  %v2772_v37 = vmul.f32 %v2711_v44, %v16103_v36  ;;  %v16105_v18 = vrot.slane %v16104_v10, 7  ;;  %v16106_v45 = vrot.slane %v10254_v58, 1  ;;  %v10413_v44 = vpop.permute.xlu1 %3000  ;;  %v16110_v36 = vld [vmem:[#allocation105_spill] sm:$0xff] }
 0x220   : > { %16102 = vst [vmem:[#allocation11_spill] sm:$0xff] %v10391_v19  ;;  %v3223_v53 = vmul.f32 %v15806_v14, %v10270_v5  ;;  %v2688_v49 = vrot.slane %v16107_v12, 7  ;;  %v2710_v27 = vsel %vm1134_vm11, %v2708_v63, %v2709_v56  ;;  %v4029_v55 = vsel %vm357_vm0, %v3987_v11, 0.0  ;;  %v16111_v11 = vld [vmem:[#allocation247_spill] sm:$0xff]  ;;  %v16125_v19 = vld [vmem:[#allocation121_spill] sm:$0xff] }
 0x221   : > { %v2741_v25 = vsel %vm1134_vm11, %v2709_v56, %v16105_v18  ;;  %v2806_v24 = vsel %vm1231_vm12, %v16106_v45, %v2805_v31  ;;  %v3989_v58 = vmul.f32 %v16075_v35, %v3953_v34  ;;  %v3858_v20 = vadd.f32 %v3826_v51, %v3790_v0  ;;  %4030 = vadd.xlane.f32.xlu1 %v4029_v55  ;;  %v16113_v51 = vld [vmem:[#allocation109_spill] sm:$0xff] }
 0x222   : > { %v10411_v3 = vmul.f32 %v2741_v25, %v16108_v46  ;;  %v3458_v18 = vmul.f32 %v15810_v23, %v2846_v47  ;;  %v16109_v5 = vrot.slane %v16104_v10, 1  ;;  %v10423_v63 = vmul.f32 %v2806_v24, %v16110_v36  ;;  %v10445_v46 = vpop.permute.xlu0 %3340 }
 0x223   : > { %v3186_v25 = vadd.f32 %v15880_v61, %v3150_v16  ;;  %v10430_v34 = vmul.f32 %v15768_v13, %v16111_v11  ;;  %v3244_v47 = vmul.f32 %v15806_v14, %v2772_v37  ;;  %v2773_v0 = vmul.f32 %v2710_v27, %v16113_v51  ;;  %v10447_v30 = vpop.permute.xlu1 %3708  ;;  %v16118_v27 = vld [vmem:[#allocation110_spill] sm:$0xff] }
 0x224   : > { %v2837_v45 = vsel %vm1231_vm12, %v2805_v31, %v16109_v5  ;;  %v2874_v56 = vmul.f32 %v15762_v60, %v10411_v3  ;;  %v10435_v10 = vsel %vm357_vm0, %v4007_v17, 0.0  ;;  %v16114_v31 = vld [vmem:[#allocation169_spill] sm:$0xff]  ;;  %v16115_v5 = vld [vmem:[#allocation152_spill] sm:$0xff]  ;;  %v3083_v7 = vadd.f32 %v16117_v62, %v2883_v43  ;;  %v16120_v62 = vld [vmem:[#allocation111_spill] sm:$0xff] }
 0x225   : > { %16112 = vst [vmem:[#allocation221_spill] sm:$0xff] %v10430_v34  ;;  %v10438_v24 = vadd.f32 %v16114_v31, %v3223_v53  ;;  %v16116_v36 = vrot.slane %v16115_v5, 7  ;;  %v2869_v51 = vmul.f32 %v2837_v45, %v16118_v27  ;;  %v4035_v17 = vsel %vm357_vm0, %v3989_v58, 0.0  ;;  %v16119_v5 = vld [vmem:[#allocation223_spill] sm:$0xff]  ;;  %v16121_v45 = vld [vmem:[#allocation173_spill] sm:$0xff] }
 0x226   : > { %v3920_v40 = vadd.f32 %v3858_v20, %v3552_v21  ;;  %v10452_v53 = vadd.f32 %v3458_v18, %v3422_v15  ;;  %v2785_v31 = vrot.slane %v10382_v4, 1  ;;  %4036 = vadd.xlane.f32.xlu1 %v4035_v17  ;;  %v3480_v16 = vmul.f32 %v15810_v23, %v10423_v63  ;;  %3356 = vrot.lane.b32.xlu0 %v16121_v45, %s7157_s7 }
 0x227   : > { %v2731_v55 = vsel %vm1134_vm11, %v16116_v36, %v2688_v49  ;;  %v3074_v36 = vadd.f32 %v16119_v5, %v2874_v56  ;;  %v10458_v34 = vadd.f32 %v3488_v26, %v3186_v25  ;;  %v3444_v8 = vadd.f32 %v10305_v57, %v3244_v47  ;;  %v3749_v57 = vpop.permute.xlu0 %3748  ;;  %v3041_v56 = vpop.permute.xlu1 %3040  ;;  %v16123_v25 = vld [vmem:[#allocation25_spill] sm:$0xff] }
 0x228   : > { %v2752_v43 = vmul.f32 %v2731_v55, %v16120_v62  ;;  %v3613_v21 = vmul.f32 %v15998_v41, %v2773_v0  ;;  %v2905_v15 = vmul.f32 %v15762_v60, %v2773_v0  ;;  %v3119_v58 = vmul.f32 %v15768_v13, %v10303_v52 }
 0x229   : > { %v16122_v20 = vrot.slane %v10382_v4, 7  ;;  %v3245_v18 = vmul.f32 %v15806_v14, %v2773_v0  ;;  %v3142_v47 = vadd.f32 %v16123_v25, %v3074_v36  ;;  %v3849_v55 = vmul.f32 %v15884_v2, %v2869_v51 }
 0x22a   : > { %v3813_v17 = vadd.f32 %v3749_v57, %v3613_v21  ;;  %v3141_v5 = vmul.f32 %v15768_v13, %v2869_v51  ;;  %v3105_v45 = vadd.f32 %v3041_v56, %v2905_v15  ;;  %v2904_v27 = vmul.f32 %v15762_v60, %v2772_v37 }
 0x22b   : > { %v2730_v26 = vsel %vm1134_vm11, %v2688_v49, %v16122_v20  ;;  %v16124_v62 = vrot.slane %v16107_v12, 1  ;;  %v3512_v49 = vadd.f32 %v3480_v16, %v3444_v8  ;;  %v3952_v20 = vmax.f32 %v3920_v40, 0.0  ;;  %v2607_v11 = vpop.permute.xlu0 %2606  ;;  %v10488_v12 = vpop.permute.xlu1 %3002 }
 0x22c   : > { %v3214_v0 = vmul.f32 %v15806_v14, %v10411_v3  ;;  %v10484_v36 = vmul.f32 %v2730_v26, %v16125_v19  ;;  %v3881_v25 = vadd.f32 %v3849_v55, %v3813_v17  ;;  %v3173_v21 = vadd.f32 %v3141_v5, %v3105_v45  ;;  %v16127_v17 = vld [vmem:[#allocation114_spill] sm:$0xff]  ;;  %v16129_v45 = vld [vmem:[#allocation165_spill] sm:$0xff] }
 0x22d   : > { %v2826_v29 = vsel %vm1231_vm12, %v16124_v62, %v2785_v31  ;;  %v3224_v57 = vmul.f32 %v15806_v14, %v2752_v43  ;;  %v3612_v15 = vmul.f32 %v15998_v41, %v2772_v37  ;;  %v3445_v56 = vadd.f32 %v3381_v32, %v3245_v18 }
 0x22e   : > { %v3178_v62 = vadd.f32 %v15880_v61, %v3142_v47  ;;  %v10492_v40 = vadd.f32 %v3881_v25, %v10335_v28  ;;  %v3209_v8 = vadd.f32 %v15880_v61, %v3173_v21  ;;  %v2786_v16 = vrot.slane %v2607_v11, 1 }
 0x22f   : > { %v3151_v26 = vadd.f32 %v3119_v58, %v3083_v7  ;;  %v2884_v55 = vmul.f32 %v15762_v60, %v2752_v43  ;;  %v10497_v5 = vmul.f32 %v2826_v29, %v16127_v17  ;;  %v3481_v37 = vmul.f32 %v15810_v23, %v2869_v51  ;;  %v16130_v58 = vld [vmem:[#allocation123_spill] sm:$0xff]  ;;  %v10511_v29 = vpop.permute.xlu0 %3342  ;;  %v10513_v17 = vpop.permute.xlu1 %3710 }
 0x230   : > { %16126 = vst [vmem:[#allocation170_spill] sm:$0xff] %v10492_v40  ;;  %v3514_v32 = vmul.f32 0.0, %v3512_v49  ;;  %v3593_v18 = vmul.f32 %v15998_v41, %v10484_v36  ;;  %v10503_v47 = vadd.f32 %v10300_v48, %v3209_v8  ;;  %v2825_v28 = vsel %vm1231_vm12, %v2785_v31, %v2786_v16 }
 0x231   : > { %v3414_v25 = vadd.f32 %v16129_v45, %v3214_v0  ;;  %v3513_v7 = vadd.f32 %v3481_v37, %v3445_v56  ;;  %v10509_v21 = vmul.f32 %v2825_v28, %v16130_v58  ;;  %v10516_v49 = vmul.f32 %v16075_v35, %v3952_v20  ;;  %v16131_v20 = vld [vmem:[#allocation20_spill] sm:$0xff]  ;;  %v16133_v45 = vld [vmem:[#allocation215_spill] sm:$0xff] }
 0x232   : > { %16128 = vst [vmem:[#allocation249_spill] sm:$0xff] %v10503_v47  ;;  %v3546_v51 = vadd.f32 %v3514_v32, %v3178_v62  ;;  %v10519_v48 = vadd.f32 %v10307_v39, %v3224_v57  ;;  %v3592_v8 = vmul.f32 %v15998_v41, %v2752_v43  ;;  %v3187_v31 = vadd.f32 %v15880_v61, %v3151_v26  ;;  %v16132_v26 = vld [vmem:[#allocation196_spill] sm:$0xff] }
 0x233   : > { %v3459_v0 = vmul.f32 %v15810_v23, %v10303_v52  ;;  %v10526_v56 = vadd.f32 %v10325_v42, %v2904_v27  ;;  %v3084_v37 = vadd.f32 %v10327_v1, %v2884_v55  ;;  %v3828_v62 = vmul.f32 %v15884_v2, %v10497_v5  ;;  %v10540_v27 = vpop.permute.xlu0 %2608  ;;  %v10542_v55 = vpop.permute.xlu1 %3004 }
 0x234   : > { %v3474_v32 = vmul.f32 %v15810_v23, %v16131_v20  ;;  %v3793_v39 = vadd.f32 %v10447_v30, %v3593_v18  ;;  %v2690_v57 = vrot.slane %v2607_v11, 7  ;;  %v3829_v43 = vmul.f32 %v15884_v2, %v10509_v21  ;;  %v16135_v30 = vld [vmem:[#allocation202_spill] sm:$0xff] }
 0x235   : > { %v3482_v28 = vadd.f32 %v16132_v26, %v3414_v25  ;;  %v3792_v52 = vadd.f32 %v10354_v50, %v3592_v8  ;;  %v3120_v42 = vmul.f32 %v15768_v13, %v10497_v5  ;;  %v3515_v1 = vmul.f32 0.0, %v3513_v7 }
 0x236   : > { %v3914_v20 = vadd.f32 %v16133_v45, %v3546_v51  ;;  %v2787_v11 = vrot.slane %v10540_v27, 1  ;;  %v3555_v18 = vadd.f32 %v10373_v33, %v3187_v31  ;;  %v3861_v58 = vadd.f32 %v3829_v43, %v3793_v39  ;;  %v16136_v33 = vld [vmem:[#allocation195_spill] sm:$0xff]  ;;  %v16137_v39 = vld [vmem:[#allocation246_spill] sm:$0xff] }
 0x237   : > { %v10549_v25 = vadd.f32 %v10352_v59, %v3612_v15  ;;  %v2885_v50 = vmul.f32 %v15762_v60, %v10484_v36  ;;  %v3860_v7 = vadd.f32 %v3828_v62, %v3792_v52  ;;  %v10554_v8 = vadd.f32 %v3459_v0, %v10438_v24  ;;  %v10567_v43 = vpop.permute.xlu0 %3344  ;;  %v3713_v24 = vpop.permute.xlu1 %3712 }
 0x238   : > { %v16134_v26 = vrot.slane %v10382_v4, 7  ;;  %v3923_v45 = vadd.f32 %v3861_v58, %v3555_v18  ;;  %v3548_v19 = vadd.f32 %v3482_v28, %v16135_v30  ;;  %v3506_v31 = vadd.f32 %v3474_v32, %v16136_v33  ;;  %v16139_v32 = vld [vmem:[#allocation257_spill] sm:$0xff]  ;;  %v16140_v18 = vld [vmem:[#allocation126_spill] sm:$0xff] }
 0x239   : > { %v3547_v59 = vadd.f32 %v3515_v1, %v16137_v39  ;;  %v16138_v15 = vrot.slane %v10540_v27, 7  ;;  %v3946_v0 = vmax.f32 %v3914_v20, 0.0  ;;  %v3152_v4 = vadd.f32 %v3120_v42, %v3084_v37  ;;  %v16141_v42 = vld [vmem:[#allocation211_spill] sm:$0xff]  ;;  %v16142_v39 = vld [vmem:[#allocation164_spill] sm:$0xff] }
 0x23a   : > { %v2729_v51 = vsel %vm1134_vm11, %v16134_v26, %v2690_v57  ;;  %v3121_v52 = vmul.f32 %v15768_v13, %v10509_v21  ;;  %v2824_v58 = vsel %vm1231_vm12, %v2786_v16, %v2787_v11  ;;  %v3955_v28 = vmax.f32 %v3923_v45, 0.0 }
 0x23b   : > { %v2728_v62 = vsel %vm1134_vm11, %v2690_v57, %v16138_v15  ;;  %v3168_v1 = vadd.f32 %v10359_v38, %v16139_v32  ;;  %v10577_v30 = vmul.f32 %v15768_v13, %v10423_v63  ;;  %v3085_v57 = vadd.f32 %v10413_v44, %v2885_v50  ;;  %v16143_v15 = vld [vmem:[#allocation127_spill] sm:$0xff]  ;;  %v2611_v40 = vpop.permute.xlu0 %2610  ;;  %v10589_v47 = vpop.permute.xlu1 %3006  ;;  %v16144_v44 = vld [vmem:[#allocation254_spill] sm:$0xff] }
 0x23c   : > { %v2754_v26 = vmul.f32 %v2729_v51, %v16140_v18  ;;  %v3922_v37 = vadd.f32 %v3860_v7, %v10458_v34  ;;  %v2755_v20 = vmul.f32 %v2728_v62, %v16141_v42  ;;  %v3991_v33 = vmul.f32 %v16075_v35, %v3955_v28 }
 0x23d   : > { %v3916_v16 = vadd.f32 %v16142_v39, %v3548_v19  ;;  %v3204_v45 = vadd.f32 %v15880_v61, %v3168_v1  ;;  %v3225_v38 = vmul.f32 %v15806_v14, %v10484_v36  ;;  %v2850_v32 = vmul.f32 %v2824_v58, %v16143_v15 }
 0x23e   : > { %v3915_v50 = vadd.f32 %v16144_v44, %v3547_v59  ;;  %v3188_v34 = vadd.f32 %v15880_v61, %v3152_v4  ;;  %v2788_v7 = vrot.slane %v2611_v40, 1  ;;  %v4041_v51 = vsel %vm357_vm0, %v3991_v33, 0.0 }
 0x23f   : > { %v3982_v62 = vmul.f32 %v16075_v35, %v3946_v0  ;;  %v3153_v19 = vadd.f32 %v3121_v52, %v3085_v57  ;;  %v3594_v28 = vmul.f32 %v15998_v41, %v2754_v26  ;;  %4042 = vadd.xlane.f32.xlu1 %v4041_v51  ;;  %v3954_v1 = vmax.f32 %v3922_v37, 0.0  ;;  %v16145_v0 = vld [vmem:[#allocation213_spill] sm:$0xff]  ;;  %v10607_v57 = vpop.permute.xlu0 %3346  ;;  %v10609_v37 = vpop.permute.xlu1 %3714 }
 0x240   : > { %v3460_v36 = vmul.f32 %v15810_v23, %v10497_v5  ;;  %v10598_v58 = vadd.f32 %v3506_v31, %v3204_v45  ;;  %v3595_v39 = vmul.f32 %v15998_v41, %v2755_v20  ;;  %v2692_v59 = vrot.slane %v2611_v40, 7 }
 0x241   : > { %v2823_v4 = vsel %vm1231_vm12, %v2787_v11, %v2788_v7  ;;  %v3948_v44 = vmax.f32 %v3916_v16, 0.0  ;;  %v2886_v33 = vmul.f32 %v15762_v60, %v2754_v26  ;;  %v3947_v51 = vmax.f32 %v3915_v50, 0.0 }
 0x242   : > { %v10605_v52 = vmul.f32 %v2823_v4, %v16145_v0  ;;  %v3830_v5 = vmul.f32 %v15884_v2, %v2850_v32  ;;  %v3425_v31 = vadd.f32 %v10445_v46, %v3225_v38  ;;  %v4014_v40 = vsel %vm357_vm0, %v3982_v62, 0.0 }
 0x243   : > { %v3189_v45 = vadd.f32 %v15880_v61, %v3153_v19  ;;  %v3556_v11 = vadd.f32 %v10452_v53, %v3188_v34  ;;  %v3226_v16 = vmul.f32 %v15806_v14, %v2754_v26  ;;  %v3794_v4 = vadd.f32 %v10513_v17, %v3594_v28  ;;  %4015 = vadd.xlane.f32.xlu1 %v4014_v40  ;;  %v2613_v17 = vpop.permute.xlu0 %2612  ;;  %v10630_v34 = vpop.permute.xlu1 %3008 }
 0x244   : > { %v3990_v15 = vmul.f32 %v16075_v35, %v3954_v1  ;;  %v10620_v42 = vadd.f32 %v3460_v36, %v10519_v48  ;;  %v3122_v50 = vmul.f32 %v15768_v13, %v2850_v32  ;;  %v3795_v18 = vadd.f32 %v3713_v24, %v3595_v39  ;;  %v16147_v39 = vld [vmem:[#allocation216_spill] sm:$0xff] }
 0x245   : > { %v16146_v46 = vrot.slane %v10540_v27, 7  ;;  %v3831_v53 = vmul.f32 %v15884_v2, %v10605_v52  ;;  %v3086_v26 = vadd.f32 %v10488_v12, %v2886_v33  ;;  %v3984_v62 = vmul.f32 %v16075_v35, %v3948_v44  ;;  %4027 = vadd.xlane.f32.xlu0 %v10367_v22 }
 0x246   : > { %v3983_v48 = vmul.f32 %v16075_v35, %v3947_v51  ;;  %v3862_v19 = vadd.f32 %v3830_v5, %v3794_v4  ;;  %v2693_v28 = vrot.slane %v2613_v17, 7  ;;  %v2789_v24 = vrot.slane %v2613_v17, 1 }
 0x247   : > { %v2727_v38 = vsel %vm1134_vm11, %v16146_v46, %v2692_v59  ;;  %v3557_v27 = vadd.f32 %v10554_v8, %v3189_v45  ;;  %v3863_v1 = vadd.f32 %v3831_v53, %v3795_v18  ;;  %v2887_v36 = vmul.f32 %v15762_v60, %v2755_v20  ;;  %4084 = vadd.xlane.f32.xlu1 %v10332_v54  ;;  %v10650_v22 = vpop.permute.xlu0 %3348  ;;  %v3717_v45 = vpop.permute.xlu1 %3716 }
 0x248   : > { %v2756_v40 = vmul.f32 %v2727_v38, %v16147_v39  ;;  %v4032_v12 = vsel %vm357_vm0, %v10516_v49, 0.0  ;;  %v3461_v44 = vmul.f32 %v15810_v23, %v10509_v21  ;;  %v3227_v33 = vmul.f32 %v15806_v14, %v2755_v20  ;;  %v16148_v20 = vld [vmem:[#allocation222_spill] sm:$0xff]  ;;  %v16218_v39 = vld [vmem:[#allocation96_spill] sm:$0xff] }
 0x249   : > { %v2822_v8 = vsel %vm1231_vm12, %v2788_v7, %v2789_v24  ;;  %v3925_v18 = vadd.f32 %v3863_v1, %v3557_v27  ;;  %v3154_v51 = vadd.f32 %v3122_v50, %v3086_v26  ;;  %v3123_v5 = vmul.f32 %v15768_v13, %v10605_v52  ;;  %4033 = vadd.xlane.f32.xlu0 %v4032_v12 }
 0x24a   : > { %v2726_v54 = vsel %vm1134_vm11, %v2692_v59, %v2693_v28  ;;  %v3924_v49 = vadd.f32 %v3862_v19, %v3556_v11  ;;  %v3462_v4 = vmul.f32 %v15810_v23, %v2850_v32  ;;  %v3426_v21 = vadd.f32 %v10511_v29, %v3226_v16  ;;  %v16149_v29 = vld [vmem:[#allocation116_spill] sm:$0xff] }
 0x24b   : > { %v10655_v46 = vmul.f32 %v2822_v8, %v16148_v20  ;;  %v4038_v7 = vsel %vm357_vm0, %v3990_v15, 0.0  ;;  %v3957_v50 = vmax.f32 %v3925_v18, 0.0  ;;  %v3087_v38 = vadd.f32 %v10542_v55, %v2887_v36  ;;  %4087 = vadd.xlane.f32.xlu1 %v10386_v9  ;;  %v2615_v17 = vpop.permute.xlu0 %2614  ;;  %v10671_v19 = vpop.permute.xlu1 %3010 }
 0x24c   : > { %v2888_v53 = vmul.f32 %v15762_v60, %v2756_v40  ;;  %v4020_v59 = vsel %vm357_vm0, %v3984_v62, 0.0  ;;  %v10663_v11 = vsel %vm357_vm0, %v3983_v48, 0.0  ;;  %v3427_v32 = vadd.f32 %v10567_v43, %v3227_v33  ;;  %v16150_v33 = vld [vmem:[#allocation199_spill] sm:$0xff] }
 0x24d   : > { %v10667_v16 = vmul.f32 %v2726_v54, %v16149_v29  ;;  %v3493_v26 = vadd.f32 %v3461_v44, %v3425_v31  ;;  %v3190_v15 = vadd.f32 %v15880_v61, %v3154_v51  ;;  %v3596_v55 = vmul.f32 %v15998_v41, %v2756_v40  ;;  %4039 = vadd.xlane.f32.xlu0 %v4038_v7  ;;  %v16152_v54 = vld [vmem:[#allocation117_spill] sm:$0xff]  ;;  %v16153_v7 = vld [vmem:[#allocation11_spill] sm:$0xff] }
 0x24e   : > { %v3155_v9 = vadd.f32 %v3123_v5, %v3087_v38  ;;  %v3956_v27 = vmax.f32 %v3924_v49, 0.0  ;;  %v3494_v62 = vadd.f32 %v3462_v4, %v3426_v21  ;;  %v3124_v48 = vmul.f32 %v15768_v13, %v10655_v46 }
 0x24f   : > { %v2694_v1 = vrot.slane %v2615_v17, 7  ;;  %v2790_v43 = vrot.slane %v2615_v17, 1  ;;  %v3993_v36 = vmul.f32 %v16075_v35, %v3957_v50  ;;  %v3088_v12 = vadd.f32 %v10589_v47, %v2888_v53  ;;  %4090 = vadd.xlane.f32.xlu1 %v10435_v10  ;;  %v16151_v47 = vld [vmem:[#allocation247_spill] sm:$0xff]  ;;  %v10693_v4 = vpop.permute.xlu0 %3350  ;;  %v3719_v21 = vpop.permute.xlu1 %3718 }
 0x250   : > { %v3228_v31 = vmul.f32 %v15806_v14, %v2756_v40  ;;  %v3832_v44 = vmul.f32 %v15884_v2, %v10655_v46  ;;  %v3819_v8 = vmul.f32 %v15884_v2, %v16150_v33  ;;  %v3597_v18 = vmul.f32 %v15998_v41, %v10667_v16  ;;  %v16154_v33 = vld [vmem:[#allocation118_spill] sm:$0xff] }
 0x251   : > { %v2725_v51 = vsel %vm1134_vm11, %v2693_v28, %v2694_v1  ;;  %v2821_v5 = vsel %vm1231_vm12, %v2789_v24, %v2790_v43  ;;  %v3846_v40 = vmul.f32 %v15884_v2, %v16151_v47  ;;  %v3796_v10 = vadd.f32 %v10609_v37, %v3596_v55  ;;  %4021 = vadd.xlane.f32.xlu0 %v4020_v59 }
 0x252   : > { %v2853_v49 = vmul.f32 %v2821_v5, %v16152_v54  ;;  %v3191_v50 = vadd.f32 %v15880_v61, %v3155_v9  ;;  %v3992_v38 = vmul.f32 %v16075_v35, %v3956_v27  ;;  %v4047_v28 = vsel %vm357_vm0, %v3993_v36, 0.0  ;;  %v16155_v5 = vld [vmem:[#allocation203_spill] sm:$0xff] }
 0x253   : > { %v3558_v53 = vadd.f32 %v10620_v42, %v3190_v15  ;;  %v3156_v24 = vadd.f32 %v3124_v48, %v3088_v12  ;;  %v3878_v17 = vadd.f32 %v3846_v40, %v16153_v7  ;;  %v2758_v47 = vmul.f32 %v2725_v51, %v16154_v33  ;;  %4048 = vadd.xlane.f32.xlu1 %v4047_v28  ;;  %v16156_v42 = vld [vmem:[#allocation201_spill] sm:$0xff]  ;;  %v16229_v54 = vld [vmem:[#allocation219_spill] sm:$0xff] }
 0x254   : > { %v3864_v37 = vadd.f32 %v3832_v44, %v3796_v10  ;;  %v3463_v55 = vmul.f32 %v15810_v23, %v10605_v52  ;;  %v3476_v20 = vmul.f32 %v15810_v23, %v16155_v5  ;;  %v3797_v9 = vadd.f32 %v3717_v45, %v3597_v18  ;;  %v2617_v52 = vpop.permute.xlu0 %2616  ;;  %v10717_v44 = vpop.permute.xlu1 %3012 }
 0x255   : > { %v3833_v27 = vmul.f32 %v15884_v2, %v2853_v49  ;;  %v10707_v36 = vadd.f32 %v3878_v17, %v10598_v58  ;;  %v10710_v15 = vadd.f32 %v3819_v8, %v16156_v42  ;;  %v10713_v48 = vadd.f32 %v10607_v57, %v3228_v31  ;;  %v16157_v31 = vld [vmem:[#allocation255_spill] sm:$0xff]  ;;  %4018 = vadd.xlane.f32.xlu0 %v10663_v11  ;;  %v16159_v17 = vld [vmem:[#allocation221_spill] sm:$0xff] }
 0x256   : > { %v2889_v12 = vmul.f32 %v15762_v60, %v10667_v16  ;;  %v3559_v51 = vadd.f32 %v3493_v26, %v3191_v50  ;;  %v10720_v45 = vsel %vm357_vm0, %v3992_v38, 0.0  ;;  %v2695_v59 = vrot.slane %v2617_v52, 7  ;;  %v16158_v38 = vld [vmem:[#allocation237_spill] sm:$0xff] }
 0x257   : > { %v2791_v18 = vrot.slane %v2617_v52, 1  ;;  %v3865_v58 = vadd.f32 %v3833_v27, %v3797_v9  ;;  %v3192_v40 = vadd.f32 %v15880_v61, %v3156_v24  ;;  %v3598_v8 = vmul.f32 %v15998_v41, %v2758_v47  ;;  %v16161_v52 = vld [vmem:[#allocation115_spill] sm:$0xff] }
 0x258   : > { %v3926_v10 = vadd.f32 %v3864_v37, %v3558_v53  ;;  %v10724_v57 = vadd.f32 %v3463_v55, %v3427_v32  ;;  %v3508_v28 = vadd.f32 %v3476_v20, %v16157_v31  ;;  %v2724_v7 = vsel %vm1134_vm11, %v2694_v1, %v2695_v59  ;;  %v16160_v20 = vld [vmem:[#allocation119_spill] sm:$0xff]  ;;  %v10739_v55 = vpop.permute.xlu0 %3352  ;;  %v3721_v1 = vpop.permute.xlu1 %3720 }
 0x259   : > { %v2820_v26 = vsel %vm1231_vm12, %v2790_v43, %v2791_v18  ;;  %v3927_v50 = vadd.f32 %v3865_v58, %v3559_v51  ;;  %v3170_v5 = vadd.f32 %v16159_v17, %v16158_v38  ;;  %v3229_v24 = vmul.f32 %v15806_v14, %v10667_v16 }
 0x25a   : > { %v3125_v32 = vmul.f32 %v15768_v13, %v2853_v49  ;;  %v2890_v53 = vmul.f32 %v15762_v60, %v2758_v47  ;;  %v2854_v37 = vmul.f32 %v2820_v26, %v16160_v20  ;;  %v3089_v43 = vadd.f32 %v10630_v34, %v2889_v12  ;;  %v16162_v26 = vld [vmem:[#allocation241_spill] sm:$0xff] }
 0x25b   : > { %v3959_v9 = vmax.f32 %v3927_v50, 0.0  ;;  %v3560_v11 = vadd.f32 %v3494_v62, %v3192_v40  ;;  %v3464_v27 = vmul.f32 %v15810_v23, %v10655_v46  ;;  %v10746_v16 = vmul.f32 %v2724_v7, %v16161_v52  ;;  %2051 = vadd.xlane.f32.xlu0 %v16162_v26  ;;  %v16217_v52 = vld [vmem:[#allocation34_spill] sm:$0xff] }
 0x25c   : > { %v3126_v42 = vmul.f32 %v15768_v13, %v2854_v37  ;;  %v3958_v51 = vmax.f32 %v3926_v10, 0.0  ;;  %v3206_v58 = vadd.f32 %v15880_v61, %v3170_v5  ;;  %v3798_v31 = vadd.f32 %v3719_v21, %v3598_v8  ;;  %v2619_v40 = vpop.permute.xlu0 %2618  ;;  %v3015_v7 = vpop.permute.xlu1 %3014 }
 0x25d   : > { %v3995_v38 = vmul.f32 %v16075_v35, %v3959_v9  ;;  %v3834_v34 = vmul.f32 %v15884_v2, %v2854_v37  ;;  %v3848_v62 = vmul.f32 %v15884_v2, %v10423_v63  ;;  %v3090_v46 = vadd.f32 %v10671_v19, %v2890_v53 }
 0x25e   : > { %v3230_v12 = vmul.f32 %v15806_v14, %v2758_v47  ;;  %v3465_v10 = vmul.f32 %v15810_v23, %v2853_v49  ;;  %v3157_v50 = vadd.f32 %v3125_v32, %v3089_v43  ;;  %v2696_v17 = vrot.slane %v2619_v40, 7  ;;  %v16163_v32 = vld [vmem:[#allocation204_spill] sm:$0xff] }
 0x25f   : > { %v2792_v21 = vrot.slane %v2619_v40, 1  ;;  %v4053_v8 = vsel %vm357_vm0, %v3995_v38, 0.0  ;;  %v3866_v5 = vadd.f32 %v3834_v34, %v3798_v31  ;;  %v3599_v9 = vmul.f32 %v15998_v41, %v10746_v16  ;;  %2054 = vadd.xlane.f32.xlu0 %v16163_v32  ;;  %v16164_v38 = vld [vmem:[#allocation233_spill] sm:$0xff] }
 0x260   : > { %4054 = vadd.xlane.f32.xlu1 %v4053_v8  ;;  %v3994_v63 = vmul.f32 %v16075_v35, %v3958_v51  ;;  %v3158_v26 = vadd.f32 %v3126_v42, %v3090_v46  ;;  %v3574_v19 = vadd.f32 %v3508_v28, %v3206_v58  ;;  %v2723_v47 = vsel %vm1134_vm11, %v2695_v59, %v2696_v17  ;;  %v10772_v51 = vpop.permute.xlu0 %3354  ;;  %v3723_v28 = vpop.permute.xlu1 %3722  ;;  %v16165_v58 = vld [vmem:[#allocation238_spill] sm:$0xff] }
 0x261   : > { %v2819_v49 = vsel %vm1231_vm12, %v2791_v18, %v2792_v21  ;;  %v3928_v53 = vadd.f32 %v3866_v5, %v3560_v11  ;;  %v3880_v43 = vadd.f32 %v3848_v62, %v10549_v25  ;;  %v2891_v31 = vmul.f32 %v15762_v60, %v10746_v16 }
 0x262   : > { %v10770_v34 = vmul.f32 %v2819_v49, %v16164_v38  ;;  %v3193_v42 = vadd.f32 %v15880_v61, %v3157_v50  ;;  %v3466_v59 = vmul.f32 %v15810_v23, %v2854_v37  ;;  %v3429_v18 = vadd.f32 %v10650_v22, %v3229_v24  ;;  %v16167_v37 = vld [vmem:[#allocation243_spill] sm:$0xff] }
 0x263   : > { %v2760_v46 = vmul.f32 %v2723_v47, %v16165_v58  ;;  %v10778_v11 = vadd.f32 %v3880_v43, %v3574_v19  ;;  %v10782_v25 = vadd.f32 %v10577_v30, %v10526_v56  ;;  %v3430_v62 = vadd.f32 %v10693_v4, %v3230_v12  ;;  %2057 = vadd.xlane.f32.xlu0 %v16167_v37  ;;  %v16174_v37 = vld [vmem:[#allocation186_spill] sm:$0xff]  ;;  %v16209_v58 = vld [vmem:[#allocation61_spill] sm:$0xff] }
 0x264   : > { %v3127_v40 = vmul.f32 %v15768_v13, %v10770_v34  ;;  %v3960_v8 = vmax.f32 %v3928_v53, 0.0  ;;  %v3194_v50 = vadd.f32 %v15880_v61, %v3158_v26  ;;  %v3799_v5 = vadd.f32 %v3721_v1, %v3599_v9  ;;  %v2621_v30 = vpop.permute.xlu0 %2620  ;;  %v10797_v32 = vpop.permute.xlu1 %3016 }
 0x265   : > { %16166 = vst [vmem:[#allocation240_spill] sm:$0xff] %v10778_v11  ;;  %v3497_v22 = vadd.f32 %v3465_v10, %v3429_v18  ;;  %v3835_v24 = vmul.f32 %v15884_v2, %v10770_v34  ;;  %v3496_v19 = vadd.f32 %v3464_v27, %v10713_v48  ;;  %v3091_v56 = vadd.f32 %v10717_v44, %v2891_v31  ;;  %v16168_v44 = vld [vmem:[#allocation138_spill] sm:$0xff]  ;;  %v16171_v18 = vld [vmem:[#allocation176_spill] sm:$0xff] }
 0x266   : > { %v4050_v4 = vsel %vm357_vm0, %v3994_v63, 0.0  ;;  %v3561_v12 = vadd.f32 %v10724_v57, %v3193_v42  ;;  %v3498_v47 = vadd.f32 %v3466_v59, %v3430_v62  ;;  %v2892_v49 = vmul.f32 %v15762_v60, %v2760_v46 }
 0x267   : > { %v2697_v26 = vrot.slane %v2621_v30, 7  ;;  %v2793_v1 = vrot.slane %v2621_v30, 1  ;;  %v3867_v9 = vadd.f32 %v3835_v24, %v3799_v5  ;;  %v3600_v10 = vmul.f32 %v15998_v41, %v2760_v46  ;;  %4045 = vadd.xlane.f32.xlu0 %v10720_v45 }
 0x268   : > { %v3159_v53 = vadd.f32 %v3127_v40, %v3091_v56  ;;  %v3996_v48 = vmul.f32 %v16075_v35, %v3960_v8  ;;  %v3562_v27 = vadd.f32 %v3496_v19, %v3194_v50  ;;  %v16169_v43 = vrot.slane %v16168_v44, 7  ;;  %v16172_v40 = vld [vmem:[#allocation200_spill] sm:$0xff]  ;;  %v16173_v50 = vld [vmem:[#allocation13_spill] sm:$0xff] }
 0x269   : > { %v2722_v57 = vsel %vm1134_vm11, %v2696_v17, %v2697_v26  ;;  %v16170_v31 = vrot.slane %v16168_v44, 1  ;;  %v2818_v59 = vsel %vm1231_vm12, %v2792_v21, %v2793_v1  ;;  %v3092_v17 = vadd.f32 %v3015_v7, %v2892_v49 }
 0x26a   : > { %v2721_v63 = vsel %vm1134_vm11, %v2697_v26, %v16169_v43  ;;  %v2856_v8 = vmul.f32 %v2818_v59, %v16172_v40  ;;  %v10819_v24 = vmul.f32 %v2722_v57, %v16174_v37  ;;  %v3232_v19 = vmul.f32 %v15806_v14, %v2760_v46 }
 0x26b   : > { %v2817_v42 = vsel %vm1231_vm12, %v2793_v1, %v16170_v31  ;;  %v2762_v62 = vmul.f32 %v2721_v63, %v16171_v18  ;;  %v3929_v56 = vadd.f32 %v3867_v9, %v3561_v12  ;;  %v3582_v30 = vmul.f32 %v15998_v41, %v10411_v3  ;;  %4051 = vadd.xlane.f32.xlu0 %v4050_v4  ;;  %v3725_v3 = vpop.permute.xlu1 %3724  ;;  %v16176_v31 = vld [vmem:[#allocation166_spill] sm:$0xff] }
 0x26c   : > { %v10816_v5 = vmul.f32 %v2817_v42, %v16173_v50  ;;  %v3128_v45 = vmul.f32 %v15768_v13, %v2856_v8  ;;  %v3195_v1 = vadd.f32 %v15880_v61, %v3159_v53  ;;  %v3800_v44 = vadd.f32 %v3723_v28, %v3600_v10  ;;  %v16175_v28 = vld [vmem:[#allocation149_spill] sm:$0xff] }
 0x26d   : > { %v2894_v21 = vmul.f32 %v15762_v60, %v2762_v62  ;;  %v3234_v26 = vmul.f32 %v15806_v14, %v2762_v62  ;;  %v3601_v43 = vmul.f32 %v15998_v41, %v10819_v24  ;;  %v3961_v7 = vmax.f32 %v3929_v56, 0.0  ;;  %v16177_v56 = vld [vmem:[#allocation168_spill] sm:$0xff] }
 0x26e   : > { %v4056_v46 = vsel %vm357_vm0, %v3996_v48, 0.0  ;;  %v3837_v12 = vmul.f32 %v15884_v2, %v10816_v5  ;;  %v3836_v49 = vmul.f32 %v15884_v2, %v2856_v8  ;;  %v3160_v9 = vadd.f32 %v3128_v45, %v3092_v17  ;;  %v16178_v17 = vld [vmem:[#allocation161_spill] sm:$0xff] }
 0x26f   : > { %v3602_v63 = vmul.f32 %v15998_v41, %v2762_v62  ;;  %v3801_v57 = vadd.f32 %v3725_v3, %v3601_v43  ;;  %v3997_v53 = vmul.f32 %v16075_v35, %v3961_v7  ;;  %v3434_v10 = vadd.f32 %v16175_v28, %v3234_v26  ;;  %4057 = vadd.xlane.f32.xlu0 %v4056_v46  ;;  %v16179_v41 = vld [vmem:[#allocation22_spill] sm:$0xff] }
 0x270   : > { %v3094_v42 = vadd.f32 %v16176_v31, %v2894_v21  ;;  %v3563_v4 = vadd.f32 %v3497_v22, %v3195_v1  ;;  %v3868_v59 = vadd.f32 %v3836_v49, %v3800_v44  ;;  %v3196_v48 = vadd.f32 %v15880_v61, %v3160_v9  ;;  %v16180_v21 = vld [vmem:[#allocation128_spill] sm:$0xff]  ;;  %v16181_v44 = vld [vmem:[#allocation205_spill] sm:$0xff]  ;;  %v16184_v28 = vld [vmem:[#allocation106_spill] sm:$0xff] }
 0x271   : > { %v3802_v18 = vadd.f32 %v16177_v56, %v3602_v63  ;;  %v3869_v40 = vadd.f32 %v3837_v12, %v3801_v57  ;;  %v4059_v37 = vsel %vm357_vm0, %v3997_v53, 0.0  ;;  %v3502_v45 = vadd.f32 %v16178_v17, %v3434_v10  ;;  %v16182_v63 = vld [vmem:[#allocation220_spill] sm:$0xff]  ;;  %v16183_v57 = vld [vmem:[#allocation35_spill] sm:$0xff] }
 0x272   : > { %v3162_v62 = vadd.f32 %v16179_v41, %v3094_v42  ;;  %v3432_v43 = vadd.f32 %v10772_v51, %v3232_v19  ;;  %4060 = vadd.xlane.f32.xlu1 %v4059_v37  ;;  %v3930_v26 = vadd.f32 %v3868_v59, %v3562_v27  ;;  %v3564_v7 = vadd.f32 %v3498_v47, %v3196_v48  ;;  %v16186_v51 = vld [vmem:[#allocation94_spill] sm:$0xff]  ;;  %v16189_v31 = vld [vmem:[#allocation143_spill] sm:$0xff]  ;;  %v16190_v42 = vld [vmem:[#allocation24_spill] sm:$0xff] }
 0x273   : > { %v3870_v22 = vadd.f32 %v16180_v21, %v3802_v18  ;;  %v3931_v1 = vadd.f32 %v3869_v40, %v3563_v4  ;;  %v3568_v3 = vadd.f32 %v3502_v45, %v16181_v44  ;;  %v3468_v12 = vmul.f32 %v15810_v23, %v2856_v8  ;;  %v16188_v18 = vld [vmem:[#allocation148_spill] sm:$0xff] }
 0x274   : > { %v3198_v49 = vadd.f32 %v15880_v61, %v3162_v62  ;;  %v3962_v9 = vmax.f32 %v3930_v26, 0.0  ;;  %v1426_v53 = vmul.f32 %v16183_v57, %v16182_v63  ;;  %v16185_v10 = vrot.slane %v16184_v28, 1  ;;  %v16191_v56 = vld [vmem:[#allocation192_spill] sm:$0xff]  ;;  %v16192_v62 = vld [vmem:[#allocation171_spill] sm:$0xff]  ;;  %v16219_v28 = vld [vmem:[#allocation190_spill] sm:$0xff] }
 0x275   : > { %v3932_v46 = vadd.f32 %v3870_v22, %v3564_v7  ;;  %v16187_v37 = vrot.slane %v16186_v51, 1  ;;  %v3963_v27 = vmax.f32 %v3931_v1, 0.0  ;;  %v3936_v40 = vadd.f32 %v16188_v18, %v3568_v3  ;;  %v16193_v1 = vld [vmem:[#allocation234_spill] sm:$0xff]  ;;  %v16194_v3 = vld [vmem:[#allocation253_spill] sm:$0xff] }
 0x276   : > { %v3500_v19 = vadd.f32 %v3468_v12, %v3432_v43  ;;  %v1324_v4 = vmul.f32 %v16190_v42, %v16189_v31  ;;  %v3998_v8 = vmul.f32 %v16075_v35, %v3962_v9  ;;  %v3208_v48 = vadd.f32 %v15880_v61, %v10782_v25  ;;  %v16196_v9 = vld [vmem:[#allocation29_spill] sm:$0xff] }
 0x277   : > { %v1236_v47 = vsel %vm1231_vm12, %v16187_v37, %v16185_v10  ;;  %v3964_v59 = vmax.f32 %v3932_v46, 0.0  ;;  %v3818_v17 = vmul.f32 %v15884_v2, %v16191_v56  ;;  %v3999_v45 = vmul.f32 %v16075_v35, %v3963_v27  ;;  %v16195_v2 = vld [vmem:[#allocation76_spill] sm:$0xff]  ;;  %v16198_v27 = vld [vmem:[#allocation249_spill] sm:$0xff]  ;;  %v16203_v56 = vld [vmem:[#allocation135_spill] sm:$0xff] }
 0x278   : > { %v3566_v41 = vadd.f32 %v3500_v19, %v3198_v49  ;;  %v3782_v26 = vadd.f32 %v16192_v62, %v3582_v30  ;;  %v3913_v7 = vmul.f32 0.0, %v10710_v15  ;;  %v4062_v43 = vsel %vm357_vm0, %v3998_v8, 0.0  ;;  %v16197_v15 = vld [vmem:[#allocation160_spill] sm:$0xff]  ;;  %v16201_v19 = vld [vmem:[#allocation75_spill] sm:$0xff] }
 0x279   : > { %v4000_v21 = vmul.f32 %v16075_v35, %v3964_v59  ;;  %v3968_v22 = vmax.f32 %v3936_v40, 0.0  ;;  %v3576_v44 = vadd.f32 %v16193_v1, %v3208_v48  ;;  %4063 = vadd.xlane.f32.xlu0 %v4062_v43  ;;  %v4065_v25 = vsel %vm357_vm0, %v3999_v45, 0.0  ;;  %v16200_v40 = vld [vmem:[#allocation209_spill] sm:$0xff]  ;;  %v16202_v59 = vld [vmem:[#allocation122_spill] sm:$0xff] }
 0x27a   : > { %v3934_v12 = vadd.f32 %v16194_v3, %v3566_v41  ;;  %v1360_v46 = vmul.f32 %v16196_v9, %v16195_v2  ;;  %v3850_v49 = vadd.f32 %v3818_v17, %v3782_v26  ;;  %4066 = vadd.xlane.f32.xlu1 %v4065_v25  ;;  %v1326_v10 = vmul.f32 %v16190_v42, %v16197_v15  ;;  %v16204_v26 = vld [vmem:[#allocation175_spill] sm:$0xff]  ;;  %v16206_v25 = vld [vmem:[#allocation45_spill] sm:$0xff] }
 0x27b   : > { %v4068_v30 = vsel %vm357_vm0, %v4000_v21, 0.0  ;;  %v1362_v37 = vmul.f32 %v16196_v9, %v16186_v51  ;;  %v10880_v18 = vadd.f32 %v3913_v7, %v16198_v27  ;;  %v1528_v8 = vmul.f32 %v16201_v19, %v16200_v40  ;;  %v16205_v21 = vld [vmem:[#allocation70_spill] sm:$0xff]  ;;  %v16207_v7 = vld [vmem:[#allocation23_spill] sm:$0xff] }
 0x27c   : > { %v3912_v17 = vmul.f32 0.0, %v3850_v49  ;;  %v4004_v41 = vmul.f32 %v16075_v35, %v3968_v22  ;;  %v3966_v62 = vmax.f32 %v3934_v12, 0.0  ;;  %v1458_v43 = vadd.f32 %v1426_v53, %v16204_v26  ;;  %v16208_v27 = vld [vmem:[#allocation139_spill] sm:$0xff]  ;;  %v16211_v22 = vld [vmem:[#allocation224_spill] sm:$0xff] }
 0x27d   : > { %16199 = vst [vmem:[#allocation208_spill] sm:$0xff] %v10880_v18  ;;  %v10889_v1 = vmul.f32 %v1236_v47, %v16205_v21  ;;  %4069 = vadd.xlane.f32.xlu0 %v4068_v30  ;;  %v1564_v3 = vmul.f32 %v16207_v7, %v16206_v25  ;;  %v1530_v40 = vmul.f32 %v16201_v19, %v16208_v27  ;;  %v16212_v26 = vrot.slane %v16203_v56, 1 }
 0x27e   : > { %v1566_v48 = vmul.f32 %v16207_v7, %v16209_v58  ;;  %v10897_v45 = vadd.f32 %v3912_v17, %v3576_v44  ;;  %v1392_v49 = vadd.f32 %v1360_v46, %v1324_v4  ;;  %v1428_v12 = vmul.f32 %v16183_v57, %v16211_v22  ;;  %v16215_v17 = vld [vmem:[#allocation92_spill] sm:$0xff] }
 0x27f   : > { %v1394_v53 = vadd.f32 %v1362_v37, %v1326_v10  ;;  %v1430_v47 = vmul.f32 %v16183_v57, %v10889_v1  ;;  %v1596_v30 = vadd.f32 %v1564_v3, %v1528_v8  ;;  %v16213_v21 = vrot.slane %v16202_v59, 1  ;;  %v16214_v37 = vld [vmem:[#allocation214_spill] sm:$0xff]  ;;  %v16216_v3 = vld [vmem:[#allocation17_spill] sm:$0xff] }
 0x280   : > { %16210 = vst [vmem:[#allocation28_spill] sm:$0xff] %v10897_v45  ;;  %v1532_v44 = vmul.f32 %v16201_v19, %v16189_v31  ;;  %v1568_v4 = vmul.f32 %v16207_v7, %v16195_v2  ;;  %v4080_v46 = vsel %vm357_vm0, %v4004_v41, 0.0  ;;  %v4002_v10 = vmul.f32 %v16075_v35, %v3966_v62 }
 0x281   : > { %v1234_v27 = vsel %vm1231_vm12, %v16213_v21, %v16212_v26  ;;  %v1632_v8 = vmul.f32 %v16215_v17, %v16214_v37  ;;  %v1768_v20 = vmul.f32 %v16216_v3, %v16189_v31  ;;  %4081 = vadd.xlane.f32.xlu0 %v4080_v46  ;;  %v1804_v21 = vmul.f32 %v16217_v52, %v16195_v2 }
 0x282   : > { %v1598_v26 = vadd.f32 %v1566_v48, %v1530_v40  ;;  %v1634_v33 = vmul.f32 %v16215_v17, %v16182_v63  ;;  %v1770_v29 = vmul.f32 %v16216_v3, %v16197_v15  ;;  %v1460_v41 = vadd.f32 %v1428_v12, %v1392_v49  ;;  %v16220_v49 = vld [vmem:[#allocation9_spill] sm:$0xff] }
 0x283   : > { %v1806_v62 = vmul.f32 %v16217_v52, %v16186_v51  ;;  %v10928_v37 = vmul.f32 %v1234_v27, %v16218_v39  ;;  %v1462_v56 = vadd.f32 %v1430_v47, %v1394_v53  ;;  %v1600_v31 = vadd.f32 %v1568_v4, %v1532_v44  ;;  %v16221_v44 = vld [vmem:[#allocation21_spill] sm:$0xff] }
 0x284   : > { %v1636_v46 = vmul.f32 %v16215_v17, %v16211_v22  ;;  %v1772_v48 = vmul.f32 %v16216_v3, %v16219_v28  ;;  %v1808_v63 = vmul.f32 %v16217_v52, %v16202_v59  ;;  %v4074_v40 = vsel %vm357_vm0, %v4002_v10, 0.0 }
 0x285   : > { %v1494_v12 = vadd.f32 %v16220_v49, %v1458_v43  ;;  %v1328_v2 = vmul.f32 %v16190_v42, %v16219_v28  ;;  %v1364_v53 = vmul.f32 %v16196_v9, %v16202_v59  ;;  %4075 = vadd.xlane.f32.xlu0 %v4074_v40  ;;  %v1664_v47 = vadd.f32 %v1632_v8, %v1596_v30  ;;  %v16223_v8 = vld [vmem:[#allocation245_spill] sm:$0xff] }
 0x286   : > { %v1836_v27 = vadd.f32 %v1804_v21, %v1768_v20  ;;  %v1872_v4 = vmul.f32 %v16221_v44, %v16211_v22  ;;  %v1666_v39 = vadd.f32 %v1634_v33, %v1598_v26  ;;  %v2893_v58 = vmul.f32 %v15762_v60, %v10819_v24  ;;  %v16222_v22 = vld [vmem:[#allocation188_spill] sm:$0xff]  ;;  %v16224_v21 = vld [vmem:[#allocation18_spill] sm:$0xff]  ;;  %v16225_v26 = vld [vmem:[#allocation163_spill] sm:$0xff] }
 0x287   : > { %v1496_v10 = vadd.f32 %v16220_v49, %v1460_v41  ;;  %v1838_v45 = vadd.f32 %v1806_v62, %v1770_v29  ;;  %v1874_v43 = vmul.f32 %v16221_v44, %v10889_v1  ;;  %v1498_v18 = vadd.f32 %v16220_v49, %v1462_v56  ;;  %v16226_v41 = vld [vmem:[#allocation172_spill] sm:$0xff] }
 0x288   : > { %v1668_v11 = vadd.f32 %v1636_v46, %v1600_v31  ;;  %v1840_v50 = vadd.f32 %v1808_v63, %v1772_v48  ;;  %v1876_v20 = vmul.f32 %v16221_v44, %v10928_v37  ;;  %v1396_v30 = vadd.f32 %v1364_v53, %v1328_v2  ;;  %v16227_v31 = vld [vmem:[#allocation183_spill] sm:$0xff]  ;;  %v16228_v46 = vld [vmem:[#allocation146_spill] sm:$0xff] }
 0x289   : > { %v1432_v33 = vmul.f32 %v16183_v57, %v10928_v37  ;;  %v1534_v60 = vmul.f32 %v16201_v19, %v16197_v15  ;;  %v1570_v29 = vmul.f32 %v16207_v7, %v16186_v51  ;;  %2060 = vadd.xlane.f32.xlu0 %v16222_v22  ;;  %v1728_v56 = vadd.f32 %v16224_v21, %v16223_v8 }
 0x28a   : > { %v1902_v62 = vadd.f32 %v16226_v41, %v16225_v26  ;;  %v1330_v2 = vmul.f32 %v16190_v42, %v16227_v31  ;;  %v1366_v48 = vmul.f32 %v16196_v9, %v16228_v46  ;;  %v3093_v63 = vadd.f32 %v10797_v32, %v2893_v58  ;;  %v16230_v32 = vld [vmem:[#allocation191_spill] sm:$0xff] }
 0x28b   : > { %v1730_v15 = vadd.f32 %v1664_v47, %v1494_v12  ;;  %v1904_v40 = vadd.f32 %v1872_v4, %v1836_v27  ;;  %v1732_v53 = vadd.f32 %v1666_v39, %v1496_v10  ;;  %v1906_v51 = vadd.f32 %v1874_v43, %v1838_v45 }
 0x28c   : > { %v1734_v25 = vadd.f32 %v1668_v11, %v1498_v18  ;;  %v1908_v22 = vadd.f32 %v1876_v20, %v1840_v50  ;;  %v1638_v8 = vmul.f32 %v16215_v17, %v10889_v1  ;;  %v3129_v21 = vmul.f32 %v15768_v13, %v10816_v5  ;;  %v16231_v1 = vld [vmem:[#allocation181_spill] sm:$0xff]  ;;  %v16232_v20 = vld [vmem:[#allocation44_spill] sm:$0xff] }
 0x28d   : > { %v1464_v26 = vadd.f32 %v1432_v33, %v1396_v30  ;;  %v1602_v41 = vadd.f32 %v1570_v29, %v1534_v60  ;;  %v1774_v38 = vmul.f32 %v16216_v3, %v16227_v31  ;;  %2063 = vadd.xlane.f32.xlu0 %v16229_v54  ;;  %v1810_v58 = vmul.f32 %v16217_v52, %v16228_v46  ;;  %v16233_v30 = vld [vmem:[#allocation151_spill] sm:$0xff]  ;;  %v16234_v31 = vld [vmem:[#allocation174_spill] sm:$0xff] }
 0x28e   : > { %v1398_v39 = vadd.f32 %v1366_v48, %v1330_v2  ;;  %v1434_v11 = vmul.f32 %v16183_v57, %v16230_v32  ;;  %v1536_v50 = vmul.f32 %v16201_v19, %v16219_v28  ;;  %v3231_v13 = vmul.f32 %v15806_v14, %v10746_v16  ;;  %v16235_v48 = vld [vmem:[#allocation154_spill] sm:$0xff] }
 0x28f   : > { %v3161_v18 = vadd.f32 %v3129_v21, %v3093_v63  ;;  %v1572_v45 = vmul.f32 %v16207_v7, %v16202_v59  ;;  %v1744_v54 = vmul.f32 %v16216_v3, %v16231_v1  ;;  %v1964_v12 = vadd.f32 %v1902_v62, %v1728_v56 }
 0x290   : > { %v1966_v47 = vadd.f32 %v1904_v40, %v1730_v15  ;;  %v1968_v27 = vadd.f32 %v1906_v51, %v1732_v53  ;;  %v1970_v4 = vadd.f32 %v1908_v22, %v1734_v25  ;;  %v3467_v10 = vmul.f32 %v15810_v23, %v10770_v34  ;;  %v16236_v15 = vld [vmem:[#allocation218_spill] sm:$0xff] }
 0x291   : > { %v1500_v43 = vadd.f32 %v16220_v49, %v1464_v26  ;;  %v1670_v28 = vadd.f32 %v1638_v8, %v1602_v41  ;;  %v1780_v16 = vmul.f32 %v16217_v52, %v16232_v20  ;;  %2066 = vadd.xlane.f32.xlu0 %v16233_v30  ;;  %v1842_v33 = vadd.f32 %v1810_v58, %v1774_v38  ;;  %v16237_v38 = vld [vmem:[#allocation242_spill] sm:$0xff]  ;;  %v16239_v41 = vld [vmem:[#allocation229_spill] sm:$0xff] }
 0x292   : > { %v1878_v60 = vmul.f32 %v16221_v44, %v16230_v32  ;;  %v1466_v29 = vadd.f32 %v1434_v11, %v1398_v39  ;;  %v1640_v51 = vmul.f32 %v16215_v17, %v10928_v37  ;;  %v3431_v25 = vadd.f32 %v10739_v55, %v3231_v13  ;;  %v16238_v26 = vld [vmem:[#allocation130_spill] sm:$0xff] }
 0x293   : > { %v3197_v34 = vadd.f32 %v15880_v61, %v3161_v18  ;;  %v1604_v56 = vadd.f32 %v1572_v45, %v1536_v50  ;;  %v1812_v62 = vadd.f32 %v1780_v16, %v1744_v54  ;;  %v1988_v2 = vmax.f32 %v16234_v31, 0.0  ;;  %v16240_v45 = vld [vmem:[#allocation198_spill] sm:$0xff]  ;;  %v16242_v54 = vld [vmem:[#allocation93_spill] sm:$0xff] }
 0x294   : > { %v1990_v63 = vmax.f32 %v16235_v48, 0.0  ;;  %v1992_v40 = vmax.f32 %v16236_v15, 0.0  ;;  %v1994_v53 = vmax.f32 %v16237_v38, 0.0  ;;  %v3499_v22 = vadd.f32 %v3467_v10, %v3431_v25  ;;  %v16244_v30 = vld [vmem:[#allocation150_spill] sm:$0xff]  ;;  %v16247_v38 = vld [vmem:[#allocation185_spill] sm:$0xff] }
 0x295   : > { %v1996_v8 = vmax.f32 %v1964_v12, 0.0  ;;  %v1998_v21 = vmax.f32 %v1966_v47, 0.0  ;;  %v1848_v37 = vmul.f32 %v16221_v44, %v16238_v26  ;;  %2069 = vadd.xlane.f32.xlu0 %v16239_v41  ;;  %v2000_v55 = vmax.f32 %v1968_v27, 0.0  ;;  %v16243_v47 = vld [vmem:[#allocation155_spill] sm:$0xff] }
 0x296   : > { %v2002_v58 = vmax.f32 %v1970_v4, 0.0  ;;  %v1736_v39 = vadd.f32 %v1670_v28, %v1500_v43  ;;  %v1910_v32 = vadd.f32 %v1878_v60, %v1842_v33  ;;  %v3565_v11 = vadd.f32 %v3499_v22, %v3197_v34  ;;  %v16245_v4 = vld [vmem:[#allocation250_spill] sm:$0xff] }
 0x297   : > { %v1502_v50 = vadd.f32 %v16220_v49, %v1466_v29  ;;  %v1672_v13 = vadd.f32 %v1640_v51, %v1604_v56  ;;  %v1880_v18 = vadd.f32 %v1848_v37, %v1812_v62  ;;  %v16241_v1 = vmax.f32 %v16240_v45, 0.0  ;;  %v16246_v56 = vld [vmem:[#allocation212_spill] sm:$0xff] }
 0x298   : > { %v2024_v12 = vmul.f32 %v16242_v54, %v1988_v2  ;;  %v1311_v16 = vmul.f32 %v16190_v42, %v16243_v47  ;;  %v1347_v27 = vmul.f32 %v16196_v9, %v16244_v30  ;;  %v2071_v43 = vsel %vm357_vm0, %v16245_v4, 0.0  ;;  %v11031_v22 = vpop.xlane.xlu0 %2048 }
 0x299   : > { %v2022_v10 = vmul.f32 %v16242_v54, %v16241_v1  ;;  %v2026_v28 = vmul.f32 %v16242_v54, %v1990_v63  ;;  %v2028_v33 = vmul.f32 %v16242_v54, %v1992_v40  ;;  %v2030_v60 = vmul.f32 %v16242_v54, %v1994_v53  ;;  %2072 = vadd.xlane.f32.xlu0 %v2071_v43  ;;  %v16254_v43 = vld [vmem:[#allocation124_spill] sm:$0xff] }
 0x29a   : > { %v2032_v29 = vmul.f32 %v16242_v54, %v1996_v8  ;;  %v2034_v51 = vmul.f32 %v16242_v54, %v1998_v21  ;;  %v2036_v25 = vmul.f32 %v16242_v54, %v2000_v55  ;;  %v2038_v34 = vmul.f32 %v16242_v54, %v2002_v58  ;;  %v16248_v8 = vld [vmem:[#allocation187_spill] sm:$0xff] }
 0x29b   : > { %v3933_v62 = vadd.f32 %v16246_v56, %v3565_v11  ;;  %v11025_v31 = vadd.f32 %v1910_v32, %v1736_v39  ;;  %v1738_v2 = vadd.f32 %v1672_v13, %v1502_v50  ;;  %v1942_v48 = vmul.f32 0.0, %v1880_v18  ;;  %v16249_v32 = vld [vmem:[#allocation189_spill] sm:$0xff] }
 0x29c   : > { %v2074_v63 = vsel %vm357_vm0, %v2022_v10, 0.0  ;;  %v2080_v15 = vsel %vm357_vm0, %v2024_v12, 0.0  ;;  %v1379_v40 = vadd.f32 %v1347_v27, %v1311_v16  ;;  %v1415_v53 = vmul.f32 %v16183_v57, %v16247_v38  ;;  %v16253_v27 = vld [vmem:[#allocation193_spill] sm:$0xff] }
 0x29d   : > { %v3199_v21 = vadd.f32 %v15880_v61, %v16248_v8  ;;  %v2086_v26 = vsel %vm357_vm0, %v2026_v28, 0.0  ;;  %v2092_v37 = vsel %vm357_vm0, %v2028_v33, 0.0  ;;  %v11038_v41 = vsel %vm357_vm0, %v2030_v60, 0.0  ;;  %2075 = vadd.xlane.f32.xlu0 %v2074_v63  ;;  %v16251_v61 = vld [vmem:[#allocation180_spill] sm:$0xff]  ;;  %v3357_v33 = vpop.permute.xlu0 %3356 }
 0x29e   : > { %v11041_v55 = vsel %vm357_vm0, %v2032_v29, 0.0  ;;  %v11044_v58 = vsel %vm357_vm0, %v2034_v51, 0.0  ;;  %v11047_v39 = vsel %vm357_vm0, %v2036_v25, 0.0  ;;  %v16250_v11 = vrot.slane %v16249_v32, 1  ;;  %v16255_v29 = vld [vmem:[#allocation210_spill] sm:$0xff]  ;;  %v16257_v25 = vld [vmem:[#allocation137_spill] sm:$0xff] }
 0x29f   : > { %v16252_v50 = vrot.slane %v16251_v61, 1  ;;  %v3965_v18 = vmax.f32 %v3933_v62, 0.0  ;;  %v11056_v45 = vsel %vm357_vm0, %v2038_v34, 0.0  ;;  %v11059_v10 = vadd.f32 %v1942_v48, %v1738_v2  ;;  %v16259_v62 = vld [vmem:[#allocation162_spill] sm:$0xff] }
 0x2a0   : > { %v3233_v12 = vmul.f32 %v15806_v14, %v10819_v24  ;;  %v1447_v16 = vadd.f32 %v1415_v53, %v1379_v40  ;;  %v1517_v4 = vmul.f32 %v16201_v19, %v16253_v27  ;;  %v1553_v28 = vmul.f32 %v16207_v7, %v16254_v43  ;;  %v16260_v40 = vld [vmem:[#allocation248_spill] sm:$0xff] }
 0x2a1   : > { %v1249_v13 = vsel %vm1231_vm12, %v16252_v50, %v16250_v11  ;;  %v16256_v51 = vrot.slane %v16255_v29, 1  ;;  %v16258_v34 = vrot.slane %v16257_v25, 1  ;;  %v1313_v14 = vmul.f32 %v16190_v42, %v16259_v62  ;;  %2081 = vadd.xlane.f32.xlu0 %v2080_v15  ;;  %v16261_v11 = vld [vmem:[#allocation236_spill] sm:$0xff] }
 0x2a2   : > { %v1277_v60 = vmul.f32 %v1249_v13, %v16145_v0  ;;  %v1349_v24 = vmul.f32 %v16196_v9, %v16251_v61  ;;  %v3469_v2 = vmul.f32 %v15810_v23, %v10816_v5  ;;  %v3433_v48 = vadd.f32 %v3357_v33, %v3233_v12  ;;  %v16262_v13 = vld [vmem:[#allocation227_spill] sm:$0xff]  ;;  %v16263_v5 = vld [vmem:[#allocation117_spill] sm:$0xff] }
 0x2a3   : > { %v1247_v56 = vsel %vm1231_vm12, %v16258_v34, %v16256_v51  ;;  %v3972_v63 = vmax.f32 %v10707_v36, 0.0  ;;  %v1621_v53 = vmul.f32 %v16215_v17, %v16260_v40  ;;  %v4001_v8 = vmul.f32 %v16075_v35, %v3965_v18 }
 0x2a4   : > { %v3973_v50 = vmax.f32 %v16261_v11, 0.0  ;;  %v1315_v27 = vmul.f32 %v16190_v42, %v16262_v13  ;;  %v1351_v51 = vmul.f32 %v16196_v9, %v16257_v25  ;;  %v3501_v15 = vadd.f32 %v3469_v2, %v3433_v48  ;;  %v16268_v48 = vld [vmem:[#allocation26_spill] sm:$0xff] }
 0x2a5   : > { %v1483_v34 = vadd.f32 %v16220_v49, %v1447_v16  ;;  %v1585_v23 = vadd.f32 %v1553_v28, %v1517_v4  ;;  %v1279_v12 = vmul.f32 %v1247_v56, %v16263_v5  ;;  %v1381_v36 = vadd.f32 %v1349_v24, %v1313_v14  ;;  %2087 = vadd.xlane.f32.xlu0 %v2086_v26  ;;  %v16264_v4 = vld [vmem:[#allocation145_spill] sm:$0xff]  ;;  %v16266_v56 = vld [vmem:[#allocation103_spill] sm:$0xff] }
 0x2a6   : > { %v1417_v33 = vmul.f32 %v16183_v57, %v1277_v60  ;;  %v1519_v18 = vmul.f32 %v16201_v19, %v16243_v47  ;;  %v1555_v40 = vmul.f32 %v16207_v7, %v16244_v30  ;;  %v3567_v11 = vadd.f32 %v3501_v15, %v3199_v21 }
 0x2a7   : > { %v1757_v1 = vmul.f32 %v16216_v3, %v16259_v62  ;;  %v1793_v16 = vmul.f32 %v16217_v52, %v16251_v61  ;;  %v16265_v28 = vrot.slane %v16264_v4, 1  ;;  %v16267_v14 = vrot.slane %v16266_v56, 1 }
 0x2a8   : > { %v1383_v2 = vadd.f32 %v1351_v51, %v1315_v27  ;;  %v1419_v47 = vmul.f32 %v16183_v57, %v1279_v12  ;;  %v1521_v21 = vmul.f32 %v16201_v19, %v16259_v62  ;;  %v1557_v26 = vmul.f32 %v16207_v7, %v16251_v61  ;;  %v16269_v51 = vld [vmem:[#allocation233_spill] sm:$0xff] }
 0x2a9   : > { %v1245_v24 = vsel %vm1231_vm12, %v16267_v14, %v16265_v28  ;;  %v3935_v15 = vadd.f32 %v16268_v48, %v3567_v11  ;;  %v1653_v5 = vadd.f32 %v1621_v53, %v1585_v23  ;;  %v1623_v0 = vmul.f32 %v16215_v17, %v16247_v38  ;;  %2093 = vadd.xlane.f32.xlu0 %v2092_v37  ;;  %v16270_v11 = vld [vmem:[#allocation232_spill] sm:$0xff] }
 0x2aa   : > { %v1759_v4 = vmul.f32 %v16216_v3, %v16262_v13  ;;  %v1449_v29 = vadd.f32 %v1417_v33, %v1381_v36  ;;  %v1587_v28 = vadd.f32 %v1555_v40, %v1519_v18  ;;  %v1795_v27 = vmul.f32 %v16217_v52, %v16257_v25 }
 0x2ab   : > { %v11119_v14 = vmul.f32 %v1245_v24, %v16269_v51  ;;  %v3967_v62 = vmax.f32 %v3935_v15, 0.0  ;;  %v1625_v32 = vmul.f32 %v16215_v17, %v1277_v60  ;;  %v1317_v53 = vmul.f32 %v16190_v42, %v16270_v11 }
 0x2ac   : > { %v1353_v38 = vmul.f32 %v16196_v9, %v16266_v56  ;;  %v1451_v23 = vadd.f32 %v1419_v47, %v1383_v2  ;;  %v1589_v48 = vadd.f32 %v1557_v26, %v1521_v21  ;;  %v1761_v36 = vmul.f32 %v16216_v3, %v16270_v11 }
 0x2ad   : > { %v1797_v33 = vmul.f32 %v16217_v52, %v16266_v56  ;;  %v4003_v18 = vmul.f32 %v16075_v35, %v3967_v62  ;;  %v1825_v37 = vadd.f32 %v1793_v16, %v1757_v1  ;;  %v1861_v40 = vmul.f32 %v16221_v44, %v1277_v60  ;;  %2099 = vadd.xlane.f32.xlu0 %v11038_v41 }
 0x2ae   : > { %v1863_v24 = vmul.f32 %v16221_v44, %v1279_v12  ;;  %v1485_v15 = vadd.f32 %v16220_v49, %v1449_v29  ;;  %v1655_v51 = vadd.f32 %v1623_v0, %v1587_v28  ;;  %v1827_v61 = vadd.f32 %v1795_v27, %v1759_v4 }
 0x2af   : > { %v1421_v2 = vmul.f32 %v16183_v57, %v11119_v14  ;;  %v4077_v47 = vsel %vm357_vm0, %v4003_v18, 0.0  ;;  %v1385_v21 = vadd.f32 %v1353_v38, %v1317_v53  ;;  %v1523_v26 = vmul.f32 %v16201_v19, %v16262_v13  ;;  %v16271_v53 = vld [vmem:[#allocation45_spill] sm:$0xff]  ;;  %v16273_v18 = vld [vmem:[#allocation239_spill] sm:$0xff] }
 0x2b0   : > { %v1559_v1 = vmul.f32 %v16207_v7, %v16257_v25  ;;  %4078 = vadd.xlane.f32.xlu1 %v4077_v47  ;;  %v1487_v60 = vadd.f32 %v16220_v49, %v1451_v23  ;;  %v1657_v29 = vadd.f32 %v1625_v32, %v1589_v48  ;;  %v1829_v0 = vadd.f32 %v1797_v33, %v1761_v36 }
 0x2b1   : > { %v1865_v16 = vmul.f32 %v16221_v44, %v11119_v14  ;;  %v4071_v4 = vsel %vm357_vm0, %v4001_v8, 0.0  ;;  %v4008_v41 = vmul.f32 %v16075_v35, %v3972_v63  ;;  %v4009_v28 = vmul.f32 %v16075_v35, %v3973_v50  ;;  %2105 = vadd.xlane.f32.xlu0 %v11041_v55  ;;  %v16275_v63 = vld [vmem:[#allocation131_spill] sm:$0xff] }
 0x2b2   : > { %v2006_v27 = vmax.f32 %v11059_v10, 0.0  ;;  %v1719_v13 = vadd.f32 %v1653_v5, %v1483_v34  ;;  %v1893_v62 = vadd.f32 %v1861_v40, %v1825_v37  ;;  %v16272_v38 = vrot.slane %v16271_v53, 1 }
 0x2b3   : > { %v16274_v47 = vrot.slane %v16273_v18, 1  ;;  %v1627_v23 = vmul.f32 %v16215_v17, %v1279_v12  ;;  %v1453_v8 = vadd.f32 %v1421_v2, %v1385_v21  ;;  %v1591_v48 = vadd.f32 %v1559_v1, %v1523_v26  ;;  %v16277_v12 = vld [vmem:[#allocation13_spill] sm:$0xff]  ;;  %v16278_v26 = vld [vmem:[#allocation240_spill] sm:$0xff] }
 0x2b4   : > { %v1763_v50 = vmul.f32 %v16216_v3, %v16275_v63  ;;  %v1799_v10 = vmul.f32 %v16217_v52, %v16273_v18  ;;  %4072 = vadd.xlane.f32.xlu1 %v4071_v4  ;;  %v1721_v34 = vadd.f32 %v1655_v51, %v1485_v15  ;;  %v1895_v5 = vadd.f32 %v1863_v24, %v1827_v61  ;;  %v16279_v61 = vld [vmem:[#allocation170_spill] sm:$0xff]  ;;  %v16280_v15 = vld [vmem:[#allocation208_spill] sm:$0xff] }
 0x2b5   : > { %v1243_v32 = vsel %vm1231_vm12, %v16274_v47, %v16272_v38  ;;  %v1723_v36 = vadd.f32 %v1657_v29, %v1487_v60  ;;  %v1897_v33 = vadd.f32 %v1865_v16, %v1829_v0  ;;  %v16276_v37 = vmax.f32 %v11025_v31, 0.0  ;;  %2111 = vadd.xlane.f32.xlu0 %v11044_v58 }
 0x2b6   : > { %v11165_v38 = vmul.f32 %v1243_v32, %v16277_v12  ;;  %v1319_v55 = vmul.f32 %v16190_v42, %v16275_v63  ;;  %v1355_v2 = vmul.f32 %v16196_v9, %v16273_v18  ;;  %v4092_v21 = vsel %vm357_vm0, %v4008_v41, 0.0 }
 0x2b7   : > { %v2040_v40 = vmul.f32 %v16242_v54, %v16276_v37  ;;  %v3974_v51 = vmax.f32 %v16278_v26, 0.0  ;;  %v3975_v24 = vmax.f32 %v16279_v61, 0.0  ;;  %v3977_v1 = vmax.f32 %v16280_v15, 0.0 }
 0x2b8   : > { %v1955_v31 = vadd.f32 %v1893_v62, %v1719_v13  ;;  %v1489_v60 = vadd.f32 %v16220_v49, %v1453_v8  ;;  %v1659_v29 = vadd.f32 %v1627_v23, %v1591_v48  ;;  %v1831_v0 = vadd.f32 %v1799_v10, %v1763_v50  ;;  %4093 = vadd.xlane.f32.xlu1 %v4092_v21  ;;  %v16281_v23 = vld [vmem:[#allocation28_spill] sm:$0xff] }
 0x2b9   : > { %v4095_v16 = vsel %vm357_vm0, %v4009_v28, 0.0  ;;  %v2042_v4 = vmul.f32 %v16242_v54, %v2006_v27  ;;  %v1957_v47 = vadd.f32 %v1895_v5, %v1721_v34  ;;  %v1959_v41 = vadd.f32 %v1897_v33, %v1723_v36  ;;  %2117 = vadd.xlane.f32.xlu0 %v11047_v39  ;;  %v16282_v36 = vld [vmem:[#allocation61_spill] sm:$0xff] }
 0x2ba   : > { %v1867_v32 = vmul.f32 %v16221_v44, %v11165_v38  ;;  %v1387_v37 = vadd.f32 %v1355_v2, %v1319_v55  ;;  %v1525_v26 = vmul.f32 %v16201_v19, %v16270_v11  ;;  %v1561_v58 = vmul.f32 %v16207_v7, %v16266_v56  ;;  %v16284_v55 = vld [vmem:[#allocation52_spill] sm:$0xff] }
 0x2bb   : > { %v4010_v13 = vmul.f32 %v16075_v35, %v3974_v51  ;;  %v4011_v62 = vmul.f32 %v16075_v35, %v3975_v24  ;;  %v3976_v28 = vmax.f32 %v16281_v23, 0.0  ;;  %v4013_v27 = vmul.f32 %v16075_v35, %v3977_v1 }
 0x2bc   : > { %v1987_v8 = vmax.f32 %v1955_v31, 0.0  ;;  %v1725_v48 = vadd.f32 %v1659_v29, %v1489_v60  ;;  %v1899_v50 = vadd.f32 %v1867_v32, %v1831_v0  ;;  %v1423_v10 = vmul.f32 %v16183_v57, %v11165_v38  ;;  %4096 = vadd.xlane.f32.xlu1 %v4095_v16  ;;  %v16286_v31 = vld [vmem:[#allocation76_spill] sm:$0xff]  ;;  %v16288_v29 = vld [vmem:[#allocation67_spill] sm:$0xff] }
 0x2bd   : > { %v2128_v11 = vsel %vm357_vm0, %v2040_v40, 0.0  ;;  %v1989_v34 = vmax.f32 %v1957_v47, 0.0  ;;  %v1991_v5 = vmax.f32 %v1959_v41, 0.0  ;;  %v16283_v33 = vrot.slane %v16282_v36, 1  ;;  %2123 = vadd.xlane.f32.xlu0 %v11056_v45  ;;  %v16290_v41 = vld [vmem:[#allocation37_spill] sm:$0xff] }
 0x2be   : > { %v16285_v2 = vrot.slane %v16284_v55, 1  ;;  %v2134_v39 = vsel %vm357_vm0, %v2042_v4, 0.0  ;;  %v1455_v51 = vadd.f32 %v1423_v10, %v1387_v37  ;;  %v1593_v61 = vadd.f32 %v1561_v58, %v1525_v26  ;;  %v16291_v58 = vld [vmem:[#allocation134_spill] sm:$0xff] }
 0x2bf   : > { %v1629_v24 = vmul.f32 %v16215_v17, %v11119_v14  ;;  %v4098_v15 = vsel %vm357_vm0, %v4010_v13, 0.0  ;;  %v4101_v40 = vsel %vm357_vm0, %v4011_v62, 0.0  ;;  %v4107_v1 = vsel %vm357_vm0, %v4013_v27, 0.0 }
 0x2c0   : > { %v1241_v21 = vsel %vm1231_vm12, %v16285_v2, %v16283_v33  ;;  %v16287_v60 = vrot.slane %v16286_v31, 1  ;;  %v16289_v0 = vrot.slane %v16288_v29, 1  ;;  %v4012_v4 = vmul.f32 %v16075_v35, %v3976_v28  ;;  %4099 = vadd.xlane.f32.xlu1 %v4098_v15  ;;  %v16292_v35 = vld [vmem:[#allocation47_spill] sm:$0xff] }
 0x2c1   : > { %v2023_v47 = vmul.f32 %v16242_v54, %v1987_v8  ;;  %v1961_v14 = vadd.f32 %v1899_v50, %v1725_v48  ;;  %v1285_v32 = vmul.f32 %v1241_v21, %v16290_v41  ;;  %v2025_v37 = vmul.f32 %v16242_v54, %v1989_v34  ;;  %v16293_v50 = vld [vmem:[#allocation142_spill] sm:$0xff]  ;;  %2129 = vadd.xlane.f32.xlu0 %v2128_v11 }
 0x2c2   : > { %v1239_v16 = vsel %vm1231_vm12, %v16289_v0, %v16287_v60  ;;  %v2027_v26 = vmul.f32 %v16242_v54, %v1991_v5  ;;  %v1765_v13 = vmul.f32 %v16216_v3, %v16291_v58  ;;  %v1801_v62 = vmul.f32 %v16217_v52, %v16284_v55 }
 0x2c3   : > { %v1491_v45 = vadd.f32 %v16220_v49, %v1455_v51  ;;  %v1661_v23 = vadd.f32 %v1629_v24, %v1593_v61  ;;  %v1287_v28 = vmul.f32 %v1239_v16, %v16292_v35  ;;  %v1321_v27 = vmul.f32 %v16190_v42, %v16291_v58 }
 0x2c4   : > { %v1527_v8 = vmul.f32 %v16201_v19, %v16275_v63  ;;  %v1563_v48 = vmul.f32 %v16207_v7, %v16273_v18  ;;  %v1323_v10 = vmul.f32 %v16190_v42, %v16293_v50  ;;  %v1359_v34 = vmul.f32 %v16196_v9, %v16288_v29  ;;  %4102 = vadd.xlane.f32.xlu1 %v4101_v40  ;;  %v16296_v40 = vld [vmem:[#allocation85_spill] sm:$0xff] }
 0x2c5   : > { %v1993_v5 = vmax.f32 %v1961_v14, 0.0  ;;  %v1869_v33 = vmul.f32 %v16221_v44, %v1285_v32  ;;  %v1357_v2 = vmul.f32 %v16196_v9, %v16284_v55  ;;  %v1425_v21 = vmul.f32 %v16183_v57, %v1285_v32  ;;  %v16294_v14 = vld [vmem:[#allocation94_spill] sm:$0xff]  ;;  %2135 = vadd.xlane.f32.xlu0 %v2134_v39 }
 0x2c6   : > { %v4104_v63 = vsel %vm357_vm0, %v4012_v4, 0.0  ;;  %v2077_v51 = vsel %vm357_vm0, %v2023_v47, 0.0  ;;  %v11240_v61 = vsel %vm357_vm0, %v2025_v37, 0.0  ;;  %v1833_v24 = vadd.f32 %v1801_v62, %v1765_v13 }
 0x2c7   : > { %v1727_v15 = vadd.f32 %v1661_v23, %v1491_v45  ;;  %v1389_v60 = vadd.f32 %v1357_v2, %v1321_v27  ;;  %v1767_v11 = vmul.f32 %v16216_v3, %v16293_v50  ;;  %v1803_v0 = vmul.f32 %v16217_v52, %v16288_v29 }
 0x2c8   : > { %v1595_v16 = vadd.f32 %v1563_v48, %v1527_v8  ;;  %v16295_v35 = vrot.slane %v16294_v14, 1  ;;  %v16297_v41 = vrot.slane %v16296_v40, 1  ;;  %v1391_v47 = vadd.f32 %v1359_v34, %v1323_v10  ;;  %4105 = vadd.xlane.f32.xlu1 %v4104_v63  ;;  %v16298_v48 = vld [vmem:[#allocation158_spill] sm:$0xff]  ;;  %v16299_v10 = vld [vmem:[#allocation65_spill] sm:$0xff]  ;;  %v11304_v14 = vpop.xlane.xlu1 %2045 }
 0x2c9   : > { %v1427_v37 = vmul.f32 %v16183_v57, %v1287_v28  ;;  %v11254_v13 = vsel %vm357_vm0, %v2027_v26, 0.0  ;;  %v11257_v62 = vmul.f32 %v16242_v54, %v1993_v5  ;;  %v1901_v45 = vadd.f32 %v1869_v33, %v1833_v24 }
 0x2ca   : > { %v1237_v4 = vsel %vm1231_vm12, %v16297_v41, %v16295_v35  ;;  %v1457_v23 = vadd.f32 %v1425_v21, %v1389_v60  ;;  %v1631_v27 = vmul.f32 %v16215_v17, %v11165_v38  ;;  %v1871_v8 = vmul.f32 %v16221_v44, %v1287_v28 }
 0x2cb   : > { %v1325_v41 = vmul.f32 %v16190_v42, %v16298_v48  ;;  %v1361_v39 = vmul.f32 %v16196_v9, %v16296_v40  ;;  %v11266_v35 = vadd.f32 %v1901_v45, %v1727_v15  ;;  %v1835_v26 = vadd.f32 %v1803_v0, %v1767_v11  ;;  %v16301_v11 = vld [vmem:[#allocation106_spill] sm:$0xff] }
 0x2cc   : > { %v1289_v34 = vmul.f32 %v1237_v4, %v16299_v10  ;;  %v1529_v5 = vmul.f32 %v16201_v19, %v16291_v58  ;;  %v1663_v33 = vadd.f32 %v1631_v27, %v1595_v16  ;;  %v1459_v2 = vadd.f32 %v1427_v37, %v1391_v47  ;;  %4108 = vadd.xlane.f32.xlu1 %v4107_v1 }
 0x2cd   : > { %v1769_v38 = vmul.f32 %v16216_v3, %v16298_v48  ;;  %v1805_v21 = vmul.f32 %v16217_v52, %v16296_v40  ;;  %v1493_v63 = vadd.f32 %v16220_v49, %v1457_v23  ;;  %v1565_v24 = vmul.f32 %v16207_v7, %v16284_v55 }
 0x2ce   : > { %v1633_v15 = vmul.f32 %v16215_v17, %v1285_v32  ;;  %v16300_v60 = vrot.slane %v16202_v59, 1  ;;  %v16302_v0 = vrot.slane %v16301_v11, 1  ;;  %v1393_v16 = vadd.f32 %v1361_v39, %v1325_v41  ;;  %v16303_v32 = vld [vmem:[#allocation178_spill] sm:$0xff] }
 0x2cf   : > { %v1429_v4 = vmul.f32 %v16183_v57, %v1289_v34  ;;  %v1531_v47 = vmul.f32 %v16201_v19, %v16293_v50  ;;  %v1567_v37 = vmul.f32 %v16207_v7, %v16288_v29  ;;  %v1903_v45 = vadd.f32 %v1871_v8, %v1835_v26  ;;  %v16306_v26 = vld [vmem:[#allocation135_spill] sm:$0xff] }
 0x2d0   : > { %v1235_v58 = vsel %vm1231_vm12, %v16302_v0, %v16300_v60  ;;  %v1597_v23 = vadd.f32 %v1565_v24, %v1529_v5  ;;  %v1327_v27 = vmul.f32 %v16190_v42, %v16303_v32  ;;  %v1363_v10 = vmul.f32 %v16196_v9, %v16301_v11  ;;  %v16304_v0 = vld [vmem:[#allocation84_spill] sm:$0xff]  ;;  %2078 = vadd.xlane.f32.xlu1 %v2077_v51  ;;  %v16308_v51 = vld [vmem:[#allocation101_spill] sm:$0xff] }
 0x2d1   : > { %v1729_v12 = vadd.f32 %v1663_v33, %v1493_v63  ;;  %v1495_v1 = vadd.f32 %v16220_v49, %v1459_v2  ;;  %v1837_v41 = vadd.f32 %v1805_v21, %v1769_v38  ;;  %v1873_v39 = vmul.f32 %v16221_v44, %v1289_v34 }
 0x2d2   : > { %v1665_v60 = vadd.f32 %v1633_v15, %v1597_v23  ;;  %v1291_v50 = vmul.f32 %v1235_v58, %v16304_v0  ;;  %v1635_v59 = vmul.f32 %v16215_v17, %v1287_v28  ;;  %v16305_v8 = vrot.slane %v16228_v46, 1 }
 0x2d3   : > { %v16307_v5 = vrot.slane %v16306_v26, 1  ;;  %v1461_v33 = vadd.f32 %v1429_v4, %v1393_v16  ;;  %v1599_v2 = vadd.f32 %v1567_v37, %v1531_v47  ;;  %v1771_v38 = vmul.f32 %v16216_v3, %v16303_v32  ;;  %v16309_v4 = vld [vmem:[#allocation197_spill] sm:$0xff] }
 0x2d4   : > { %v1807_v21 = vmul.f32 %v16217_v52, %v16301_v11  ;;  %v1395_v63 = vadd.f32 %v1363_v10, %v1327_v27  ;;  %v1431_v28 = vmul.f32 %v16183_v57, %v1291_v50  ;;  %v1533_v15 = vmul.f32 %v16201_v19, %v16298_v48  ;;  %2084 = vadd.xlane.f32.xlu1 %v11240_v61 }
 0x2d5   : > { %v1233_v24 = vsel %vm1231_vm12, %v16307_v5, %v16305_v8  ;;  %v1569_v58 = vmul.f32 %v16207_v7, %v16296_v40  ;;  %v1995_v23 = vmax.f32 %v11266_v35, 0.0  ;;  %v1329_v47 = vmul.f32 %v16190_v42, %v16309_v4  ;;  %v11321_v8 = vpop.xlane.xlu0 %4027 }
 0x2d6   : > { %v1293_v16 = vmul.f32 %v1233_v24, %v16308_v51  ;;  %v1365_v37 = vmul.f32 %v16196_v9, %v16306_v26  ;;  %v1965_v10 = vadd.f32 %v1903_v45, %v1729_v12  ;;  %v1731_v27 = vadd.f32 %v1665_v60, %v1495_v1  ;;  %v11331_v45 = vpop.xlane.xlu1 %4024  ;;  %v16310_v60 = vld [vmem:[#allocation179_spill] sm:$0xff] }
 0x2d7   : > { %v1905_v5 = vadd.f32 %v1873_v39, %v1837_v41  ;;  %v1875_v48 = vmul.f32 %v16221_v44, %v1291_v50  ;;  %v1497_v0 = vadd.f32 %v16220_v49, %v1461_v33  ;;  %v1667_v35 = vadd.f32 %v1635_v59, %v1599_v2  ;;  %v16311_v2 = vld [vmem:[#allocation159_spill] sm:$0xff] }
 0x2d8   : > { %v1839_v6 = vadd.f32 %v1807_v21, %v1771_v38  ;;  %v1637_v24 = vmul.f32 %v16215_v17, %v1289_v34  ;;  %v1463_v51 = vadd.f32 %v1431_v28, %v1395_v63  ;;  %v1601_v46 = vadd.f32 %v1569_v58, %v1533_v15  ;;  %2090 = vadd.xlane.f32.xlu1 %v11254_v13 }
 0x2d9   : > { %v1773_v40 = vmul.f32 %v16216_v3, %v16309_v4  ;;  %v1809_v12 = vmul.f32 %v16217_v52, %v16306_v26  ;;  %v1397_v1 = vadd.f32 %v1365_v37, %v1329_v47  ;;  %v1433_v41 = vmul.f32 %v16183_v57, %v1293_v16  ;;  %v11343_v21 = vpop.xlane.xlu0 %4033 }
 0x2da   : > { %v1535_v61 = vmul.f32 %v16201_v19, %v16303_v32  ;;  %v1571_v59 = vmul.f32 %v16207_v7, %v16301_v11  ;;  %v2031_v34 = vmul.f32 %v16242_v54, %v1995_v23  ;;  %v1997_v39 = vmax.f32 %v1965_v10, 0.0 }
 0x2db   : > { %v1331_v33 = vmul.f32 %v16190_v42, %v16310_v60  ;;  %v1367_v38 = vmul.f32 %v16196_v9, %v16311_v2  ;;  %v1967_v63 = vadd.f32 %v1905_v5, %v1731_v27  ;;  %v1733_v28 = vadd.f32 %v1667_v35, %v1497_v0 }
 0x2dc   : > { %v1907_v15 = vadd.f32 %v1875_v48, %v1839_v6  ;;  %v1877_v32 = vmul.f32 %v16221_v44, %v1293_v16  ;;  %v1499_v58 = vadd.f32 %v16220_v49, %v1463_v51  ;;  %v1669_v47 = vadd.f32 %v1637_v24, %v1601_v46 }
 0x2dd   : > { %v1841_v23 = vadd.f32 %v1809_v12, %v1773_v40  ;;  %v1639_v37 = vmul.f32 %v16215_v17, %v1291_v50  ;;  %v1465_v10 = vadd.f32 %v1433_v41, %v1397_v1  ;;  %v1603_v42 = vadd.f32 %v1571_v59, %v1535_v61  ;;  %v11359_v40 = vpop.xlane.xlu1 %4030  ;;  %v11361_v50 = vpop.xlane.xlu0 %4039  ;;  %v16313_v59 = vld [vmem:[#allocation125_spill] sm:$0xff] }
 0x2de   : > { %v1775_v9 = vmul.f32 %v16216_v3, %v16310_v60  ;;  %v1811_v11 = vmul.f32 %v16217_v52, %v16311_v2  ;;  %v2095_v13 = vsel %vm357_vm0, %v11257_v62, 0.0  ;;  %v1399_v6 = vadd.f32 %v1367_v38, %v1331_v33  ;;  %v16312_v62 = vld [vmem:[#allocation184_spill] sm:$0xff] }
 0x2df   : > { %v1537_v0 = vmul.f32 %v16201_v19, %v16309_v4  ;;  %v1573_v46 = vmul.f32 %v16207_v7, %v16306_v26  ;;  %2096 = vadd.xlane.f32.xlu1 %v2095_v13  ;;  %v2101_v51 = vsel %vm357_vm0, %v2031_v34, 0.0  ;;  %v2033_v27 = vmul.f32 %v16242_v54, %v1997_v39 }
 0x2e0   : > { %v1999_v5 = vmax.f32 %v1967_v63, 0.0  ;;  %v1969_v48 = vadd.f32 %v1907_v15, %v1733_v28  ;;  %v1909_v35 = vadd.f32 %v1877_v32, %v1841_v23  ;;  %v1435_v24 = vmul.f32 %v16183_v57, %v16312_v62  ;;  %v16314_v57 = vld [vmem:[#allocation51_spill] sm:$0xff]  ;;  %v16315_v63 = vld [vmem:[#allocation136_spill] sm:$0xff] }
 0x2e1   : > { %v1735_v12 = vadd.f32 %v1669_v47, %v1499_v58  ;;  %v1501_v19 = vadd.f32 %v16220_v49, %v1465_v10  ;;  %v1671_v4 = vadd.f32 %v1639_v37, %v1603_v42  ;;  %v1843_v7 = vadd.f32 %v1811_v11, %v1775_v9  ;;  %v4022_v60 = vpop.xlane.xlu0 %4021  ;;  %v4037_v28 = vpop.xlane.xlu1 %4036 }
 0x2e2   : > { %v1467_v1 = vadd.f32 %v1435_v24, %v1399_v6  ;;  %v1605_v41 = vadd.f32 %v1573_v46, %v1537_v0  ;;  %v1641_v61 = vmul.f32 %v16215_v17, %v1293_v16  ;;  %v1745_v34 = vmul.f32 %v16216_v3, %v16313_v59 }
 0x2e3   : > { %2102 = vadd.xlane.f32.xlu1 %v2101_v51  ;;  %v2107_v39 = vsel %vm357_vm0, %v2033_v27, 0.0  ;;  %v1879_v33 = vmul.f32 %v16221_v44, %v16312_v62  ;;  %v1781_v38 = vmul.f32 %v16217_v52, %v16314_v57  ;;  %v1849_v11 = vmul.f32 %v16221_v44, %v16315_v63 }
 0x2e4   : > { %v2035_v15 = vmul.f32 %v16242_v54, %v1999_v5  ;;  %v2001_v17 = vmax.f32 %v1969_v48, 0.0  ;;  %v1971_v16 = vadd.f32 %v1909_v35, %v1735_v12  ;;  %v1737_v32 = vadd.f32 %v1671_v4, %v1501_v19 }
 0x2e5   : > { %v1911_v3 = vadd.f32 %v1879_v33, %v1843_v7  ;;  %v1503_v58 = vadd.f32 %v16220_v49, %v1467_v1  ;;  %v1673_v47 = vadd.f32 %v1641_v61, %v1605_v41  ;;  %v1813_v23 = vadd.f32 %v1781_v38, %v1745_v34  ;;  %v4019_v37 = vpop.xlane.xlu0 %4018  ;;  %v4043_v42 = vpop.xlane.xlu1 %4042 }
 0x2e6   : > { %v2113_v52 = vsel %vm357_vm0, %v2035_v15, 0.0  ;;  %v2037_v9 = vmul.f32 %v16242_v54, %v2001_v17  ;;  %v2003_v44 = vmax.f32 %v1971_v16, 0.0  ;;  %v6652_v62 = vmul.f32 -1.442695, %v4019_v37 }
 0x2e7   : > { %2108 = vadd.xlane.f32.xlu1 %v2107_v39  ;;  %v1881_v10 = vadd.f32 %v1849_v11, %v1813_v23  ;;  %v1973_v13 = vadd.f32 %v1911_v3, %v1737_v32  ;;  %v1739_v6 = vadd.f32 %v1673_v47, %v1503_v58  ;;  %v6653_v1 = vmul.f32 -1.442695, %v4022_v60 }
 0x2e8   : > { %v2119_v51 = vsel %vm357_vm0, %v2037_v9, 0.0  ;;  %v2039_v49 = vmul.f32 %v16242_v54, %v2003_v44  ;;  %6829 = vpow2.f32 %v6652_v62  ;;  %v6654_v34 = vmul.f32 -1.442695, %v11331_v45 }
 0x2e9   : > { %v11382_v0 = vpop.xlane.xlu0 %2051  ;;  %v1943_v46 = vmul.f32 0.0, %v1881_v10  ;;  %v2005_v27 = vmax.f32 %v1973_v13, 0.0  ;;  %v4016_v48 = vpop.xlane.xlu1 %4015  ;;  %v6655_v38 = vmul.f32 -1.442695, %v11321_v8  ;;  %v6656_v60 = vmul.f32 -1.442695, %v11359_v40 }
 0x2ea   : > { %v6651_v24 = vmul.f32 -1.442695, %v4016_v48  ;;  %v2125_v12 = vsel %vm357_vm0, %v2039_v49, 0.0  ;;  %v6657_v45 = vmul.f32 -1.442695, %v11343_v21 }
 0x2eb   : > { %2114 = vadd.xlane.f32.xlu1 %v2113_v52  ;;  %v1975_v5 = vadd.f32 %v1943_v46, %v1739_v6  ;;  %v2041_v19 = vmul.f32 %v16242_v54, %v2005_v27  ;;  %v6658_v58 = vmul.f32 -1.442695, %v4037_v28  ;;  %v6659_v10 = vmul.f32 -1.442695, %v11361_v50 }
 0x2ec   : > { %6831 = vpow2.f32 %v6651_v24  ;;  %v6660_v21 = vmul.f32 -1.442695, %v4043_v42  ;;  %v6618_v6 = vmul.f32 -1.442695, %v11031_v22  ;;  %v6617_v48 = vmul.f32 -1.442695, %v11304_v14 }
 0x2ed   : > { %v11386_v35 = vpop.xlane.xlu0 %2054  ;;  %v2007_v4 = vmax.f32 %v1975_v5, 0.0  ;;  %v2131_v41 = vsel %vm357_vm0, %v2041_v19, 0.0  ;;  %6833 = vpow2.f32 %v6653_v1 }
 0x2ee   : > { %6835 = vpow2.f32 %v6654_v34 }
 0x2ef   : > { %2120 = vadd.xlane.f32.xlu1 %v2119_v51  ;;  %v2043_v61 = vmul.f32 %v16242_v54, %v2007_v4  ;;  %6837 = vpow2.f32 %v6655_v38  ;;  %v4085_v54 = vpop.xlane.xlu1 %4084 }
 0x2f0   : > { %6839 = vpow2.f32 %v6656_v60  ;;  %v6674_v1 = vmul.f32 -1.442695, %v4085_v54 }
 0x2f1   : > { %v11390_v7 = vpop.xlane.xlu0 %2057  ;;  %v2137_v39 = vsel %vm357_vm0, %v2043_v61, 0.0 }
 0x2f3   : > { %2126 = vadd.xlane.f32.xlu1 %v2125_v12  ;;  %v4088_v47 = vpop.xlane.xlu1 %4087 }
 0x2f5   : > { %v4046_v59 = vpop.xlane.xlu0 %4045  ;;  %v6830_v63 = vpop.eup %6829 }
 0x2f6   : > { %v4207_v17 = vadd.f32 1.0, %v6830_v63  ;;  %v6661_v5 = vmul.f32 -1.442695, %v4046_v59  ;;  %v16316_v63 = vld [vmem:[#allocation60_spill] sm:$0xff] }
 0x2f7   : > { %2132 = vadd.xlane.f32.xlu1 %v2131_v41  ;;  %v4091_v9 = vpop.xlane.xlu1 %4090  ;;  %v6675_v41 = vmul.f32 -1.442695, %v4088_v47 }
 0x2f8   : > { %6841 = vrcp.f32 %v4207_v17 }
 0x2f9   : > { %v11396_v33 = vpop.xlane.xlu0 %4051  ;;  %v6832_v11 = vpop.eup %6831  ;;  %6843 = vpow2.f32 %v6657_v45 }
 0x2fa   : > { %v4206_v16 = vadd.f32 1.0, %v6832_v11  ;;  %v6834_v32 = vpop.eup %6833  ;;  %v6663_v11 = vmul.f32 -1.442695, %v11396_v33 }
 0x2fb   : > { %2138 = vadd.xlane.f32.xlu1 %v2137_v39  ;;  %v6836_v8 = vpop.eup %6835  ;;  %v4208_v40 = vadd.f32 1.0, %v6834_v32  ;;  %v4049_v27 = vpop.xlane.xlu1 %4048  ;;  %v16317_v32 = vld [vmem:[#allocation66_spill] sm:$0xff] }
 0x2fc   : > { %6845 = vrcp.f32 %v4206_v16  ;;  %v4209_v37 = vadd.f32 1.0, %v6836_v8  ;;  %v6838_v52 = vpop.eup %6837  ;;  %v6662_v24 = vmul.f32 -1.442695, %v4049_v27 }
 0x2fd   : > { %v11400_v15 = vpop.xlane.xlu0 %4057  ;;  %6847 = vpow2.f32 %v6658_v58  ;;  %v6840_v13 = vpop.eup %6839  ;;  %v4210_v28 = vadd.f32 1.0, %v6838_v52 }
 0x2fe   : > { %6849 = vrcp.f32 %v4208_v40  ;;  %v4211_v51 = vadd.f32 1.0, %v6840_v13  ;;  %v6665_v27 = vmul.f32 -1.442695, %v11400_v15  ;;  %v1092_v15 = vld [vmem:[%s14765_s3 + $0x30] sm:$0xff] }
 0x2ff   : > { %6851 = vrcp.f32 %v4209_v37  ;;  %v4055_v59 = vpop.xlane.xlu1 %4054  ;;  %v6676_v37 = vmul.f32 -1.442695, %v4091_v9 }
 0x300   : > { %6853 = vpow2.f32 %v6659_v10  ;;  %v6664_v45 = vmul.f32 -1.442695, %v4055_v59 }
 0x301   : > { %6855 = vpow2.f32 %v6660_v21 }
 0x302   : > { %v11403_v3 = vpop.xlane.xlu0 %4063  ;;  %6857 = vrcp.f32 %v4210_v28  ;;  %v6619_v28 = vmul.f32 -1.442695, %v11382_v0 }
 0x303   : > { %6859 = vpow2.f32 %v6618_v6  ;;  %v4061_v21 = vpop.xlane.xlu1 %4060  ;;  %v6667_v0 = vmul.f32 -1.442695, %v11403_v3  ;;  %v16322_v3 = vmov 0.0  }
 0x304   : > { %6861 = vrcp.f32 %v4211_v51  ;;  %v16318_v51 = vld [vmem:[#allocation74_spill] sm:$0xff]  ;;  %6726 = vmatprep.mubr.msk.f32.mxu1 %vm7159_vm10, %v16322_v3 }
 0x305   : > { %v6842_v46 = vpop.eup %6841  ;;  %6863 = vpow2.f32 %v6661_v5 }
 0x306   : > { %v11405_v23 = vpop.xlane.xlu0 %4069  ;;  %v6844_v49 = vpop.eup %6843  ;;  %v11415_v62 = vmul.f32 %v6842_v46, %v16314_v57  ;;  %6865 = vpow2.f32 %v6617_v48 }
 0x307   : > { %v4212_v19 = vadd.f32 1.0, %v6844_v49  ;;  %6867 = vpow2.f32 %v6662_v24 }
 0x308   : > { %v4336_v14 = vsel %vm4334_vm9, %v11415_v62, 0.0 }
 0x309   : > { %v6846_v50 = vpop.eup %6845  ;;  %6869 = vrcp.f32 %v4212_v19  ;;  %v1093_v19 = vld [vmem:[%s14765_s3 + $0x38] sm:$0xff] }
 0x30a   : > { %v11408_v44 = vpop.xlane.xlu0 %4081  ;;  %v6848_v12 = vpop.eup %6847  ;;  %v11418_v22 = vmul.f32 %v6846_v50, %v16232_v20  ;;  %6871 = vpow2.f32 %v6674_v1  ;;  %v6666_v50 = vmul.f32 -1.442695, %v4061_v21  ;;  %v16320_v1 = vld [vmem:[#allocation80_spill] sm:$0xff]  ;;  %6711 = vmatpush3.msra.mxu1 %v1093_v19 }
 0x30b   : > { %v6850_v4 = vpop.eup %6849  ;;  %v4213_v61 = vadd.f32 1.0, %v6848_v12  ;;  %6873 = vpow2.f32 %v6675_v41  ;;  %6712 = vmatprep.subr.mxu1 %v16322_v3 }
 0x30c   : > { %v6852_v39 = vpop.eup %6851  ;;  %v4335_v38 = vsel %vm4334_vm9, %v11418_v22, 0.0  ;;  %v11427_v60 = vmul.f32 %v6850_v4, %v16316_v63  ;;  %6713 = vmatpush3.msra.mxu1 %v1092_v15 }
 0x30d   : > { %v6854_v54 = vpop.eup %6853  ;;  %v4337_v17 = vadd.f32 %v4336_v14, %v4335_v38  ;;  %6875 = vrcp.f32 %v4213_v61  ;;  %v11431_v58 = vmul.f32 %v6852_v39, %v16317_v32  ;;  %6714 = vmatprep.subr.mxu1 %v16322_v3 }
 0x30e   : > { %v11412_v42 = vpop.xlane.xlu0 %4075  ;;  %v6856_v16 = vpop.eup %6855  ;;  %v4214_v8 = vadd.f32 1.0, %v6854_v54  ;;  %v4338_v47 = vsel %vm4334_vm9, %v11427_v60, 0.0  ;;  %6877 = vpow2.f32 %v6663_v11  ;;  %v1091_v54 = vld [vmem:[%s14765_s3 + $0x28] sm:$0xff] }
 0x30f   : > { %v6858_v40 = vpop.eup %6857  ;;  %v4339_v10 = vadd.f32 %v4338_v47, %v4337_v17  ;;  %v4215_v33 = vadd.f32 1.0, %v6856_v16  ;;  %6879 = vpow2.f32 %v6664_v45  ;;  %v4340_v46 = vsel %vm4334_vm9, %v11431_v58, 0.0  ;;  %v4067_v11 = vpop.xlane.xlu1 %4066  ;;  %v1090_v47 = vld [vmem:[%s14765_s3 + $0x20] sm:$0xff]  ;;  %6715 = vmatpush3.msra.mxu1 %v1091_v54 }
 0x310   : > { %v6860_v13 = vpop.eup %6859  ;;  %v11441_v49 = vmul.f32 %v6858_v40, %v16318_v51  ;;  %6881 = vrcp.f32 %v4214_v8  ;;  %v6620_v45 = vmul.f32 -1.442695, %v11386_v35  ;;  %v6668_v21 = vmul.f32 -1.442695, %v4067_v11  ;;  %6716 = vmatprep.subr.mxu1 %v16322_v3 }
 0x311   : > { %v6862_v6 = vpop.eup %6861  ;;  %6883 = vpow2.f32 %v6676_v37  ;;  %v4341_v5 = vadd.f32 %v4340_v46, %v4339_v10  ;;  %v2237_v24 = vadd.f32 1.0, %v6860_v13  ;;  %v16323_v10 = vld [vmem:[#allocation86_spill] sm:$0xff]  ;;  %v1089_v46 = vld [vmem:[%s14765_s3 + $0x18] sm:$0xff]  ;;  %6717 = vmatpush3.msra.mxu1 %v1090_v47 }
 0x312   : > { %v11422_v34 = vpop.xlane.xlu0 %2060  ;;  %16319 = vst [vmem:[#allocation156_spill] sm:$0xff] %v11441_v49  ;;  %v6864_v9 = vpop.eup %6863  ;;  %6885 = vrcp.f32 %v4215_v33  ;;  %v11454_v41 = vmul.f32 %v6862_v6, %v16320_v1  ;;  %v4342_v14 = vsel %vm4334_vm9, %v11441_v49, 0.0  ;;  %6718 = vmatprep.subr.mxu1 %v16322_v3 }
 0x313   : > { %v6866_v48 = vpop.eup %6865  ;;  %6887 = vpow2.f32 %v6619_v28  ;;  %v4216_v61 = vadd.f32 1.0, %v6864_v9  ;;  %v4343_v38 = vadd.f32 %v4342_v14, %v4341_v5  ;;  %v6621_v5 = vmul.f32 -1.442695, %v11390_v7  ;;  %6719 = vmatpush3.msra.mxu1 %v1089_v46  ;;  %v1087_v14 = vld [vmem:[%s14765_s3 + $0x8] sm:$0xff] }
 0x314   : > { %v6868_v4 = vpop.eup %6867  ;;  %16321 = vst [vmem:[#allocation252_spill] sm:$0xff] %v11454_v41  ;;  %6889 = vpow2.f32 %v6665_v27  ;;  %v2236_v39 = vadd.f32 1.0, %v6866_v48  ;;  %v4344_v37 = vsel %vm4334_vm9, %v11454_v41, 0.0  ;;  %v16325_v48 = vld [vmem:[#allocation97_spill] sm:$0xff]  ;;  %v6669_v7 = vmul.f32 -1.442695, %v11405_v23  ;;  %6720 = vmatprep.subr.mxu1 %v16322_v3 }
 0x315   : > { %6891 = vpow2.f32 %v6666_v50  ;;  %v4217_v8 = vadd.f32 1.0, %v6868_v4  ;;  %v4345_v28 = vadd.f32 %v4344_v37, %v4343_v38  ;;  %v1088_v50 = vld [vmem:[%s14765_s3 + $0x10] sm:$0xff]  ;;  %v6673_v38 = vmul.f32 -1.442695, %v11408_v44  ;;  %v1086_v23 = vld [vmem:[%s14765_s3] sm:$0xff] }
 0x316   : > { %v11435_v52 = vpop.xlane.xlu0 %2063  ;;  %v6870_v59 = vpop.eup %6869  ;;  %6893 = vrcp.f32 %v2237_v24  ;;  %6721 = vmatpush3.msra.mxu1 %v1088_v50 }
 0x317   : > { %v6872_v17 = vpop.eup %6871  ;;  %6895 = vpow2.f32 %v6667_v0  ;;  %v11472_v33 = vmul.f32 %v6870_v59, %v16323_v10  ;;  %6722 = vmatprep.subr.mxu1 %v16322_v3 }
 0x318   : > { %v6874_v16 = vpop.eup %6873  ;;  %6897 = vrcp.f32 %v4216_v61  ;;  %v4229_v13 = vadd.f32 1.0, %v6872_v17  ;;  %6723 = vmatpush3.msra.mxu1 %v1087_v14 }
 0x319   : > { %16324 = vst [vmem:[#allocation207_spill] sm:$0xff] %v11472_v33  ;;  %6899 = vrcp.f32 %v2236_v39  ;;  %v4230_v27 = vadd.f32 1.0, %v6874_v16  ;;  %v4346_v0 = vsel %vm4334_vm9, %v11472_v33, 0.0  ;;  %6724 = vmatprep.subr.mxu1 %v16322_v3 }
 0x31a   : > { %v11445_v12 = vpop.xlane.xlu0 %2066  ;;  %v6876_v40 = vpop.eup %6875  ;;  %6901 = vpow2.f32 %v6620_v45  ;;  %v4347_v4 = vadd.f32 %v4346_v0, %v4345_v28  ;;  %v16327_v45 = vld [vmem:[#allocation112_spill] sm:$0xff]  ;;  %6725 = vmatpush3.msra.mxu1 %v1086_v23 }
 0x31b   : > { %v6878_v35 = vpop.eup %6877  ;;  %6903 = vrcp.f32 %v4217_v8  ;;  %v11486_v24 = vmul.f32 %v6876_v40, %v16325_v48  ;;  %v6671_v8 = vmul.f32 -1.442695, %v11412_v42  ;;  %6729 = vmatprep.subr.mxu1 %v16322_v3 }
 0x31c   : > { %v6880_v9 = vpop.eup %6879  ;;  %v4218_v19 = vadd.f32 1.0, %v6878_v35  ;;  %6905 = vpow2.f32 %v6668_v21  ;;  %v6622_v21 = vmul.f32 -1.442695, %v11422_v34 }
 0x31d   : > { %16326 = vst [vmem:[#allocation147_spill] sm:$0xff] %v11486_v24  ;;  %v6882_v15 = vpop.eup %6881  ;;  %6907 = vrcp.f32 %v4229_v13  ;;  %v4219_v59 = vadd.f32 1.0, %v6880_v9  ;;  %v4348_v17 = vsel %vm4334_vm9, %v11486_v24, 0.0 }
 0x31e   : > { %v11474_v6 = vpop.xlane.xlu0 %2069  ;;  %v6884_v61 = vpop.eup %6883  ;;  %6909 = vrcp.f32 %v4230_v27  ;;  %v11505_v16 = vmul.f32 %v6882_v15, %v16327_v45  ;;  %v4349_v40 = vadd.f32 %v4348_v17, %v4347_v4  ;;  %v6624_v17 = vmul.f32 -1.442695, %v11445_v12 }
 0x31f   : > { %v6886_v39 = vpop.eup %6885  ;;  %6911 = vpow2.f32 %v6621_v5  ;;  %v4231_v47 = vadd.f32 1.0, %v6884_v61 }
 0x320   : > { %v6888_v54 = vpop.eup %6887  ;;  %16328 = vst [vmem:[#allocation27_spill] sm:$0xff] %v11505_v16  ;;  %6913 = vrcp.f32 %v4218_v19  ;;  %v11514_v42 = vmul.f32 %v6886_v39, %v16254_v43  ;;  %v4350_v46 = vsel %vm4334_vm9, %v11505_v16, 0.0 }
 0x321   : > { %v6890_v44 = vpop.eup %6889  ;;  %6915 = vpow2.f32 %v6669_v7  ;;  %v2238_v13 = vadd.f32 1.0, %v6888_v54  ;;  %v4351_v5 = vadd.f32 %v4350_v46, %v4349_v40 }
 0x322   : > { %v11496_v11 = vpop.xlane.xlu0 %2072  ;;  %v6892_v37 = vpop.eup %6891  ;;  %6917 = vrcp.f32 %v4219_v59  ;;  %16329 = vst [vmem:[#allocation251_spill] sm:$0xff] %v11514_v42  ;;  %v4220_v27 = vadd.f32 1.0, %v6890_v44  ;;  %v4352_v61 = vsel %vm4334_vm9, %v11514_v42, 0.0  ;;  %v16330_v59 = vld [vmem:[#allocation140_spill] sm:$0xff] }
 0x323   : > { %v11510_v35 = vpop.eup %6893  ;;  %6919 = vpow2.f32 %v6673_v38  ;;  %v4221_v34 = vadd.f32 1.0, %v6892_v37  ;;  %v6623_v38 = vmul.f32 -1.442695, %v11435_v52  ;;  %v4353_v54 = vadd.f32 %v4352_v61, %v4351_v5  ;;  %v16333_v61 = vld [vmem:[#allocation167_spill] sm:$0xff] }
 0x324   : > { %v6896_v28 = vpop.eup %6895  ;;  %6921 = vpow2.f32 %v6671_v8 }
 0x325   : > { %v6898_v9 = vpop.eup %6897  ;;  %6923 = vrcp.f32 %v4231_v47  ;;  %v4222_v4 = vadd.f32 1.0, %v6896_v28 }
 0x326   : > { %v11518_v50 = vpop.xlane.xlu0 %2075  ;;  %v11520_v0 = vpop.eup %6899  ;;  %6925 = vpow2.f32 %v6622_v21  ;;  %v11525_v39 = vmul.f32 %v6898_v9, %v16330_v59  ;;  %v6625_v9 = vmul.f32 -1.442695, %v11474_v6 }
 0x327   : > { %v6902_v15 = vpop.eup %6901  ;;  %6927 = vrcp.f32 %v2238_v13 }
 0x328   : > { %v6904_v14 = vpop.eup %6903  ;;  %16331 = vst [vmem:[#allocation226_spill] sm:$0xff] %v11525_v39  ;;  %6929 = vrcp.f32 %v4220_v27  ;;  %v2239_v40 = vadd.f32 1.0, %v6902_v15  ;;  %v4354_v52 = vsel %vm4334_vm9, %v11525_v39, 0.0 }
 0x329   : > { %v6906_v23 = vpop.eup %6905  ;;  %6931 = vrcp.f32 %v4221_v34  ;;  %v11534_v28 = vmul.f32 %v6904_v14, %v16244_v30  ;;  %v4355_v27 = vadd.f32 %v4354_v52, %v4353_v54  ;;  %v6626_v34 = vmul.f32 -1.442695, %v11496_v11 }
 0x32a   : > { %v11529_v8 = vpop.eup %6907  ;;  %v2082_v37 = vpop.xlane.xlu0 %2081  ;;  %v4223_v46 = vadd.f32 1.0, %v6906_v23 }
 0x32b   : > { %v11531_v47 = vpop.eup %6909  ;;  %16332 = vst [vmem:[#allocation225_spill] sm:$0xff] %v11534_v28  ;;  %v4356_v14 = vsel %vm4334_vm9, %v11534_v28, 0.0  ;;  %v16335_v28 = vld [vmem:[#allocation180_spill] sm:$0xff] }
 0x32c   : > { %v6912_v13 = vpop.eup %6911 }
 0x32d   : > { %v6914_v12 = vpop.eup %6913 }
 0x32e   : > { %v6916_v5 = vpop.eup %6915  ;;  %v11543_v23 = vmul.f32 %v6914_v12, %v16333_v61 }
 0x32f   : > { %v6918_v15 = vpop.eup %6917  ;;  %v4224_v6 = vadd.f32 1.0, %v6916_v5 }
 0x330   : > { %16334 = vst [vmem:[#allocation99_spill] sm:$0xff] %v11543_v23  ;;  %v11550_v12 = vmul.f32 %v6918_v15, %v16335_v28 }
 0x332   : > { %16336 = vst [vmem:[#allocation230_spill] sm:$0xff] %v11550_v12  ;;  %v4360_v42 = vsel %vm4334_vm9, %v11550_v12, 0.0 }
 0x339   : > { %v4079_v19 = vpop.xlane.xlu1 %4078 }
 0x33a   : > { %v6672_v7 = vmul.f32 -1.442695, %v4079_v19 }
 0x33c   : > { %6933 = vpow2.f32 %v6672_v7  ;;  %v6920_v7 = vpop.eup %6919 }
 0x33d   : > { %v4073_v44 = vpop.xlane.xlu1 %4072  ;;  %6935 = vrcp.f32 %v4222_v4  ;;  %v2240_v4 = vadd.f32 1.0, %v6912_v13  ;;  %v6922_v54 = vpop.eup %6921  ;;  %v4228_v13 = vadd.f32 1.0, %v6920_v7 }
 0x33e   : > { %v6670_v21 = vmul.f32 -1.442695, %v4073_v44  ;;  %6937 = vpow2.f32 %v6623_v38  ;;  %v2088_v44 = vpop.xlane.xlu0 %2087  ;;  %v11545_v11 = vpop.eup %6923 }
 0x33f   : > { %6939 = vpow2.f32 %v6624_v17  ;;  %v4357_v17 = vadd.f32 %v4356_v14, %v4355_v27  ;;  %v4226_v27 = vadd.f32 1.0, %v6922_v54 }
 0x340   : > { %6941 = vpow2.f32 %v6670_v21 }
 0x341   : > { %v4094_v19 = vpop.xlane.xlu1 %4093  ;;  %6943 = vrcp.f32 %v2239_v40  ;;  %v6926_v40 = vpop.eup %6925 }
 0x342   : > { %6945 = vrcp.f32 %v4223_v46  ;;  %v6677_v38 = vmul.f32 -1.442695, %v4094_v19  ;;  %v11547_v39 = vpop.eup %6927  ;;  %v4358_v46 = vsel %vm4334_vm9, %v11543_v23, 0.0  ;;  %v2241_v14 = vadd.f32 1.0, %v6926_v40  ;;  %v16337_v23 = vld [vmem:[#allocation189_spill] sm:$0xff] }
 0x343   : > { %6947 = vpow2.f32 %v6625_v9  ;;  %v6930_v9 = vpop.eup %6929  ;;  %v4359_v5 = vadd.f32 %v4358_v46, %v4357_v17 }
 0x344   : > { %6949 = vpow2.f32 %v6626_v34  ;;  %v6627_v34 = vmul.f32 -1.442695, %v11518_v50  ;;  %v6932_v19 = vpop.eup %6931  ;;  %v11558_v54 = vmul.f32 %v6930_v9, %v16337_v23 }
 0x345   : > { %v4097_v21 = vpop.xlane.xlu1 %4096  ;;  %6951 = vrcp.f32 %v2240_v4 }
 0x346   : > { %v6678_v52 = vmul.f32 -1.442695, %v4097_v21  ;;  %6953 = vpow2.f32 %v6677_v38  ;;  %v2094_v21 = vpop.xlane.xlu0 %2093  ;;  %v6629_v38 = vmul.f32 -1.442695, %v2082_v37  ;;  %v4362_v9 = vsel %vm4334_vm9, %v11558_v54, 0.0 }
 0x347   : > { %6955 = vrcp.f32 %v4224_v6  ;;  %v4361_v6 = vadd.f32 %v4360_v42, %v4359_v5 }
 0x348   : > { %6957 = vpow2.f32 %v6678_v52 }
 0x349   : > { %v4100_v4 = vpop.xlane.xlu1 %4099  ;;  %v6934_v7 = vpop.eup %6933  ;;  %6959 = vrcp.f32 %v4228_v13  ;;  %v11561_v13 = vmul.f32 %v6932_v19, %v16257_v25  ;;  %v4363_v42 = vadd.f32 %v4362_v9, %v4361_v6 }
 0x34a   : > { %v6679_v16 = vmul.f32 -1.442695, %v4100_v4  ;;  %v6936_v15 = vpop.eup %6935  ;;  %6961 = vrcp.f32 %v4226_v27  ;;  %v4227_v50 = vadd.f32 1.0, %v6934_v7  ;;  %v6631_v27 = vmul.f32 -1.442695, %v2088_v44  ;;  %v16338_v7 = vld [vmem:[#allocation210_spill] sm:$0xff] }
 0x34b   : > { %v6938_v17 = vpop.eup %6937  ;;  %6963 = vpow2.f32 %v6627_v34  ;;  %v2100_v34 = vpop.xlane.xlu0 %2099  ;;  %v11566_v24 = vmul.f32 %v6936_v15, %v16338_v7  ;;  %v11572_v44 = vmul.f32 %v11510_v35, %v16314_v57  ;;  %v11578_v15 = vmul.f32 %v11520_v0, %v16232_v20 }
 0x34c   : > { %v6940_v40 = vpop.eup %6939  ;;  %6965 = vrcp.f32 %v2241_v14  ;;  %v2242_v5 = vadd.f32 1.0, %v6938_v17  ;;  %v6633_v17 = vmul.f32 -1.442695, %v2094_v21  ;;  %v11591_v0 = vmul.f32 %v11547_v39, %v16316_v63 }
 0x34d   : > { %v4103_v52 = vpop.xlane.xlu1 %4102  ;;  %v6942_v46 = vpop.eup %6941  ;;  %6967 = vpow2.f32 %v6679_v16  ;;  %16339 = vst [vmem:[#allocation231_spill] sm:$0xff] %v11566_v24  ;;  %v2243_v19 = vadd.f32 1.0, %v6940_v40  ;;  %16340 = vst [vmem:[#allocation217_spill] sm:$0xff] %v11572_v44  ;;  %v2365_v20 = vsel %vm357_vm0, %v11572_v44, 0.0 }
 0x34e   : > { %v6680_v4 = vmul.f32 -1.442695, %v4103_v52  ;;  %v6944_v33 = vpop.eup %6943  ;;  %6969 = vpow2.f32 %v6629_v38  ;;  %v4225_v37 = vadd.f32 1.0, %v6942_v46  ;;  %v4364_v38 = vsel %vm4334_vm9, %v11561_v13, 0.0  ;;  %16341 = vst [vmem:[#allocation256_spill] sm:$0xff] %v11578_v15  ;;  %16343 = vst [vmem:[#allocation152_spill] sm:$0xff] %v11591_v0 }
 0x34f   : > { %v6946_v12 = vpop.eup %6945  ;;  %6971 = vrcp.f32 %v4227_v50  ;;  %v4365_v50 = vadd.f32 %v4364_v38, %v4363_v42  ;;  %v2106_v21 = vpop.xlane.xlu0 %2105 }
 0x350   : > { %v6948_v14 = vpop.eup %6947  ;;  %6973 = vrcp.f32 %v4225_v37  ;;  %v11583_v57 = vmul.f32 %v6946_v12, %v16266_v56 }
 0x351   : > { %v4106_v16 = vpop.xlane.xlu1 %4105  ;;  %v6950_v52 = vpop.eup %6949  ;;  %6975 = vpow2.f32 %v6680_v4  ;;  %v2244_v40 = vadd.f32 1.0, %v6948_v14  ;;  %v4366_v4 = vsel %vm4334_vm9, %v11566_v24, 0.0 }
 0x352   : > { %v6681_v49 = vmul.f32 -1.442695, %v4106_v16  ;;  %v11568_v41 = vpop.eup %6951  ;;  %6977 = vpow2.f32 %v6631_v27  ;;  %16342 = vst [vmem:[#allocation169_spill] sm:$0xff] %v11583_v57  ;;  %v2245_v35 = vadd.f32 1.0, %v6950_v52  ;;  %v4367_v14 = vadd.f32 %v4366_v4, %v4365_v50 }
 0x353   : > { %v6954_v6 = vpop.eup %6953  ;;  %6979 = vrcp.f32 %v2242_v5  ;;  %v2364_v5 = vsel %vm357_vm0, %v11578_v15, 0.0  ;;  %v11597_v52 = vmul.f32 %v11529_v8, %v16288_v29  ;;  %v4368_v38 = vsel %vm4334_vm9, %v11583_v57, 0.0  ;;  %v2112_v24 = vpop.xlane.xlu0 %2111 }
 0x354   : > { %v6956_v46 = vpop.eup %6955  ;;  %6981 = vrcp.f32 %v2243_v19  ;;  %v4232_v42 = vadd.f32 1.0, %v6954_v6  ;;  %v11606_v6 = vmul.f32 %v11531_v47, %v16286_v31  ;;  %v6635_v50 = vmul.f32 -1.442695, %v2100_v34 }
 0x355   : > { %v4109_v9 = vpop.xlane.xlu1 %4108  ;;  %v6958_v27 = vpop.eup %6957  ;;  %6983 = vpow2.f32 %v6681_v49  ;;  %16344 = vst [vmem:[#allocation244_spill] sm:$0xff] %v11597_v52  ;;  %v2367_v8 = vsel %vm357_vm0, %v11591_v0, 0.0  ;;  %v11611_v15 = vmul.f32 %v6944_v33, %v16317_v32  ;;  %v11615_v34 = vsel %vm4334_vm9, %v11597_v52, 0.0 }
 0x356   : > { %v6682_v37 = vmul.f32 -1.442695, %v4109_v9  ;;  %v11585_v16 = vpop.eup %6959  ;;  %6985 = vpow2.f32 %v6633_v17  ;;  %v4233_v19 = vadd.f32 1.0, %v6958_v27  ;;  %v16345_v9 = vld [vmem:[#allocation145_spill] sm:$0xff]  ;;  %16346 = vst [vmem:[#allocation223_spill] sm:$0xff] %v11606_v6  ;;  %v2366_v27 = vadd.f32 %v2365_v20, %v2364_v5 }
 0x357   : > { %v6962_v12 = vpop.eup %6961  ;;  %6987 = vrcp.f32 %v2244_v40  ;;  %v11602_v63 = vmul.f32 %v6956_v46, %v16345_v9  ;;  %16347 = vst [vmem:[#allocation173_spill] sm:$0xff] %v11611_v15  ;;  %v11621_v32 = vsel %vm4334_vm9, %v11606_v6, 0.0 }
 0x358   : > { %v6964_v49 = vpop.eup %6963  ;;  %6989 = vrcp.f32 %v2245_v35  ;;  %v4369_v35 = vadd.f32 %v4368_v38, %v4367_v14  ;;  %v2368_v33 = vadd.f32 %v2367_v8, %v2366_v27 }
 0x359   : > { %v2079_v39 = vpop.xlane.xlu1 %2078  ;;  %v6966_v17 = vpop.eup %6965  ;;  %6991 = vpow2.f32 %v6682_v37  ;;  %v2246_v44 = vadd.f32 1.0, %v6964_v49  ;;  %v4370_v37 = vsel %vm4334_vm9, %v11602_v63, 0.0  ;;  %v6637_v49 = vmul.f32 -1.442695, %v2106_v21 }
 0x35a   : > { %v6628_v40 = vmul.f32 -1.442695, %v2079_v39  ;;  %v6968_v4 = vpop.eup %6967  ;;  %6993 = vrcp.f32 %v4232_v42 }
 0x35b   : > { %v6970_v46 = vpop.eup %6969  ;;  %6995 = vrcp.f32 %v4233_v19  ;;  %v4234_v57 = vadd.f32 1.0, %v6968_v4  ;;  %v11624_v19 = vmul.f32 %v6962_v12, %v16271_v53  ;;  %v4371_v4 = vadd.f32 %v4370_v37, %v4369_v35 }
 0x35c   : > { %v6972_v47 = vpop.eup %6971  ;;  %6997 = vpow2.f32 %v6628_v40  ;;  %v2369_v40 = vsel %vm357_vm0, %v11611_v15, 0.0  ;;  %v2248_v27 = vadd.f32 1.0, %v6970_v46  ;;  %v11642_v46 = vmul.f32 %v11585_v16, %v16282_v36 }
 0x35d   : > { %v2085_v20 = vpop.xlane.xlu1 %2084  ;;  %v6974_v5 = vpop.eup %6973  ;;  %6999 = vpow2.f32 %v6635_v50  ;;  %v11632_v50 = vmul.f32 %v6972_v47, %v16284_v55  ;;  %v4374_v47 = vsel %vm4334_vm9, %v11624_v19, 0.0 }
 0x35e   : > { %v6630_v42 = vmul.f32 -1.442695, %v2085_v20  ;;  %v6976_v14 = vpop.eup %6975  ;;  %v11627_v38 = vmul.f32 %v6974_v5, %v16273_v18  ;;  %7001 = vrcp.f32 %v4234_v57  ;;  %v11638_v57 = vmul.f32 %v11568_v41, %v16318_v51  ;;  %v2118_v5 = vpop.xlane.xlu0 %2117 }
 0x35f   : > { %v6978_v39 = vpop.eup %6977  ;;  %7003 = vrcp.f32 %v2246_v44  ;;  %v4235_v0 = vadd.f32 1.0, %v6976_v14  ;;  %v11647_v14 = vmul.f32 %v6966_v17, %v16320_v1  ;;  %v4376_v16 = vsel %vm4334_vm9, %v11632_v50, 0.0 }
 0x360   : > { %v6980_v6 = vpop.eup %6979  ;;  %v4372_v12 = vsel %vm4334_vm9, %v11627_v38, 0.0  ;;  %7005 = vpow2.f32 %v6630_v42  ;;  %16348 = vst [vmem:[#allocation25_spill] sm:$0xff] %v11638_v57  ;;  %v2250_v37 = vadd.f32 1.0, %v6978_v39 }
 0x361   : > { %v2091_v21 = vpop.xlane.xlu1 %2090  ;;  %v6982_v8 = vpop.eup %6981  ;;  %v4373_v20 = vadd.f32 %v4372_v12, %v4371_v4  ;;  %7007 = vrcp.f32 %v4235_v0  ;;  %16349 = vst [vmem:[#allocation165_spill] sm:$0xff] %v11647_v14  ;;  %v11650_v0 = vmul.f32 %v6980_v6, %v16323_v10  ;;  %v6639_v12 = vmul.f32 -1.442695, %v2112_v24 }
 0x362   : > { %v6632_v44 = vmul.f32 -1.442695, %v2091_v21  ;;  %v6984_v35 = vpop.eup %6983  ;;  %7009 = vpow2.f32 %v6637_v49  ;;  %v2371_v49 = vsel %vm357_vm0, %v11638_v57, 0.0  ;;  %v16351_v57 = vld [vmem:[#allocation85_spill] sm:$0xff] }
 0x363   : > { %v6986_v42 = vpop.eup %6985  ;;  %v4375_v51 = vadd.f32 %v4374_v47, %v4373_v20  ;;  %v4236_v41 = vadd.f32 1.0, %v6984_v35  ;;  %16350 = vst [vmem:[#allocation20_spill] sm:$0xff] %v11650_v0  ;;  %v2370_v20 = vadd.f32 %v2369_v40, %v2368_v33  ;;  %v2124_v35 = vpop.xlane.xlu0 %2123  ;;  %v2375_v33 = vsel %vm357_vm0, %v11650_v0, 0.0 }
 0x364   : > { %7011 = vpow2.f32 %v6632_v44  ;;  %v6988_v4 = vpop.eup %6987  ;;  %v4378_v44 = vsel %vm4334_vm9, %v11642_v46, 0.0  ;;  %v2252_v10 = vadd.f32 1.0, %v6986_v42 }
 0x365   : > { %7013 = vrcp.f32 %v2248_v27  ;;  %v6990_v15 = vpop.eup %6989  ;;  %v4377_v39 = vadd.f32 %v4376_v16, %v4375_v51  ;;  %v2373_v27 = vsel %vm357_vm0, %v11647_v14, 0.0  ;;  %v11662_v51 = vmul.f32 %v11545_v11, %v16351_v57 }
 0x366   : > { %7015 = vrcp.f32 %v4236_v41  ;;  %v6992_v17 = vpop.eup %6991  ;;  %v2372_v41 = vadd.f32 %v2371_v49, %v2370_v20  ;;  %v6641_v16 = vmul.f32 -1.442695, %v2118_v5  ;;  %v11671_v49 = vmul.f32 %v6982_v8, %v16325_v48 }
 0x367   : > { %7017 = vrcp.f32 %v2250_v37  ;;  %v6994_v6 = vpop.eup %6993  ;;  %v4379_v24 = vadd.f32 %v4378_v44, %v4377_v39  ;;  %v4237_v47 = vadd.f32 1.0, %v6992_v17 }
 0x368   : > { %v2097_v21 = vpop.xlane.xlu1 %2096  ;;  %v6996_v52 = vpop.eup %6995  ;;  %v2374_v17 = vadd.f32 %v2373_v27, %v2372_v41  ;;  %16353 = vst [vmem:[#allocation196_spill] sm:$0xff] %v11671_v49 }
 0x369   : > { %v6634_v1 = vmul.f32 -1.442695, %v2097_v21  ;;  %v6998_v37 = vpop.eup %6997  ;;  %v4381_v42 = vadd.f32 %v11615_v34, %v4379_v24  ;;  %v4384_v34 = vsel %vm4334_vm9, %v11662_v51, 0.0  ;;  %v16354_v24 = vld [vmem:[#allocation106_spill] sm:$0xff] }
 0x36a   : > { %v7000_v39 = vpop.eup %6999  ;;  %v2247_v11 = vadd.f32 1.0, %v6998_v37  ;;  %v2376_v5 = vadd.f32 %v2375_v33, %v2374_v17  ;;  %v6643_v37 = vmul.f32 -1.442695, %v2124_v35 }
 0x36b   : > { %7019 = vpow2.f32 %v6634_v1  ;;  %v16352_v1 = vld [vmem:[#allocation94_spill] sm:$0xff]  ;;  %v7002_v14 = vpop.eup %7001  ;;  %v2254_v27 = vadd.f32 1.0, %v7000_v39 }
 0x36c   : > { %7021 = vpow2.f32 %v6639_v12  ;;  %v2103_v40 = vpop.xlane.xlu1 %2102  ;;  %v11668_v44 = vmul.f32 %v6994_v6, %v16352_v1  ;;  %v4383_v12 = vadd.f32 %v11621_v32, %v4381_v42  ;;  %v7004_v20 = vpop.eup %7003  ;;  %v16355_v42 = vld [vmem:[#allocation122_spill] sm:$0xff] }
 0x36d   : > { %7023 = vrcp.f32 %v4237_v47  ;;  %v6636_v21 = vmul.f32 -1.442695, %v2103_v40  ;;  %v11677_v47 = vmul.f32 %v6996_v52, %v16354_v24  ;;  %v7006_v6 = vpop.eup %7005  ;;  %v2130_v40 = vpop.xlane.xlu0 %2129  ;;  %v2377_v52 = vsel %vm357_vm0, %v11671_v49, 0.0 }
 0x36e   : > { %7025 = vrcp.f32 %v2252_v10  ;;  %v4385_v41 = vadd.f32 %v4384_v34, %v4383_v12  ;;  %v7008_v8 = vpop.eup %7007  ;;  %v4386_v32 = vsel %vm4334_vm9, %v11668_v44, 0.0  ;;  %v2249_v33 = vadd.f32 1.0, %v7006_v6 }
 0x36f   : > { %7027 = vpow2.f32 %v6636_v21  ;;  %v11682_v21 = vmul.f32 %v7002_v14, %v16355_v42  ;;  %v7010_v17 = vpop.eup %7009  ;;  %v11690_v12 = vmul.f32 %v6990_v15, %v16254_v43  ;;  %v4388_v35 = vsel %vm4334_vm9, %v11677_v47, 0.0 }
 0x370   : > { %7029 = vrcp.f32 %v2247_v11  ;;  %v2109_v10 = vpop.xlane.xlu1 %2108  ;;  %v11687_v11 = vmul.f32 %v6988_v4, %v16327_v45  ;;  %v4387_v39 = vadd.f32 %v4386_v32, %v4385_v41  ;;  %v11695_v14 = vmul.f32 %v7008_v8, %v16306_v26 }
 0x371   : > { %7031 = vpow2.f32 %v6641_v16  ;;  %v6638_v48 = vmul.f32 -1.442695, %v2109_v10  ;;  %16356 = vst [vmem:[#allocation215_spill] sm:$0xff] %v11682_v21  ;;  %v7012_v16 = vpop.eup %7011  ;;  %16358 = vst [vmem:[#allocation195_spill] sm:$0xff] %v11690_v12  ;;  %v2378_v41 = vadd.f32 %v2377_v52, %v2376_v5  ;;  %v4390_v43 = vsel %vm4334_vm9, %v11682_v21, 0.0  ;;  %v2136_v8 = vpop.xlane.xlu0 %2135 }
 0x372   : > { %16357 = vst [vmem:[#allocation202_spill] sm:$0xff] %v11687_v11  ;;  %16359 = vst [vmem:[#allocation246_spill] sm:$0xff] %v11695_v14  ;;  %v7014_v10 = vpop.eup %7013  ;;  %v2251_v6 = vadd.f32 1.0, %v7012_v16  ;;  %v4389_v45 = vadd.f32 %v4388_v35, %v4387_v39  ;;  %v2379_v32 = vsel %vm357_vm0, %v11687_v11, 0.0  ;;  %v2381_v39 = vsel %vm357_vm0, %v11690_v12, 0.0 }
 0x373   : > { %7033 = vpow2.f32 %v6638_v48  ;;  %v7016_v4 = vpop.eup %7015  ;;  %v6645_v48 = vmul.f32 -1.442695, %v2130_v40  ;;  %v11707_v5 = vmul.f32 %v7004_v20, %v16330_v59  ;;  %v2256_v35 = vadd.f32 1.0, %v7010_v17 }
 0x374   : > { %7035 = vrcp.f32 %v2249_v33  ;;  %v2115_v34 = vpop.xlane.xlu1 %2114  ;;  %v7018_v15 = vpop.eup %7017  ;;  %v16360_v33 = vld [vmem:[#allocation146_spill] sm:$0xff]  ;;  %v2380_v21 = vadd.f32 %v2379_v32, %v2378_v41 }
 0x375   : > { %7037 = vrcp.f32 %v2254_v27  ;;  %v6640_v0 = vmul.f32 -1.442695, %v2115_v34  ;;  %v11702_v49 = vmul.f32 %v7016_v4, %v16360_v33  ;;  %v4391_v27 = vadd.f32 %v4390_v43, %v4389_v45 }
 0x376   : > { %7039 = vpow2.f32 %v6643_v37  ;;  %v4392_v37 = vsel %vm4334_vm9, %v11695_v14, 0.0  ;;  %v6647_v45 = vmul.f32 -1.442695, %v2136_v8  ;;  %v2382_v14 = vadd.f32 %v2381_v39, %v2380_v21 }
 0x377   : > { %7041 = vrcp.f32 %v2251_v6  ;;  %v4393_v11 = vadd.f32 %v4392_v37, %v4391_v27  ;;  %v4394_v43 = vsel %vm4334_vm9, %v11702_v49, 0.0  ;;  %v2383_v17 = vsel %vm357_vm0, %v11707_v5, 0.0 }
 0x378   : > { %v7020_v16 = vpop.eup %7019  ;;  %7043 = vpow2.f32 %v6640_v0  ;;  %v2121_v40 = vpop.xlane.xlu1 %2120  ;;  %v11719_v27 = vmul.f32 %v7014_v10, %v16333_v61  ;;  %v2384_v39 = vadd.f32 %v2383_v17, %v2382_v14  ;;  %v11727_v10 = vmul.f32 %v7018_v15, %v16337_v23 }
 0x379   : > { %v7022_v52 = vpop.eup %7021  ;;  %v2253_v34 = vadd.f32 1.0, %v7020_v16  ;;  %v6642_v6 = vmul.f32 -1.442695, %v2121_v40  ;;  %7045 = vpow2.f32 %v6645_v48  ;;  %v4395_v0 = vadd.f32 %v4394_v43, %v4393_v11 }
 0x37a   : > { %v7024_v4 = vpop.eup %7023  ;;  %v2258_v37 = vadd.f32 1.0, %v7022_v52  ;;  %v2387_v52 = vsel %vm357_vm0, %v11719_v27, 0.0 }
 0x37b   : > { %v7026_v12 = vpop.eup %7025  ;;  %7047 = vrcp.f32 %v2253_v34  ;;  %v11714_v59 = vmul.f32 %v7024_v4, %v16311_v2 }
 0x37c   : > { %v7028_v20 = vpop.eup %7027  ;;  %7049 = vpow2.f32 %v6642_v6  ;;  %v2127_v41 = vpop.xlane.xlu1 %2126 }
 0x37d   : > { %v7030_v48 = vpop.eup %7029  ;;  %7051 = vrcp.f32 %v2256_v35  ;;  %v2255_v32 = vadd.f32 1.0, %v7028_v20  ;;  %v6644_v8 = vmul.f32 -1.442695, %v2127_v41  ;;  %v4396_v16 = vsel %vm4334_vm9, %v11714_v59, 0.0 }
 0x37e   : > { %v7032_v40 = vpop.eup %7031  ;;  %7053 = vpow2.f32 %v6647_v45  ;;  %v11724_v21 = vmul.f32 %v7030_v48, %v16244_v30  ;;  %v4397_v11 = vadd.f32 %v4396_v16, %v4395_v0  ;;  %v2391_v48 = vsel %vm357_vm0, %v11727_v10, 0.0 }
 0x37f   : > { %7055 = vrcp.f32 %v2255_v32  ;;  %v2260_v14 = vadd.f32 1.0, %v7032_v40  ;;  %v11741_v40 = vmul.f32 %v7026_v12, %v16338_v7 }
 0x380   : > { %v7034_v61 = vpop.eup %7033  ;;  %v2385_v35 = vsel %vm357_vm0, %v11724_v21, 0.0  ;;  %7057 = vpow2.f32 %v6644_v8  ;;  %v2133_v34 = vpop.xlane.xlu1 %2132  ;;  %v4398_v6 = vrot.slane %v4397_v11, 4 }
 0x381   : > { %v7036_v4 = vpop.eup %7035  ;;  %v2386_v45 = vadd.f32 %v2385_v35, %v2384_v39  ;;  %v2257_v30 = vadd.f32 1.0, %v7034_v61  ;;  %v6646_v43 = vmul.f32 -1.442695, %v2133_v34  ;;  %7059 = vrcp.f32 %v2258_v37  ;;  %16361 = vst [vmem:[#allocation257_spill] sm:$0xff] %v11741_v40 }
 0x382   : > { %v7038_v0 = vpop.eup %7037  ;;  %v11734_v20 = vmul.f32 %v7036_v4, %v16335_v28  ;;  %v4399_v23 = vadd.f32 %v4398_v6, %v4397_v11  ;;  %v2395_v12 = vsel %vm357_vm0, %v11741_v40, 0.0  ;;  %v16446_v40 = vld [vmem:[#allocation10_spill] sm:$0xff] }
 0x383   : > { %v7040_v15 = vpop.eup %7039  ;;  %v2388_v17 = vadd.f32 %v2387_v52, %v2386_v45  ;;  %7061 = vrcp.f32 %v2257_v30 }
 0x384   : > { %v7042_v41 = vpop.eup %7041  ;;  %v2389_v32 = vsel %vm357_vm0, %v11734_v20, 0.0  ;;  %7063 = vpow2.f32 %v6646_v43  ;;  %v2139_v8 = vpop.xlane.xlu1 %2138  ;;  %v4400_v16 = vrot.slane %v4399_v23, 2  ;;  %v2262_v61 = vadd.f32 1.0, %v7040_v15 }
 0x385   : > { %v7044_v39 = vpop.eup %7043  ;;  %v2390_v28 = vadd.f32 %v2389_v32, %v2388_v17  ;;  %v11744_v37 = vmul.f32 %v7042_v41, %v16257_v25  ;;  %v6648_v11 = vmul.f32 -1.442695, %v2139_v8  ;;  %7065 = vrcp.f32 %v2260_v14 }
 0x386   : > { %v2259_v35 = vadd.f32 1.0, %v7044_v39  ;;  %v4401_v34 = vadd.f32 %v4400_v16, %v4399_v23  ;;  %v7046_v6 = vpop.eup %7045  ;;  %v11751_v25 = vmul.f32 %v7038_v0, %v16345_v9 }
 0x387   : > { %v2392_v4 = vadd.f32 %v2391_v48, %v2390_v28  ;;  %v2393_v52 = vsel %vm357_vm0, %v11744_v37, 0.0  ;;  %7067 = vpow2.f32 %v6648_v11  ;;  %v2264_v15 = vadd.f32 1.0, %v7046_v6 }
 0x388   : > { %v7048_v45 = vpop.eup %7047  ;;  %7069 = vrcp.f32 %v2259_v35  ;;  %v4402_v30 = vrot.slane %v4401_v34, 1  ;;  %16362 = vst [vmem:[#allocation164_spill] sm:$0xff] %v11751_v25  ;;  %v2399_v9 = vsel %vm357_vm0, %v11751_v25, 0.0 }
 0x389   : > { %v7050_v7 = vpop.eup %7049  ;;  %v2394_v43 = vadd.f32 %v2393_v52, %v2392_v4  ;;  %v11754_v14 = vmul.f32 %v7048_v45, %v16266_v56  ;;  %7071 = vrcp.f32 %v2262_v61 }
 0x38a   : > { %v7052_v23 = vpop.eup %7051  ;;  %v2261_v17 = vadd.f32 1.0, %v7050_v7  ;;  %v4403_v41 = vadd.f32 %v4402_v30, %v4401_v34 }
 0x38b   : > { %16363 = vst [vmem:[#allocation254_spill] sm:$0xff] %v11754_v14  ;;  %v7054_v48 = vpop.eup %7053  ;;  %v2396_v32 = vadd.f32 %v2395_v12, %v2394_v43  ;;  %v2397_v8 = vsel %vm357_vm0, %v11754_v14, 0.0  ;;  %v11764_v11 = vmul.f32 %v7052_v23, %v16271_v53 }
 0x38c   : > { %v7056_v16 = vpop.eup %7055  ;;  %7073 = vrcp.f32 %v2261_v17  ;;  %v4404_v39 = vmul.f32 0.00390625, %v4403_v41  ;;  %v2266_v61 = vadd.f32 1.0, %v7054_v48 }
 0x38d   : > { %v7058_v28 = vpop.eup %7057  ;;  %v2398_v0 = vadd.f32 %v2397_v8, %v2396_v32  ;;  %v11761_v56 = vmul.f32 %v7056_v16, %v16273_v18  ;;  %16365 = vst [vmem:[#allocation247_spill] sm:$0xff] %v11764_v11  ;;  %7075 = vrcp.f32 %v2264_v15  ;;  %v2403_v53 = vsel %vm357_vm0, %v11764_v11, 0.0 }
 0x38e   : > { %v2263_v35 = vadd.f32 1.0, %v7058_v28  ;;  %4406 = vrot.lane.b32.xlu0 %v4404_v39, %s7157_s7  ;;  %v7060_v34 = vpop.eup %7059 }
 0x38f   : > { %16364 = vst [vmem:[#allocation199_spill] sm:$0xff] %v11761_v56  ;;  %v2400_v6 = vadd.f32 %v2399_v9, %v2398_v0  ;;  %v2401_v4 = vsel %vm357_vm0, %v11761_v56, 0.0  ;;  %v11775_v7 = vmul.f32 %v7060_v34, %v16282_v36 }
 0x390   : > { %v7062_v52 = vpop.eup %7061  ;;  %7077 = vrcp.f32 %v2263_v35 }
 0x391   : > { %v7064_v45 = vpop.eup %7063  ;;  %v2402_v30 = vadd.f32 %v2401_v4, %v2400_v6  ;;  %v11770_v18 = vmul.f32 %v7062_v52, %v16284_v55  ;;  %16367 = vst [vmem:[#allocation203_spill] sm:$0xff] %v11775_v7  ;;  %7079 = vrcp.f32 %v2266_v61  ;;  %v2407_v55 = vsel %vm357_vm0, %v11775_v7, 0.0  ;;  %v16444_v7 = vld [vmem:[#allocation41_spill] sm:$0xff] }
 0x392   : > { %v2265_v12 = vadd.f32 1.0, %v7064_v45  ;;  %v7066_v43 = vpop.eup %7065 }
 0x393   : > { %16366 = vst [vmem:[#allocation11_spill] sm:$0xff] %v11770_v18  ;;  %v2404_v23 = vadd.f32 %v2403_v53, %v2402_v30  ;;  %v2405_v15 = vsel %vm357_vm0, %v11770_v18, 0.0  ;;  %v11782_v8 = vmul.f32 %v7066_v43, %v16286_v31 }
 0x394   : > { %v7068_v17 = vpop.eup %7067  ;;  %7081 = vrcp.f32 %v2265_v12 }
 0x395   : > { %v7070_v41 = vpop.eup %7069  ;;  %v2406_v48 = vadd.f32 %v2405_v15, %v2404_v23  ;;  %v2267_v32 = vadd.f32 1.0, %v7068_v17  ;;  %16368 = vst [vmem:[#allocation201_spill] sm:$0xff] %v11782_v8  ;;  %v2411_v61 = vsel %vm357_vm0, %v11782_v8, 0.0 }
 0x396   : > { %v11785_v36 = vmul.f32 %v7070_v41, %v16288_v29  ;;  %v7072_v16 = vpop.eup %7071 }
 0x397   : > { %v2408_v39 = vadd.f32 %v2407_v55, %v2406_v48  ;;  %7083 = vrcp.f32 %v2267_v32  ;;  %v11792_v35 = vmul.f32 %v7072_v16, %v16352_v1 }
 0x398   : > { %16369 = vst [vmem:[#allocation255_spill] sm:$0xff] %v11785_v36  ;;  %v2409_v28 = vsel %vm357_vm0, %v11785_v36, 0.0 }
 0x399   : > { %v7074_v9 = vpop.eup %7073  ;;  %v2410_v0 = vadd.f32 %v2409_v28, %v2408_v39  ;;  %16370 = vst [vmem:[#allocation237_spill] sm:$0xff] %v11792_v35  ;;  %v2415_v45 = vsel %vm357_vm0, %v11792_v35, 0.0 }
 0x39a   : > { %v11795_v31 = vmul.f32 %v7074_v9, %v16351_v57  ;;  %v7076_v34 = vpop.eup %7075 }
 0x39b   : > { %v2412_v29 = vadd.f32 %v2411_v61, %v2410_v0  ;;  %v11802_v30 = vmul.f32 %v7076_v34, %v16355_v42 }
 0x39c   : > { %16371 = vst [vmem:[#allocation221_spill] sm:$0xff] %v11795_v31  ;;  %v2413_v6 = vsel %vm357_vm0, %v11795_v31, 0.0 }
 0x39d   : > { %v7078_v4 = vpop.eup %7077  ;;  %v2414_v52 = vadd.f32 %v2413_v6, %v2412_v29  ;;  %16372 = vst [vmem:[#allocation241_spill] sm:$0xff] %v11802_v30  ;;  %v2419_v15 = vsel %vm357_vm0, %v11802_v30, 0.0  ;;  %v16438_v30 = vld [vmem:[#allocation30_spill] sm:$0xff] }
 0x39e   : > { %v11805_v53 = vmul.f32 %v7078_v4, %v16354_v24  ;;  %v7080_v1 = vpop.eup %7079  ;;  %v1100_v4 = vld [vmem:[%s14765_s3 + $0x70] sm:$0xff] }
 0x39f   : > { %v2416_v12 = vadd.f32 %v2415_v45, %v2414_v52  ;;  %v11812_v17 = vmul.f32 %v7080_v1, %v16360_v33  ;;  %v1099_v52 = vld [vmem:[%s14765_s3 + $0x68] sm:$0xff]  ;;  %v1098_v45 = vld [vmem:[%s14765_s3 + $0x60] sm:$0xff]  ;;  %v1097_v1 = vld [vmem:[%s14765_s3 + $0x58] sm:$0xff] }
 0x3a0   : > { %16373 = vst [vmem:[#allocation204_spill] sm:$0xff] %v11805_v53  ;;  %v2417_v57 = vsel %vm357_vm0, %v11805_v53, 0.0 }
 0x3a1   : > { %v7082_v43 = vpop.eup %7081  ;;  %v2418_v23 = vadd.f32 %v2417_v57, %v2416_v12  ;;  %16374 = vst [vmem:[#allocation243_spill] sm:$0xff] %v11812_v17  ;;  %v2423_v16 = vsel %vm357_vm0, %v11812_v17, 0.0  ;;  %v1096_v12 = vld [vmem:[%s14765_s3 + $0x50] sm:$0xff]  ;;  %v1095_v57 = vld [vmem:[%s14765_s3 + $0x48] sm:$0xff] }
 0x3a2   : > { %v11815_v41 = vmul.f32 %v7082_v43, %v16306_v26  ;;  %v1094_v43 = vld [vmem:[%s14765_s3 + $0x40] sm:$0xff]  ;;  %v16547_v17 = vld [vmem:[#allocation127_spill] sm:$0xff] }
 0x3a3   : > { %v2420_v42 = vadd.f32 %v2419_v15, %v2418_v23  ;;  %v11861_v15 = vpop.f32.mrf.mxu1 }
 0x3a4   : > { %16375 = vst [vmem:[#allocation138_spill] sm:$0xff] %v11815_v41  ;;  %v7084_v48 = vpop.eup %7083  ;;  %v2421_v24 = vsel %vm357_vm0, %v11815_v41, 0.0  ;;  %16377 = vst [vmem:[#allocation166_spill] sm:$0xff] %v11861_v15 }
 0x3a5   : > { %v2422_v32 = vadd.f32 %v2421_v24, %v2420_v42  ;;  %v11820_v55 = vmul.f32 %v7084_v48, %v16311_v2  ;;  %v1101_v2 = vld [vmem:[%s14765_s3 + $0x78] sm:$0xff] }
 0x3a7   : > { %16376 = vst [vmem:[#allocation149_spill] sm:$0xff] %v11820_v55  ;;  %v2424_v39 = vadd.f32 %v2423_v16, %v2422_v32  ;;  %v2425_v33 = vsel %vm357_vm0, %v11820_v55, 0.0 }
 0x3a9   : > { %v2426_v28 = vadd.f32 %v2425_v33, %v2424_v39 }
 0x3ab   : > { %v2427_v9 = vrot.slane %v2426_v28, 4 }
 0x3ad   : > { %v2428_v26 = vadd.f32 %v2427_v9, %v2426_v28  ;;  %v16378_v9 = vld [vmem:[#allocation16_spill] sm:$0xff] }
 0x3af   : > { %v2429_v0 = vrot.slane %v2428_v26, 2 }
 0x3b1   : > { %v2430_v61 = vadd.f32 %v2429_v0, %v2428_v26 }
 0x3b3   : > { %v2431_v34 = vrot.slane %v2430_v61, 1 }
 0x3b5   : > { %v2432_v29 = vadd.f32 %v2431_v34, %v2430_v61 }
 0x3b7   : > { %v2434_v6 = vmul.f32 0.00390625, %v2432_v29 }
 0x3b9   : > { %6727 = vmatmul.mubr.msk.f32.vlgmr.msra.gmra.mxu1 %vm357_vm0, %v2434_v6  ;;  %v16379_v6 = vld [vmem:[#allocation252_spill] sm:$0xff] }
 0x3ba   : > { %6730 = vmatpush3.msra.mxu1 %v1101_v2  ;;  %6745 = vmatprep.mubr.msk.f32.mxu1 %vm7159_vm10, %v16322_v3 }
 0x3bb   : > { %6731 = vmatprep.subr.mxu1 %v16322_v3 }
 0x3bc   : > { %6732 = vmatpush3.msra.mxu1 %v1100_v4  ;;  %v16380_v4 = vld [vmem:[#allocation156_spill] sm:$0xff] }
 0x3bd   : > { %6733 = vmatprep.subr.mxu1 %v16322_v3 }
 0x3be   : > { %6734 = vmatpush3.msra.mxu1 %v1099_v52 }
 0x3bf   : > { %6735 = vmatprep.subr.mxu1 %v16322_v3 }
 0x3c0   : > { %6736 = vmatpush3.msra.mxu1 %v1098_v45  ;;  %v16382_v45 = vld [vmem:[#allocation207_spill] sm:$0xff] }
 0x3c1   : > { %6737 = vmatprep.subr.mxu1 %v16322_v3 }
 0x3c2   : > { %6738 = vmatpush3.msra.mxu1 %v1097_v1 }
 0x3c3   : > { %6739 = vmatprep.subr.mxu1 %v16322_v3 }
 0x3c4   : > { %6740 = vmatpush3.msra.mxu1 %v1096_v12  ;;  %v16384_v12 = vld [vmem:[#allocation27_spill] sm:$0xff] }
 0x3c5   : > { %6741 = vmatprep.subr.mxu1 %v16322_v3 }
 0x3c6   : > { %6742 = vmatpush3.msra.mxu1 %v1095_v57 }
 0x3c7   : > { %6743 = vmatprep.subr.mxu1 %v16322_v3 }
 0x3c8   : > { %6744 = vmatpush3.msra.mxu1 %v1094_v43  ;;  %v16385_v43 = vld [vmem:[#allocation225_spill] sm:$0xff] }
 0x400   : > { %v4407_v23 = vpop.permute.xlu0 %4406 }
 0x401   : > { %6746 = vmatmul.mubr.msk.f32.vlgmr.msra.gmra.mxu1 %vm357_vm0, %v4407_v23 }
 0x479   : > { %v11863_v42 = vpop.f32.mrf.mxu1 }
 0x47b   : > { %v6728_v48 = vpop.f32.mrf.mxu1 }
 0x47c   : > { %v16386_v48 = vld [vmem:[#allocation226_spill] sm:$0xff] }
 0x4c1   : > { %v4476_v24 = vpop.f32.mrf.mxu1 }
 0x4c2   : > { %v6684_v32 = vmul.f32 -1.442695, %v4476_v24 }
 0x4c3   : > { %v6747_v16 = vpop.f32.mrf.mxu1 }
 0x4c4   : > { %7085 = vpow2.f32 %v6684_v32  ;;  %v16387_v32 = vld [vmem:[#allocation230_spill] sm:$0xff] }
 0x4d1   : > { %v7086_v39 = vpop.eup %7085 }
 0x4d2   : > { %v4483_v33 = vadd.f32 1.0, %v7086_v39  ;;  %v16388_v39 = vld [vmem:[#allocation99_spill] sm:$0xff] }
 0x4d4   : > { %7087 = vrcp.f32 %v4483_v33 }
 0x4e1   : > { %v7088_v28 = vpop.eup %7087 }
 0x4e2   : > { %v4489_v26 = vrot.slane %v7088_v28, %v16378_v9 }
 0x4e4   : > { %4491 = vrot.lane.b32.xlu1 %v4489_v26, %s7157_s7 }
 0x556   : > { %v4492_v3 = vpop.permute.xlu1 %4491 }
 0x557   : > { %v4495_v0 = vmul.f32 %v4492_v3, %v11415_v62  ;;  %v4494_v61 = vmul.f32 %v4492_v3, %v11418_v22  ;;  %v4497_v34 = vmul.f32 %v4492_v3, %v11431_v58  ;;  %v4496_v29 = vmul.f32 %v4492_v3, %v11427_v60  ;;  %v16381_v62 = vld [vmem:[#allocation147_spill] sm:$0xff] }
 0x558   : > { %v4499_v2 = vmul.f32 %v4492_v3, %v16379_v6  ;;  %v4498_v52 = vmul.f32 %v4492_v3, %v16380_v4  ;;  %v4501_v22 = vmul.f32 %v4492_v3, %v16381_v62  ;;  %v4500_v1 = vmul.f32 %v4492_v3, %v16382_v45  ;;  %v16383_v60 = vld [vmem:[#allocation251_spill] sm:$0xff]  ;;  %v16391_v4 = vld [vmem:[#allocation244_spill] sm:$0xff] }
 0x559   : > { %4560 = vrot.lane.b32.xlu0 %v4495_v0, %s7157_s7  ;;  %4558 = vrot.lane.b32.xlu1 %v4494_v61, %s7157_s7  ;;  %v4503_v58 = vmul.f32 %v4492_v3, %v16383_v60  ;;  %v4502_v57 = vmul.f32 %v4492_v3, %v16384_v12  ;;  %v4505_v23 = vmul.f32 %v4492_v3, %v16385_v43  ;;  %v16389_v0 = vld [vmem:[#allocation169_spill] sm:$0xff]  ;;  %v1083_v43 = vld [vmem:[%s14764_s2 + $0x18] sm:$0xff] }
 0x55a   : > { %v4504_v24 = vmul.f32 %v4492_v3, %v16386_v48  ;;  %v4507_v16 = vmul.f32 %v4492_v3, %v16387_v32  ;;  %v4506_v33 = vmul.f32 %v4492_v3, %v16388_v39  ;;  %v4509_v28 = vmul.f32 %v4492_v3, %v11561_v13  ;;  %v7093_v48 = vld [vmem:[%s14764_s2 + $0x10] sm:$0xff] }
 0x55b   : > { %v4508_v26 = vmul.f32 %v4492_v3, %v11558_v54  ;;  %v4511_v61 = vmul.f32 %v4492_v3, %v16389_v0  ;;  %v4513_v6 = vmul.f32 %v4492_v3, %v11627_v38  ;;  %v4515_v54 = vmul.f32 %v4492_v3, %v11632_v50  ;;  %v16392_v38 = vld [vmem:[#allocation223_spill] sm:$0xff] }
 0x55c   : > { %v4514_v13 = vmul.f32 %v4492_v3, %v11624_v19  ;;  %v4516_v62 = vmul.f32 %v4492_v3, %v11642_v46  ;;  %v4521_v19 = vmul.f32 %v4492_v3, %v11677_v47  ;;  %v4520_v50 = vmul.f32 %v4492_v3, %v11668_v44  ;;  %v16393_v46 = vld [vmem:[#allocation246_spill] sm:$0xff]  ;;  %v16404_v0 = vld [vmem:[#allocation15_spill] sm:$0xff] }
 0x55d   : > { %4564 = vrot.lane.b32.xlu0 %v4497_v34, %s7157_s7  ;;  %4562 = vrot.lane.b32.xlu1 %v4496_v29, %s7157_s7  ;;  %v16390_v34 = vld [vmem:[#allocation231_spill] sm:$0xff]  ;;  %v4523_v45 = vmul.f32 %v4492_v3, %v16393_v46  ;;  %v6650_v44 = vmul.f32 -1.442695, %v11863_v42  ;;  %v16416_v46 = vld [vmem:[#allocation152_spill] sm:$0xff] }
 0x55e   : > { %v4510_v29 = vmul.f32 %v4492_v3, %v16390_v34  ;;  %v16406_v34 = vld [vmem:[#allocation8_spill] sm:$0xff] }
 0x55f   : > { %7089 = vpow2.f32 %v6650_v44 }
 0x561   : > { %4568 = vrot.lane.b32.xlu0 %v4499_v2, %s7157_s7  ;;  %4566 = vrot.lane.b32.xlu1 %v4498_v52, %s7157_s7  ;;  %v4512_v2 = vmul.f32 %v4492_v3, %v11602_v63  ;;  %v4517_v52 = vmul.f32 %v4492_v3, %v16391_v4  ;;  %v4519_v63 = vmul.f32 %v4492_v3, %v11662_v51 }
 0x562   : > { %v4525_v51 = vmul.f32 %v4492_v3, %v11714_v59  ;;  %v1084_v59 = vld [vmem:[%s14764_s2 + $0x20] sm:$0xff]  ;;  %v11977_v4 = vrot.slane %v1083_v43, %v16378_v9 }
 0x564   : > { %16411 = vst [vmem:[#allocation24_spill] sm:$0xff] %v11977_v4 }
 0x565   : > { %4572 = vrot.lane.b32.xlu0 %v4501_v22, %s7157_s7  ;;  %4570 = vrot.lane.b32.xlu1 %v4500_v1, %s7157_s7  ;;  %v4518_v22 = vmul.f32 %v4492_v3, %v16392_v38  ;;  %v16394_v1 = vld [vmem:[#allocation215_spill] sm:$0xff] }
 0x566   : > { %v4522_v60 = vmul.f32 %v4492_v3, %v16394_v1  ;;  %v11992_v1 = vrot.slane %v1083_v43, %v16404_v0 }
 0x569   : > { %4576 = vrot.lane.b32.xlu0 %v4503_v58, %s7157_s7  ;;  %4574 = vrot.lane.b32.xlu1 %v4502_v57, %s7157_s7  ;;  %v4524_v58 = vmul.f32 %v4492_v3, %v11702_v49  ;;  %v16396_v3 = vld [vmem:[#allocation6_spill] sm:$0xff] }
 0x56a   : > { %v11945_v42 = vrot.slane %v1084_v59, %v16396_v3 }
 0x56c   : > { %v7090_v47 = vpop.eup %7089  ;;  %16398 = vst [vmem:[#allocation22_spill] sm:$0xff] %v11945_v42 }
 0x56d   : > { %4580 = vrot.lane.b32.xlu0 %v4505_v23, %s7157_s7  ;;  %4578 = vrot.lane.b32.xlu1 %v4504_v24, %s7157_s7  ;;  %v2511_v12 = vadd.f32 1.0, %v7090_v47  ;;  %v11942_v23 = vrot.slane %v1083_v43, %v16396_v3  ;;  %v16399_v24 = vld [vmem:[#allocation12_spill] sm:$0xff]  ;;  %v16418_v47 = vld [vmem:[#allocation25_spill] sm:$0xff] }
 0x56e   : > { %v11951_v32 = vrot.slane %v7093_v48, %v16399_v24 }
 0x56f   : > { %7091 = vrcp.f32 %v2511_v12  ;;  %16397 = vst [vmem:[#allocation161_spill] sm:$0xff] %v11942_v23 }
 0x571   : > { %4584 = vrot.lane.b32.xlu0 %v4507_v16, %s7157_s7  ;;  %4582 = vrot.lane.b32.xlu1 %v4506_v33, %s7157_s7  ;;  %v16400_v16 = vld [vmem:[#allocation7_spill] sm:$0xff] }
 0x572   : > { %v11954_v39 = vrot.slane %v1083_v43, %v16400_v16  ;;  %v11957_v33 = vrot.slane %v1084_v59, %v16400_v16 }
 0x574   : > { %16401 = vst [vmem:[#allocation128_spill] sm:$0xff] %v11954_v39  ;;  %16402 = vst [vmem:[#allocation205_spill] sm:$0xff] %v11957_v33 }
 0x575   : > { %4588 = vrot.lane.b32.xlu0 %v4509_v28, %s7157_s7  ;;  %4586 = vrot.lane.b32.xlu1 %v4508_v26, %s7157_s7  ;;  %v16403_v28 = vld [vmem:[#allocation14_spill] sm:$0xff] }
 0x576   : > { %v11960_v26 = vrot.slane %v7093_v48, %v16403_v28 }
 0x579   : > { %4592 = vrot.lane.b32.xlu0 %v4511_v61, %s7157_s7  ;;  %4590 = vrot.lane.b32.xlu1 %v4510_v29, %s7157_s7  ;;  %v11963_v61 = vrot.slane %v7093_v48, %v16404_v0  ;;  %v11966_v29 = vrot.slane %v1083_v43, %v16406_v34  ;;  %v16420_v48 = vld [vmem:[#allocation20_spill] sm:$0xff] }
 0x57b   : > { %16405 = vst [vmem:[#allocation220_spill] sm:$0xff] %v11963_v61  ;;  %16407 = vst [vmem:[#allocation35_spill] sm:$0xff] %v11966_v29 }
 0x57c   : > { %v7092_v57 = vpop.eup %7091 }
 0x57d   : > { %4596 = vrot.lane.b32.xlu0 %v4513_v6, %s7157_s7  ;;  %4594 = vrot.lane.b32.xlu1 %v4512_v2, %s7157_s7  ;;  %v11939_v49 = vrot.slane %v7092_v57, %v16378_v9  ;;  %v11969_v6 = vrot.slane %v1084_v59, %v16406_v34  ;;  %v11972_v2 = vrot.slane %v1084_v59, %v16399_v24  ;;  %v16419_v57 = vld [vmem:[#allocation196_spill] sm:$0xff] }
 0x57f   : > { %16395 = vst [vmem:[#allocation168_spill] sm:$0xff] %v11939_v49  ;;  %16408 = vst [vmem:[#allocation148_spill] sm:$0xff] %v11969_v6  ;;  %v12000_v12 = vmul.f32 %v11939_v49, %v16418_v47  ;;  %v12004_v3 = vmul.f32 %v11939_v49, %v16419_v57  ;;  %v12008_v16 = vmul.f32 %v11939_v49, %v16420_v48  ;;  %v16427_v57 = vld [vmem:[#allocation195_spill] sm:$0xff] }
 0x580   : > { %16409 = vst [vmem:[#allocation143_spill] sm:$0xff] %v11972_v2  ;;  %v12025_v47 = vrot.slane %v1084_v59, %v16404_v0  ;;  %v12043_v0 = vmul.f32 %v11939_v49, %v11707_v5  ;;  %v12047_v48 = vmul.f32 %v11939_v49, %v11734_v20 }
 0x581   : > { %4600 = vrot.lane.b32.xlu0 %v4515_v54, %s7157_s7  ;;  %4598 = vrot.lane.b32.xlu1 %v4514_v13, %s7157_s7  ;;  %v16410_v54 = vld [vmem:[#allocation217_spill] sm:$0xff] }
 0x582   : > { %v2519_v13 = vmul.f32 %v11939_v49, %v16410_v54  ;;  %16426 = vst [vmem:[#allocation249_spill] sm:$0xff] %v12025_v47  ;;  %16429 = vst [vmem:[#allocation209_spill] sm:$0xff] %v12043_v0 }
 0x583   : > { %16430 = vst [vmem:[#allocation75_spill] sm:$0xff] %v12047_v48 }
 0x585   : > { %4604 = vrot.lane.b32.xlu0 %v4517_v52, %s7157_s7  ;;  %4602 = vrot.lane.b32.xlu1 %v4516_v62, %s7157_s7  ;;  %v16412_v52 = vld [vmem:[#allocation256_spill] sm:$0xff] }
 0x586   : > { %v2518_v62 = vmul.f32 %v11939_v49, %v16412_v52 }
 0x589   : > { %4608 = vrot.lane.b32.xlu0 %v4519_v63, %s7157_s7  ;;  %4606 = vrot.lane.b32.xlu1 %v4518_v22, %s7157_s7  ;;  %v16413_v63 = vld [vmem:[#allocation19_spill] sm:$0xff]  ;;  %v11985_v22 = vrot.slane %v1083_v43, %v16403_v28 }
 0x58a   : > { %v11982_v38 = vrot.slane %v1083_v43, %v16413_v63  ;;  %v12013_v52 = vrot.slane %v1084_v59, %v16413_v63  ;;  %v16428_v63 = vld [vmem:[#allocation202_spill] sm:$0xff] }
 0x58c   : > { %16414 = vst [vmem:[#allocation192_spill] sm:$0xff] %v11982_v38  ;;  %16422 = vst [vmem:[#allocation234_spill] sm:$0xff] %v12013_v52 }
 0x58d   : > { %4612 = vrot.lane.b32.xlu0 %v4521_v19, %s7157_s7  ;;  %4610 = vrot.lane.b32.xlu1 %v4520_v50, %s7157_s7  ;;  %v16415_v19 = vld [vmem:[#allocation173_spill] sm:$0xff] }
 0x58e   : > { %v2521_v50 = vmul.f32 %v11939_v49, %v16415_v19  ;;  %v12016_v19 = vrot.slane %v1083_v43, %v16399_v24  ;;  %v12054_v43 = vmul.f32 %v11939_v49, %v11719_v27 }
 0x590   : > { %16423 = vst [vmem:[#allocation253_spill] sm:$0xff] %v12016_v19  ;;  %16431 = vst [vmem:[#allocation175_spill] sm:$0xff] %v12054_v43 }
 0x591   : > { %4616 = vrot.lane.b32.xlu0 %v4523_v45, %s7157_s7  ;;  %4614 = vrot.lane.b32.xlu1 %v4522_v60, %s7157_s7  ;;  %v2520_v45 = vmul.f32 %v11939_v49, %v16416_v46  ;;  %v12019_v46 = vrot.slane %v1084_v59, %v16378_v9  ;;  %v12037_v9 = vmul.f32 %v11939_v49, %v11724_v21 }
 0x593   : > { %16424 = vst [vmem:[#allocation29_spill] sm:$0xff] %v12019_v46 }
 0x595   : > { %4620 = vrot.lane.b32.xlu0 %v4525_v51, %s7157_s7  ;;  %4618 = vrot.lane.b32.xlu1 %v4524_v58, %s7157_s7  ;;  %v16417_v58 = vld [vmem:[#allocation165_spill] sm:$0xff] }
 0x596   : > { %v11996_v44 = vmul.f32 %v11939_v49, %v16417_v58  ;;  %v12022_v58 = vrot.slane %v1084_v59, %v16403_v28 }
 0x598   : > { %16425 = vst [vmem:[#allocation160_spill] sm:$0xff] %v12022_v58 }
 0x5cb   : > { %v4561_v60 = vpop.permute.xlu0 %4560  ;;  %v4559_v51 = vpop.permute.xlu1 %4558 }
 0x5cc   : > { %v4655_v34 = vadd.f32 %v4561_v60, %v2519_v13  ;;  %v12010_v54 = vadd.f32 %v4559_v51, %v2518_v62  ;;  %v12029_v13 = vmul.f32 %v11939_v49, %v16427_v57  ;;  %v12033_v51 = vmul.f32 %v11939_v49, %v16428_v63 }
 0x5ce   : > { %16421 = vst [vmem:[#allocation171_spill] sm:$0xff] %v12010_v54  ;;  %v4687_v62 = vrot.slane %v4655_v34, 7  ;;  %v4783_v60 = vrot.slane %v4655_v34, 1  ;;  %v4919_v57 = vmul.f32 %v11977_v4, %v4655_v34  ;;  %v5127_v24 = vmul.f32 %v11963_v61, %v4655_v34 }
 0x5cf   : > { %v4565_v59 = vpop.permute.xlu0 %4564  ;;  %v4563_v28 = vpop.permute.xlu1 %4562  ;;  %v5363_v15 = vmul.f32 %v11966_v29, %v4655_v34  ;;  %v16432_v5 = vrot.slane %v12010_v54, 7  ;;  %v16434_v20 = vrot.slane %v12010_v54, 1  ;;  %v12069_v27 = vmul.f32 %v11977_v4, %v12010_v54 }
 0x5d0   : > { %v12050_v63 = vadd.f32 %v4565_v59, %v2521_v50  ;;  %v4656_v21 = vadd.f32 %v4563_v28, %v2520_v45  ;;  %v16435_v59 = vld [vmem:[#allocation32_spill] sm:$0xff]  ;;  %v12073_v28 = vmul.f32 %v11963_v61, %v12010_v54 }
 0x5d1   : > { %v4748_v55 = vsel %vm1134_vm11, %v16432_v5, %v4687_v62  ;;  %v4844_v50 = vsel %vm1231_vm12, %v16434_v20, %v4783_v60  ;;  %16436 = vst [vmem:[#allocation23_spill] sm:$0xff] %v12069_v27  ;;  %v12079_v5 = vmul.f32 %v11966_v29, %v12010_v54 }
 0x5d2   : > { %v4751_v45 = vmul.f32 %v4748_v55, %v16435_v59  ;;  %16437 = vst [vmem:[#allocation139_spill] sm:$0xff] %v12073_v28  ;;  %v4846_v41 = vmul.f32 %v4844_v50, %v16438_v30  ;;  %v4688_v35 = vrot.slane %v4656_v21, 7  ;;  %v12083_v55 = vmul.f32 %v11939_v49, %v11744_v37 }
 0x5d3   : > { %16439 = vst [vmem:[#allocation224_spill] sm:$0xff] %v12079_v5  ;;  %v4569_v20 = vpop.permute.xlu0 %4568  ;;  %v4921_v28 = vmul.f32 %v11977_v4, %v12050_v63  ;;  %v12091_v50 = vmul.f32 %v11939_v49, %v11727_v10  ;;  %v5129_v30 = vmul.f32 %v11963_v61, %v12050_v63  ;;  %v16442_v5 = vrot.slane %v12050_v63, 7  ;;  %v4567_v54 = vpop.permute.xlu1 %4566  ;;  %v16443_v10 = vld [vmem:[#allocation38_spill] sm:$0xff] }
 0x5d4   : > { %16440 = vst [vmem:[#allocation214_spill] sm:$0xff] %v12083_v55  ;;  %v4883_v59 = vmul.f32 %v11951_v32, %v4751_v45  ;;  %v5327_v34 = vmul.f32 %v11982_v38, %v4751_v45  ;;  %v4747_v27 = vsel %vm1134_vm11, %v4687_v62, %v4688_v35  ;;  %v5365_v8 = vmul.f32 %v11966_v29, %v12050_v63 }
 0x5d5   : > { %16441 = vst [vmem:[#allocation92_spill] sm:$0xff] %v12091_v50  ;;  %v4746_v37 = vsel %vm1134_vm11, %v4688_v35, %v16442_v5  ;;  %v4752_v31 = vmul.f32 %v4747_v27, %v16443_v10  ;;  %v12107_v11 = vmul.f32 %v11954_v39, %v4846_v41  ;;  %v5091_v18 = vmul.f32 %v11960_v26, %v4751_v45 }
 0x5d6   : > { %v4951_v53 = vadd.f32 %v4919_v57, %v4883_v59  ;;  %v4753_v36 = vmul.f32 %v4746_v37, %v16444_v7  ;;  %v5395_v25 = vadd.f32 %v5363_v15, %v5327_v34  ;;  %v4784_v56 = vrot.slane %v4656_v21, 1  ;;  %v16449_v37 = vld [vmem:[#allocation36_spill] sm:$0xff]  ;;  %v16450_v7 = vld [vmem:[#allocation39_spill] sm:$0xff] }
 0x5d7   : > { %16445 = vst [vmem:[#allocation17_spill] sm:$0xff] %v12107_v11  ;;  %v4573_v5 = vpop.permute.xlu0 %4572  ;;  %v12111_v2 = vmul.f32 %v16446_v40, %v4846_v41  ;;  %v4884_v35 = vmul.f32 %v11951_v32, %v4752_v31  ;;  %v4920_v62 = vmul.f32 %v11977_v4, %v4656_v21  ;;  %v5092_v57 = vmul.f32 %v11960_v26, %v4752_v31 }
 0x5d8   : > { %v16448_v59 = vrot.slane %v12050_v63, 1  ;;  %v4843_v45 = vsel %vm1231_vm12, %v4783_v60, %v4784_v56  ;;  %v5328_v15 = vmul.f32 %v11982_v38, %v4752_v31  ;;  %v5329_v34 = vmul.f32 %v11982_v38, %v4753_v36 }
 0x5d9   : > { %16447 = vst [vmem:[#allocation34_spill] sm:$0xff] %v12111_v2  ;;  %v4847_v10 = vmul.f32 %v4843_v45, %v16449_v37  ;;  %v4952_v2 = vadd.f32 %v4920_v62, %v4884_v35  ;;  %v5128_v49 = vmul.f32 %v11963_v61, %v4656_v21  ;;  %v4885_v14 = vmul.f32 %v11951_v32, %v4753_v36 }
 0x5da   : > { %v4842_v27 = vsel %vm1231_vm12, %v4784_v56, %v16448_v59  ;;  %v5093_v50 = vmul.f32 %v11960_v26, %v4753_v36  ;;  %v5364_v59 = vmul.f32 %v11966_v29, %v4656_v21  ;;  %v12130_v55 = vadd.f32 %v5365_v8, %v5329_v34  ;;  %v4571_v56 = vpop.permute.xlu1 %4570 }
 0x5db   : > { %v4848_v11 = vmul.f32 %v4842_v27, %v16450_v7  ;;  %v4577_v60 = vpop.permute.xlu0 %4576  ;;  %v4987_v31 = vmul.f32 %v11954_v39, %v4847_v10  ;;  %v5160_v45 = vadd.f32 %v5128_v49, %v5092_v57  ;;  %v5195_v27 = vmul.f32 %v16446_v40, %v4847_v10 }
 0x5dc   : > { %v5396_v35 = vadd.f32 %v5364_v59, %v5328_v15  ;;  %v5431_v62 = vmul.f32 %v11985_v22, %v4847_v10  ;;  %v12138_v36 = vadd.f32 %v4569_v20, %v11996_v44  ;;  %v5159_v21 = vadd.f32 %v5127_v24, %v5091_v18 }
 0x5dd   : > { %v4988_v43 = vmul.f32 %v11954_v39, %v4848_v11  ;;  %v5432_v37 = vmul.f32 %v11985_v22, %v4848_v11  ;;  %v5019_v8 = vadd.f32 %v4987_v31, %v4951_v53  ;;  %v5196_v7 = vmul.f32 %v16446_v40, %v4848_v11 }
 0x5de   : > { %v12142_v48 = vmul.f32 %v11985_v22, %v4846_v41  ;;  %v4953_v0 = vadd.f32 %v4921_v28, %v4885_v14  ;;  %v5463_v49 = vadd.f32 %v5431_v62, %v5395_v25  ;;  %v5161_v15 = vadd.f32 %v5129_v30, %v5093_v50  ;;  %v4575_v25 = vpop.permute.xlu1 %4574 }
 0x5df   : > { %v5020_v34 = vadd.f32 %v4988_v43, %v4952_v2  ;;  %v12144_v57 = vadd.f32 %v5432_v37, %v5396_v35  ;;  %v12146_v59 = vadd.f32 %v5195_v27, %v5159_v21  ;;  %v12148_v10 = vadd.f32 %v5196_v7, %v5160_v45  ;;  %v4581_v41 = vpop.permute.xlu0 %4580  ;;  %v16460_v35 = vld [vmem:[#allocation43_spill] sm:$0xff] }
 0x5e0   : > { %16451 = vst [vmem:[#allocation190_spill] sm:$0xff] %v12142_v48  ;;  %v4691_v44 = vrot.slane %v12138_v36, 7  ;;  %v12152_v18 = vadd.f32 %v11992_v1, %v5019_v8  ;;  %v15169_v11 = vrot.slane %v12138_v36, 1  ;;  %v4658_v14 = vadd.f32 %v4567_v54, %v12000_v12  ;;  %v16461_v8 = vld [vmem:[#allocation54_spill] sm:$0xff] }
 0x5e1   : > { %16452 = vst [vmem:[#allocation9_spill] sm:$0xff] %v12144_v57  ;;  %v12155_v53 = vadd.f32 %v11992_v1, %v5020_v34  ;;  %v12159_v2 = vmul.f32 0.0, %v5463_v49  ;;  %v4923_v7 = vmul.f32 %v11977_v4, %v12138_v36  ;;  %v5131_v30 = vmul.f32 %v11963_v61, %v12138_v36 }
 0x5e2   : > { %16453 = vst [vmem:[#allocation21_spill] sm:$0xff] %v12152_v18  ;;  %v5367_v43 = vmul.f32 %v11966_v29, %v12138_v36  ;;  %v4690_v24 = vrot.slane %v4658_v14, 7  ;;  %v4786_v28 = vrot.slane %v4658_v14, 1  ;;  %v12168_v20 = vadd.f32 %v4573_v5, %v12004_v3 }
 0x5e3   : > { %16454 = vst [vmem:[#allocation188_spill] sm:$0xff] %v12155_v53  ;;  %16455 = vst [vmem:[#allocation245_spill] sm:$0xff] %v12159_v2  ;;  %v12171_v12 = vadd.f32 %v4571_v56, %v12008_v16  ;;  %v4922_v54 = vmul.f32 %v11977_v4, %v4658_v14  ;;  %v12175_v50 = vadd.f32 %v4577_v60, %v12029_v13  ;;  %v16456_v3 = vrot.slane %v12050_v63, 7  ;;  %v16459_v60 = vld [vmem:[#allocation58_spill] sm:$0xff] }
 0x5e4   : > { %v12178_v37 = vadd.f32 %v4575_v25, %v12033_v51  ;;  %v12181_v31 = vadd.f32 %v4581_v41, %v12037_v9  ;;  %v4744_v45 = vsel %vm1134_vm11, %v4690_v24, %v4691_v44  ;;  %v4840_v13 = vsel %vm1231_vm12, %v4786_v28, %v15169_v11  ;;  %v16458_v9 = vld [vmem:[#allocation53_spill] sm:$0xff] }
 0x5e5   : > { %v4745_v16 = vsel %vm1134_vm11, %v16456_v3, %v4690_v24  ;;  %v16457_v5 = vrot.slane %v12050_v63, 1  ;;  %v4755_v27 = vmul.f32 %v4744_v45, %v16459_v60  ;;  %v5130_v21 = vmul.f32 %v11963_v61, %v4658_v14 }
 0x5e6   : > { %v4754_v56 = vmul.f32 %v4745_v16, %v16458_v9  ;;  %v4850_v34 = vmul.f32 %v4840_v13, %v16461_v8  ;;  %v5366_v49 = vmul.f32 %v11966_v29, %v4658_v14  ;;  %v4925_v45 = vmul.f32 %v11977_v4, %v12168_v20 }
 0x5e7   : > { %v4841_v51 = vsel %vm1231_vm12, %v16457_v5, %v4786_v28  ;;  %v4887_v24 = vmul.f32 %v11951_v32, %v4755_v27  ;;  %v5095_v16 = vmul.f32 %v11960_v26, %v4755_v27  ;;  %v4692_v14 = vrot.slane %v12171_v12, 7 }
 0x5e8   : > { %v4849_v62 = vmul.f32 %v4841_v51, %v16460_v35  ;;  %v4886_v63 = vmul.f32 %v11951_v32, %v4754_v56  ;;  %v5094_v3 = vmul.f32 %v11960_v26, %v4754_v56  ;;  %v5330_v51 = vmul.f32 %v11982_v38, %v4754_v56 }
 0x5e9   : > { %v5133_v11 = vmul.f32 %v11963_v61, %v12168_v20  ;;  %v5369_v41 = vmul.f32 %v11966_v29, %v12168_v20  ;;  %v4955_v25 = vadd.f32 %v4923_v7, %v4887_v24  ;;  %v4990_v57 = vmul.f32 %v11954_v39, %v4850_v34 }
 0x5ea   : > { %v4989_v28 = vmul.f32 %v11954_v39, %v4849_v62  ;;  %v5197_v13 = vmul.f32 %v16446_v40, %v4849_v62  ;;  %v4954_v5 = vadd.f32 %v4922_v54, %v4886_v63  ;;  %v5198_v2 = vmul.f32 %v16446_v40, %v4850_v34 }
 0x5eb   : > { %v4788_v18 = vrot.slane %v12171_v12, 1  ;;  %v5162_v53 = vadd.f32 %v5130_v21, %v5094_v3  ;;  %v5398_v8 = vadd.f32 %v5366_v49, %v5330_v51  ;;  %v5433_v54 = vmul.f32 %v11985_v22, %v4849_v62  ;;  %v16466_v62 = vld [vmem:[#allocation78_spill] sm:$0xff] }
 0x5ec   : > { %v5021_v48 = vadd.f32 %v4989_v28, %v4953_v0  ;;  %v5163_v63 = vadd.f32 %v5131_v30, %v5095_v16  ;;  %v5229_v56 = vadd.f32 %v5197_v13, %v5161_v15  ;;  %v5434_v60 = vmul.f32 %v11985_v22, %v4850_v34  ;;  %v16465_v30 = vld [vmem:[#allocation69_spill] sm:$0xff] }
 0x5ed   : > { %v16462_v42 = vrot.slane %v12168_v20, 7  ;;  %v5022_v24 = vadd.f32 %v4990_v57, %v4954_v5  ;;  %v5331_v46 = vmul.f32 %v11982_v38, %v4755_v27  ;;  %v12230_v6 = vadd.f32 %v5433_v54, %v12130_v55 }
 0x5ee   : > { %v4743_v0 = vsel %vm1134_vm11, %v4691_v44, %v4692_v14  ;;  %v12234_v21 = vadd.f32 %v5434_v60, %v5398_v8  ;;  %v16467_v49 = vrot.slane %v12168_v20, 1  ;;  %v5057_v57 = vadd.f32 %v11992_v1, %v5021_v48  ;;  %v16469_v44 = vld [vmem:[#allocation71_spill] sm:$0xff] }
 0x5ef   : > { %v4742_v7 = vsel %vm1134_vm11, %v4692_v14, %v16462_v42  ;;  %16463 = vst [vmem:[#allocation18_spill] sm:$0xff] %v12230_v6  ;;  %v4756_v15 = vmul.f32 %v4743_v0, %v16465_v30  ;;  %v5230_v27 = vadd.f32 %v5198_v2, %v5162_v53  ;;  %v16468_v55 = vrot.slane %v12138_v36, 1  ;;  %v16470_v8 = vld [vmem:[#allocation59_spill] sm:$0xff] }
 0x5f0   : > { %16464 = vst [vmem:[#allocation163_spill] sm:$0xff] %v12234_v21  ;;  %v4757_v34 = vmul.f32 %v4742_v7, %v16466_v62  ;;  %v4838_v42 = vsel %vm1231_vm12, %v4788_v18, %v16467_v49  ;;  %v4924_v13 = vmul.f32 %v11977_v4, %v12171_v12  ;;  %v5058_v5 = vadd.f32 %v11992_v1, %v5022_v24  ;;  %v16483_v21 = vld [vmem:[#allocation148_spill] sm:$0xff] }
 0x5f1   : > { %v4839_v28 = vsel %vm1231_vm12, %v16468_v55, %v4788_v18  ;;  %v4852_v60 = vmul.f32 %v4838_v42, %v16469_v44  ;;  %v4888_v16 = vmul.f32 %v11951_v32, %v4756_v15  ;;  %v5096_v14 = vmul.f32 %v11960_v26, %v4756_v15  ;;  %v16485_v44 = vld [vmem:[#allocation29_spill] sm:$0xff] }
 0x5f2   : > { %v4851_v3 = vmul.f32 %v4839_v28, %v16470_v8  ;;  %v5399_v48 = vadd.f32 %v5367_v43, %v5331_v46  ;;  %v4889_v53 = vmul.f32 %v11951_v32, %v4757_v34  ;;  %v5132_v36 = vmul.f32 %v11963_v61, %v12171_v12 }
 0x5f3   : > { %v4956_v18 = vadd.f32 %v4924_v13, %v4888_v16  ;;  %v4992_v51 = vmul.f32 %v11954_v39, %v4852_v60  ;;  %v5097_v54 = vmul.f32 %v11960_v26, %v4757_v34  ;;  %v5293_v7 = vadd.f32 %v12146_v59, %v5057_v57 }
 0x5f4   : > { %v4991_v2 = vmul.f32 %v11954_v39, %v4851_v3  ;;  %v5164_v0 = vadd.f32 %v5132_v36, %v5096_v14  ;;  %v5199_v49 = vmul.f32 %v16446_v40, %v4851_v3  ;;  %v5332_v24 = vmul.f32 %v11982_v38, %v4756_v15 }
 0x5f5   : > { %v5024_v43 = vadd.f32 %v4992_v51, %v4956_v18  ;;  %v5333_v42 = vmul.f32 %v11982_v38, %v4757_v34  ;;  %v5368_v55 = vmul.f32 %v11966_v29, %v12171_v12  ;;  %v5294_v28 = vadd.f32 %v12148_v10, %v5058_v5 }
 0x5f6   : > { %v5023_v46 = vadd.f32 %v4991_v2, %v4955_v25  ;;  %v4957_v16 = vadd.f32 %v4925_v45, %v4889_v53  ;;  %v5200_v13 = vmul.f32 %v16446_v40, %v4852_v60  ;;  %v5435_v6 = vmul.f32 %v11985_v22, %v4851_v3  ;;  %v16471_v2 = vld [vmem:[#allocation72_spill] sm:$0xff] }
 0x5f7   : > { %v12270_v57 = vadd.f32 %v5133_v11, %v5097_v54  ;;  %v5400_v14 = vadd.f32 %v5368_v55, %v5332_v24  ;;  %v5436_v25 = vmul.f32 %v11985_v22, %v4852_v60  ;;  %v5060_v15 = vadd.f32 %v11992_v1, %v5024_v43  ;;  %v16474_v24 = vld [vmem:[#allocation77_spill] sm:$0xff] }
 0x5f8   : > { %v5059_v59 = vadd.f32 %v11992_v1, %v5023_v46  ;;  %v12274_v34 = vadd.f32 %v5199_v49, %v5163_v63  ;;  %v5467_v36 = vadd.f32 %v5435_v6, %v5399_v48  ;;  %v15175_v12 = vrot.slane %v12175_v50, 7 }
 0x5f9   : > { %v12277_v10 = vadd.f32 %v5200_v13, %v5164_v0  ;;  %v12279_v45 = vadd.f32 %v5369_v41, %v5333_v42  ;;  %v5468_v5 = vadd.f32 %v5436_v25, %v5400_v14  ;;  %v15173_v3 = vrot.slane %v12175_v50, 1 }
 0x5fa   : > { %v5529_v53 = vadd.f32 %v5467_v36, %v5293_v7  ;;  %v4927_v11 = vmul.f32 %v11977_v4, %v12175_v50  ;;  %v4694_v60 = vrot.slane %v12178_v37, 7  ;;  %v4790_v18 = vrot.slane %v12178_v37, 1 }
 0x5fb   : > { %v5530_v63 = vadd.f32 %v5468_v5, %v5294_v28  ;;  %v5135_v6 = vmul.f32 %v11963_v61, %v12175_v50  ;;  %v12290_v48 = vmul.f32 %v11966_v29, %v12175_v50  ;;  %v12292_v41 = vadd.f32 %v5229_v56, %v5059_v59  ;;  %v16475_v56 = vld [vmem:[#allocation88_spill] sm:$0xff]  ;;  %v16477_v28 = vld [vmem:[#allocation107_spill] sm:$0xff] }
 0x5fc   : > { %v12295_v51 = vmul.f32 %v5529_v53, %v16471_v2  ;;  %v12297_v54 = vadd.f32 %v5230_v27, %v5060_v15  ;;  %v4740_v7 = vsel %vm1134_vm11, %v4694_v60, %v15175_v12  ;;  %v16473_v0 = vrot.slane %v12168_v20, 7 }
 0x5fd   : > { %v12308_v46 = vmul.f32 %v5530_v63, %v16474_v24  ;;  %v4836_v27 = vsel %vm1231_vm12, %v4790_v18, %v15173_v3  ;;  %v16476_v42 = vrot.slane %v12168_v20, 1  ;;  %v4759_v13 = vmul.f32 %v4740_v7, %v16477_v28  ;;  %v16480_v63 = vld [vmem:[#allocation90_spill] sm:$0xff] }
 0x5fe   : > { %16472 = vst [vmem:[#allocation172_spill] sm:$0xff] %v12295_v51  ;;  %v4741_v49 = vsel %vm1134_vm11, %v16473_v0, %v4694_v60  ;;  %v4926_v59 = vmul.f32 %v11977_v4, %v12178_v37  ;;  %v5134_v14 = vmul.f32 %v11963_v61, %v12178_v37  ;;  %v5370_v25 = vmul.f32 %v11966_v29, %v12178_v37  ;;  %v16479_v60 = vld [vmem:[#allocation79_spill] sm:$0xff]  ;;  %v4579_v0 = vpop.permute.xlu1 %4578 }
 0x5ff   : > { %v4758_v43 = vmul.f32 %v4741_v49, %v16475_v56  ;;  %v4837_v55 = vsel %vm1231_vm12, %v16476_v42, %v4790_v18  ;;  %v15174_v15 = vrot.slane %v12295_v51, 7  ;;  %v15178_v36 = vrot.slane %v12308_v46, 7 }
 0x600   : > { %v15176_v20 = vrot.slane %v12295_v51, 1  ;;  %v15177_v5 = vrot.slane %v12308_v46, 1  ;;  %v12332_v53 = vmul.f32 %v12013_v52, %v12295_v51  ;;  %v4853_v18 = vmul.f32 %v4837_v55, %v16479_v60 }
 0x601   : > { %v4854_v2 = vmul.f32 %v4836_v27, %v16480_v63  ;;  %v5649_v37 = vsel %vm1134_vm11, %v15174_v15, %v15178_v36  ;;  %v12351_v24 = vmul.f32 %v12016_v19, %v12295_v51  ;;  %v4890_v27 = vmul.f32 %v11951_v32, %v4758_v43 }
 0x602   : > { %16478 = vst [vmem:[#allocation183_spill] sm:$0xff] %v12332_v53  ;;  %v5745_v49 = vsel %vm1231_vm12, %v15176_v20, %v15177_v5  ;;  %v5658_v42 = vmul.f32 %v5649_v37, %v16458_v9  ;;  %v4891_v3 = vmul.f32 %v11951_v32, %v4759_v13  ;;  %v4993_v15 = vmul.f32 %v11954_v39, %v4853_v18  ;;  %v4583_v60 = vpop.permute.xlu1 %4582 }
 0x603   : > { %16481 = vst [vmem:[#allocation219_spill] sm:$0xff] %v12351_v24  ;;  %v5753_v55 = vmul.f32 %v5745_v49, %v16460_v35  ;;  %v5826_v12 = vmul.f32 %v12013_v52, %v12308_v46  ;;  %v6034_v20 = vmul.f32 %v12016_v19, %v12308_v46  ;;  %v4958_v7 = vadd.f32 %v4926_v59, %v4890_v27 }
 0x604   : > { %v5098_v5 = vmul.f32 %v11960_v26, %v4758_v43  ;;  %v5790_v36 = vmul.f32 %v11957_v33, %v5658_v42  ;;  %v12366_v9 = vmul.f32 %v12025_v47, %v12295_v51  ;;  %v6270_v35 = vmul.f32 %v12025_v47, %v12308_v46  ;;  %v4585_v51 = vpop.permute.xlu0 %4584 }
 0x605   : > { %v4994_v37 = vmul.f32 %v11954_v39, %v4854_v2  ;;  %v5998_v49 = vmul.f32 %v11942_v23, %v5658_v42  ;;  %v6234_v24 = vmul.f32 %v12022_v58, %v5658_v42  ;;  %v5025_v53 = vadd.f32 %v4993_v15, %v4957_v16  ;;  %v16488_v15 = vld [vmem:[#allocation22_spill] sm:$0xff] }
 0x606   : > { %16482 = vst [vmem:[#allocation191_spill] sm:$0xff] %v12366_v9  ;;  %v5099_v59 = vmul.f32 %v11960_v26, %v4759_v13  ;;  %v12374_v27 = vadd.f32 %v5826_v12, %v5790_v36  ;;  %v12377_v63 = vmul.f32 %v16483_v21, %v5753_v55  ;;  %v12379_v28 = vadd.f32 %v4927_v11, %v4891_v3 }
 0x607   : > { %v5026_v9 = vadd.f32 %v4994_v37, %v4958_v7  ;;  %v12382_v56 = vmul.f32 %v16485_v44, %v5753_v55  ;;  %v12384_v62 = vadd.f32 %v6270_v35, %v6234_v24  ;;  %v5166_v39 = vadd.f32 %v5134_v14, %v5098_v5 }
 0x608   : > { %16484 = vst [vmem:[#allocation181_spill] sm:$0xff] %v12377_v63  ;;  %v5201_v16 = vmul.f32 %v16446_v40, %v4853_v18  ;;  %v12388_v42 = vmul.f32 %v16488_v15, %v5753_v55  ;;  %v5334_v12 = vmul.f32 %v11982_v38, %v4758_v43  ;;  %v5335_v36 = vmul.f32 %v11982_v38, %v4759_v13 }
 0x609   : > { %16486 = vst [vmem:[#allocation44_spill] sm:$0xff] %v12382_v56  ;;  %16487 = vst [vmem:[#allocation151_spill] sm:$0xff] %v12384_v62  ;;  %v5437_v3 = vmul.f32 %v11985_v22, %v4853_v18  ;;  %v12393_v11 = vadd.f32 %v6034_v20, %v5998_v49  ;;  %v5061_v7 = vadd.f32 %v11992_v1, %v5025_v53  ;;  %v16506_v20 = vld [vmem:[#allocation58_spill] sm:$0xff] }
 0x60a   : > { %16489 = vst [vmem:[#allocation174_spill] sm:$0xff] %v12388_v42  ;;  %v12396_v37 = vadd.f32 %v5135_v6, %v5099_v59  ;;  %v5202_v24 = vmul.f32 %v16446_v40, %v4854_v2  ;;  %v5062_v14 = vadd.f32 %v11992_v1, %v5026_v9  ;;  %v5402_v5 = vadd.f32 %v5370_v25, %v5334_v12 }
 0x60b   : > { %v5438_v55 = vmul.f32 %v11985_v22, %v4854_v2  ;;  %v5469_v35 = vadd.f32 %v5437_v3, %v12279_v45  ;;  %v12403_v43 = vadd.f32 %v5201_v16, %v12270_v57  ;;  %v12410_v6 = vmul.f32 %v11977_v4, %v12181_v31  ;;  %v16491_v2 = vld [vmem:[#allocation209_spill] sm:$0xff]  ;;  %v4589_v45 = vpop.permute.xlu0 %4588  ;;  %v4587_v57 = vpop.permute.xlu1 %4586  ;;  %v16495_v3 = vld [vmem:[#allocation175_spill] sm:$0xff] }
 0x60c   : > { %v12405_v13 = vadd.f32 %v5202_v24, %v5166_v39  ;;  %v12413_v53 = vadd.f32 %v12290_v48, %v5335_v36  ;;  %v12417_v9 = vadd.f32 %v4579_v0, %v16491_v2  ;;  %v12421_v39 = vmul.f32 %v11963_v61, %v12181_v31  ;;  %v16492_v48 = vld [vmem:[#allocation75_spill] sm:$0xff]  ;;  %v16501_v2 = vld [vmem:[#allocation168_spill] sm:$0xff] }
 0x60d   : > { %v5470_v18 = vadd.f32 %v5438_v55, %v5402_v5  ;;  %v5531_v25 = vadd.f32 %v5469_v35, %v12292_v41  ;;  %v12425_v49 = vmul.f32 %v11966_v29, %v12181_v31  ;;  %v12428_v59 = vadd.f32 %v12274_v34, %v5061_v7  ;;  %v16494_v0 = vld [vmem:[#allocation83_spill] sm:$0xff]  ;;  %v16496_v55 = vld [vmem:[#allocation214_spill] sm:$0xff]  ;;  %v16498_v34 = vld [vmem:[#allocation92_spill] sm:$0xff] }
 0x60e   : > { %16490 = vst [vmem:[#allocation154_spill] sm:$0xff] %v12405_v13  ;;  %v12431_v16 = vadd.f32 %v4585_v51, %v16492_v48  ;;  %v12436_v36 = vadd.f32 %v12277_v10, %v5062_v14  ;;  %v12439_v24 = vadd.f32 %v4583_v60, %v16495_v3  ;;  %v4696_v5 = vrot.slane %v12417_v9, 7  ;;  %v16500_v51 = vld [vmem:[#allocation254_spill] sm:$0xff] }
 0x60f   : > { %v5532_v41 = vadd.f32 %v5470_v18, %v12297_v54  ;;  %v5563_v12 = vmul.f32 %v5531_v25, %v16494_v0  ;;  %v12443_v35 = vadd.f32 %v4589_v45, %v16496_v55  ;;  %v12446_v7 = vadd.f32 %v4587_v57, %v16498_v34  ;;  %v16503_v54 = vld [vmem:[#allocation91_spill] sm:$0xff] }
 0x610   : > { %16493 = vst [vmem:[#allocation218_spill] sm:$0xff] %v12431_v16  ;;  %v12450_v48 = vmul.f32 %v16501_v2, %v16500_v51  ;;  %v4792_v60 = vrot.slane %v12417_v9, 1  ;;  %v4928_v25 = vmul.f32 %v11977_v4, %v12417_v9  ;;  %v5136_v45 = vmul.f32 %v11963_v61, %v12417_v9 }
 0x611   : > { %16497 = vst [vmem:[#allocation242_spill] sm:$0xff] %v12443_v35  ;;  %16499 = vst [vmem:[#allocation130_spill] sm:$0xff] %v12446_v7  ;;  %v12453_v18 = vmul.f32 %v5532_v41, %v16503_v54  ;;  %v5595_v10 = vrot.slane %v5563_v12, 7  ;;  %v5691_v14 = vrot.slane %v5563_v12, 1  ;;  %v12462_v57 = vmul.f32 %v11966_v29, %v12417_v9  ;;  %v16507_v9 = vld [vmem:[#allocation54_spill] sm:$0xff] }
 0x612   : > { %16502 = vst [vmem:[#allocation229_spill] sm:$0xff] %v12450_v48  ;;  %v16504_v41 = vrot.slane %v12308_v46, 7  ;;  %v16505_v51 = vrot.slane %v12308_v46, 1  ;;  %v5827_v0 = vmul.f32 %v12013_v52, %v5563_v12  ;;  %v6035_v3 = vmul.f32 %v12016_v19, %v5563_v12 }
 0x613   : > { %v15183_v34 = vrot.slane %v12453_v18, 1  ;;  %v16509_v56 = vrot.slane %v12453_v18, 7  ;;  %v6271_v2 = vmul.f32 %v12025_v47, %v5563_v12 }
 0x614   : > { %v5648_v55 = vsel %vm1134_vm11, %v16504_v41, %v5595_v10  ;;  %v5744_v54 = vsel %vm1231_vm12, %v16505_v51, %v5691_v14  ;;  %v16510_v51 = vrot.slane %v12181_v31, 7 }
 0x615   : > { %v5659_v42 = vmul.f32 %v5648_v55, %v16506_v20  ;;  %v12477_v63 = vmul.f32 %v5744_v54, %v16507_v9  ;;  %v5647_v41 = vsel %vm1134_vm11, %v5595_v10, %v16509_v56  ;;  %v5743_v46 = vsel %vm1231_vm12, %v5691_v14, %v15183_v34 }
 0x616   : > { %v4738_v20 = vsel %vm1134_vm11, %v4696_v5, %v16510_v51  ;;  %v16511_v55 = vrot.slane %v12175_v50, 7  ;;  %v5660_v9 = vmul.f32 %v5647_v41, %v16465_v30  ;;  %v5755_v62 = vmul.f32 %v5743_v46, %v16470_v8 }
 0x617   : > { %16508 = vst [vmem:[#allocation198_spill] sm:$0xff] %v12477_v63  ;;  %v5791_v56 = vmul.f32 %v11957_v33, %v5659_v42  ;;  %v5894_v10 = vmul.f32 %v16483_v21, %v12477_v63  ;;  %v5828_v14 = vmul.f32 %v12013_v52, %v12453_v18  ;;  %v5999_v34 = vmul.f32 %v11942_v23, %v5659_v42  ;;  %v16513_v52 = vld [vmem:[#allocation121_spill] sm:$0xff] }
 0x618   : > { %v4739_v54 = vsel %vm1134_vm11, %v16511_v55, %v4696_v5  ;;  %v6235_v51 = vmul.f32 %v12022_v58, %v5659_v42  ;;  %v5895_v5 = vmul.f32 %v16483_v21, %v5755_v62  ;;  %v6036_v30 = vmul.f32 %v12016_v19, %v12453_v18  ;;  %v16512_v55 = vld [vmem:[#allocation111_spill] sm:$0xff] }
 0x619   : > { %v5859_v48 = vadd.f32 %v5827_v0, %v5791_v56  ;;  %v6102_v8 = vmul.f32 %v16485_v44, %v12477_v63  ;;  %v5792_v41 = vmul.f32 %v11957_v33, %v5660_v9  ;;  %v6272_v46 = vmul.f32 %v12025_v47, %v12453_v18 }
 0x61a   : > { %v4760_v7 = vmul.f32 %v4739_v54, %v16512_v55  ;;  %v4761_v42 = vmul.f32 %v4738_v20, %v16513_v52  ;;  %v5926_v12 = vadd.f32 %v5894_v10, %v12374_v27  ;;  %v6000_v56 = vmul.f32 %v11942_v23, %v5660_v9  ;;  %v16542_v52 = vld [vmem:[#allocation253_spill] sm:$0xff] }
 0x61b   : > { %v5927_v0 = vadd.f32 %v5895_v5, %v5859_v48  ;;  %v6236_v21 = vmul.f32 %v12022_v58, %v5660_v9  ;;  %v6067_v19 = vadd.f32 %v6035_v3, %v5999_v34  ;;  %v6103_v35 = vmul.f32 %v16485_v44, %v5755_v62 }
 0x61c   : > { %v6303_v63 = vadd.f32 %v6271_v2, %v6235_v51  ;;  %v6339_v33 = vmul.f32 %v16488_v15, %v5755_v62  ;;  %v12523_v13 = vadd.f32 %v6102_v8, %v12393_v11  ;;  %v16514_v20 = vrot.slane %v12181_v31, 1  ;;  %v16517_v2 = vld [vmem:[#allocation108_spill] sm:$0xff]  ;;  %v16518_v62 = vld [vmem:[#allocation114_spill] sm:$0xff] }
 0x61d   : > { %v12525_v47 = vadd.f32 %v6272_v46, %v6236_v21  ;;  %v16515_v48 = vrot.slane %v12175_v50, 1  ;;  %v4892_v11 = vmul.f32 %v11951_v32, %v4760_v7  ;;  %v12540_v21 = vadd.f32 %v5828_v14, %v5792_v41  ;;  %v16519_v8 = vld [vmem:[#allocation128_spill] sm:$0xff] }
 0x61e   : > { %v4834_v27 = vsel %vm1231_vm12, %v4792_v60, %v16514_v20  ;;  %v12535_v34 = vadd.f32 %v6339_v33, %v6303_v63  ;;  %v4893_v10 = vmul.f32 %v11951_v32, %v4761_v42  ;;  %v5100_v51 = vmul.f32 %v11960_v26, %v4760_v7 }
 0x61f   : > { %v4835_v3 = vsel %vm1231_vm12, %v16515_v48, %v4792_v60  ;;  %v4856_v9 = vmul.f32 %v4834_v27, %v16518_v62  ;;  %v5336_v5 = vmul.f32 %v11982_v38, %v4760_v7  ;;  %v4960_v50 = vadd.f32 %v4928_v25, %v4892_v11  ;;  %v16520_v60 = vld [vmem:[#allocation143_spill] sm:$0xff] }
 0x620   : > { %16516 = vst [vmem:[#allocation93_spill] sm:$0xff] %v12535_v34  ;;  %v4855_v54 = vmul.f32 %v4835_v3, %v16517_v2  ;;  %v5101_v63 = vmul.f32 %v11960_v26, %v4761_v42  ;;  %v12549_v20 = vadd.f32 %v16520_v60, %v5926_v12  ;;  %v12551_v27 = vadd.f32 %v6036_v30, %v6000_v56  ;;  %v16543_v2 = vld [vmem:[#allocation205_spill] sm:$0xff] }
 0x621   : > { %v4996_v33 = vmul.f32 %v16519_v8, %v4856_v9  ;;  %v12553_v14 = vadd.f32 %v6103_v35, %v6067_v19  ;;  %v5168_v7 = vadd.f32 %v5136_v45, %v5100_v51  ;;  %v5337_v25 = vmul.f32 %v11982_v38, %v4761_v42 }
 0x622   : > { %v4995_v46 = vmul.f32 %v16519_v8, %v4855_v54  ;;  %16521 = vst [vmem:[#allocation155_spill] sm:$0xff] %v12549_v20  ;;  %v5203_v41 = vmul.f32 %v16446_v40, %v4855_v54  ;;  %v12559_v11 = vadd.f32 %v16520_v60, %v5927_v0  ;;  %v5404_v34 = vadd.f32 %v12462_v57, %v5336_v5 }
 0x623   : > { %v5028_v3 = vadd.f32 %v4996_v33, %v4960_v50  ;;  %v5439_v12 = vmul.f32 %v11985_v22, %v4855_v54  ;;  %v5440_v30 = vmul.f32 %v11985_v22, %v4856_v9  ;;  %v12565_v19 = vadd.f32 %v12410_v6, %v4893_v10  ;;  %v16526_v50 = vld [vmem:[#allocation104_spill] sm:$0xff] }
 0x624   : > { %v5027_v48 = vadd.f32 %v4995_v46, %v12379_v28  ;;  %16522 = vst [vmem:[#allocation150_spill] sm:$0xff] %v12559_v11  ;;  %v12569_v28 = vadd.f32 %v12421_v39, %v5101_v63  ;;  %v5204_v45 = vmul.f32 %v16446_v40, %v4856_v9  ;;  %v12574_v0 = vadd.f32 %v5203_v41, %v12396_v37  ;;  %v16527_v33 = vld [vmem:[#allocation120_spill] sm:$0xff]  ;;  %v16528_v41 = vld [vmem:[#allocation154_spill] sm:$0xff] }
 0x625   : > { %v5064_v42 = vadd.f32 %v11992_v1, %v5028_v3  ;;  %v5471_v57 = vadd.f32 %v5439_v12, %v12413_v53  ;;  %v5472_v56 = vadd.f32 %v5440_v30, %v5404_v34  ;;  %v12580_v6 = vadd.f32 %v12425_v49, %v5337_v25 }
 0x626   : > { %v5063_v35 = vadd.f32 %v11992_v1, %v5027_v48  ;;  %16523 = vst [vmem:[#allocation250_spill] sm:$0xff] %v12574_v0  ;;  %v12577_v54 = vadd.f32 %v5204_v45, %v5168_v7  ;;  %v15196_v10 = vrot.slane %v12431_v16, 1  ;;  %v4698_v39 = vrot.slane %v12439_v24, 7  ;;  %v16531_v7 = vld [vmem:[#allocation126_spill] sm:$0xff] }
 0x627   : > { %v5533_v51 = vadd.f32 %v5471_v57, %v12428_v59  ;;  %v5534_v9 = vadd.f32 %v5472_v56, %v12436_v36  ;;  %v12588_v37 = vmul.f32 %v11977_v4, %v12431_v16  ;;  %v12592_v53 = vmul.f32 %v11963_v61, %v12431_v16 }
 0x628   : > { %16524 = vst [vmem:[#allocation212_spill] sm:$0xff] %v12577_v54  ;;  %v12596_v49 = vmul.f32 %v11966_v29, %v12431_v16  ;;  %v12599_v34 = vadd.f32 %v12403_v43, %v5063_v35  ;;  %v16525_v5 = vrot.slane %v12181_v31, 7  ;;  %v4794_v36 = vrot.slane %v12439_v24, 1 }
 0x629   : > { %v5565_v46 = vmul.f32 %v5533_v51, %v16526_v50  ;;  %v12608_v63 = vmul.f32 %v5534_v9, %v16527_v33  ;;  %v12611_v48 = vadd.f32 %v16528_v41, %v5064_v42  ;;  %v16530_v3 = vrot.slane %v12431_v16, 7  ;;  %v16538_v50 = vld [vmem:[#allocation88_spill] sm:$0xff] }
 0x62a   : > { %v4737_v59 = vsel %vm1134_vm11, %v16525_v5, %v4698_v39  ;;  %v4930_v12 = vmul.f32 %v11977_v4, %v12439_v24  ;;  %v12624_v30 = vmul.f32 %v11963_v61, %v12439_v24  ;;  %v12628_v35 = vmul.f32 %v11966_v29, %v12439_v24  ;;  %v16534_v24 = vld [vmem:[#allocation242_spill] sm:$0xff] }
 0x62b   : > { %16529 = vst [vmem:[#allocation185_spill] sm:$0xff] %v12611_v48  ;;  %v4736_v43 = vsel %vm1134_vm11, %v4698_v39, %v16530_v3  ;;  %v12618_v25 = vmul.f32 %v4737_v59, %v16531_v7  ;;  %v5597_v45 = vrot.slane %v5565_v46, 7  ;;  %v15197_v42 = vrot.slane %v12608_v63, 7  ;;  %v16532_v39 = vld [vmem:[#allocation211_spill] sm:$0xff]  ;;  %v16541_v7 = vld [vmem:[#allocation234_spill] sm:$0xff] }
 0x62c   : > { %v5693_v57 = vrot.slane %v5565_v46, 1  ;;  %v15198_v56 = vrot.slane %v12608_v63, 1  ;;  %v4763_v51 = vmul.f32 %v4736_v43, %v16532_v39  ;;  %v4832_v9 = vsel %vm1231_vm12, %v4794_v36, %v15196_v10  ;;  %v16540_v39 = vld [vmem:[#allocation79_spill] sm:$0xff] }
 0x62d   : > { %v16533_v5 = vrot.slane %v12181_v31, 1  ;;  %v5645_v33 = vsel %vm1134_vm11, %v5597_v45, %v15197_v42  ;;  %v16535_v41 = vrot.slane %v12453_v18, 7  ;;  %v16536_v43 = vrot.slane %v12453_v18, 1  ;;  %v16539_v42 = vld [vmem:[#allocation71_spill] sm:$0xff] }
 0x62e   : > { %v5741_v31 = vsel %vm1231_vm12, %v5693_v57, %v15198_v56  ;;  %v5662_v20 = vmul.f32 %v5645_v33, %v16538_v50  ;;  %v6037_v56 = vmul.f32 %v16542_v52, %v5565_v46  ;;  %v16545_v33 = vld [vmem:[#allocation249_spill] sm:$0xff] }
 0x62f   : > { %v4833_v59 = vsel %vm1231_vm12, %v16533_v5, %v4794_v36  ;;  %v5646_v3 = vsel %vm1134_vm11, %v16535_v41, %v5597_v45  ;;  %v5742_v36 = vsel %vm1231_vm12, %v16536_v43, %v5693_v57  ;;  %v16537_v5 = vld [vmem:[#allocation78_spill] sm:$0xff]  ;;  %v5757_v62 = vmul.f32 %v5741_v31, %v16540_v39 }
 0x630   : > { %v5661_v10 = vmul.f32 %v5646_v3, %v16537_v5  ;;  %v5756_v11 = vmul.f32 %v5742_v36, %v16539_v42  ;;  %v5829_v45 = vmul.f32 %v16541_v7, %v5565_v46  ;;  %v5830_v41 = vmul.f32 %v16541_v7, %v12608_v63  ;;  %v16544_v3 = vld [vmem:[#allocation148_spill] sm:$0xff] }
 0x631   : > { %v5794_v57 = vmul.f32 %v16543_v2, %v5662_v20  ;;  %v5897_v50 = vmul.f32 %v16544_v3, %v5757_v62  ;;  %v6038_v39 = vmul.f32 %v16542_v52, %v12608_v63  ;;  %v6273_v31 = vmul.f32 %v16545_v33, %v5565_v46 }
 0x632   : > { %v5793_v55 = vmul.f32 %v16543_v2, %v5661_v10  ;;  %v5896_v43 = vmul.f32 %v16544_v3, %v5756_v11  ;;  %v6001_v42 = vmul.f32 %v11942_v23, %v5661_v10  ;;  %v6274_v36 = vmul.f32 %v16545_v33, %v12608_v63  ;;  %v16546_v2 = vld [vmem:[#allocation123_spill] sm:$0xff] }
 0x633   : > { %v6237_v7 = vmul.f32 %v12022_v58, %v5661_v10  ;;  %v4857_v54 = vmul.f32 %v4833_v59, %v16546_v2  ;;  %v6002_v0 = vmul.f32 %v11942_v23, %v5662_v20  ;;  %v6104_v3 = vmul.f32 %v16485_v44, %v5756_v11 }
 0x634   : > { %v5861_v5 = vadd.f32 %v5829_v45, %v5793_v55  ;;  %v5928_v18 = vadd.f32 %v5896_v43, %v12540_v21  ;;  %v6105_v16 = vmul.f32 %v16485_v44, %v5757_v62  ;;  %v4858_v52 = vmul.f32 %v4832_v9, %v16547_v17  ;;  %v16577_v17 = vld [vmem:[#allocation108_spill] sm:$0xff] }
 0x635   : > { %v12684_v29 = vadd.f32 %v5830_v41, %v5794_v57  ;;  %v6305_v48 = vadd.f32 %v6273_v31, %v6237_v7  ;;  %v6340_v55 = vmul.f32 %v16488_v15, %v5756_v11  ;;  %v6069_v45 = vadd.f32 %v6037_v56, %v6001_v42 }
 0x636   : > { %v5929_v46 = vadd.f32 %v5897_v50, %v5861_v5  ;;  %v6238_v21 = vmul.f32 %v12022_v58, %v5662_v20  ;;  %v6341_v10 = vmul.f32 %v16488_v15, %v5757_v62  ;;  %v4894_v59 = vmul.f32 %v11951_v32, %v12618_v25 }
 0x637   : > { %v5964_v43 = vadd.f32 %v16520_v60, %v5928_v18  ;;  %v12694_v9 = vadd.f32 %v6340_v55, %v12525_v47  ;;  %v4895_v41 = vmul.f32 %v11951_v32, %v4763_v51  ;;  %v4997_v56 = vmul.f32 %v16519_v8, %v4857_v54  ;;  %v16552_v55 = vld [vmem:[#allocation130_spill] sm:$0xff] }
 0x638   : > { %v5965_v2 = vadd.f32 %v16520_v60, %v5929_v46  ;;  %v12697_v7 = vadd.f32 %v6341_v10, %v6305_v48  ;;  %v4962_v11 = vadd.f32 %v4930_v12, %v4894_v59  ;;  %v4998_v20 = vmul.f32 %v16519_v8, %v4858_v52 }
 0x639   : > { %16548 = vst [vmem:[#allocation187_spill] sm:$0xff] %v12694_v9  ;;  %v12701_v62 = vadd.f32 %v6038_v39, %v6002_v0  ;;  %v12704_v57 = vadd.f32 %v6104_v3, %v12551_v27  ;;  %v5102_v18 = vmul.f32 %v11960_v26, %v12618_v25  ;;  %v5103_v47 = vmul.f32 %v11960_v26, %v4763_v51 }
 0x63a   : > { %16549 = vst [vmem:[#allocation193_spill] sm:$0xff] %v12697_v7  ;;  %v12709_v50 = vadd.f32 %v6105_v16, %v6069_v45  ;;  %v5029_v48 = vadd.f32 %v4997_v56, %v12565_v19  ;;  %v5030_v42 = vadd.f32 %v4998_v20, %v4962_v11  ;;  %v5205_v12 = vmul.f32 %v16446_v40, %v4857_v54  ;;  %v16557_v11 = vld [vmem:[#allocation218_spill] sm:$0xff] }
 0x63b   : > { %v12713_v31 = vadd.f32 %v6274_v36, %v6238_v21  ;;  %v5170_v0 = vadd.f32 %v12624_v30, %v5102_v18  ;;  %v5338_v27 = vmul.f32 %v11982_v38, %v12618_v25  ;;  %v5339_v3 = vmul.f32 %v11982_v38, %v4763_v51  ;;  %v16553_v21 = vld [vmem:[#allocation185_spill] sm:$0xff] }
 0x63c   : > { %v12720_v39 = vadd.f32 %v12523_v13, %v5964_v43  ;;  %v12723_v16 = vadd.f32 %v12553_v14, %v5965_v2  ;;  %v12726_v19 = vadd.f32 %v12588_v37, %v4895_v41  ;;  %v5441_v5 = vmul.f32 %v11985_v22, %v4857_v54  ;;  %v16559_v18 = vld [vmem:[#allocation133_spill] sm:$0xff] }
 0x63d   : > { %v12730_v36 = vadd.f32 %v12592_v53, %v5103_v47  ;;  %v5206_v30 = vmul.f32 %v16446_v40, %v4858_v52  ;;  %v5406_v25 = vadd.f32 %v12628_v35, %v5338_v27  ;;  %v5442_v51 = vmul.f32 %v11985_v22, %v4858_v52 }
 0x63e   : > { %v5065_v13 = vadd.f32 %v11992_v1, %v5029_v48  ;;  %v5066_v46 = vadd.f32 %v11992_v1, %v5030_v42  ;;  %v12738_v2 = vadd.f32 %v5205_v12, %v12569_v28  ;;  %v5473_v14 = vadd.f32 %v5441_v5, %v12580_v6  ;;  %v16560_v48 = vld [vmem:[#allocation250_spill] sm:$0xff]  ;;  %v16561_v12 = vld [vmem:[#allocation212_spill] sm:$0xff] }
 0x63f   : > { %v12741_v37 = vadd.f32 %v5206_v30, %v5170_v0  ;;  %v12744_v54 = vadd.f32 %v12596_v49, %v5339_v3  ;;  %v5474_v53 = vadd.f32 %v5442_v51, %v5406_v25  ;;  %v4700_v45 = vrot.slane %v16552_v55, 7  ;;  %v16554_v49 = vld [vmem:[#allocation35_spill] sm:$0xff]  ;;  %v16563_v5 = vld [vmem:[#allocation144_spill] sm:$0xff] }
 0x640   : > { %16550 = vst [vmem:[#allocation124_spill] sm:$0xff] %v12738_v2  ;;  %v5535_v35 = vadd.f32 %v5473_v14, %v12599_v34  ;;  %v12750_v52 = vmul.f32 %v11977_v4, %v16534_v24  ;;  %v12754_v28 = vmul.f32 %v11963_v61, %v16534_v24  ;;  %v4796_v6 = vrot.slane %v16552_v55, 1  ;;  %v16579_v2 = vld [vmem:[#allocation205_spill] sm:$0xff] }
 0x641   : > { %16551 = vst [vmem:[#allocation137_spill] sm:$0xff] %v12741_v37  ;;  %v5536_v10 = vadd.f32 %v5474_v53, %v16553_v21  ;;  %v12760_v59 = vmul.f32 %v16554_v49, %v16534_v24  ;;  %v16555_v43 = vrot.slane %v16534_v24, 7  ;;  %v16558_v56 = vrot.slane %v16557_v11, 7  ;;  %v16565_v21 = vld [vmem:[#allocation116_spill] sm:$0xff] }
 0x642   : > { %v5567_v47 = vmul.f32 %v5535_v35, %v16559_v18  ;;  %v12772_v42 = vadd.f32 %v16560_v48, %v5065_v13  ;;  %v12775_v0 = vadd.f32 %v16561_v12, %v5066_v46  ;;  %v16562_v27 = vrot.slane %v16534_v24, 1  ;;  %v4593_v46 = vpop.permute.xlu0 %4592 }
 0x643   : > { %v4734_v34 = vsel %vm1134_vm11, %v4700_v45, %v16555_v43  ;;  %v4735_v20 = vsel %vm1134_vm11, %v16558_v56, %v4700_v45  ;;  %v12782_v30 = vmul.f32 %v5536_v10, %v16563_v5  ;;  %v4932_v25 = vmul.f32 %v11977_v4, %v16552_v55  ;;  %v16564_v45 = vld [vmem:[#allocation216_spill] sm:$0xff]  ;;  %v16570_v56 = vld [vmem:[#allocation234_spill] sm:$0xff] }
 0x644   : > { %v4830_v3 = vsel %vm1231_vm12, %v4796_v6, %v16562_v27  ;;  %v12788_v51 = vmul.f32 %v11963_v61, %v16552_v55  ;;  %v12792_v13 = vmul.f32 %v16554_v49, %v16552_v55  ;;  %v5599_v14 = vrot.slane %v5567_v47, 7  ;;  %v16567_v55 = vld [vmem:[#allocation222_spill] sm:$0xff]  ;;  %v16581_v49 = vld [vmem:[#allocation213_spill] sm:$0xff] }
 0x645   : > { %v5695_v53 = vrot.slane %v5567_v47, 1  ;;  %v12795_v35 = vmul.f32 %v4735_v20, %v16564_v45  ;;  %v12798_v10 = vmul.f32 %v4734_v34, %v16565_v21  ;;  %v16566_v18 = vrot.slane %v16557_v11, 1  ;;  %v16571_v11 = vld [vmem:[#allocation229_spill] sm:$0xff] }
 0x646   : > { %v12807_v12 = vmul.f32 %v4830_v3, %v16567_v55  ;;  %v16568_v27 = vrot.slane %v12608_v63, 7  ;;  %v16569_v34 = vrot.slane %v12608_v63, 1  ;;  %v5831_v43 = vmul.f32 %v16570_v56, %v5567_v47  ;;  %v16575_v55 = vld [vmem:[#allocation90_spill] sm:$0xff] }
 0x647   : > { %v4831_v48 = vsel %vm1231_vm12, %v16566_v18, %v4796_v6  ;;  %v12819_v9 = vadd.f32 %v4593_v46, %v16571_v11  ;;  %v16572_v6 = vrot.slane %v12782_v30, 7  ;;  %v16573_v18 = vld [vmem:[#allocation107_spill] sm:$0xff]  ;;  %v5832_v46 = vmul.f32 %v16570_v56, %v12782_v30  ;;  %v16578_v11 = vld [vmem:[#allocation253_spill] sm:$0xff] }
 0x648   : > { %v5644_v20 = vsel %vm1134_vm11, %v16568_v27, %v5599_v14  ;;  %v5740_v5 = vsel %vm1231_vm12, %v16569_v34, %v5695_v53  ;;  %v16574_v27 = vrot.slane %v12782_v30, 1  ;;  %v16576_v34 = vld [vmem:[#allocation111_spill] sm:$0xff]  ;;  %v6039_v37 = vmul.f32 %v16578_v11, %v5567_v47 }
 0x649   : > { %v5643_v3 = vsel %vm1134_vm11, %v5599_v14, %v16572_v6  ;;  %v5663_v7 = vmul.f32 %v5644_v20, %v16573_v18  ;;  %v5758_v21 = vmul.f32 %v5740_v5, %v16575_v55  ;;  %v16580_v6 = vld [vmem:[#allocation148_spill] sm:$0xff]  ;;  %v4896_v56 = vmul.f32 %v11951_v32, %v12795_v35 }
 0x64a   : > { %v5739_v63 = vsel %vm1231_vm12, %v5695_v53, %v16574_v27  ;;  %v5664_v45 = vmul.f32 %v5643_v3, %v16576_v34  ;;  %v6275_v3 = vmul.f32 %v16545_v33, %v5567_v47  ;;  %v6276_v34 = vmul.f32 %v16545_v33, %v12782_v30 }
 0x64b   : > { %v5759_v24 = vmul.f32 %v5739_v63, %v16577_v17  ;;  %v5795_v14 = vmul.f32 %v16579_v2, %v5663_v7  ;;  %v5898_v20 = vmul.f32 %v16580_v6, %v5758_v21  ;;  %v6003_v18 = vmul.f32 %v11942_v23, %v5663_v7 }
 0x64c   : > { %v6106_v53 = vmul.f32 %v16485_v44, %v5758_v21  ;;  %v5796_v55 = vmul.f32 %v16579_v2, %v5664_v45  ;;  %v6040_v17 = vmul.f32 %v16578_v11, %v12782_v30  ;;  %v6004_v41 = vmul.f32 %v11942_v23, %v5664_v45 }
 0x64d   : > { %v5899_v5 = vmul.f32 %v16580_v6, %v5759_v24  ;;  %v5863_v27 = vadd.f32 %v5831_v43, %v5795_v14  ;;  %v5930_v63 = vadd.f32 %v5898_v20, %v12684_v29  ;;  %v6107_v2 = vmul.f32 %v16485_v44, %v5759_v24 }
 0x64e   : > { %v6239_v6 = vmul.f32 %v12022_v58, %v5663_v7  ;;  %v4859_v61 = vmul.f32 %v4831_v48, %v16581_v49  ;;  %v6071_v43 = vadd.f32 %v6039_v37, %v6003_v18  ;;  %v12858_v29 = vadd.f32 %v6106_v53, %v12701_v62 }
 0x64f   : > { %v5931_v47 = vadd.f32 %v5899_v5, %v5863_v27  ;;  %v6342_v14 = vmul.f32 %v16488_v15, %v5758_v21  ;;  %v12861_v20 = vadd.f32 %v5832_v46, %v5796_v55  ;;  %v6240_v33 = vmul.f32 %v12022_v58, %v5664_v45  ;;  %v4597_v27 = vpop.permute.xlu0 %4596 }
 0x650   : > { %v6307_v23 = vadd.f32 %v6275_v3, %v6239_v6  ;;  %v6343_v44 = vmul.f32 %v16488_v15, %v5759_v24  ;;  %v5966_v7 = vadd.f32 %v16520_v60, %v5930_v63  ;;  %v4897_v5 = vmul.f32 %v11951_v32, %v12798_v10 }
 0x651   : > { %v6374_v48 = vadd.f32 %v6342_v14, %v12713_v31  ;;  %v4964_v37 = vadd.f32 %v4932_v25, %v4896_v56  ;;  %v5967_v62 = vadd.f32 %v16520_v60, %v5931_v47  ;;  %v4999_v21 = vmul.f32 %v16519_v8, %v4859_v61 }
 0x652   : > { %v6375_v18 = vadd.f32 %v6343_v44, %v6307_v23  ;;  %v5000_v46 = vmul.f32 %v16519_v8, %v12807_v12  ;;  %v12873_v45 = vadd.f32 %v6040_v17, %v6004_v41  ;;  %v5104_v6 = vmul.f32 %v11960_v26, %v12795_v35  ;;  %v4591_v41 = vpop.permute.xlu1 %4590 }
 0x653   : > { %v6436_v24 = vadd.f32 %v6374_v48, %v12720_v39  ;;  %v5105_v31 = vmul.f32 %v11960_v26, %v12798_v10  ;;  %v5031_v56 = vadd.f32 %v4999_v21, %v12726_v19  ;;  %v5207_v44 = vmul.f32 %v16446_v40, %v4859_v61  ;;  %v16588_v21 = vld [vmem:[#allocation124_spill] sm:$0xff] }
 0x654   : > { %v6437_v25 = vadd.f32 %v6375_v18, %v12723_v16  ;;  %v5032_v23 = vadd.f32 %v5000_v46, %v4964_v37  ;;  %v12883_v53 = vadd.f32 %v6107_v2, %v6071_v43  ;;  %v12885_v55 = vadd.f32 %v6276_v34, %v6240_v33  ;;  %v16610_v43 = vld [vmem:[#allocation123_spill] sm:$0xff] }
 0x655   : > { %6468 = vst.msk [vmem:[%s12887_s30 + $0x30] sm:$0xff] %vm357_vm0, %v6436_v24  ;;  %v5172_v39 = vadd.f32 %v12788_v51, %v5104_v6  ;;  %v5340_v16 = vmul.f32 %v11982_v38, %v12795_v35  ;;  %v12897_v19 = vadd.f32 %v12704_v57, %v5966_v7  ;;  %v12900_v33 = vadd.f32 %v12709_v50, %v5967_v62  ;;  %v16585_v7 = vld [vmem:[#allocation168_spill] sm:$0xff]  ;;  %v16589_v6 = vld [vmem:[#allocation199_spill] sm:$0xff] }
 0x656   : > { %6469 = vst.msk [vmem:[%s12887_s30 + $0x38] sm:$0xff] %vm357_vm0, %v6437_v25  ;;  %v12903_v2 = vadd.f32 %v12750_v52, %v4897_v5  ;;  %v5341_v17 = vmul.f32 %v11982_v38, %v12798_v10  ;;  %v5208_v51 = vmul.f32 %v16446_v40, %v12807_v12  ;;  %v5443_v3 = vmul.f32 %v11985_v22, %v4859_v61  ;;  %v4595_v18 = vpop.permute.xlu1 %4594  ;;  %v16591_v25 = vld [vmem:[#allocation157_spill] sm:$0xff] }
 0x657   : > { %v5408_v35 = vadd.f32 %v12792_v13, %v5340_v16  ;;  %v5444_v57 = vmul.f32 %v11985_v22, %v12807_v12  ;;  %v5067_v50 = vadd.f32 %v11992_v1, %v5031_v56  ;;  %v5068_v63 = vadd.f32 %v11992_v1, %v5032_v23  ;;  %v16592_v23 = vld [vmem:[#allocation177_spill] sm:$0xff] }
 0x658   : > { %v12916_v52 = vadd.f32 %v12754_v28, %v5105_v31  ;;  %v12919_v10 = vadd.f32 %v5207_v44, %v12730_v36  ;;  %v12921_v34 = vadd.f32 %v5208_v51, %v5172_v39  ;;  %v12924_v13 = vadd.f32 %v12760_v59, %v5341_v17  ;;  %v16584_v28 = vld [vmem:[#allocation257_spill] sm:$0xff]  ;;  %v16586_v59 = vld [vmem:[#allocation220_spill] sm:$0xff]  ;;  %v16596_v17 = vld [vmem:[#allocation11_spill] sm:$0xff] }
 0x659   : > { %v5475_v61 = vadd.f32 %v5443_v3, %v12744_v54  ;;  %v5476_v47 = vadd.f32 %v5444_v57, %v5408_v35  ;;  %v12931_v14 = vmul.f32 %v11977_v4, %v12819_v9  ;;  %v2534_v36 = vmul.f32 %v16585_v7, %v16584_v28  ;;  %v16587_v54 = vld [vmem:[#allocation35_spill] sm:$0xff]  ;;  %v16594_v39 = vld [vmem:[#allocation137_spill] sm:$0xff]  ;;  %v4601_v35 = vpop.permute.xlu0 %4600 }
 0x65a   : > { %16582 = vst [vmem:[#allocation162_spill] sm:$0xff] %v12919_v10  ;;  %16583 = vst [vmem:[#allocation248_spill] sm:$0xff] %v12921_v34  ;;  %v12939_v37 = vmul.f32 %v16586_v59, %v12819_v9  ;;  %v12943_v62 = vmul.f32 %v16587_v54, %v12819_v9  ;;  %v12946_v46 = vadd.f32 %v16588_v21, %v5067_v50  ;;  %v16599_v57 = vld [vmem:[#allocation247_spill] sm:$0xff]  ;;  %v16616_v34 = vld [vmem:[#allocation242_spill] sm:$0xff] }
 0x65b   : > { %v5537_v48 = vadd.f32 %v5475_v61, %v12772_v42  ;;  %v5538_v5 = vadd.f32 %v5476_v47, %v12775_v0  ;;  %v12948_v24 = vadd.f32 %v4591_v41, %v2534_v36  ;;  %v2537_v31 = vmul.f32 %v16585_v7, %v16589_v6  ;;  %v16590_v42 = vld [vmem:[#allocation164_spill] sm:$0xff]  ;;  %v16601_v61 = vld [vmem:[#allocation255_spill] sm:$0xff] }
 0x65c   : > { %v2536_v0 = vmul.f32 %v16585_v7, %v16590_v42  ;;  %v12959_v16 = vadd.f32 %v16594_v39, %v5068_v63  ;;  %v2539_v51 = vmul.f32 %v16585_v7, %v16596_v17  ;;  %v12969_v50 = vmul.f32 %v16585_v7, %v16599_v57  ;;  %v16607_v17 = vld [vmem:[#allocation121_spill] sm:$0xff] }
 0x65d   : > { %v5569_v56 = vmul.f32 %v5537_v48, %v16591_v25  ;;  %v12956_v44 = vmul.f32 %v5538_v5, %v16592_v23  ;;  %v12963_v41 = vadd.f32 %v4597_v27, %v2537_v31  ;;  %v12973_v47 = vmul.f32 %v16585_v7, %v16601_v61  ;;  %v16609_v61 = vld [vmem:[#allocation114_spill] sm:$0xff] }
 0x65e   : > { %16595 = vst [vmem:[#allocation227_spill] sm:$0xff] %v12959_v16  ;;  %v12965_v3 = vadd.f32 %v4595_v18, %v2536_v0  ;;  %16600 = vst [vmem:[#allocation232_spill] sm:$0xff] %v12969_v50  ;;  %v4702_v5 = vrot.slane %v12948_v24, 7  ;;  %v4798_v27 = vrot.slane %v12948_v24, 1  ;;  %v4934_v18 = vmul.f32 %v11977_v4, %v12948_v24  ;;  %v16611_v7 = vld [vmem:[#allocation234_spill] sm:$0xff] }
 0x65f   : > { %16593 = vst [vmem:[#allocation236_spill] sm:$0xff] %v12956_v44  ;;  %16597 = vst [vmem:[#allocation103_spill] sm:$0xff] %v12963_v41  ;;  %v5601_v28 = vrot.slane %v5569_v56, 7  ;;  %v15220_v63 = vrot.slane %v12956_v44, 7  ;;  %v5697_v36 = vrot.slane %v5569_v56, 1  ;;  %v15222_v48 = vrot.slane %v12956_v44, 1 }
 0x660   : > { %16598 = vst [vmem:[#allocation26_spill] sm:$0xff] %v12965_v3  ;;  %16602 = vst [vmem:[#allocation45_spill] sm:$0xff] %v12973_v47  ;;  %v12981_v21 = vadd.f32 %v4601_v35, %v2539_v51  ;;  %v16605_v42 = vrot.slane %v12782_v30, 7  ;;  %v16606_v23 = vrot.slane %v12782_v30, 1  ;;  %v16608_v35 = vld [vmem:[#allocation126_spill] sm:$0xff]  ;;  %v5142_v30 = vmul.f32 %v16586_v59, %v12948_v24  ;;  %v16612_v47 = vld [vmem:[#allocation205_spill] sm:$0xff] }
 0x661   : > { %v5641_v31 = vsel %vm1134_vm11, %v5601_v28, %v15220_v63  ;;  %v5737_v25 = vsel %vm1231_vm12, %v5697_v36, %v15222_v48  ;;  %v6041_v48 = vmul.f32 %v16578_v11, %v5569_v56 }
 0x662   : > { %16603 = vst [vmem:[#allocation239_spill] sm:$0xff] %v12981_v21  ;;  %v5642_v0 = vsel %vm1134_vm11, %v16605_v42, %v5601_v28  ;;  %v5738_v39 = vsel %vm1231_vm12, %v16606_v23, %v5697_v36  ;;  %v5666_v57 = vmul.f32 %v5641_v31, %v16608_v35  ;;  %v5761_v12 = vmul.f32 %v5737_v25, %v16610_v43  ;;  %v16613_v23 = vld [vmem:[#allocation148_spill] sm:$0xff] }
 0x663   : > { %v5665_v51 = vmul.f32 %v5642_v0, %v16607_v17  ;;  %v5760_v63 = vmul.f32 %v5738_v39, %v16609_v61  ;;  %v5833_v28 = vmul.f32 %v16611_v7, %v5569_v56  ;;  %v5834_v42 = vmul.f32 %v16611_v7, %v12956_v44  ;;  %v16614_v17 = vld [vmem:[#allocation161_spill] sm:$0xff] }
 0x664   : > { %v5798_v0 = vmul.f32 %v16612_v47, %v5666_v57  ;;  %v5901_v39 = vmul.f32 %v16613_v23, %v5761_v12  ;;  %v6006_v25 = vmul.f32 %v16614_v17, %v5666_v57  ;;  %v6042_v35 = vmul.f32 %v16578_v11, %v12956_v44  ;;  %v16615_v61 = vld [vmem:[#allocation249_spill] sm:$0xff] }
 0x665   : > { %v5797_v36 = vmul.f32 %v16612_v47, %v5665_v51  ;;  %v5900_v31 = vmul.f32 %v16613_v23, %v5760_v63  ;;  %v6005_v43 = vmul.f32 %v16614_v17, %v5665_v51  ;;  %v6277_v50 = vmul.f32 %v16615_v61, %v5569_v56  ;;  %v16618_v23 = vld [vmem:[#allocation29_spill] sm:$0xff] }
 0x666   : > { %v6241_v7 = vmul.f32 %v12022_v58, %v5665_v51  ;;  %v16617_v47 = vrot.slane %v16616_v34, 7  ;;  %v6108_v16 = vmul.f32 %v16618_v23, %v5760_v63  ;;  %v6109_v59 = vmul.f32 %v16618_v23, %v5761_v12  ;;  %v16620_v23 = vld [vmem:[#allocation118_spill] sm:$0xff] }
 0x667   : > { %v5865_v21 = vadd.f32 %v5833_v28, %v5797_v36  ;;  %v5932_v49 = vadd.f32 %v5900_v31, %v12861_v20  ;;  %v6278_v17 = vmul.f32 %v16615_v61, %v12956_v44  ;;  %v16619_v11 = vrot.slane %v12819_v9, 7 }
 0x668   : > { %v4733_v10 = vsel %vm1134_vm11, %v16617_v47, %v4702_v5  ;;  %v13032_v20 = vadd.f32 %v5834_v42, %v5798_v0  ;;  %v6309_v28 = vadd.f32 %v6277_v50, %v6241_v7  ;;  %v6344_v36 = vmul.f32 %v16488_v15, %v5760_v63 }
 0x669   : > { %v4732_v56 = vsel %vm1134_vm11, %v4702_v5, %v16619_v11  ;;  %v5933_v51 = vadd.f32 %v5901_v39, %v5865_v21  ;;  %v6073_v31 = vadd.f32 %v6041_v48, %v6005_v43  ;;  %v13035_v47 = vadd.f32 %v6042_v35, %v6006_v25  ;;  %v16621_v5 = vld [vmem:[#allocation115_spill] sm:$0xff]  ;;  %v16624_v48 = vld [vmem:[#allocation117_spill] sm:$0xff] }
 0x66a   : > { %v6345_v4 = vmul.f32 %v16488_v15, %v5761_v12  ;;  %v4766_v3 = vmul.f32 %v4733_v10, %v16620_v23  ;;  %v5968_v61 = vadd.f32 %v16520_v60, %v5932_v49  ;;  %v6242_v44 = vmul.f32 %v12022_v58, %v5666_v57 }
 0x66b   : > { %v6376_v11 = vadd.f32 %v6344_v36, %v12885_v55  ;;  %v4767_v42 = vmul.f32 %v4732_v56, %v16621_v5  ;;  %v16622_v7 = vrot.slane %v12819_v9, 1  ;;  %v16623_v63 = vrot.slane %v16616_v34, 1  ;;  %v16651_v5 = vld [vmem:[#allocation205_spill] sm:$0xff] }
 0x66c   : > { %v6377_v21 = vadd.f32 %v6345_v4, %v6309_v28  ;;  %v4898_v49 = vmul.f32 %v11951_v32, %v4766_v3  ;;  %v5969_v12 = vadd.f32 %v16520_v60, %v5933_v51  ;;  %v16625_v4 = vld [vmem:[#allocation119_spill] sm:$0xff]  ;;  %v5106_v34 = vmul.f32 %v11960_v26, %v4766_v3 }
 0x66d   : > { %v4828_v50 = vsel %vm1231_vm12, %v4798_v27, %v16622_v7  ;;  %v4829_v10 = vsel %vm1231_vm12, %v16623_v63, %v4798_v27  ;;  %v6438_v55 = vadd.f32 %v6376_v11, %v12897_v19  ;;  %v4899_v43 = vmul.f32 %v11951_v32, %v4767_v42 }
 0x66e   : > { %v4861_v57 = vmul.f32 %v4829_v10, %v16624_v48  ;;  %v4862_v0 = vmul.f32 %v4828_v50, %v16625_v4  ;;  %v6439_v39 = vadd.f32 %v6377_v21, %v12900_v33  ;;  %v4966_v25 = vadd.f32 %v4934_v18, %v4898_v49  ;;  %v16628_v10 = vld [vmem:[#allocation26_spill] sm:$0xff]  ;;  %v16652_v48 = vld [vmem:[#allocation148_spill] sm:$0xff] }
 0x66f   : > { %6470 = vst.msk [vmem:[%s12887_s30 + $0x40] sm:$0xff] %vm357_vm0, %v6438_v55  ;;  %v5107_v56 = vmul.f32 %v11960_v26, %v4767_v42  ;;  %v13066_v51 = vadd.f32 %v6108_v16, %v12873_v45  ;;  %v13068_v28 = vadd.f32 %v6109_v59, %v6073_v31  ;;  %v13070_v33 = vadd.f32 %v6278_v17, %v6242_v44  ;;  %v16630_v55 = vld [vmem:[#allocation220_spill] sm:$0xff] }
 0x670   : > { %v5001_v27 = vmul.f32 %v16519_v8, %v4861_v57  ;;  %v5002_v35 = vmul.f32 %v16519_v8, %v4862_v0  ;;  %v5209_v19 = vmul.f32 %v16446_v40, %v4861_v57  ;;  %6471 = vst.msk [vmem:[%s12887_s30 + $0x48] sm:$0xff] %vm357_vm0, %v6439_v39  ;;  %v5342_v18 = vmul.f32 %v11982_v38, %v4766_v3  ;;  %v16631_v39 = vld [vmem:[#allocation227_spill] sm:$0xff] }
 0x671   : > { %v13076_v36 = vadd.f32 %v12858_v29, %v5968_v61  ;;  %v5174_v7 = vadd.f32 %v5142_v30, %v5106_v34  ;;  %v13080_v50 = vadd.f32 %v12883_v53, %v5969_v12  ;;  %v5343_v45 = vmul.f32 %v11982_v38, %v4767_v42 }
 0x672   : > { %v5033_v11 = vadd.f32 %v5001_v27, %v12903_v2  ;;  %v5034_v21 = vadd.f32 %v5002_v35, %v4966_v25  ;;  %v5378_v59 = vmul.f32 %v16587_v54, %v12948_v24  ;;  %v5445_v44 = vmul.f32 %v11985_v22, %v4861_v57 }
 0x673   : > { %v13087_v16 = vadd.f32 %v12931_v14, %v4899_v43  ;;  %v13090_v29 = vadd.f32 %v12939_v37, %v5107_v56  ;;  %v5210_v2 = vmul.f32 %v16446_v40, %v4862_v0  ;;  %v13094_v3 = vadd.f32 %v5209_v19, %v12916_v52  ;;  %v16632_v43 = vld [vmem:[#allocation182_spill] sm:$0xff] }
 0x674   : > { %v5410_v53 = vadd.f32 %v5378_v59, %v5342_v18  ;;  %v5446_v30 = vmul.f32 %v11985_v22, %v4862_v0  ;;  %v5477_v17 = vadd.f32 %v5445_v44, %v12924_v13  ;;  %v15238_v24 = vrot.slane %v12963_v41, 7  ;;  %v16629_v13 = vld [vmem:[#allocation24_spill] sm:$0xff]  ;;  %v16634_v56 = vld [vmem:[#allocation162_spill] sm:$0xff] }
 0x675   : > { %16626 = vst [vmem:[#allocation131_spill] sm:$0xff] %v13094_v3  ;;  %v5069_v61 = vadd.f32 %v11992_v1, %v5033_v11  ;;  %v5070_v14 = vadd.f32 %v11992_v1, %v5034_v21  ;;  %v13101_v31 = vadd.f32 %v5210_v2, %v5174_v7  ;;  %v13104_v37 = vadd.f32 %v12943_v62, %v5343_v45  ;;  %v16635_v18 = vld [vmem:[#allocation248_spill] sm:$0xff]  ;;  %v16636_v45 = vld [vmem:[#allocation194_spill] sm:$0xff] }
 0x676   : > { %v5478_v42 = vadd.f32 %v5446_v30, %v5410_v53  ;;  %v5539_v52 = vadd.f32 %v5477_v17, %v12946_v46  ;;  %v15237_v63 = vrot.slane %v12963_v41, 1  ;;  %v4704_v49 = vrot.slane %v16628_v10, 7  ;;  %v16637_v30 = vld [vmem:[#allocation238_spill] sm:$0xff] }
 0x677   : > { %16627 = vst [vmem:[#allocation240_spill] sm:$0xff] %v13101_v31  ;;  %v13111_v12 = vmul.f32 %v16629_v13, %v12963_v41  ;;  %v13115_v57 = vmul.f32 %v16630_v55, %v12963_v41  ;;  %v13119_v0 = vmul.f32 %v16587_v54, %v12963_v41  ;;  %v4800_v62 = vrot.slane %v16628_v10, 1  ;;  %v16653_v31 = vld [vmem:[#allocation161_spill] sm:$0xff] }
 0x678   : > { %v5540_v46 = vadd.f32 %v5478_v42, %v16631_v39  ;;  %v5571_v25 = vmul.f32 %v5539_v52, %v16632_v43  ;;  %v4730_v34 = vsel %vm1134_vm11, %v4704_v49, %v15238_v24  ;;  %v16633_v27 = vrot.slane %v12819_v9, 7 }
 0x679   : > { %v13133_v19 = vadd.f32 %v16634_v56, %v5069_v61  ;;  %v13136_v11 = vadd.f32 %v16635_v18, %v5070_v14  ;;  %v4936_v21 = vmul.f32 %v16629_v13, %v16628_v10  ;;  %v13142_v7 = vmul.f32 %v16630_v55, %v16628_v10  ;;  %v16638_v61 = vld [vmem:[#allocation186_spill] sm:$0xff]  ;;  %v16643_v56 = vld [vmem:[#allocation211_spill] sm:$0xff] }
 0x67a   : > { %v4731_v35 = vsel %vm1134_vm11, %v16633_v27, %v4704_v49  ;;  %v13145_v59 = vmul.f32 %v5540_v46, %v16636_v45  ;;  %v5603_v44 = vrot.slane %v5571_v25, 7  ;;  %v5699_v2 = vrot.slane %v5571_v25, 1 }
 0x67b   : > { %v13149_v53 = vmul.f32 %v16587_v54, %v16628_v10  ;;  %v13152_v17 = vmul.f32 %v4731_v35, %v16637_v30  ;;  %v13155_v14 = vmul.f32 %v4730_v34, %v16638_v61  ;;  %v4826_v42 = vsel %vm1231_vm12, %v4800_v62, %v15237_v63  ;;  %v16640_v10 = vld [vmem:[#allocation236_spill] sm:$0xff]  ;;  %v16645_v63 = vld [vmem:[#allocation234_spill] sm:$0xff]  ;;  %v16647_v61 = vld [vmem:[#allocation249_spill] sm:$0xff] }
 0x67c   : > { %v16639_v52 = vrot.slane %v12819_v9, 1  ;;  %v15241_v39 = vrot.slane %v13145_v59, 7  ;;  %v16641_v46 = vrot.slane %v16640_v10, 7  ;;  %v15243_v34 = vrot.slane %v13145_v59, 1  ;;  %v16644_v9 = vld [vmem:[#allocation127_spill] sm:$0xff]  ;;  %v16648_v30 = vld [vmem:[#allocation233_spill] sm:$0xff] }
 0x67d   : > { %v16642_v27 = vrot.slane %v16640_v10, 1 }
 0x67e   : > { %v4827_v49 = vsel %vm1231_vm12, %v16639_v52, %v4800_v62  ;;  %v5640_v43 = vsel %vm1134_vm11, %v16641_v46, %v5603_v44  ;;  %v5835_v62 = vmul.f32 %v16645_v63, %v5571_v25  ;;  %v16646_v52 = vld [vmem:[#allocation253_spill] sm:$0xff]  ;;  %v5639_v46 = vsel %vm1134_vm11, %v5603_v44, %v15241_v39 }
 0x67f   : > { %v5736_v35 = vsel %vm1231_vm12, %v16642_v27, %v5699_v2  ;;  %v5667_v18 = vmul.f32 %v5640_v43, %v16643_v56  ;;  %v6043_v24 = vmul.f32 %v16646_v52, %v5571_v25  ;;  %v5735_v10 = vsel %vm1231_vm12, %v5699_v2, %v15243_v34  ;;  %v16649_v56 = vld [vmem:[#allocation216_spill] sm:$0xff]  ;;  %v16654_v44 = vld [vmem:[#allocation29_spill] sm:$0xff] }
 0x680   : > { %v5762_v45 = vmul.f32 %v5736_v35, %v16644_v9  ;;  %v6279_v27 = vmul.f32 %v16647_v61, %v5571_v25  ;;  %v4863_v43 = vmul.f32 %v4827_v49, %v16648_v30  ;;  %v5668_v35 = vmul.f32 %v5639_v46, %v16649_v56  ;;  %v16650_v9 = vld [vmem:[#allocation213_spill] sm:$0xff] }
 0x681   : > { %v5763_v4 = vmul.f32 %v5735_v10, %v16650_v9  ;;  %v5799_v41 = vmul.f32 %v16651_v5, %v5667_v18  ;;  %v6007_v3 = vmul.f32 %v16653_v31, %v5667_v18  ;;  %v6243_v54 = vmul.f32 %v12022_v58, %v5667_v18  ;;  %v16655_v9 = vld [vmem:[#allocation200_spill] sm:$0xff] }
 0x682   : > { %v5902_v23 = vmul.f32 %v16652_v48, %v5762_v45  ;;  %v6110_v39 = vmul.f32 %v16654_v44, %v5762_v45  ;;  %v6346_v2 = vmul.f32 %v16488_v15, %v5762_v45  ;;  %v5800_v25 = vmul.f32 %v16651_v5, %v5668_v35 }
 0x683   : > { %v5867_v34 = vadd.f32 %v5835_v62, %v5799_v41  ;;  %v5903_v49 = vmul.f32 %v16652_v48, %v5763_v4  ;;  %v5836_v10 = vmul.f32 %v16645_v63, %v13145_v59  ;;  %v6044_v56 = vmul.f32 %v16646_v52, %v13145_v59 }
 0x684   : > { %v5934_v46 = vadd.f32 %v5902_v23, %v13032_v20  ;;  %v4864_v30 = vmul.f32 %v4826_v42, %v16655_v9  ;;  %v4900_v18 = vmul.f32 %v11951_v32, %v13152_v17  ;;  %v6008_v45 = vmul.f32 %v16653_v31, %v5668_v35 }
 0x685   : > { %v5935_v6 = vadd.f32 %v5903_v49, %v5867_v34  ;;  %v6075_v5 = vadd.f32 %v6043_v24, %v6007_v3  ;;  %v6280_v41 = vmul.f32 %v16647_v61, %v13145_v59  ;;  %v6111_v23 = vmul.f32 %v16654_v44, %v5763_v4 }
 0x686   : > { %v13212_v20 = vadd.f32 %v6110_v39, %v13035_v47  ;;  %v6311_v62 = vadd.f32 %v6279_v27, %v6243_v54  ;;  %v6347_v48 = vmul.f32 %v16488_v15, %v5763_v4  ;;  %v13215_v52 = vadd.f32 %v5836_v10, %v5800_v25 }
 0x687   : > { %v5970_v42 = vadd.f32 %v16520_v60, %v5934_v46  ;;  %v6244_v34 = vmul.f32 %v12022_v58, %v5668_v35  ;;  %v6378_v3 = vadd.f32 %v6346_v2, %v13070_v33  ;;  %v5971_v24 = vadd.f32 %v16520_v60, %v5935_v6 }
 0x688   : > { %v6379_v49 = vadd.f32 %v6347_v48, %v6311_v62  ;;  %v4968_v9 = vadd.f32 %v4936_v21, %v4900_v18  ;;  %v5003_v47 = vmul.f32 %v16519_v8, %v4863_v43  ;;  %v4901_v4 = vmul.f32 %v11951_v32, %v13155_v14 }
 0x689   : > { %v6440_v54 = vadd.f32 %v6378_v3, %v13076_v36  ;;  %v5004_v39 = vmul.f32 %v16519_v8, %v4864_v30  ;;  %v5108_v27 = vmul.f32 %v11960_v26, %v13152_v17  ;;  %v13228_v35 = vadd.f32 %v6044_v56, %v6008_v45 }
 0x68a   : > { %v13230_v33 = vadd.f32 %v6111_v23, %v6075_v5  ;;  %v6441_v6 = vadd.f32 %v6379_v49, %v13080_v50  ;;  %v5035_v48 = vadd.f32 %v5003_v47, %v13087_v16  ;;  %v5109_v36 = vmul.f32 %v11960_v26, %v13155_v14  ;;  %v16660_v49 = vld [vmem:[#allocation35_spill] sm:$0xff] }
 0x68b   : > { %6472 = vst.msk [vmem:[%s12887_s30 + $0x50] sm:$0xff] %vm357_vm0, %v6440_v54  ;;  %v5036_v21 = vadd.f32 %v5004_v39, %v4968_v9  ;;  %v5176_v2 = vadd.f32 %v13142_v7, %v5108_v27  ;;  %v5211_v25 = vmul.f32 %v16446_v40, %v4863_v43  ;;  %v13240_v46 = vadd.f32 %v6280_v41, %v6244_v34  ;;  %v4599_v41 = vpop.permute.xlu1 %4598  ;;  %v16661_v54 = vld [vmem:[#allocation131_spill] sm:$0xff]  ;;  %v16664_v27 = vld [vmem:[#allocation206_spill] sm:$0xff] }
 0x68c   : > { %6473 = vst.msk [vmem:[%s12887_s30 + $0x58] sm:$0xff] %vm357_vm0, %v6441_v6  ;;  %v13245_v5 = vadd.f32 %v13066_v51, %v5970_v42  ;;  %v5344_v50 = vmul.f32 %v11982_v38, %v13152_v17  ;;  %v5345_v16 = vmul.f32 %v11982_v38, %v13155_v14  ;;  %v13252_v10 = vadd.f32 %v13068_v28, %v5971_v24  ;;  %v16658_v42 = vld [vmem:[#allocation239_spill] sm:$0xff] }
 0x68d   : > { %v13255_v7 = vadd.f32 %v13111_v12, %v4901_v4  ;;  %v5212_v56 = vmul.f32 %v16446_v40, %v4864_v30  ;;  %v5447_v9 = vmul.f32 %v11985_v22, %v4863_v43  ;;  %v5071_v18 = vadd.f32 %v11992_v1, %v5035_v48  ;;  %v16665_v48 = vld [vmem:[#allocation45_spill] sm:$0xff] }
 0x68e   : > { %v5072_v51 = vadd.f32 %v11992_v1, %v5036_v21  ;;  %v5412_v45 = vadd.f32 %v13149_v53, %v5344_v50  ;;  %v5448_v17 = vmul.f32 %v11985_v22, %v4864_v30  ;;  %v13264_v14 = vadd.f32 %v13115_v57, %v5109_v36  ;;  %v4605_v30 = vpop.permute.xlu0 %4604  ;;  %v16666_v36 = vld [vmem:[#allocation203_spill] sm:$0xff] }
 0x68f   : > { %v13267_v28 = vadd.f32 %v5211_v25, %v13090_v29  ;;  %v13269_v12 = vadd.f32 %v5212_v56, %v5176_v2  ;;  %v5479_v23 = vadd.f32 %v5447_v9, %v13104_v37  ;;  %v13273_v43 = vadd.f32 %v13119_v0, %v5345_v16  ;;  %v16659_v37 = vld [vmem:[#allocation232_spill] sm:$0xff] }
 0x690   : > { %v5480_v62 = vadd.f32 %v5448_v17, %v5412_v45  ;;  %v13280_v57 = vmul.f32 %v16629_v13, %v16658_v42  ;;  %v13284_v29 = vmul.f32 %v16630_v55, %v16658_v42  ;;  %v13287_v24 = vadd.f32 %v4599_v41, %v16659_v37  ;;  %v16667_v2 = vld [vmem:[#allocation168_spill] sm:$0xff] }
 0x691   : > { %16656 = vst [vmem:[#allocation170_spill] sm:$0xff] %v13267_v28  ;;  %16657 = vst [vmem:[#allocation208_spill] sm:$0xff] %v13269_v12  ;;  %v5541_v3 = vadd.f32 %v5479_v23, %v13133_v19  ;;  %v13292_v47 = vmul.f32 %v16660_v49, %v16658_v42  ;;  %v13295_v4 = vadd.f32 %v16661_v54, %v5071_v18  ;;  %v16662_v19 = vld [vmem:[#allocation240_spill] sm:$0xff]  ;;  %v16672_v18 = vld [vmem:[#allocation201_spill] sm:$0xff] }
 0x692   : > { %v5542_v0 = vadd.f32 %v5480_v62, %v13136_v11  ;;  %v13298_v39 = vadd.f32 %v16662_v19, %v5072_v51  ;;  %v13302_v21 = vadd.f32 %v4605_v30, %v16665_v48  ;;  %v13306_v25 = vmul.f32 %v16667_v2, %v16666_v36  ;;  %v16669_v11 = vld [vmem:[#allocation221_spill] sm:$0xff]  ;;  %v16671_v16 = vld [vmem:[#allocation132_spill] sm:$0xff] }
 0x693   : > { %v5573_v6 = vmul.f32 %v5541_v3, %v16664_v27  ;;  %v13310_v50 = vmul.f32 %v16667_v2, %v16669_v11  ;;  %v4706_v9 = vrot.slane %v13287_v24, 7  ;;  %v13318_v51 = vmul.f32 %v16667_v2, %v16672_v18  ;;  %v16674_v45 = vld [vmem:[#allocation204_spill] sm:$0xff]  ;;  %v16684_v28 = vld [vmem:[#allocation205_spill] sm:$0xff] }
 0x694   : > { %16663 = vst [vmem:[#allocation28_spill] sm:$0xff] %v13298_v39  ;;  %16668 = vst [vmem:[#allocation61_spill] sm:$0xff] %v13306_v25  ;;  %v13313_v56 = vmul.f32 %v5542_v0, %v16671_v16  ;;  %v13322_v17 = vmul.f32 %v16667_v2, %v16674_v45  ;;  %v4802_v62 = vrot.slane %v13287_v24, 1  ;;  %v4938_v30 = vmul.f32 %v16629_v13, %v13287_v24  ;;  %v16679_v45 = vld [vmem:[#allocation116_spill] sm:$0xff]  ;;  %v16681_v2 = vld [vmem:[#allocation118_spill] sm:$0xff] }
 0x695   : > { %16670 = vst [vmem:[#allocation52_spill] sm:$0xff] %v13310_v50  ;;  %16673 = vst [vmem:[#allocation76_spill] sm:$0xff] %v13318_v51  ;;  %v5605_v41 = vrot.slane %v5573_v6, 7  ;;  %v5701_v23 = vrot.slane %v5573_v6, 1  ;;  %v13331_v0 = vmul.f32 %v16630_v55, %v13287_v24  ;;  %v13335_v54 = vmul.f32 %v16660_v49, %v13287_v24  ;;  %v16683_v50 = vld [vmem:[#allocation253_spill] sm:$0xff] }
 0x696   : > { %16675 = vst [vmem:[#allocation67_spill] sm:$0xff] %v13322_v17  ;;  %v15249_v3 = vrot.slane %v13313_v56, 7  ;;  %v15250_v37 = vrot.slane %v13313_v56, 1  ;;  %v16676_v19 = vrot.slane %v13145_v59, 7  ;;  %v16678_v36 = vrot.slane %v13145_v59, 1  ;;  %v16680_v59 = vld [vmem:[#allocation222_spill] sm:$0xff] }
 0x697   : > { %v5837_v16 = vmul.f32 %v16645_v63, %v5573_v6  ;;  %v16682_v17 = vld [vmem:[#allocation117_spill] sm:$0xff]  ;;  %v5838_v18 = vmul.f32 %v16645_v63, %v13313_v56  ;;  %v6045_v12 = vmul.f32 %v16683_v50, %v5573_v6  ;;  %v16690_v25 = vrot.slane %v16658_v42, 7 }
 0x698   : > { %v5638_v48 = vsel %vm1134_vm11, %v16676_v19, %v5605_v41  ;;  %v5734_v11 = vsel %vm1231_vm12, %v16678_v36, %v5701_v23  ;;  %v5637_v24 = vsel %vm1134_vm11, %v5605_v41, %v15249_v3  ;;  %v5733_v19 = vsel %vm1231_vm12, %v5701_v23, %v15250_v37  ;;  %v16685_v3 = vld [vmem:[#allocation148_spill] sm:$0xff] }
 0x699   : > { %v5669_v53 = vmul.f32 %v5638_v48, %v16679_v45  ;;  %v5764_v34 = vmul.f32 %v5734_v11, %v16680_v59  ;;  %v5670_v36 = vmul.f32 %v5637_v24, %v16681_v2  ;;  %v5765_v51 = vmul.f32 %v5733_v19, %v16682_v17  ;;  %v16686_v24 = vld [vmem:[#allocation103_spill] sm:$0xff] }
 0x69a   : > { %v6046_v45 = vmul.f32 %v16683_v50, %v13313_v56  ;;  %v6281_v17 = vmul.f32 %v16647_v61, %v5573_v6  ;;  %v16687_v19 = vrot.slane %v16686_v24, 7  ;;  %v6282_v6 = vmul.f32 %v16647_v61, %v13313_v56 }
 0x69b   : > { %v5801_v41 = vmul.f32 %v16684_v28, %v5669_v53  ;;  %v5904_v48 = vmul.f32 %v16685_v3, %v5764_v34  ;;  %v6112_v23 = vmul.f32 %v16654_v44, %v5764_v34  ;;  %v5905_v11 = vmul.f32 %v16685_v3, %v5765_v51 }
 0x69c   : > { %v6010_v2 = vmul.f32 %v16653_v31, %v5670_v36  ;;  %v4729_v59 = vsel %vm1134_vm11, %v16687_v19, %v4706_v9  ;;  %v6009_v49 = vmul.f32 %v16653_v31, %v5669_v53  ;;  %v6245_v3 = vmul.f32 %v12022_v58, %v5669_v53 }
 0x69d   : > { %v5869_v37 = vadd.f32 %v5837_v16, %v5801_v41  ;;  %v5936_v63 = vadd.f32 %v5904_v48, %v13215_v52  ;;  %v13377_v50 = vadd.f32 %v6112_v23, %v13228_v35  ;;  %v4728_v19 = vsel %vm1134_vm11, %v4706_v9, %v16690_v25  ;;  %v16691_v23 = vld [vmem:[#allocation176_spill] sm:$0xff]  ;;  %v16692_v25 = vld [vmem:[#allocation33_spill] sm:$0xff] }
 0x69e   : > { %v13379_v39 = vadd.f32 %v6046_v45, %v6010_v2  ;;  %v5802_v16 = vmul.f32 %v16684_v28, %v5670_v36  ;;  %v6113_v41 = vmul.f32 %v16654_v44, %v5765_v51  ;;  %v6348_v35 = vmul.f32 %v16488_v15, %v5764_v34 }
 0x69f   : > { %16688 = vst [vmem:[#allocation134_spill] sm:$0xff] %v13377_v50  ;;  %v5972_v52 = vadd.f32 %v16520_v60, %v5936_v63  ;;  %v5937_v48 = vadd.f32 %v5905_v11, %v5869_v37  ;;  %v6313_v45 = vadd.f32 %v6281_v17, %v6245_v3  ;;  %v6349_v53 = vmul.f32 %v16488_v15, %v5765_v51  ;;  %v16696_v11 = vld [vmem:[#allocation31_spill] sm:$0xff] }
 0x6a0   : > { %16689 = vst [vmem:[#allocation142_spill] sm:$0xff] %v13379_v39  ;;  %v4770_v2 = vmul.f32 %v4729_v59, %v16691_v23  ;;  %v6077_v50 = vadd.f32 %v6045_v12, %v6009_v49  ;;  %v6380_v39 = vadd.f32 %v6348_v35, %v13240_v46  ;;  %v4771_v9 = vmul.f32 %v4728_v19, %v16692_v25  ;;  %v16695_v49 = vld [vmem:[#allocation13_spill] sm:$0xff]  ;;  %v4609_v35 = vpop.permute.xlu0 %4608 }
 0x6a1   : > { %v13396_v61 = vadd.f32 %v13212_v20, %v5972_v52  ;;  %v6381_v63 = vadd.f32 %v6349_v53, %v6313_v45  ;;  %v16693_v31 = vrot.slane %v16658_v42, 1  ;;  %v16694_v3 = vrot.slane %v16686_v24, 1 }
 0x6a2   : > { %v4902_v12 = vmul.f32 %v11951_v32, %v4770_v2  ;;  %v6246_v20 = vmul.f32 %v12022_v58, %v5670_v36  ;;  %v6442_v46 = vadd.f32 %v6380_v39, %v13245_v5  ;;  %v5973_v59 = vadd.f32 %v16520_v60, %v5937_v48  ;;  %v4603_v39 = vpop.permute.xlu1 %4602 }
 0x6a3   : > { %v4824_v34 = vsel %vm1231_vm12, %v4802_v62, %v16693_v31  ;;  %v4825_v51 = vsel %vm1231_vm12, %v16694_v3, %v4802_v62  ;;  %v6443_v31 = vadd.f32 %v6381_v63, %v13252_v10  ;;  %v5110_v24 = vmul.f32 %v11960_v26, %v4770_v2 }
 0x6a4   : > { %v4865_v37 = vmul.f32 %v4825_v51, %v16695_v49  ;;  %v4866_v17 = vmul.f32 %v4824_v34, %v16696_v11  ;;  %v4970_v19 = vadd.f32 %v4938_v30, %v4902_v12  ;;  %v13415_v52 = vadd.f32 %v5838_v18, %v5802_v16  ;;  %6474 = vst.msk [vmem:[%s12887_s30 + $0x60] sm:$0xff] %vm357_vm0, %v6442_v46  ;;  %v16724_v49 = vld [vmem:[#allocation253_spill] sm:$0xff] }
 0x6a5   : > { %v13417_v62 = vadd.f32 %v6113_v41, %v6077_v50  ;;  %6475 = vst.msk [vmem:[%s12887_s30 + $0x68] sm:$0xff] %vm357_vm0, %v6443_v31  ;;  %v4903_v48 = vmul.f32 %v11951_v32, %v4771_v9  ;;  %v5111_v10 = vmul.f32 %v11960_v26, %v4771_v9  ;;  %v5346_v18 = vmul.f32 %v11982_v38, %v4770_v2 }
 0x6a6   : > { %v5005_v36 = vmul.f32 %v16519_v8, %v4865_v37  ;;  %v5006_v5 = vmul.f32 %v16519_v8, %v4866_v17  ;;  %v5213_v30 = vmul.f32 %v16446_v40, %v4865_v37  ;;  %v13429_v50 = vadd.f32 %v6282_v6, %v6246_v20 }
 0x6a7   : > { %v5178_v45 = vadd.f32 %v13331_v0, %v5110_v24  ;;  %v13434_v53 = vadd.f32 %v13230_v33, %v5973_v59  ;;  %v5347_v63 = vmul.f32 %v11982_v38, %v4771_v9  ;;  %v5414_v34 = vadd.f32 %v13335_v54, %v5346_v18  ;;  %v4613_v59 = vpop.permute.xlu0 %4612  ;;  %v16701_v24 = vld [vmem:[#allocation35_spill] sm:$0xff] }
 0x6a8   : > { %v5037_v16 = vadd.f32 %v5005_v36, %v13255_v7  ;;  %v5038_v41 = vadd.f32 %v5006_v5, %v4970_v19  ;;  %v5449_v3 = vmul.f32 %v11985_v22, %v4865_v37  ;;  %v5214_v6 = vmul.f32 %v16446_v40, %v4866_v17  ;;  %v16702_v5 = vld [vmem:[#allocation170_spill] sm:$0xff]  ;;  %v16719_v37 = vld [vmem:[#allocation115_spill] sm:$0xff] }
 0x6a9   : > { %v5450_v7 = vmul.f32 %v11985_v22, %v4866_v17  ;;  %v13444_v12 = vadd.f32 %v13280_v57, %v4903_v48  ;;  %v13447_v33 = vadd.f32 %v13284_v29, %v5111_v10  ;;  %v13450_v0 = vadd.f32 %v5213_v30, %v13264_v14  ;;  %v4607_v17 = vpop.permute.xlu1 %4606  ;;  %v16704_v30 = vld [vmem:[#allocation228_spill] sm:$0xff] }
 0x6aa   : > { %v5073_v51 = vadd.f32 %v11992_v1, %v5037_v16  ;;  %v5074_v2 = vadd.f32 %v11992_v1, %v5038_v41  ;;  %v5481_v54 = vadd.f32 %v5449_v3, %v13273_v43  ;;  %v13453_v9 = vadd.f32 %v5214_v6, %v5178_v45  ;;  %v16699_v43 = vld [vmem:[#allocation61_spill] sm:$0xff]  ;;  %v16705_v16 = vld [vmem:[#allocation52_spill] sm:$0xff]  ;;  %v16710_v3 = vld [vmem:[#allocation235_spill] sm:$0xff] }
 0x6ab   : > { %16697 = vst [vmem:[#allocation158_spill] sm:$0xff] %v13450_v0  ;;  %v13456_v20 = vadd.f32 %v13292_v47, %v5347_v63  ;;  %v5482_v46 = vadd.f32 %v5450_v7, %v5414_v34  ;;  %v13462_v29 = vmul.f32 %v16629_v13, %v13302_v21  ;;  %v13466_v14 = vmul.f32 %v16630_v55, %v13302_v21  ;;  %v16700_v47 = vld [vmem:[#allocation28_spill] sm:$0xff]  ;;  %v16708_v63 = vld [vmem:[#allocation67_spill] sm:$0xff]  ;;  %v16711_v7 = vld [vmem:[#allocation237_spill] sm:$0xff] }
 0x6ac   : > { %16698 = vst [vmem:[#allocation178_spill] sm:$0xff] %v13453_v9  ;;  %v5543_v57 = vadd.f32 %v5481_v54, %v13295_v4  ;;  %v13469_v31 = vadd.f32 %v4603_v39, %v16699_v43  ;;  %v13474_v36 = vmul.f32 %v16701_v24, %v13302_v21  ;;  %v13477_v48 = vadd.f32 %v16702_v5, %v5073_v51  ;;  %v16703_v4 = vld [vmem:[#allocation208_spill] sm:$0xff] }
 0x6ad   : > { %v5544_v19 = vadd.f32 %v5482_v46, %v16700_v47  ;;  %v13480_v10 = vadd.f32 %v16703_v4, %v5074_v2  ;;  %v13484_v41 = vadd.f32 %v4609_v35, %v16705_v16  ;;  %v16707_v45 = vld [vmem:[#allocation76_spill] sm:$0xff]  ;;  %v13490_v34 = vadd.f32 %v4613_v59, %v16708_v63  ;;  %v16714_v46 = vld [vmem:[#allocation138_spill] sm:$0xff] }
 0x6ae   : > { %v5575_v18 = vmul.f32 %v5543_v57, %v16704_v30  ;;  %v13487_v39 = vadd.f32 %v4607_v17, %v16707_v45  ;;  %v4708_v51 = vrot.slane %v13469_v31, 7  ;;  %v16712_v54 = vld [vmem:[#allocation168_spill] sm:$0xff]  ;;  %v4804_v17 = vrot.slane %v13469_v31, 1 }
 0x6af   : > { %16706 = vst [vmem:[#allocation135_spill] sm:$0xff] %v13484_v41  ;;  %16709 = vst [vmem:[#allocation197_spill] sm:$0xff] %v13490_v34  ;;  %v13493_v6 = vmul.f32 %v5544_v19, %v16710_v3  ;;  %v13498_v2 = vmul.f32 %v16712_v54, %v16711_v7  ;;  %v13502_v57 = vmul.f32 %v16712_v54, %v16714_v46  ;;  %v16716_v30 = vrot.slane %v13313_v56, 7  ;;  %v16718_v3 = vld [vmem:[#allocation234_spill] sm:$0xff] }
 0x6b0   : > { %v5607_v35 = vrot.slane %v5575_v18, 7  ;;  %v5703_v43 = vrot.slane %v5575_v18, 1  ;;  %v4940_v59 = vmul.f32 %v16629_v13, %v13469_v31  ;;  %v13511_v5 = vmul.f32 %v16630_v55, %v13469_v31  ;;  %v16722_v54 = vld [vmem:[#allocation238_spill] sm:$0xff] }
 0x6b1   : > { %16713 = vst [vmem:[#allocation179_spill] sm:$0xff] %v13498_v2  ;;  %16715 = vst [vmem:[#allocation159_spill] sm:$0xff] %v13502_v57  ;;  %v15258_v47 = vrot.slane %v13493_v6, 7  ;;  %v13515_v4 = vmul.f32 %v16701_v24, %v13469_v31  ;;  %v16717_v45 = vrot.slane %v13313_v56, 1  ;;  %v5839_v7 = vmul.f32 %v16718_v3, %v5575_v18  ;;  %v16721_v56 = vld [vmem:[#allocation119_spill] sm:$0xff]  ;;  %v16723_v57 = vld [vmem:[#allocation233_spill] sm:$0xff] }
 0x6b2   : > { %v5636_v16 = vsel %vm1134_vm11, %v16716_v30, %v5607_v35  ;;  %v16720_v11 = vrot.slane %v13493_v6, 1  ;;  %v5840_v46 = vmul.f32 %v16718_v3, %v13493_v6  ;;  %v6047_v23 = vmul.f32 %v16724_v49, %v5575_v18  ;;  %v16728_v34 = vld [vmem:[#allocation142_spill] sm:$0xff] }
 0x6b3   : > { %v5732_v63 = vsel %vm1231_vm12, %v16717_v45, %v5703_v43  ;;  %v5635_v31 = vsel %vm1134_vm11, %v5607_v35, %v15258_v47  ;;  %v5671_v19 = vmul.f32 %v5636_v16, %v16719_v37  ;;  %v16725_v47 = vld [vmem:[#allocation148_spill] sm:$0xff]  ;;  %v6048_v16 = vmul.f32 %v16724_v49, %v13493_v6 }
 0x6b4   : > { %v5731_v30 = vsel %vm1231_vm12, %v5703_v43, %v16720_v11  ;;  %v5766_v25 = vmul.f32 %v5732_v63, %v16721_v56  ;;  %v5672_v45 = vmul.f32 %v5635_v31, %v16722_v54  ;;  %v16726_v63 = vld [vmem:[#allocation161_spill] sm:$0xff]  ;;  %v16730_v0 = vrot.slane %v16658_v42, 7 }
 0x6b5   : > { %v5767_v2 = vmul.f32 %v5731_v30, %v16723_v57  ;;  %v5803_v35 = vmul.f32 %v16684_v28, %v5671_v19  ;;  %v6011_v54 = vmul.f32 %v16726_v63, %v5671_v19  ;;  %v16727_v31 = vld [vmem:[#allocation249_spill] sm:$0xff]  ;;  %v6247_v55 = vmul.f32 %v12022_v58, %v5671_v19 }
 0x6b6   : > { %v5906_v37 = vmul.f32 %v16725_v47, %v5766_v25  ;;  %v6114_v11 = vmul.f32 %v16654_v44, %v5766_v25  ;;  %v6012_v57 = vmul.f32 %v16726_v63, %v5672_v45  ;;  %v6283_v30 = vmul.f32 %v16727_v31, %v5575_v18 }
 0x6b7   : > { %v5907_v43 = vmul.f32 %v16725_v47, %v5767_v2  ;;  %v5871_v56 = vadd.f32 %v5839_v7, %v5803_v35  ;;  %v4727_v49 = vsel %vm1134_vm11, %v16730_v0, %v4708_v51  ;;  %v5804_v24 = vmul.f32 %v16684_v28, %v5672_v45 }
 0x6b8   : > { %v5938_v3 = vadd.f32 %v5906_v37, %v13415_v52  ;;  %v13553_v9 = vadd.f32 %v6114_v11, %v16728_v34  ;;  %v13560_v47 = vadd.f32 %v6048_v16, %v6012_v57  ;;  %v16732_v63 = vrot.slane %v13302_v21, 7  ;;  %v16733_v16 = vld [vmem:[#allocation40_spill] sm:$0xff] }
 0x6b9   : > { %v5939_v52 = vadd.f32 %v5907_v43, %v5871_v56  ;;  %v6115_v7 = vmul.f32 %v16654_v44, %v5767_v2  ;;  %v6350_v35 = vmul.f32 %v16488_v15, %v5766_v25  ;;  %v6079_v37 = vadd.f32 %v6047_v23, %v6011_v54  ;;  %v16735_v43 = vld [vmem:[#allocation46_spill] sm:$0xff] }
 0x6ba   : > { %16729 = vst [vmem:[#allocation184_spill] sm:$0xff] %v13553_v9  ;;  %16731 = vst [vmem:[#allocation125_spill] sm:$0xff] %v13560_v47  ;;  %v4726_v18 = vsel %vm1134_vm11, %v4708_v51, %v16732_v63  ;;  %v5974_v34 = vadd.f32 %v16520_v60, %v5938_v3  ;;  %v6315_v0 = vadd.f32 %v6283_v30, %v6247_v55  ;;  %v16734_v47 = vld [vmem:[#allocation134_spill] sm:$0xff]  ;;  %v16736_v56 = vrot.slane %v13302_v21, 1 }
 0x6bb   : > { %v6351_v11 = vmul.f32 %v16488_v15, %v5767_v2  ;;  %v4772_v57 = vmul.f32 %v4727_v49, %v16733_v16  ;;  %v5975_v19 = vadd.f32 %v16520_v60, %v5939_v52  ;;  %v6382_v9 = vadd.f32 %v6350_v35, %v13429_v50  ;;  %v16739_v30 = vld [vmem:[#allocation42_spill] sm:$0xff] }
 0x6bc   : > { %v13575_v51 = vadd.f32 %v16734_v47, %v5974_v34  ;;  %v4773_v3 = vmul.f32 %v4726_v18, %v16735_v43  ;;  %v4822_v55 = vsel %vm1231_vm12, %v4804_v17, %v16736_v56  ;;  %v16737_v23 = vrot.slane %v16658_v42, 1  ;;  %v16738_v47 = vld [vmem:[#allocation37_spill] sm:$0xff] }
 0x6bd   : > { %v6383_v63 = vadd.f32 %v6351_v11, %v6315_v0  ;;  %v4904_v49 = vmul.f32 %v11951_v32, %v4772_v57  ;;  %v6444_v50 = vadd.f32 %v6382_v9, %v13396_v61  ;;  %v13589_v2 = vadd.f32 %v13417_v62, %v5975_v19 }
 0x6be   : > { %v4823_v25 = vsel %vm1231_vm12, %v16737_v23, %v4804_v17  ;;  %v4868_v18 = vmul.f32 %v4822_v55, %v16739_v30  ;;  %v6248_v52 = vmul.f32 %v12022_v58, %v5672_v45  ;;  %v5112_v35 = vmul.f32 %v11960_v26, %v4772_v57  ;;  %v16759_v30 = vld [vmem:[#allocation176_spill] sm:$0xff] }
 0x6bf   : > { %v4867_v54 = vmul.f32 %v4823_v25, %v16738_v47  ;;  %v6445_v34 = vadd.f32 %v6383_v63, %v13434_v53  ;;  %v4972_v42 = vadd.f32 %v4940_v59, %v4904_v49  ;;  %v6284_v17 = vmul.f32 %v16727_v31, %v13493_v6  ;;  %6476 = vst.msk [vmem:[%s12887_s30 + $0x70] sm:$0xff] %vm357_vm0, %v6444_v50 }
 0x6c0   : > { %v4905_v61 = vmul.f32 %v11951_v32, %v4773_v3  ;;  %v5008_v9 = vmul.f32 %v16519_v8, %v4868_v18  ;;  %v13603_v0 = vadd.f32 %v5840_v46, %v5804_v24  ;;  %v5113_v53 = vmul.f32 %v11960_v26, %v4773_v3 }
 0x6c1   : > { %v5007_v62 = vmul.f32 %v16519_v8, %v4867_v54  ;;  %6477 = vst.msk [vmem:[%s12887_s30 + $0x78] sm:$0xff] %vm357_vm0, %v6445_v34  ;;  %v5215_v59 = vmul.f32 %v16446_v40, %v4867_v54  ;;  %v5348_v45 = vmul.f32 %v11982_v38, %v4772_v57  ;;  %v13610_v11 = vadd.f32 %v6115_v7, %v6079_v37  ;;  %v536_v34 = vpop.f32.mrf.mxu0  ;;  %v16765_v27 = vld [vmem:[#allocation125_spill] sm:$0xff] }
 0x6c2   : > { %v5040_v63 = vadd.f32 %v5008_v9, %v4972_v42  ;;  %v5180_v56 = vadd.f32 %v13511_v5, %v5112_v35  ;;  %v13614_v55 = vadd.f32 %v6284_v17, %v6248_v52  ;;  %v5349_v24 = vmul.f32 %v11982_v38, %v4773_v3  ;;  %v16742_v42 = vld [vmem:[#allocation220_spill] sm:$0xff]  ;;  %v16743_v35 = vld [vmem:[#allocation35_spill] sm:$0xff]  ;;  %v16745_v9 = vld [vmem:[#allocation178_spill] sm:$0xff] }
 0x6c3   : > { %v5039_v19 = vadd.f32 %v5007_v62, %v13444_v12  ;;  %v5416_v46 = vadd.f32 %v13515_v4, %v5348_v45  ;;  %v5451_v23 = vmul.f32 %v11985_v22, %v4867_v54  ;;  %v13620_v25 = vadd.f32 %v13462_v29, %v4905_v61 }
 0x6c4   : > { %v5216_v7 = vmul.f32 %v16446_v40, %v4868_v18  ;;  %v5452_v12 = vmul.f32 %v11985_v22, %v4868_v18  ;;  %v5076_v37 = vadd.f32 %v11992_v1, %v5040_v63  ;;  %v13627_v5 = vadd.f32 %v13466_v14, %v5113_v53  ;;  %v16748_v63 = vld [vmem:[#allocation50_spill] sm:$0xff] }
 0x6c5   : > { %v5075_v57 = vadd.f32 %v11992_v1, %v5039_v19  ;;  %v13630_v3 = vadd.f32 %v5215_v59, %v13447_v33  ;;  %v5483_v4 = vadd.f32 %v5451_v23, %v13456_v20  ;;  %v13636_v29 = vadd.f32 %v13474_v36, %v5349_v24 }
 0x6c6   : > { %v13633_v49 = vadd.f32 %v5216_v7, %v5180_v56  ;;  %v5484_v50 = vadd.f32 %v5452_v12, %v5416_v46  ;;  %v15266_v54 = vrot.slane %v13484_v41, 1  ;;  %v13642_v52 = vmul.f32 %v16629_v13, %v13484_v41 }
 0x6c7   : > { %16740 = vst [vmem:[#allocation51_spill] sm:$0xff] %v13630_v3  ;;  %v5545_v18 = vadd.f32 %v5483_v4, %v13477_v48  ;;  %v4710_v14 = vrot.slane %v13487_v39, 7  ;;  %v4806_v33 = vrot.slane %v13487_v39, 1  ;;  %v13649_v36 = vmul.f32 %v16742_v42, %v13484_v41  ;;  %v16744_v48 = vld [vmem:[#allocation158_spill] sm:$0xff] }
 0x6c8   : > { %16741 = vst [vmem:[#allocation136_spill] sm:$0xff] %v13633_v49  ;;  %v5546_v20 = vadd.f32 %v5484_v50, %v13480_v10  ;;  %v13653_v17 = vmul.f32 %v16743_v35, %v13484_v41  ;;  %v13656_v61 = vadd.f32 %v16744_v48, %v5075_v57  ;;  %v13659_v53 = vadd.f32 %v16745_v9, %v5076_v37  ;;  %v16749_v37 = vld [vmem:[#allocation197_spill] sm:$0xff] }
 0x6c9   : > { %v5577_v62 = vmul.f32 %v5545_v18, %v536_v34  ;;  %v16746_v59 = vrot.slane %v13484_v41, 7  ;;  %v16747_v45 = vrot.slane %v13302_v21, 7  ;;  %v4942_v24 = vmul.f32 %v16629_v13, %v13487_v39 }
 0x6ca   : > { %v13670_v56 = vmul.f32 %v5546_v20, %v16748_v63  ;;  %v13676_v46 = vmul.f32 %v16742_v42, %v13487_v39  ;;  %v13680_v23 = vmul.f32 %v16743_v35, %v13487_v39  ;;  %v4820_v12 = vsel %vm1231_vm12, %v4806_v33, %v15266_v54  ;;  %v16751_v20 = vld [vmem:[#allocation62_spill] sm:$0xff]  ;;  %v16766_v35 = vld [vmem:[#allocation57_spill] sm:$0xff] }
 0x6cb   : > { %v4724_v10 = vsel %vm1134_vm11, %v4710_v14, %v16746_v59  ;;  %v4725_v19 = vsel %vm1134_vm11, %v16747_v45, %v4710_v14  ;;  %v5609_v57 = vrot.slane %v5577_v62, 7  ;;  %v5705_v7 = vrot.slane %v5577_v62, 1  ;;  %v16750_v14 = vld [vmem:[#allocation48_spill] sm:$0xff]  ;;  %v16754_v63 = vld [vmem:[#allocation234_spill] sm:$0xff] }
 0x6cc   : > { %v15269_v50 = vrot.slane %v13670_v56, 7  ;;  %v4774_v34 = vmul.f32 %v4725_v19, %v16750_v14  ;;  %v4775_v48 = vmul.f32 %v4724_v10, %v16751_v20  ;;  %v16752_v39 = vrot.slane %v13493_v6, 7  ;;  %v16756_v19 = vld [vmem:[#allocation186_spill] sm:$0xff] }
 0x6cd   : > { %v16753_v59 = vrot.slane %v13493_v6, 1  ;;  %v5841_v54 = vmul.f32 %v16754_v63, %v5577_v62  ;;  %v16755_v4 = vrot.slane %v13302_v21, 1  ;;  %v16760_v21 = vld [vmem:[#allocation13_spill] sm:$0xff]  ;;  %v4870_v42 = vmul.f32 %v4820_v12, %v16766_v35  ;;  %v16790_v35 = vld [vmem:[#allocation40_spill] sm:$0xff] }
 0x6ce   : > { %v5634_v9 = vsel %vm1134_vm11, %v16752_v39, %v5609_v57  ;;  %v5633_v10 = vsel %vm1134_vm11, %v5609_v57, %v15269_v50  ;;  %v16757_v39 = vrot.slane %v13670_v56, 1  ;;  %v16762_v50 = vld [vmem:[#allocation148_spill] sm:$0xff] }
 0x6cf   : > { %v5730_v45 = vsel %vm1231_vm12, %v16753_v59, %v5705_v7  ;;  %v4821_v18 = vsel %vm1231_vm12, %v16755_v4, %v4806_v33  ;;  %v5673_v20 = vmul.f32 %v5634_v9, %v16756_v19  ;;  %v16758_v59 = vld [vmem:[#allocation200_spill] sm:$0xff]  ;;  %v5674_v43 = vmul.f32 %v5633_v10, %v16759_v30  ;;  %v16761_v4 = vld [vmem:[#allocation253_spill] sm:$0xff] }
 0x6d0   : > { %v5729_v6 = vsel %vm1231_vm12, %v5705_v7, %v16757_v39  ;;  %v5768_v14 = vmul.f32 %v5730_v45, %v16758_v59  ;;  %v5842_v33 = vmul.f32 %v16754_v63, %v13670_v56  ;;  %v6049_v47 = vmul.f32 %v16761_v4, %v5577_v62  ;;  %v16763_v39 = vld [vmem:[#allocation161_spill] sm:$0xff] }
 0x6d1   : > { %v5769_v41 = vmul.f32 %v5729_v6, %v16760_v21  ;;  %v5805_v57 = vmul.f32 %v16684_v28, %v5673_v20  ;;  %v6050_v19 = vmul.f32 %v16761_v4, %v13670_v56  ;;  %v6013_v30 = vmul.f32 %v16763_v39, %v5673_v20  ;;  %v16764_v6 = vld [vmem:[#allocation47_spill] sm:$0xff] }
 0x6d2   : > { %v5908_v9 = vmul.f32 %v16762_v50, %v5768_v14  ;;  %v6116_v7 = vmul.f32 %v16654_v44, %v5768_v14  ;;  %v6014_v10 = vmul.f32 %v16763_v39, %v5674_v43  ;;  %v4869_v59 = vmul.f32 %v4821_v18, %v16764_v6  ;;  %v16791_v6 = vld [vmem:[#allocation37_spill] sm:$0xff] }
 0x6d3   : > { %v5909_v45 = vmul.f32 %v16762_v50, %v5769_v41  ;;  %v5806_v21 = vmul.f32 %v16684_v28, %v5674_v43  ;;  %v5873_v16 = vadd.f32 %v5841_v54, %v5805_v57  ;;  %v6249_v4 = vmul.f32 %v12022_v58, %v5673_v20 }
 0x6d4   : > { %v5940_v63 = vadd.f32 %v5908_v9, %v13603_v0  ;;  %v13731_v49 = vadd.f32 %v6116_v7, %v16765_v27  ;;  %v13733_v3 = vadd.f32 %v6050_v19, %v6014_v10  ;;  %v6285_v50 = vmul.f32 %v16727_v31, %v5577_v62 }
 0x6d5   : > { %v5941_v13 = vadd.f32 %v5909_v45, %v5873_v16  ;;  %v6117_v39 = vmul.f32 %v16654_v44, %v5769_v41  ;;  %v6286_v18 = vmul.f32 %v16727_v31, %v13670_v56  ;;  %v6352_v54 = vmul.f32 %v16488_v15, %v5768_v14 }
 0x6d6   : > { %v6081_v0 = vadd.f32 %v6049_v47, %v6013_v30  ;;  %v6317_v57 = vadd.f32 %v6285_v50, %v6249_v4  ;;  %v6353_v27 = vmul.f32 %v16488_v15, %v5769_v41  ;;  %v4906_v9 = vmul.f32 %v11951_v32, %v4774_v34 }
 0x6d7   : > { %v13744_v19 = vadd.f32 %v5842_v33, %v5806_v21  ;;  %v6250_v62 = vmul.f32 %v12022_v58, %v5674_v43  ;;  %v6384_v16 = vadd.f32 %v6352_v54, %v13614_v55  ;;  %v5009_v12 = vmul.f32 %v16519_v8, %v4869_v59 }
 0x6d8   : > { %v6385_v20 = vadd.f32 %v6353_v27, %v6317_v57  ;;  %v4974_v7 = vadd.f32 %v4942_v24, %v4906_v9  ;;  %v5010_v45 = vmul.f32 %v16519_v8, %v4870_v42  ;;  %v5114_v47 = vmul.f32 %v11960_v26, %v4774_v34  ;;  %v16767_v57 = vld [vmem:[#allocation184_spill] sm:$0xff] }
 0x6d9   : > { %v5976_v41 = vadd.f32 %v16520_v60, %v5940_v63  ;;  %v5977_v50 = vadd.f32 %v16520_v60, %v5941_v13  ;;  %v6446_v14 = vadd.f32 %v6384_v16, %v13575_v51  ;;  %v5115_v33 = vmul.f32 %v11960_v26, %v4775_v48 }
 0x6da   : > { %v6447_v43 = vadd.f32 %v6385_v20, %v13589_v2  ;;  %v4907_v55 = vmul.f32 %v11951_v32, %v4775_v48  ;;  %v5041_v4 = vadd.f32 %v5009_v12, %v13620_v25  ;;  %v5042_v24 = vadd.f32 %v5010_v45, %v4974_v7  ;;  %v16770_v20 = vld [vmem:[#allocation179_spill] sm:$0xff]  ;;  %v16771_v7 = vld [vmem:[#allocation24_spill] sm:$0xff] }
 0x6db   : > { %6478 = vst.msk [vmem:[%s12887_s30 + $0x80] sm:$0xff] %vm357_vm0, %v6446_v14  ;;  %v5182_v30 = vadd.f32 %v13676_v46, %v5114_v47  ;;  %v13762_v10 = vadd.f32 %v13649_v36, %v5115_v33  ;;  %v5217_v13 = vmul.f32 %v16446_v40, %v4869_v59  ;;  %v5350_v51 = vmul.f32 %v11982_v38, %v4774_v34  ;;  %v4611_v34 = vpop.permute.xlu1 %4610  ;;  %v16772_v45 = vld [vmem:[#allocation220_spill] sm:$0xff]  ;;  %v16775_v14 = vld [vmem:[#allocation51_spill] sm:$0xff] }
 0x6dc   : > { %v13766_v63 = vadd.f32 %v6117_v39, %v6081_v0  ;;  %v13768_v21 = vadd.f32 %v6286_v18, %v6250_v62  ;;  %6479 = vst.msk [vmem:[%s12887_s30 + $0x88] sm:$0xff] %vm357_vm0, %v6447_v43  ;;  %v5351_v2 = vmul.f32 %v11982_v38, %v4775_v48  ;;  %v5453_v25 = vmul.f32 %v11985_v22, %v4869_v59  ;;  %v4617_v62 = vpop.permute.xlu0 %4616  ;;  %v16776_v43 = vld [vmem:[#allocation136_spill] sm:$0xff] }
 0x6dd   : > { %v5218_v54 = vmul.f32 %v16446_v40, %v4870_v42  ;;  %v5418_v46 = vadd.f32 %v13680_v23, %v5350_v51  ;;  %v5454_v36 = vmul.f32 %v11985_v22, %v4870_v42  ;;  %v13778_v27 = vadd.f32 %v16767_v57, %v5976_v41  ;;  %v16779_v51 = vld [vmem:[#allocation241_spill] sm:$0xff] }
 0x6de   : > { %v5077_v39 = vadd.f32 %v11992_v1, %v5041_v4  ;;  %v5078_v18 = vadd.f32 %v11992_v1, %v5042_v24  ;;  %v5485_v0 = vadd.f32 %v5453_v25, %v13636_v29  ;;  %v13784_v48 = vadd.f32 %v13610_v11, %v5977_v50  ;;  %v16778_v24 = vld [vmem:[#allocation64_spill] sm:$0xff] }
 0x6df   : > { %v13787_v59 = vadd.f32 %v13642_v52, %v4907_v55  ;;  %v13790_v23 = vadd.f32 %v5217_v13, %v13627_v5  ;;  %v13792_v42 = vadd.f32 %v5218_v54, %v5182_v30  ;;  %v5486_v9 = vadd.f32 %v5454_v36, %v5418_v46  ;;  %v16782_v54 = vld [vmem:[#allocation149_spill] sm:$0xff] }
 0x6e0   : > { %v13795_v16 = vadd.f32 %v13653_v17, %v5351_v2  ;;  %v5547_v12 = vadd.f32 %v5485_v0, %v13656_v61  ;;  %v13800_v11 = vadd.f32 %v4611_v34, %v16770_v20  ;;  %v13805_v5 = vmul.f32 %v16771_v7, %v16749_v37  ;;  %v16773_v17 = vld [vmem:[#allocation35_spill] sm:$0xff]  ;;  %v16774_v61 = vld [vmem:[#allocation56_spill] sm:$0xff] }
 0x6e1   : > { %16768 = vst [vmem:[#allocation60_spill] sm:$0xff] %v13790_v23  ;;  %16769 = vst [vmem:[#allocation66_spill] sm:$0xff] %v13792_v42  ;;  %v5548_v52 = vadd.f32 %v5486_v9, %v13659_v53  ;;  %v13809_v47 = vmul.f32 %v16772_v45, %v16749_v37  ;;  %v13813_v41 = vmul.f32 %v16773_v17, %v16749_v37  ;;  %v16777_v53 = vld [vmem:[#allocation159_spill] sm:$0xff]  ;;  %v16780_v2 = vld [vmem:[#allocation168_spill] sm:$0xff] }
 0x6e2   : > { %v5579_v50 = vmul.f32 %v5547_v12, %v16774_v61  ;;  %v13817_v33 = vadd.f32 %v16775_v14, %v5077_v39  ;;  %v13820_v55 = vadd.f32 %v16776_v43, %v5078_v18  ;;  %v13823_v4 = vadd.f32 %v4617_v62, %v16777_v53  ;;  %v16787_v43 = vld [vmem:[#allocation234_spill] sm:$0xff] }
 0x6e3   : > { %v13826_v30 = vmul.f32 %v5548_v52, %v16778_v24  ;;  %v4712_v13 = vrot.slane %v13800_v11, 7  ;;  %v13831_v25 = vmul.f32 %v16780_v2, %v16779_v51  ;;  %v13835_v46 = vmul.f32 %v16780_v2, %v16782_v54  ;;  %v16788_v51 = vld [vmem:[#allocation33_spill] sm:$0xff] }
 0x6e4   : > { %v5611_v36 = vrot.slane %v5579_v50, 7  ;;  %v5707_v57 = vrot.slane %v5579_v50, 1  ;;  %v4808_v34 = vrot.slane %v13800_v11, 1  ;;  %v4944_v39 = vmul.f32 %v16771_v7, %v13800_v11 }
 0x6e5   : > { %16781 = vst [vmem:[#allocation74_spill] sm:$0xff] %v13831_v25  ;;  %16783 = vst [vmem:[#allocation80_spill] sm:$0xff] %v13835_v46  ;;  %v15279_v18 = vrot.slane %v13826_v30, 7  ;;  %v15281_v0 = vrot.slane %v13826_v30, 1  ;;  %v5152_v9 = vmul.f32 %v16772_v45, %v13800_v11  ;;  %v13846_v62 = vmul.f32 %v16773_v17, %v13800_v11  ;;  %v16792_v46 = vld [vmem:[#allocation253_spill] sm:$0xff] }
 0x6e6   : > { %v16784_v12 = vrot.slane %v13670_v56, 7  ;;  %v16786_v61 = vrot.slane %v13670_v56, 1  ;;  %v5843_v53 = vmul.f32 %v16787_v43, %v5579_v50  ;;  %v16789_v56 = vld [vmem:[#allocation31_spill] sm:$0xff]  ;;  %v6051_v24 = vmul.f32 %v16792_v46, %v5579_v50 }
 0x6e7   : > { %v5631_v11 = vsel %vm1134_vm11, %v5611_v36, %v15279_v18  ;;  %v6052_v42 = vmul.f32 %v16792_v46, %v13826_v30  ;;  %v16793_v18 = vld [vmem:[#allocation148_spill] sm:$0xff]  ;;  %v16797_v46 = vld [vmem:[#allocation135_spill] sm:$0xff] }
 0x6e8   : > { %v5632_v52 = vsel %vm1134_vm11, %v16784_v12, %v5611_v36  ;;  %v5728_v14 = vsel %vm1231_vm12, %v16786_v61, %v5707_v57  ;;  %v5727_v12 = vsel %vm1231_vm12, %v5707_v57, %v15281_v0  ;;  %v5676_v61 = vmul.f32 %v5631_v11, %v16790_v35 }
 0x6e9   : > { %v5675_v54 = vmul.f32 %v5632_v52, %v16788_v51  ;;  %v5770_v29 = vmul.f32 %v5728_v14, %v16789_v56  ;;  %v5771_v2 = vmul.f32 %v5727_v12, %v16791_v6  ;;  %v16794_v51 = vld [vmem:[#allocation161_spill] sm:$0xff]  ;;  %v6287_v35 = vmul.f32 %v16727_v31, %v5579_v50 }
 0x6ea   : > { %v6016_v14 = vmul.f32 %v16794_v51, %v5676_v61  ;;  %v16795_v6 = vrot.slane %v16749_v37, 7  ;;  %v16798_v45 = vrot.slane %v16797_v46, 7 }
 0x6eb   : > { %v5807_v36 = vmul.f32 %v16684_v28, %v5675_v54  ;;  %v5910_v52 = vmul.f32 %v16793_v18, %v5770_v29  ;;  %v6015_v23 = vmul.f32 %v16794_v51, %v5675_v54  ;;  %v6118_v17 = vmul.f32 %v16654_v44, %v5770_v29 }
 0x6ec   : > { %v5911_v57 = vmul.f32 %v16793_v18, %v5771_v2  ;;  %v4722_v11 = vsel %vm1134_vm11, %v4712_v13, %v16795_v6  ;;  %v4723_v18 = vsel %vm1134_vm11, %v16798_v45, %v4712_v13  ;;  %v5808_v51 = vmul.f32 %v16684_v28, %v5676_v61  ;;  %v16799_v45 = vld [vmem:[#allocation68_spill] sm:$0xff] }
 0x6ed   : > { %v5875_v12 = vadd.f32 %v5843_v53, %v5807_v36  ;;  %v5942_v56 = vadd.f32 %v5910_v52, %v13744_v19  ;;  %v13886_v0 = vadd.f32 %v6118_v17, %v13733_v3  ;;  %v13893_v25 = vadd.f32 %v6052_v42, %v6016_v14 }
 0x6ee   : > { %v6119_v50 = vmul.f32 %v16654_v44, %v5771_v2  ;;  %v6251_v7 = vmul.f32 %v12022_v58, %v5675_v54  ;;  %v6083_v53 = vadd.f32 %v6051_v24, %v6015_v23  ;;  %v6252_v19 = vmul.f32 %v12022_v58, %v5676_v61 }
 0x6ef   : > { %16796 = vst [vmem:[#allocation86_spill] sm:$0xff] %v13886_v0  ;;  %v5943_v6 = vadd.f32 %v5911_v57, %v5875_v12  ;;  %v6354_v3 = vmul.f32 %v16488_v15, %v5770_v29  ;;  %v5978_v17 = vadd.f32 %v16520_v60, %v5942_v56  ;;  %v6355_v52 = vmul.f32 %v16488_v15, %v5771_v2  ;;  %v16800_v0 = vld [vmem:[#allocation82_spill] sm:$0xff] }
 0x6f0   : > { %v6319_v36 = vadd.f32 %v6287_v35, %v6251_v7  ;;  %v4776_v13 = vmul.f32 %v4723_v18, %v16799_v45  ;;  %v4777_v54 = vmul.f32 %v4722_v11, %v16800_v0  ;;  %v16801_v23 = vrot.slane %v16749_v37, 1  ;;  %v16803_v2 = vld [vmem:[#allocation70_spill] sm:$0xff]  ;;  %v16804_v35 = vld [vmem:[#allocation65_spill] sm:$0xff] }
 0x6f1   : > { %v5979_v42 = vadd.f32 %v16520_v60, %v5943_v6  ;;  %v6386_v14 = vadd.f32 %v6354_v3, %v13768_v21  ;;  %v16802_v61 = vrot.slane %v16797_v46, 1 }
 0x6f2   : > { %v4818_v24 = vsel %vm1231_vm12, %v4808_v34, %v16801_v23  ;;  %v6387_v29 = vadd.f32 %v6355_v52, %v6319_v36  ;;  %v4908_v57 = vmul.f32 %v11951_v32, %v4776_v13  ;;  %v4909_v12 = vmul.f32 %v11951_v32, %v4777_v54 }
 0x6f3   : > { %v4819_v7 = vsel %vm1231_vm12, %v16802_v61, %v4808_v34  ;;  %v4872_v18 = vmul.f32 %v4818_v24, %v16803_v2  ;;  %v6448_v21 = vadd.f32 %v6386_v14, %v13778_v27  ;;  %v5116_v56 = vmul.f32 %v11960_v26, %v4776_v13  ;;  %v16826_v2 = vld [vmem:[#allocation48_spill] sm:$0xff] }
 0x6f4   : > { %v4871_v11 = vmul.f32 %v4819_v7, %v16804_v35  ;;  %v6449_v6 = vadd.f32 %v6387_v29, %v13784_v48  ;;  %v4976_v3 = vadd.f32 %v4944_v39, %v4908_v57  ;;  %v5117_v34 = vmul.f32 %v11960_v26, %v4777_v54  ;;  %v16827_v35 = vld [vmem:[#allocation47_spill] sm:$0xff] }
 0x6f5   : > { %v5012_v46 = vmul.f32 %v16519_v8, %v4872_v18  ;;  %6480 = vst.msk [vmem:[%s12887_s30 + $0x90] sm:$0xff] %vm357_vm0, %v6448_v21  ;;  %v13925_v36 = vadd.f32 %v13805_v5, %v4909_v12  ;;  %v5184_v52 = vadd.f32 %v5152_v9, %v5116_v56  ;;  %v5220_v39 = vmul.f32 %v16446_v40, %v4872_v18 }
 0x6f6   : > { %v5011_v27 = vmul.f32 %v16519_v8, %v4871_v11  ;;  %v5219_v14 = vmul.f32 %v16446_v40, %v4871_v11  ;;  %6481 = vst.msk [vmem:[%s12887_s30 + $0x98] sm:$0xff] %vm357_vm0, %v6449_v6  ;;  %v13932_v48 = vadd.f32 %v13809_v47, %v5117_v34  ;;  %v5352_v24 = vmul.f32 %v11982_v38, %v4776_v13 }
 0x6f7   : > { %v5044_v23 = vadd.f32 %v5012_v46, %v4976_v3  ;;  %v5353_v61 = vmul.f32 %v11982_v38, %v4777_v54  ;;  %v5455_v9 = vmul.f32 %v11985_v22, %v4871_v11  ;;  %v5844_v7 = vmul.f32 %v16787_v43, %v13826_v30  ;;  %v4615_v11 = vpop.permute.xlu1 %4614 }
 0x6f8   : > { %v5043_v29 = vadd.f32 %v5011_v27, %v13787_v59  ;;  %v13938_v5 = vadd.f32 %v5219_v14, %v13762_v10  ;;  %v13944_v57 = vadd.f32 %v5220_v39, %v5184_v52  ;;  %v5420_v47 = vadd.f32 %v13846_v62, %v5352_v24  ;;  %v16808_v52 = vld [vmem:[#allocation74_spill] sm:$0xff] }
 0x6f9   : > { %v5456_v21 = vmul.f32 %v11985_v22, %v4872_v18  ;;  %v6288_v13 = vmul.f32 %v16727_v31, %v13826_v30  ;;  %v5487_v10 = vadd.f32 %v5455_v9, %v13795_v16  ;;  %v13953_v54 = vadd.f32 %v13731_v49, %v5978_v17  ;;  %v4621_v16 = vpop.permute.xlu0 %4620  ;;  %v16815_v24 = vld [vmem:[#allocation66_spill] sm:$0xff] }
 0x6fa   : > { %16805 = vst [vmem:[#allocation97_spill] sm:$0xff] %v13938_v5  ;;  %16806 = vst [vmem:[#allocation112_spill] sm:$0xff] %v13944_v57  ;;  %v5079_v59 = vadd.f32 %v11992_v1, %v5043_v29  ;;  %v5876_v12 = vadd.f32 %v5844_v7, %v5808_v51  ;;  %v5080_v56 = vadd.f32 %v11992_v1, %v5044_v23  ;;  %v16807_v51 = vld [vmem:[#allocation24_spill] sm:$0xff]  ;;  %v16814_v23 = vld [vmem:[#allocation81_spill] sm:$0xff] }
 0x6fb   : > { %v5488_v6 = vadd.f32 %v5456_v21, %v5420_v47  ;;  %v13957_v3 = vadd.f32 %v13766_v63, %v5979_v42  ;;  %v13959_v62 = vadd.f32 %v6119_v50, %v6083_v53  ;;  %v6320_v18 = vadd.f32 %v6288_v13, %v6252_v19  ;;  %v16809_v50 = vld [vmem:[#allocation73_spill] sm:$0xff]  ;;  %v16810_v19 = vld [vmem:[#allocation220_spill] sm:$0xff]  ;;  %v16818_v7 = vld [vmem:[#allocation243_spill] sm:$0xff] }
 0x6fc   : > { %v13962_v46 = vadd.f32 %v13813_v41, %v5353_v61  ;;  %v5549_v34 = vadd.f32 %v5487_v10, %v13817_v33  ;;  %v13969_v27 = vmul.f32 %v16807_v51, %v13823_v4  ;;  %v13972_v63 = vadd.f32 %v4615_v11, %v16808_v52  ;;  %v16811_v33 = vld [vmem:[#allocation35_spill] sm:$0xff]  ;;  %v16817_v61 = vld [vmem:[#allocation80_spill] sm:$0xff] }
 0x6fd   : > { %v5550_v49 = vadd.f32 %v5488_v6, %v13820_v55  ;;  %v13977_v41 = vmul.f32 %v16810_v19, %v13823_v4  ;;  %v13981_v42 = vmul.f32 %v16811_v33, %v13823_v4  ;;  %v16813_v55 = vld [vmem:[#allocation60_spill] sm:$0xff]  ;;  %v13990_v29 = vadd.f32 %v16815_v24, %v5080_v56 }
 0x6fe   : > { %v5581_v53 = vmul.f32 %v5549_v34, %v16809_v50  ;;  %v13984_v14 = vadd.f32 %v16813_v55, %v5079_v59  ;;  %v13993_v9 = vadd.f32 %v4621_v16, %v16817_v61  ;;  %v16819_v47 = vld [vmem:[#allocation168_spill] sm:$0xff]  ;;  %v4714_v11 = vrot.slane %v13972_v63, 7 }
 0x6ff   : > { %16812 = vst [vmem:[#allocation140_spill] sm:$0xff] %v13981_v42  ;;  %v13987_v39 = vmul.f32 %v5550_v49, %v16814_v23  ;;  %16816 = vst [vmem:[#allocation167_spill] sm:$0xff] %v13990_v29  ;;  %v13997_v21 = vmul.f32 %v16819_v47, %v16818_v7  ;;  %v4810_v59 = vrot.slane %v13972_v63, 1  ;;  %v16821_v49 = vld [vmem:[#allocation253_spill] sm:$0xff]  ;;  %v16822_v16 = vrot.slane %v13826_v30, 7  ;;  %v16824_v47 = vld [vmem:[#allocation46_spill] sm:$0xff] }
 0x700   : > { %v5613_v13 = vrot.slane %v5581_v53, 7  ;;  %v5709_v10 = vrot.slane %v5581_v53, 1  ;;  %v5845_v56 = vmul.f32 %v16787_v43, %v5581_v53  ;;  %v6053_v52 = vmul.f32 %v16821_v49, %v5581_v53 }
 0x701   : > { %16820 = vst [vmem:[#allocation180_spill] sm:$0xff] %v13997_v21  ;;  %v15289_v6 = vrot.slane %v13987_v39, 7  ;;  %v15290_v34 = vrot.slane %v13987_v39, 1  ;;  %v16823_v55 = vrot.slane %v13826_v30, 1  ;;  %v5846_v24 = vmul.f32 %v16787_v43, %v13987_v39  ;;  %v16830_v21 = vld [vmem:[#allocation161_spill] sm:$0xff] }
 0x702   : > { %v5630_v50 = vsel %vm1134_vm11, %v16822_v16, %v5613_v13  ;;  %v6054_v61 = vmul.f32 %v16821_v49, %v13987_v39  ;;  %v16825_v16 = vld [vmem:[#allocation42_spill] sm:$0xff]  ;;  %v6289_v49 = vmul.f32 %v16727_v31, %v5581_v53  ;;  %v16828_v43 = vrot.slane %v16749_v37, 7 }
 0x703   : > { %v5726_v23 = vsel %vm1231_vm12, %v16823_v55, %v5709_v10  ;;  %v5629_v7 = vsel %vm1134_vm11, %v5613_v13, %v15289_v6  ;;  %v5677_v17 = vmul.f32 %v5630_v50, %v16824_v47  ;;  %v5725_v30 = vsel %vm1231_vm12, %v5709_v10, %v15290_v34  ;;  %v16829_v47 = vld [vmem:[#allocation148_spill] sm:$0xff] }
 0x704   : > { %v5772_v55 = vmul.f32 %v5726_v23, %v16825_v16  ;;  %v5678_v0 = vmul.f32 %v5629_v7, %v16826_v2  ;;  %v5773_v45 = vmul.f32 %v5725_v30, %v16827_v35  ;;  %v4721_v13 = vsel %vm1134_vm11, %v16828_v43, %v4714_v11 }
 0x705   : > { %v5809_v50 = vmul.f32 %v16684_v28, %v5677_v17  ;;  %v6017_v29 = vmul.f32 %v16830_v21, %v5677_v17  ;;  %v6253_v42 = vmul.f32 %v12022_v58, %v5677_v17  ;;  %v4946_v17 = vmul.f32 %v16807_v51, %v13972_v63 }
 0x706   : > { %v5912_v6 = vmul.f32 %v16829_v47, %v5772_v55  ;;  %v6120_v10 = vmul.f32 %v16654_v44, %v5772_v55  ;;  %v5810_v23 = vmul.f32 %v16684_v28, %v5678_v0  ;;  %v5913_v2 = vmul.f32 %v16829_v47, %v5773_v45 }
 0x707   : > { %v6018_v35 = vmul.f32 %v16830_v21, %v5678_v0  ;;  %v6121_v53 = vmul.f32 %v16654_v44, %v5773_v45  ;;  %v5877_v7 = vadd.f32 %v5845_v56, %v5809_v50  ;;  %v6085_v16 = vadd.f32 %v6053_v52, %v6017_v29  ;;  %v16832_v29 = vld [vmem:[#allocation198_spill] sm:$0xff]  ;;  %v16833_v52 = vld [vmem:[#allocation95_spill] sm:$0xff] }
 0x708   : > { %v5944_v30 = vadd.f32 %v5912_v6, %v5876_v12  ;;  %v14043_v43 = vadd.f32 %v6120_v10, %v13893_v25  ;;  %v14045_v34 = vadd.f32 %v5846_v24, %v5810_v23  ;;  %v16831_v28 = vrot.slane %v13823_v4, 7 }
 0x709   : > { %v14047_v57 = vadd.f32 %v6054_v61, %v6018_v35  ;;  %v5945_v21 = vadd.f32 %v5913_v2, %v5877_v7  ;;  %v14054_v5 = vadd.f32 %v6121_v53, %v6085_v16  ;;  %v6356_v12 = vmul.f32 %v16488_v15, %v5772_v55  ;;  %v16838_v35 = vld [vmem:[#allocation84_spill] sm:$0xff] }
 0x70a   : > { %v4720_v47 = vsel %vm1134_vm11, %v4714_v11, %v16831_v28  ;;  %v14059_v25 = vmul.f32 %v16488_v15, %v16832_v29  ;;  %v6321_v6 = vadd.f32 %v6289_v49, %v6253_v42  ;;  %v6357_v56 = vmul.f32 %v16488_v15, %v5773_v45  ;;  %v16834_v11 = vld [vmem:[#allocation98_spill] sm:$0xff]  ;;  %v16837_v49 = vld [vmem:[#allocation96_spill] sm:$0xff] }
 0x70b   : > { %v4778_v24 = vmul.f32 %v4721_v13, %v16833_v52  ;;  %v5981_v61 = vadd.f32 %v16520_v60, %v5945_v21  ;;  %v6388_v28 = vadd.f32 %v6356_v12, %v6320_v18  ;;  %v4779_v50 = vmul.f32 %v4720_v47, %v16834_v11 }
 0x70c   : > { %v16835_v10 = vrot.slane %v13823_v4, 1  ;;  %v6389_v23 = vadd.f32 %v6357_v56, %v6321_v6  ;;  %v16836_v42 = vrot.slane %v16749_v37, 1  ;;  %v6290_v18 = vmul.f32 %v16727_v31, %v13987_v39 }
 0x70d   : > { %v4910_v21 = vmul.f32 %v11951_v32, %v4778_v24  ;;  %v6450_v47 = vadd.f32 %v6388_v28, %v13953_v54  ;;  %v14081_v2 = vadd.f32 %v13959_v62, %v5981_v61  ;;  %v5118_v16 = vmul.f32 %v11960_v26, %v4778_v24 }
 0x70e   : > { %v4816_v55 = vsel %vm1231_vm12, %v4810_v59, %v16835_v10  ;;  %v4817_v45 = vsel %vm1231_vm12, %v16836_v42, %v4810_v59  ;;  %v6451_v37 = vadd.f32 %v6389_v23, %v13957_v3  ;;  %v5980_v12 = vadd.f32 %v16520_v60, %v5944_v30 }
 0x70f   : > { %v4874_v13 = vmul.f32 %v4816_v55, %v16837_v49  ;;  %v4873_v53 = vmul.f32 %v4817_v45, %v16838_v35  ;;  %v4978_v7 = vadd.f32 %v4946_v17, %v4910_v21  ;;  %v6254_v29 = vmul.f32 %v12022_v58, %v5678_v0  ;;  %6482 = vst.msk [vmem:[%s12887_s30 + $0xa0] sm:$0xff] %vm357_vm0, %v6450_v47  ;;  %v16866_v35 = vld [vmem:[#allocation57_spill] sm:$0xff] }
 0x710   : > { %v5154_v62 = vmul.f32 %v16810_v19, %v13972_v63  ;;  %6483 = vst.msk [vmem:[%s12887_s30 + $0xa8] sm:$0xff] %vm357_vm0, %v6451_v37  ;;  %v4911_v3 = vmul.f32 %v11951_v32, %v4779_v50  ;;  %v5354_v17 = vmul.f32 %v11982_v38, %v4778_v24  ;;  %v5119_v0 = vmul.f32 %v11960_v26, %v4779_v50 }
 0x711   : > { %v5014_v59 = vmul.f32 %v16519_v8, %v4874_v13  ;;  %v5013_v54 = vmul.f32 %v16519_v8, %v4873_v53  ;;  %v5221_v56 = vmul.f32 %v16446_v40, %v4873_v53  ;;  %v5222_v28 = vmul.f32 %v16446_v40, %v4874_v13 }
 0x712   : > { %v5186_v61 = vadd.f32 %v5154_v62, %v5118_v16  ;;  %v5355_v55 = vmul.f32 %v11982_v38, %v4779_v50  ;;  %v5390_v23 = vmul.f32 %v16811_v33, %v13972_v63  ;;  %v5457_v42 = vmul.f32 %v11985_v22, %v4873_v53  ;;  %v16843_v62 = vld [vmem:[#allocation171_spill] sm:$0xff] }
 0x713   : > { %v5046_v6 = vadd.f32 %v5014_v59, %v4978_v7  ;;  %v5045_v30 = vadd.f32 %v5013_v54, %v13925_v36  ;;  %v14103_v10 = vadd.f32 %v5221_v56, %v13932_v48  ;;  %v5458_v21 = vmul.f32 %v11985_v22, %v4874_v13  ;;  %v16841_v48 = vld [vmem:[#allocation86_spill] sm:$0xff] }
 0x714   : > { %v14111_v36 = vadd.f32 %v5222_v28, %v5186_v61  ;;  %v5422_v47 = vadd.f32 %v5390_v23, %v5354_v17  ;;  %v5489_v37 = vadd.f32 %v5457_v42, %v13962_v46  ;;  %v14116_v7 = vadd.f32 %v16841_v48, %v5980_v12  ;;  %v16853_v61 = vld [vmem:[#allocation167_spill] sm:$0xff]  ;;  %v16854_v23 = vld [vmem:[#allocation89_spill] sm:$0xff]  ;;  %v16858_v48 = vld [vmem:[#allocation180_spill] sm:$0xff] }
 0x715   : > { %16839 = vst [vmem:[#allocation189_spill] sm:$0xff] %v14103_v10  ;;  %v5081_v45 = vadd.f32 %v11992_v1, %v5045_v30  ;;  %v5082_v24 = vadd.f32 %v11992_v1, %v5046_v6  ;;  %v15295_v50 = vrot.slane %v13993_v9, 7  ;;  %v14119_v59 = vadd.f32 %v6290_v18, %v6254_v29  ;;  %v16845_v18 = vld [vmem:[#allocation97_spill] sm:$0xff]  ;;  %v16851_v30 = vld [vmem:[#allocation112_spill] sm:$0xff] }
 0x716   : > { %16840 = vst [vmem:[#allocation210_spill] sm:$0xff] %v14111_v36  ;;  %v14122_v63 = vadd.f32 %v13969_v27, %v4911_v3  ;;  %v14125_v53 = vadd.f32 %v13977_v41, %v5119_v0  ;;  %v15294_v16 = vrot.slane %v13993_v9, 1  ;;  %v5490_v54 = vadd.f32 %v5458_v21, %v5422_v47  ;;  %v4619_v27 = vpop.permute.xlu1 %4618  ;;  %v16847_v3 = vld [vmem:[#allocation140_spill] sm:$0xff]  ;;  %v16849_v41 = vld [vmem:[#allocation87_spill] sm:$0xff]  ;;  %v16856_v21 = vld [vmem:[#allocation110_spill] sm:$0xff] }
 0x717   : > { %v5551_v13 = vadd.f32 %v5489_v37, %v13984_v14  ;;  %v16844_v46 = vrot.slane %v16843_v62, 7  ;;  %v14136_v29 = vadd.f32 %v16845_v18, %v5081_v45  ;;  %v14139_v6 = vadd.f32 %v16847_v3, %v5355_v55  ;;  %v16861_v3 = vld [vmem:[#allocation234_spill] sm:$0xff] }
 0x718   : > { %16842 = vst [vmem:[#allocation145_spill] sm:$0xff] %v14125_v53  ;;  %v16850_v17 = vrot.slane %v16843_v62, 1  ;;  %v14149_v0 = vadd.f32 %v16851_v30, %v5082_v24  ;;  %v5552_v28 = vadd.f32 %v5490_v54, %v16853_v61  ;;  %v14155_v55 = vmul.f32 %v16807_v51, %v13993_v9 }
 0x719   : > { %v4749_v12 = vsel %vm1134_vm11, %v15295_v50, %v16844_v46  ;;  %16846 = vst [vmem:[#allocation85_spill] sm:$0xff] %v14136_v29  ;;  %16848 = vst [vmem:[#allocation94_spill] sm:$0xff] %v14139_v6  ;;  %v5583_v42 = vmul.f32 %v5551_v13, %v16854_v23  ;;  %v14159_v45 = vmul.f32 %v16810_v19, %v13993_v9  ;;  %v16859_v13 = vld [vmem:[#allocation100_spill] sm:$0xff] }
 0x71a   : > { %v4750_v56 = vmul.f32 %v4749_v12, %v16849_v41  ;;  %v4845_v14 = vsel %vm1231_vm12, %v15294_v16, %v16850_v17  ;;  %16852 = vst [vmem:[#allocation106_spill] sm:$0xff] %v14149_v0  ;;  %v14167_v24 = vmul.f32 %v16811_v33, %v13993_v9  ;;  %v14170_v54 = vadd.f32 %v4619_v27, %v16858_v48  ;;  %v16867_v16 = vld [vmem:[#allocation23_spill] sm:$0xff]  ;;  %v16872_v0 = vld [vmem:[#allocation148_spill] sm:$0xff] }
 0x71b   : > { %16855 = vst [vmem:[#allocation122_spill] sm:$0xff] %v14159_v45  ;;  %v14162_v47 = vmul.f32 %v4845_v14, %v16856_v21  ;;  %v14173_v62 = vmul.f32 %v5552_v28, %v16859_v13  ;;  %v5615_v46 = vrot.slane %v5583_v42, 7  ;;  %v5711_v12 = vrot.slane %v5583_v42, 1  ;;  %v16862_v14 = vld [vmem:[#allocation253_spill] sm:$0xff]  ;;  %v16865_v21 = vld [vmem:[#allocation62_spill] sm:$0xff] }
 0x71c   : > { %v4882_v37 = vmul.f32 %v11951_v32, %v4750_v56  ;;  %16857 = vst [vmem:[#allocation146_spill] sm:$0xff] %v14167_v24  ;;  %v5090_v18 = vmul.f32 %v11960_v26, %v4750_v56  ;;  %v5847_v17 = vmul.f32 %v16861_v3, %v5583_v42  ;;  %v6055_v30 = vmul.f32 %v16862_v14, %v5583_v42 }
 0x71d   : > { %16860 = vst [vmem:[#allocation16_spill] sm:$0xff] %v14173_v62  ;;  %v6291_v61 = vmul.f32 %v16727_v31, %v5583_v42  ;;  %v5326_v23 = vmul.f32 %v11982_v38, %v4750_v56  ;;  %v16863_v27 = vrot.slane %v13987_v39, 7  ;;  %v15296_v48 = vrot.slane %v14173_v62, 1 }
 0x71e   : > { %v16864_v13 = vrot.slane %v13987_v39, 1  ;;  %v5848_v56 = vmul.f32 %v16861_v3, %v14173_v62  ;;  %v4950_v11 = vadd.f32 %v16867_v16, %v4882_v37  ;;  %v16868_v52 = vrot.slane %v14173_v62, 7  ;;  %v16871_v37 = vld [vmem:[#allocation205_spill] sm:$0xff] }
 0x71f   : > { %v5628_v28 = vsel %vm1134_vm11, %v16863_v27, %v5615_v46  ;;  %v5723_v39 = vsel %vm1231_vm12, %v5711_v12, %v15296_v48  ;;  %v16874_v48 = vld [vmem:[#allocation139_spill] sm:$0xff] }
 0x720   : > { %v5724_v50 = vsel %vm1231_vm12, %v16864_v13, %v5711_v12  ;;  %v5679_v49 = vmul.f32 %v5628_v28, %v16865_v21  ;;  %v5627_v27 = vsel %vm1134_vm11, %v5615_v46, %v16868_v52  ;;  %v6056_v21 = vmul.f32 %v16862_v14, %v14173_v62  ;;  %v16870_v13 = vld [vmem:[#allocation65_spill] sm:$0xff] }
 0x721   : > { %v5774_v42 = vmul.f32 %v5724_v50, %v16866_v35  ;;  %v6292_v35 = vmul.f32 %v16727_v31, %v14173_v62  ;;  %v16869_v50 = vld [vmem:[#allocation68_spill] sm:$0xff]  ;;  %v5775_v16 = vmul.f32 %v5723_v39, %v16870_v13  ;;  %v16873_v52 = vld [vmem:[#allocation161_spill] sm:$0xff]  ;;  %v5158_v24 = vadd.f32 %v16874_v48, %v5090_v18 }
 0x722   : > { %v5680_v28 = vmul.f32 %v5627_v27, %v16869_v50  ;;  %v5811_v41 = vmul.f32 %v16871_v37, %v5679_v49  ;;  %v6019_v46 = vmul.f32 %v16873_v52, %v5679_v49  ;;  %v6255_v6 = vmul.f32 %v12022_v58, %v5679_v49 }
 0x723   : > { %v5914_v29 = vmul.f32 %v16872_v0, %v5774_v42  ;;  %v6358_v12 = vmul.f32 %v16488_v15, %v5774_v42  ;;  %v5915_v62 = vmul.f32 %v16872_v0, %v5775_v16  ;;  %v6123_v13 = vmul.f32 %v16654_v44, %v5775_v16 }
 0x724   : > { %v5812_v38 = vmul.f32 %v16871_v37, %v5680_v28  ;;  %v5879_v36 = vadd.f32 %v5847_v17, %v5811_v41  ;;  %v6020_v39 = vmul.f32 %v16873_v52, %v5680_v28  ;;  %v6087_v50 = vadd.f32 %v6055_v30, %v6019_v46  ;;  %v16878_v46 = vld [vmem:[#allocation17_spill] sm:$0xff] }
 0x725   : > { %v5946_v27 = vadd.f32 %v5914_v29, %v14045_v34  ;;  %v6256_v10 = vmul.f32 %v12022_v58, %v5680_v28  ;;  %v6323_v18 = vadd.f32 %v6291_v61, %v6255_v6  ;;  %v6359_v34 = vmul.f32 %v16488_v15, %v5775_v16  ;;  %v16876_v28 = vld [vmem:[#allocation34_spill] sm:$0xff]  ;;  %v16881_v16 = vld [vmem:[#allocation188_spill] sm:$0xff] }
 0x726   : > { %v14221_v53 = vadd.f32 %v5848_v56, %v5812_v38  ;;  %v5947_v49 = vadd.f32 %v5915_v62, %v5879_v36  ;;  %v14224_v48 = vadd.f32 %v6056_v21, %v6020_v39  ;;  %v14226_v41 = vadd.f32 %v6123_v13, %v6087_v50  ;;  %v16877_v56 = vld [vmem:[#allocation224_spill] sm:$0xff]  ;;  %v16879_v21 = vld [vmem:[#allocation151_spill] sm:$0xff]  ;;  %v16882_v39 = vld [vmem:[#allocation190_spill] sm:$0xff] }
 0x727   : > { %v5982_v45 = vadd.f32 %v16520_v60, %v5946_v27  ;;  %v14228_v17 = vadd.f32 %v6292_v35, %v6256_v10  ;;  %v6390_v30 = vadd.f32 %v6358_v12, %v14119_v59  ;;  %v5226_v38 = vadd.f32 %v16876_v28, %v5158_v24  ;;  %v16885_v12 = vld [vmem:[#allocation163_spill] sm:$0xff] }
 0x728   : > { %v5983_v29 = vadd.f32 %v16520_v60, %v5947_v49  ;;  %v5394_v36 = vadd.f32 %v16877_v56, %v5326_v23  ;;  %v6391_v62 = vadd.f32 %v6359_v34, %v6323_v18  ;;  %v5018_v6 = vadd.f32 %v16878_v46, %v4950_v11  ;;  %v16886_v49 = vld [vmem:[#allocation63_spill] sm:$0xff]  ;;  %v16890_v56 = vld [vmem:[#allocation102_spill] sm:$0xff] }
 0x729   : > { %16875 = vst [vmem:[#allocation252_spill] sm:$0xff] %v14228_v17  ;;  %v6122_v61 = vmul.f32 %v16654_v44, %v5774_v42  ;;  %v14239_v10 = vadd.f32 %v14059_v25, %v16879_v21  ;;  %v6452_v35 = vadd.f32 %v6390_v30, %v14116_v7  ;;  %v5292_v27 = vadd.f32 %v5226_v38, %v16881_v16  ;;  %v16905_v17 = vld [vmem:[#allocation44_spill] sm:$0xff] }
 0x72a   : > { %v5462_v59 = vadd.f32 %v16882_v39, %v5394_v36  ;;  %v14245_v24 = vadd.f32 %v14043_v43, %v5982_v45  ;;  %v6453_v23 = vadd.f32 %v6391_v62, %v14081_v2  ;;  %v5017_v11 = vmul.f32 %v16519_v8, %v14162_v47  ;;  %v16891_v36 = vld [vmem:[#allocation109_spill] sm:$0xff] }
 0x72b   : > { %16880 = vst [vmem:[#allocation156_spill] sm:$0xff] %v14239_v10  ;;  %v14251_v42 = vadd.f32 %v6122_v61, %v14047_v57  ;;  %v14254_v25 = vadd.f32 %v14054_v5, %v5983_v29  ;;  %6484 = vst.msk [vmem:[%s12887_s30 + $0xb0] sm:$0xff] %vm357_vm0, %v6452_v35  ;;  %v5225_v7 = vmul.f32 %v16446_v40, %v14162_v47  ;;  %v4716_v43 = vrot.slane %v14170_v54, 7 }
 0x72c   : > { %16883 = vst [vmem:[#allocation147_spill] sm:$0xff] %v14245_v24  ;;  %v5528_v50 = vadd.f32 %v16885_v12, %v5292_v27  ;;  %v4812_v2 = vrot.slane %v14170_v54, 1  ;;  %6485 = vst.msk [vmem:[%s12887_s30 + $0xb8] sm:$0xff] %vm357_vm0, %v6453_v23  ;;  %v14267_v57 = vmul.f32 %v11985_v22, %v14162_v47  ;;  %v14270_v5 = vadd.f32 %v11992_v1, %v5018_v6 }
 0x72d   : > { %16884 = vst [vmem:[#allocation207_spill] sm:$0xff] %v14254_v25  ;;  %v14272_v45 = vmul.f32 0.0, %v5462_v59  ;;  %v4948_v13 = vmul.f32 %v16807_v51, %v14170_v54  ;;  %v16887_v34 = vrot.slane %v13993_v9, 7  ;;  %v16888_v30 = vrot.slane %v13823_v4, 7 }
 0x72e   : > { %v14277_v18 = vmul.f32 %v5528_v50, %v16886_v49  ;;  %v16889_v28 = vrot.slane %v13993_v9, 1  ;;  %v16892_v46 = vrot.slane %v13823_v4, 1  ;;  %v5156_v61 = vmul.f32 %v16810_v19, %v14170_v54  ;;  %v16893_v9 = vld [vmem:[#allocation105_spill] sm:$0xff]  ;;  %v16895_v19 = vld [vmem:[#allocation172_spill] sm:$0xff] }
 0x72f   : > { %v4718_v29 = vsel %vm1134_vm11, %v4716_v43, %v16887_v34  ;;  %v4719_v47 = vsel %vm1134_vm11, %v16888_v30, %v4716_v43  ;;  %v5392_v27 = vmul.f32 %v16811_v33, %v14170_v54  ;;  %v16894_v4 = vld [vmem:[#allocation101_spill] sm:$0xff]  ;;  %v16896_v50 = vrot.slane %v16895_v19, 7 }
 0x730   : > { %v4814_v38 = vsel %vm1231_vm12, %v4812_v2, %v16889_v28  ;;  %v4780_v51 = vmul.f32 %v4719_v47, %v16890_v56  ;;  %v4781_v62 = vmul.f32 %v4718_v29, %v16891_v36  ;;  %v4815_v6 = vsel %vm1231_vm12, %v16892_v46, %v4812_v2  ;;  %v16898_v49 = vld [vmem:[#allocation41_spill] sm:$0xff]  ;;  %v16899_v29 = vld [vmem:[#allocation39_spill] sm:$0xff] }
 0x731   : > { %v15302_v21 = vrot.slane %v14277_v18, 7  ;;  %v15301_v35 = vrot.slane %v14277_v18, 1  ;;  %v4876_v16 = vmul.f32 %v4814_v38, %v16893_v9  ;;  %v14306_v39 = vmul.f32 %v16861_v3, %v14277_v18 }
 0x732   : > { %v4875_v59 = vmul.f32 %v4815_v6, %v16894_v4  ;;  %v4912_v23 = vmul.f32 %v11951_v32, %v4780_v51  ;;  %v4913_v12 = vmul.f32 %v11951_v32, %v4781_v62  ;;  %v16897_v2 = vrot.slane %v16895_v19, 1 }
 0x733   : > { %v5650_v43 = vsel %vm1134_vm11, %v15302_v21, %v16896_v50  ;;  %v14325_v54 = vmul.f32 %v16862_v14, %v14277_v18  ;;  %v5120_v32 = vmul.f32 %v11960_v26, %v4780_v51  ;;  %v14333_v38 = vmul.f32 %v16727_v31, %v14277_v18 }
 0x734   : > { %v5746_v33 = vsel %vm1231_vm12, %v15301_v35, %v16897_v2  ;;  %v5657_v34 = vmul.f32 %v5650_v43, %v16898_v49  ;;  %v4980_v47 = vadd.f32 %v4948_v13, %v4912_v23  ;;  %v4981_v28 = vadd.f32 %v14155_v55, %v4913_v12  ;;  %v16901_v49 = vld [vmem:[#allocation183_spill] sm:$0xff] }
 0x735   : > { %v5752_v30 = vmul.f32 %v5746_v33, %v16899_v29  ;;  %16900 = vst [vmem:[#allocation251_spill] sm:$0xff] %v14333_v38  ;;  %v5015_v46 = vmul.f32 %v16519_v8, %v4875_v59  ;;  %v5016_v6 = vmul.f32 %v16519_v8, %v4876_v16  ;;  %v5121_v19 = vmul.f32 %v11960_v26, %v4781_v62  ;;  %v16902_v8 = vld [vmem:[#allocation219_spill] sm:$0xff] }
 0x736   : > { %v5789_v50 = vmul.f32 %v16871_v37, %v5657_v34  ;;  %v5997_v2 = vmul.f32 %v16873_v52, %v5657_v34  ;;  %v6233_v43 = vmul.f32 %v12022_v58, %v5657_v34  ;;  %v5188_v33 = vadd.f32 %v5156_v61, %v5120_v32  ;;  %v16903_v26 = vld [vmem:[#allocation191_spill] sm:$0xff]  ;;  %v16904_v61 = vld [vmem:[#allocation122_spill] sm:$0xff] }
 0x737   : > { %v14342_v13 = vmul.f32 %v16654_v44, %v5752_v30  ;;  %v5047_v55 = vadd.f32 %v5015_v46, %v14122_v63  ;;  %v5048_v23 = vadd.f32 %v5016_v6, %v4980_v47  ;;  %v5223_v12 = vmul.f32 %v16446_v40, %v4875_v59  ;;  %v16906_v47 = vld [vmem:[#allocation181_spill] sm:$0xff]  ;;  %v16907_v6 = vld [vmem:[#allocation174_spill] sm:$0xff] }
 0x738   : > { %v5857_v29 = vadd.f32 %v16901_v49, %v5789_v50  ;;  %v6065_v35 = vadd.f32 %v16902_v8, %v5997_v2  ;;  %v6301_v21 = vadd.f32 %v16903_v26, %v6233_v43  ;;  %v5049_v25 = vadd.f32 %v5017_v11, %v4981_v28  ;;  %v16909_v2 = vld [vmem:[#allocation145_spill] sm:$0xff] }
 0x739   : > { %v5083_v24 = vadd.f32 %v11992_v1, %v5047_v55  ;;  %v5084_v34 = vadd.f32 %v11992_v1, %v5048_v23  ;;  %v5189_v32 = vadd.f32 %v16904_v61, %v5121_v19  ;;  %v5224_v10 = vmul.f32 %v16446_v40, %v4876_v16  ;;  %v16910_v55 = vld [vmem:[#allocation189_spill] sm:$0xff]  ;;  %v16911_v23 = vld [vmem:[#allocation150_spill] sm:$0xff]  ;;  %v16913_v19 = vld [vmem:[#allocation192_spill] sm:$0xff] }
 0x73a   : > { %v6133_v63 = vadd.f32 %v16905_v17, %v6065_v35  ;;  %v5925_v46 = vadd.f32 %v16906_v47, %v5857_v29  ;;  %v14356_v38 = vadd.f32 %v16907_v6, %v6301_v21  ;;  %v5085_v50 = vadd.f32 %v11992_v1, %v5049_v25  ;;  %v16912_v17 = vld [vmem:[#allocation210_spill] sm:$0xff]  ;;  %v16914_v25 = vld [vmem:[#allocation193_spill] sm:$0xff] }
 0x73b   : > { %v5255_v43 = vadd.f32 %v5223_v12, %v16909_v2  ;;  %v5256_v11 = vadd.f32 %v5224_v10, %v5188_v33  ;;  %v5257_v28 = vadd.f32 %v5225_v7, %v5189_v32  ;;  %v5319_v49 = vadd.f32 %v16910_v55, %v5083_v24  ;;  %v16915_v32 = vld [vmem:[#allocation21_spill] sm:$0xff]  ;;  %v16916_v47 = vld [vmem:[#allocation146_spill] sm:$0xff] }
 0x73c   : > { %16908 = vst [vmem:[#allocation27_spill] sm:$0xff] %v14356_v38  ;;  %v6199_v8 = vadd.f32 %v6133_v63, %v16911_v23  ;;  %v14363_v40 = vmul.f32 %v16872_v0, %v5752_v30  ;;  %v5320_v35 = vadd.f32 %v16912_v17, %v5084_v34  ;;  %v5356_v29 = vmul.f32 %v16913_v19, %v4780_v51  ;;  %v16919_v2 = vld [vmem:[#allocation245_spill] sm:$0xff] }
 0x73d   : > { %v5258_v21 = vmul.f32 0.0, %v5256_v11  ;;  %v5259_v26 = vmul.f32 0.0, %v5257_v28  ;;  %v5321_v61 = vadd.f32 %v5255_v43, %v5085_v50  ;;  %v5357_v1 = vmul.f32 %v16913_v19, %v4781_v62  ;;  %v16918_v62 = vld [vmem:[#allocation94_spill] sm:$0xff]  ;;  %v16922_v28 = vld [vmem:[#allocation153_spill] sm:$0xff] }
 0x73e   : > { %v6435_v10 = vadd.f32 %v16914_v25, %v6199_v8  ;;  %v5424_v7 = vadd.f32 %v5392_v27, %v5356_v29  ;;  %v5459_v24 = vmul.f32 %v11985_v22, %v4875_v59  ;;  %v5460_v33 = vmul.f32 %v11985_v22, %v4876_v16  ;;  %v16920_v16 = vld [vmem:[#allocation9_spill] sm:$0xff]  ;;  %v16921_v43 = vld [vmem:[#allocation18_spill] sm:$0xff] }
 0x73f   : > { %v5290_v12 = vadd.f32 %v5258_v21, %v14270_v5  ;;  %v5291_v63 = vadd.f32 %v5259_v26, %v16915_v32  ;;  %v5425_v34 = vadd.f32 %v16916_v47, %v5357_v1  ;;  %v5556_v51 = vadd.f32 %v14272_v45, %v5320_v35  ;;  %v16924_v23 = vld [vmem:[#allocation85_spill] sm:$0xff]  ;;  %v16925_v8 = vld [vmem:[#allocation106_spill] sm:$0xff]  ;;  %v16928_v26 = vld [vmem:[#allocation55_spill] sm:$0xff] }
 0x740   : > { %6467 = vst.msk [vmem:[%s12887_s30 + $0x28] sm:$0xff] %vm357_vm0, %v6435_v10  ;;  %v14378_v6 = vmul.f32 %v16488_v15, %v5752_v30  ;;  %v5491_v50 = vadd.f32 %v5459_v24, %v16918_v62  ;;  %v5492_v27 = vadd.f32 %v5460_v33, %v5424_v7  ;;  %v5557_v59 = vadd.f32 %v16919_v2, %v5321_v61  ;;  %v16926_v35 = vld [vmem:[#allocation166_spill] sm:$0xff]  ;;  %v16927_v21 = vld [vmem:[#allocation49_spill] sm:$0xff] }
 0x741   : > { %v5493_v22 = vadd.f32 %v14267_v57, %v5425_v34  ;;  %v5526_v5 = vadd.f32 %v16920_v16, %v5290_v12  ;;  %v5527_v11 = vadd.f32 %v16921_v43, %v5291_v63  ;;  %v14386_v55 = vmul.f32 %v5556_v51, %v16922_v28  ;;  %v16929_v25 = vld [vmem:[#allocation113_spill] sm:$0xff]  ;;  %v16934_v43 = vld [vmem:[#allocation16_spill] sm:$0xff] }
 0x742   : > { %16917 = vst [vmem:[#allocation225_spill] sm:$0xff] %v14378_v6  ;;  %v14389_v45 = vadd.f32 %v16520_v60, %v5925_v46  ;;  %v5553_v30 = vadd.f32 %v5491_v50, %v16924_v23  ;;  %v5554_v17 = vadd.f32 %v5492_v27, %v16925_v8  ;;  %v14394_v19 = vmul.f32 %v5557_v59, %v16926_v35  ;;  %v16930_v46 = vld [vmem:[#allocation129_spill] sm:$0xff]  ;;  %v16936_v23 = vld [vmem:[#allocation87_spill] sm:$0xff]  ;;  %v16937_v8 = vld [vmem:[#allocation32_spill] sm:$0xff] }
 0x743   : > { %16923 = vst [vmem:[#allocation226_spill] sm:$0xff] %v14386_v55  ;;  %v5555_v29 = vadd.f32 %v5493_v22, %v5319_v49  ;;  %v14397_v57 = vmul.f32 %v5526_v5, %v16927_v21  ;;  %v14400_v61 = vmul.f32 %v5527_v11, %v16928_v26  ;;  %v5620_v1 = vrot.slane %v14386_v55, 7  ;;  %v16931_v12 = vld [vmem:[#allocation141_spill] sm:$0xff]  ;;  %v16938_v21 = vld [vmem:[#allocation38_spill] sm:$0xff] }
 0x744   : > { %v14404_v10 = vmul.f32 %v5553_v30, %v16929_v25  ;;  %v14407_v7 = vmul.f32 %v5554_v17, %v16930_v46  ;;  %v5621_v24 = vrot.slane %v14394_v19, 7  ;;  %v5716_v33 = vrot.slane %v14386_v55, 1  ;;  %v16939_v25 = vld [vmem:[#allocation82_spill] sm:$0xff] }
 0x745   : > { %v14412_v49 = vmul.f32 %v5555_v29, %v16931_v12  ;;  %v5590_v32 = vrot.slane %v14397_v57, 7  ;;  %v5591_v63 = vrot.slane %v14400_v61, 7  ;;  %v5686_v47 = vrot.slane %v14397_v57, 1 }
 0x746   : > { %v5617_v34 = vrot.slane %v14404_v10, 7  ;;  %v5618_v51 = vrot.slane %v14407_v7, 7  ;;  %v5622_v62 = vsel %vm1134_vm11, %v5620_v1, %v5621_v24  ;;  %v5687_v50 = vrot.slane %v14400_v61, 1 }
 0x747   : > { %16932 = vst [vmem:[#allocation230_spill] sm:$0xff] %v14412_v49  ;;  %v5619_v27 = vrot.slane %v14412_v49, 7  ;;  %v16933_v2 = vrot.slane %v14277_v18, 7  ;;  %v5652_v22 = vsel %vm1134_vm11, %v5590_v32, %v5591_v63  ;;  %v5653_v16 = vsel %vm1134_vm11, %v5621_v24, %v5590_v32  ;;  %v16940_v24 = vld [vmem:[#allocation95_spill] sm:$0xff]  ;;  %v16941_v32 = vld [vmem:[#allocation98_spill] sm:$0xff] }
 0x748   : > { %v5625_v5 = vsel %vm1134_vm11, %v5617_v34, %v5618_v51  ;;  %v16935_v11 = vrot.slane %v16934_v43, 7  ;;  %v14438_v30 = vmul.f32 %v5653_v16, %v16936_v23  ;;  %v14441_v17 = vmul.f32 %v5652_v22, %v16937_v8 }
 0x749   : > { %v5651_v59 = vsel %vm1134_vm11, %v5591_v63, %v16933_v2  ;;  %v5623_v35 = vsel %vm1134_vm11, %v5619_v27, %v5620_v1  ;;  %v5624_v29 = vsel %vm1134_vm11, %v5618_v51, %v5619_v27  ;;  %v14454_v12 = vmul.f32 %v5625_v5, %v16940_v24 }
 0x74a   : > { %v5626_v28 = vsel %vm1134_vm11, %v16935_v11, %v5617_v34  ;;  %v14448_v26 = vmul.f32 %v5651_v59, %v16938_v21  ;;  %v14457_v63 = vmul.f32 %v5624_v29, %v16941_v32  ;;  %v14460_v34 = vmul.f32 %v5623_v35, %v16890_v56  ;;  %v16944_v35 = vld [vmem:[#allocation30_spill] sm:$0xff]  ;;  %v16945_v21 = vld [vmem:[#allocation36_spill] sm:$0xff] }
 0x74b   : > { %v14451_v46 = vmul.f32 %v5626_v28, %v16939_v25  ;;  %v14463_v1 = vmul.f32 %v5622_v62, %v16891_v36  ;;  %v5713_v51 = vrot.slane %v14404_v10, 1  ;;  %v5714_v27 = vrot.slane %v14407_v7, 1  ;;  %v16947_v32 = vld [vmem:[#allocation84_spill] sm:$0xff] }
 0x74c   : > { %v5715_v2 = vrot.slane %v14412_v49, 1  ;;  %v5717_v59 = vrot.slane %v14394_v19, 1  ;;  %v16942_v22 = vrot.slane %v14277_v18, 1  ;;  %v5748_v56 = vsel %vm1231_vm12, %v5686_v47, %v5687_v50 }
 0x74d   : > { %v5786_v36 = vmul.f32 %v16871_v37, %v14438_v30  ;;  %v5787_v62 = vmul.f32 %v16871_v37, %v14441_v17  ;;  %v5721_v28 = vsel %vm1231_vm12, %v5713_v51, %v5714_v27  ;;  %v14494_v29 = vmul.f32 %v5748_v56, %v16944_v35 }
 0x74e   : > { %v5747_v16 = vsel %vm1231_vm12, %v5687_v50, %v16942_v22  ;;  %v5718_v5 = vsel %vm1231_vm12, %v5716_v33, %v5717_v59  ;;  %v5719_v11 = vsel %vm1231_vm12, %v5715_v2, %v5716_v33  ;;  %v5720_v18 = vsel %vm1231_vm12, %v5714_v27, %v5715_v2  ;;  %v16946_v33 = vld [vmem:[#allocation70_spill] sm:$0xff]  ;;  %v16948_v27 = vld [vmem:[#allocation96_spill] sm:$0xff] }
 0x74f   : > { %v16943_v50 = vrot.slane %v16934_v43, 1  ;;  %v5749_v8 = vsel %vm1231_vm12, %v5717_v59, %v5686_v47  ;;  %v14497_v25 = vmul.f32 %v5747_v16, %v16945_v21  ;;  %v14503_v2 = vmul.f32 %v5721_v28, %v16947_v32  ;;  %v16952_v47 = vld [vmem:[#allocation110_spill] sm:$0xff] }
 0x750   : > { %v14506_v43 = vmul.f32 %v5720_v18, %v16948_v27  ;;  %v14512_v20 = vmul.f32 %v5718_v5, %v16893_v9  ;;  %v14515_v59 = vmul.f32 %v5749_v8, %v16952_v47  ;;  %v5788_v22 = vmul.f32 %v16871_v37, %v14448_v26 }
 0x751   : > { %v5722_v23 = vsel %vm1231_vm12, %v16943_v50, %v5713_v51  ;;  %v14509_v51 = vmul.f32 %v5719_v11, %v16894_v4  ;;  %v5813_v16 = vmul.f32 %v16871_v37, %v14451_v46  ;;  %v5814_v56 = vmul.f32 %v16871_v37, %v14454_v12 }
 0x752   : > { %v14500_v24 = vmul.f32 %v5722_v23, %v16946_v33  ;;  %16949 = vst [vmem:[#allocation99_spill] sm:$0xff] %v14506_v43  ;;  %16951 = vst [vmem:[#allocation231_spill] sm:$0xff] %v14512_v20  ;;  %v5815_v18 = vmul.f32 %v16871_v37, %v14457_v63  ;;  %v5816_v4 = vmul.f32 %v16871_v37, %v14460_v34 }
 0x753   : > { %16950 = vst [vmem:[#allocation169_spill] sm:$0xff] %v14509_v51  ;;  %v5817_v9 = vmul.f32 %v16871_v37, %v14463_v1  ;;  %v5822_v5 = vmul.f32 %v16861_v3, %v14397_v57  ;;  %v5823_v11 = vmul.f32 %v16861_v3, %v14400_v61  ;;  %v5849_v28 = vmul.f32 %v16861_v3, %v14404_v10 }
 0x754   : > { %v5850_v50 = vmul.f32 %v16861_v3, %v14407_v7  ;;  %v5851_v23 = vmul.f32 %v16861_v3, %v14412_v49  ;;  %v5852_v8 = vmul.f32 %v16861_v3, %v14386_v55  ;;  %v5853_v37 = vmul.f32 %v16861_v3, %v14394_v19 }
 0x755   : > { %v5856_v35 = vadd.f32 %v14306_v39, %v5788_v22  ;;  %v5854_v21 = vadd.f32 %v5822_v5, %v5786_v36  ;;  %v5855_v33 = vadd.f32 %v5823_v11, %v5787_v62  ;;  %v5881_v32 = vadd.f32 %v5849_v28, %v5813_v16 }
 0x756   : > { %v5882_v27 = vadd.f32 %v5850_v50, %v5814_v56  ;;  %v5883_v47 = vadd.f32 %v5851_v23, %v5815_v18  ;;  %v5884_v38 = vadd.f32 %v5852_v8, %v5816_v4  ;;  %v5885_v6 = vadd.f32 %v5853_v37, %v5817_v9 }
 0x757   : > { %v5890_v15 = vmul.f32 %v16872_v0, %v14494_v29  ;;  %v5891_v31 = vmul.f32 %v16872_v0, %v14497_v25  ;;  %v5916_v58 = vmul.f32 %v16872_v0, %v14500_v24  ;;  %v5917_v3 = vmul.f32 %v16872_v0, %v14503_v2 }
 0x758   : > { %v5918_v39 = vmul.f32 %v16872_v0, %v14506_v43  ;;  %v5919_v36 = vmul.f32 %v16872_v0, %v14509_v51  ;;  %v5920_v62 = vmul.f32 %v16872_v0, %v14512_v20  ;;  %v5921_v22 = vmul.f32 %v16872_v0, %v14515_v59 }
 0x759   : > { %v5922_v16 = vadd.f32 %v5890_v15, %v5854_v21  ;;  %v5923_v56 = vadd.f32 %v5891_v31, %v5855_v33  ;;  %v5924_v18 = vadd.f32 %v14363_v40, %v5856_v35  ;;  %v5948_v4 = vadd.f32 %v5916_v58, %v14221_v53 }
 0x75a   : > { %v5949_v9 = vadd.f32 %v5917_v3, %v5881_v32  ;;  %v5950_v5 = vadd.f32 %v5918_v39, %v5882_v27  ;;  %v5951_v11 = vadd.f32 %v5919_v36, %v5883_v47  ;;  %v5952_v28 = vadd.f32 %v5920_v62, %v5884_v38 }
 0x75b   : > { %v5953_v50 = vadd.f32 %v5921_v22, %v5885_v6  ;;  %v5958_v23 = vadd.f32 %v16520_v60, %v5922_v16  ;;  %v14564_v8 = vadd.f32 %v16520_v60, %v5923_v56  ;;  %v5960_v37 = vadd.f32 %v16520_v60, %v5924_v18 }
 0x75c   : > { %v5984_v0 = vadd.f32 %v16520_v60, %v5948_v4  ;;  %v5985_v15 = vadd.f32 %v16520_v60, %v5949_v9  ;;  %v5986_v31 = vadd.f32 %v16520_v60, %v5950_v5  ;;  %v5987_v58 = vadd.f32 %v16520_v60, %v5951_v11 }
 0x75d   : > { %v5988_v53 = vadd.f32 %v16520_v60, %v5952_v28  ;;  %v5989_v38 = vadd.f32 %v16520_v60, %v5953_v50  ;;  %v5994_v40 = vmul.f32 %v16873_v52, %v14438_v30  ;;  %v5995_v6 = vmul.f32 %v16873_v52, %v14441_v17 }
 0x75e   : > { %v5996_v35 = vmul.f32 %v16873_v52, %v14448_v26  ;;  %v6021_v21 = vmul.f32 %v16873_v52, %v14451_v46  ;;  %v6022_v33 = vmul.f32 %v16873_v52, %v14454_v12  ;;  %v6023_v32 = vmul.f32 %v16873_v52, %v14457_v63 }
 0x75f   : > { %v6024_v60 = vmul.f32 %v16873_v52, %v14460_v34  ;;  %v6025_v27 = vmul.f32 %v16873_v52, %v14463_v1  ;;  %v6030_v47 = vmul.f32 %v16862_v14, %v14397_v57  ;;  %v6031_v3 = vmul.f32 %v16862_v14, %v14400_v61 }
 0x760   : > { %v6057_v39 = vmul.f32 %v16862_v14, %v14404_v10  ;;  %v6058_v36 = vmul.f32 %v16862_v14, %v14407_v7  ;;  %v6059_v62 = vmul.f32 %v16862_v14, %v14412_v49  ;;  %v6060_v22 = vmul.f32 %v16862_v14, %v14386_v55 }
 0x761   : > { %v6061_v52 = vmul.f32 %v16862_v14, %v14394_v19  ;;  %v6062_v16 = vadd.f32 %v6030_v47, %v5994_v40  ;;  %v6063_v56 = vadd.f32 %v6031_v3, %v5995_v6  ;;  %v6064_v18 = vadd.f32 %v14325_v54, %v5996_v35 }
 0x762   : > { %v6089_v4 = vadd.f32 %v6057_v39, %v6021_v21  ;;  %v6090_v9 = vadd.f32 %v6058_v36, %v6022_v33  ;;  %v6091_v5 = vadd.f32 %v6059_v62, %v6023_v32  ;;  %v6092_v11 = vadd.f32 %v6060_v22, %v6024_v60 }
 0x763   : > { %v6093_v28 = vadd.f32 %v6061_v52, %v6025_v27  ;;  %v6098_v50 = vmul.f32 %v16654_v44, %v14494_v29  ;;  %v6099_v49 = vmul.f32 %v16654_v44, %v14497_v25  ;;  %v6124_v55 = vmul.f32 %v16654_v44, %v14500_v24  ;;  %v16953_v52 = vld [vmem:[#allocation155_spill] sm:$0xff] }
 0x764   : > { %v6125_v14 = vmul.f32 %v16654_v44, %v14503_v2  ;;  %v6126_v54 = vmul.f32 %v16654_v44, %v14506_v43  ;;  %v6127_v40 = vmul.f32 %v16654_v44, %v14509_v51  ;;  %v6128_v6 = vmul.f32 %v16654_v44, %v14512_v20 }
 0x765   : > { %v6129_v35 = vmul.f32 %v16654_v44, %v14515_v59  ;;  %v6130_v21 = vadd.f32 %v6098_v50, %v6062_v16  ;;  %v6131_v33 = vadd.f32 %v6099_v49, %v6063_v56  ;;  %v6132_v32 = vadd.f32 %v14342_v13, %v6064_v18  ;;  %v16954_v18 = vld [vmem:[#allocation160_spill] sm:$0xff] }
 0x766   : > { %v6156_v60 = vadd.f32 %v6124_v55, %v14224_v48  ;;  %v6157_v27 = vadd.f32 %v6125_v14, %v6089_v4  ;;  %v6158_v47 = vadd.f32 %v6126_v54, %v6090_v9  ;;  %v6159_v3 = vadd.f32 %v6127_v40, %v6091_v5  ;;  %v16960_v54 = vld [vmem:[#allocation99_spill] sm:$0xff] }
 0x767   : > { %v6160_v39 = vadd.f32 %v6128_v6, %v6092_v11  ;;  %v6161_v36 = vadd.f32 %v6129_v35, %v6093_v28  ;;  %v6196_v62 = vadd.f32 %v6130_v21, %v5960_v37  ;;  %v6197_v22 = vadd.f32 %v6131_v33, %v14389_v45  ;;  %v16961_v6 = vld [vmem:[#allocation169_spill] sm:$0xff]  ;;  %v16962_v21 = vld [vmem:[#allocation231_spill] sm:$0xff] }
 0x768   : > { %v6198_v51 = vadd.f32 %v6132_v32, %v16953_v52  ;;  %v6220_v43 = vadd.f32 %v14251_v42, %v5984_v0  ;;  %v6221_v44 = vadd.f32 %v14226_v41, %v5985_v15  ;;  %v6222_v49 = vadd.f32 %v6156_v60, %v5986_v31  ;;  %v16956_v15 = vld [vmem:[#allocation230_spill] sm:$0xff] }
 0x769   : > { %v6162_v20 = vmul.f32 0.0, %v6160_v39  ;;  %v6163_v16 = vmul.f32 0.0, %v6161_v36  ;;  %v6223_v13 = vadd.f32 %v6157_v27, %v5987_v58  ;;  %v6224_v56 = vadd.f32 %v6158_v47, %v5988_v53  ;;  %v16957_v31 = vld [vmem:[#allocation226_spill] sm:$0xff]  ;;  %v16958_v53 = vld [vmem:[#allocation251_spill] sm:$0xff]  ;;  %v16964_v27 = vld [vmem:[#allocation252_spill] sm:$0xff] }
 0x76a   : > { %v14626_v48 = vadd.f32 %v6159_v3, %v5989_v38  ;;  %v6230_v4 = vmul.f32 %v16954_v18, %v14438_v30  ;;  %v6231_v45 = vmul.f32 %v16954_v18, %v14441_v17  ;;  %v6232_v37 = vmul.f32 %v16954_v18, %v14448_v26 }
 0x76b   : > { %v6194_v55 = vadd.f32 %v6162_v20, %v5958_v23  ;;  %v6195_v42 = vadd.f32 %v6163_v16, %v14564_v8  ;;  %v6257_v41 = vmul.f32 %v16954_v18, %v14451_v46  ;;  %v6258_v0 = vmul.f32 %v16954_v18, %v14454_v12  ;;  %v16955_v23 = vld [vmem:[#allocation249_spill] sm:$0xff] }
 0x76c   : > { %v6259_v20 = vmul.f32 %v16954_v18, %v14457_v63  ;;  %v6260_v30 = vmul.f32 %v16954_v18, %v14460_v34  ;;  %v6261_v17 = vmul.f32 %v16954_v18, %v14463_v1  ;;  %v6266_v26 = vmul.f32 %v16955_v23, %v14397_v57 }
 0x76d   : > { %v6267_v8 = vmul.f32 %v16955_v23, %v14400_v61  ;;  %v6293_v46 = vmul.f32 %v16955_v23, %v14404_v10  ;;  %v6294_v12 = vmul.f32 %v16955_v23, %v14407_v7  ;;  %v6295_v63 = vmul.f32 %v16955_v23, %v16956_v15  ;;  %v16959_v7 = vld [vmem:[#allocation22_spill] sm:$0xff] }
 0x76e   : > { %v6296_v34 = vmul.f32 %v16955_v23, %v16957_v31  ;;  %v6297_v1 = vmul.f32 %v16955_v23, %v14394_v19  ;;  %v6298_v58 = vadd.f32 %v6266_v26, %v6230_v4  ;;  %v6300_v38 = vadd.f32 %v16958_v53, %v6232_v37  ;;  %v16965_v4 = vld [vmem:[#allocation27_spill] sm:$0xff]  ;;  %v16966_v37 = vld [vmem:[#allocation156_spill] sm:$0xff] }
 0x76f   : > { %v6299_v57 = vadd.f32 %v6267_v8, %v6231_v45  ;;  %v6325_v61 = vadd.f32 %v6293_v46, %v6257_v41  ;;  %v6326_v9 = vadd.f32 %v6294_v12, %v6258_v0  ;;  %v6327_v5 = vadd.f32 %v6295_v63, %v6259_v20  ;;  %v16967_v0 = vld [vmem:[#allocation93_spill] sm:$0xff]  ;;  %v16969_v23 = vld [vmem:[#allocation147_spill] sm:$0xff] }
 0x770   : > { %v6328_v10 = vadd.f32 %v6296_v34, %v6260_v30  ;;  %v6329_v11 = vadd.f32 %v6297_v1, %v6261_v17  ;;  %v6334_v28 = vmul.f32 %v16959_v7, %v14494_v29  ;;  %v6335_v50 = vmul.f32 %v16959_v7, %v14497_v25  ;;  %v16968_v30 = vld [vmem:[#allocation187_spill] sm:$0xff] }
 0x771   : > { %v6360_v14 = vmul.f32 %v16959_v7, %v14500_v24  ;;  %v6361_v19 = vmul.f32 %v16959_v7, %v14503_v2  ;;  %v6362_v40 = vmul.f32 %v16959_v7, %v16960_v54  ;;  %v6363_v35 = vmul.f32 %v16959_v7, %v16961_v6  ;;  %v16963_v24 = vld [vmem:[#allocation225_spill] sm:$0xff]  ;;  %v16970_v8 = vld [vmem:[#allocation207_spill] sm:$0xff] }
 0x772   : > { %v6364_v29 = vmul.f32 %v16959_v7, %v16962_v21  ;;  %v6365_v25 = vmul.f32 %v16959_v7, %v14515_v59  ;;  %v6366_v33 = vadd.f32 %v6334_v28, %v6298_v58  ;;  %v6367_v32 = vadd.f32 %v6335_v50, %v6299_v57 }
 0x773   : > { %v6368_v60 = vadd.f32 %v16963_v24, %v6300_v38  ;;  %v6392_v2 = vadd.f32 %v6360_v14, %v16964_v27  ;;  %v6393_v47 = vadd.f32 %v6361_v19, %v6325_v61  ;;  %v6394_v3 = vadd.f32 %v6362_v40, %v6326_v9 }
 0x774   : > { %v6395_v39 = vadd.f32 %v6363_v35, %v6327_v5  ;;  %v6396_v36 = vadd.f32 %v6364_v29, %v6328_v10  ;;  %v6397_v52 = vadd.f32 %v6365_v25, %v6329_v11  ;;  %v6428_v16 = vmul.f32 0.0, %v6366_v33 }
 0x775   : > { %v6429_v18 = vmul.f32 0.0, %v6367_v32  ;;  %v6430_v59 = vadd.f32 %v6368_v60, %v6194_v55  ;;  %v6431_v45 = vadd.f32 %v16965_v4, %v6195_v42  ;;  %v6432_v41 = vadd.f32 %v16966_v37, %v6196_v62 }
 0x776   : > { %v6433_v20 = vadd.f32 %v16967_v0, %v6197_v22  ;;  %v6434_v17 = vadd.f32 %v16968_v30, %v6198_v51  ;;  %v6454_v26 = vadd.f32 %v6392_v2, %v16969_v23  ;;  %v6455_v46 = vadd.f32 %v6393_v47, %v16970_v8 }
 0x777   : > { %v6456_v12 = vadd.f32 %v6394_v3, %v6220_v43  ;;  %v6457_v15 = vadd.f32 %v6395_v39, %v6221_v44  ;;  %v6458_v55 = vadd.f32 %v6396_v36, %v6222_v49  ;;  %v6459_v42 = vadd.f32 %v6397_v52, %v6223_v13  ;;  %6462 = vst.msk [vmem:[%s12887_s30] sm:$0xff] %vm357_vm0, %v6430_v59 }
 0x778   : > { %v6460_v62 = vadd.f32 %v6428_v16, %v6224_v56  ;;  %6463 = vst.msk [vmem:[%s12887_s30 + $0x8] sm:$0xff] %vm357_vm0, %v6431_v45  ;;  %6464 = vst.msk [vmem:[%s12887_s30 + $0x10] sm:$0xff] %vm357_vm0, %v6432_v41  ;;  %v6461_v43 = vadd.f32 %v6429_v18, %v14626_v48 }
 0x779   : > { %6465 = vst.msk [vmem:[%s12887_s30 + $0x18] sm:$0xff] %vm357_vm0, %v6433_v20  ;;  %6466 = vst.msk [vmem:[%s12887_s30 + $0x20] sm:$0xff] %vm357_vm0, %v6434_v17 }
 0x77a   : > { %6486 = vst.msk [vmem:[%s12887_s30 + $0xc0] sm:$0xff] %vm357_vm0, %v6454_v26  ;;  %6487 = vst.msk [vmem:[%s12887_s30 + $0xc8] sm:$0xff] %vm357_vm0, %v6455_v46 }
 0x77b   : > { %6488 = vst.msk [vmem:[%s12887_s30 + $0xd0] sm:$0xff] %vm357_vm0, %v6456_v12  ;;  %6489 = vst.msk [vmem:[%s12887_s30 + $0xd8] sm:$0xff] %vm357_vm0, %v6457_v15 }
 0x77c   : > { %6490 = vst.msk [vmem:[%s12887_s30 + $0xe0] sm:$0xff] %vm357_vm0, %v6458_v55  ;;  %6491 = vst.msk [vmem:[%s12887_s30 + $0xe8] sm:$0xff] %vm357_vm0, %v6459_v42 }
 0x77d   : > { %6492 = vst.msk [vmem:[%s12887_s30 + $0xf0] sm:$0xff] %vm357_vm0, %v6460_v62  ;;  %6493 = vst.msk [vmem:[%s12887_s30 + $0xf8] sm:$0xff] %vm357_vm0, %v6461_v43 }
 0x77e   : > { %7107 = shalt.err (!%p7104_p3)
}
 0x77f   : > { %s7108_s20 = scalar_lea.hbm %s14697_s9, 4096  ;;  %s7112_s7 = scalar_lea.hbm %s14766_s4, 8192 }
 0x780   : > { %p7109_p4 = scmp.ne.s32.totalorder %s14697_s9, %s7108_s20  ;;  %p7113_p9 = scmp.lt.s32.totalorder %s14697_s9, %s14766_s4 }
 0x781   : > { %p7114_p10 = scmp.lt.s32.totalorder %s7112_s7, %s7108_s20 }
 0x782   : > { %p7110_p7 = pnand %p7109_p4, %p7226_p5 }
 0x783   : > { %p7115_p11 = por %p7114_p10, %p7113_p9 }
 0x784   : > { %p7111_p8 = pneg %p7110_p7 }
 0x786   : > { %p7116_p12 = pnand %p7115_p11, %p7111_p8 }
 0x788   : > { %7119 = shalt.err (!%p7116_p12)
}
 0x789   : > { %s7161_s29 = smov 128   ;;  %s7162_s30 = smov 8  }
 0x78a   : > { %6756 = dma.vmem_to_hbm [thread:$0]  (%p7226_p5), %s14699_s6, 4096, %s14697_s9, %s14722_s10, %s7161_s29, %s7161_s29, %s7162_s30  }
 0x78b PF: > { %p6762_p13 = scmp.ge.s32.totalorder %s7154_s18, 2  ;;  %s6523_s5 = sand.u32 1, %s7142_s15  }
 0x78c   : > { %s6524_s19 = scalar_lea.sflag [#allocation3], %s6523_s5 }
 0x78d   : > { %p6759_p0 = pnand %p6762_p13, %p7230_p6 }
 0x78f   : > { %p6760_p1 = pneg %p6759_p0 }
 0x791   : > { %7137 = dma.done.wait (%p6760_p1), %s6524_s19, 4096  }
 0x792   : > { %7139 = vsyncadd (%p6760_p1), %s6524_s19, 4294963200  ;;  %p14_p2 = scmp.ge.s32.totalorder %s7213_s21, 4   ;;  %s16971_s15 = smov %s7146_s16 }
 0x793   : > { %s16972_s16 = smov %s7150_s17  ;;  %s16973_s17 = smov %s7224_s24 }
 0x794   : > { %s16974_s18 = smov %s7213_s21  ;;  %16 = sbr.rel (!%p14_p2) target bundleno = 3 (0x3), region = 71 }
 0x799   :  { %6529 = vsyncpa [#allocation3], 1 }
 0x79a   :  { %6531 = vsyncpa [#allocation3 + $0x1], 1 }

</bundles_post_ra>
